<compile_context>
chip_gen: v5e
topology: v5e:2x2
jax: 0.10.0
libtpu: 0.0.40
codegen_flags: <defaults>
</compile_context>

<pallas_src>
import jax
import jax.numpy as jnp
from jax import lax
from jax.experimental import pallas as pl
from jax.experimental.pallas import tpu as pltpu
import numpy as np

# ---------------- problem sizes (small, consistent with the module) ----------------
HID = 32                       # hid_channels
HEADS = 4                      # heads
OUT = 8                        # out_channels
NUM_LAYERS = 2                 # num_layers
NODES_PER_GRAPH = 16
NUM_GRAPHS = 16                # batched so total nodes reach MXU-friendly width
N_NODES = NUM_GRAPHS * NODES_PER_GRAPH          # 256
NODE_BLOCK = 128                                # nodes per grid program (block-diagonal tile)
NBLK = N_NODES // NODE_BLOCK                    # 2 grid programs
GRAPH_BLOCK = NUM_GRAPHS // NBLK                # 8 graphs per program
QKV = HEADS * HID                               # 128 (heads * out_channels)
DCAT = 3 * QKV + HID                            # 416: [Q | K | V | skip] packed width
OUT_PAD = 128                                   # lane-dense padded output width
ATOM_VOCABS = (119, 4, 12)                      # simplified OGB AtomEncoder vocab sizes
BN_EPS = 1e-5
NEG_BIG = -1e9                                  # additive attention mask for non-edges


# ---------------- shared layer-stack math (used by the kernel AND the reference) ----
def _layer_stack(x, mask_bias, w_cat, vec_cat):
    """x:[n,HID] f32, mask_bias:[n,n] f32 (0 / -1e9), w_cat:[L,HID,DCAT] bf16,
    vec_cat:[L,3,DCAT] f32 (row0 = fused bias, row1/2 = folded BN scale/shift)."""
    inv_sqrt_d = 1.0 / float(np.sqrt(HID))
    for l in range(NUM_LAYERS):
        w_l = w_cat[l]                               # [HID, DCAT] bf16
        vec_l = vec_cat[l]                           # [3, DCAT]   f32
        bias = vec_l[0:1, :]                         # [1, DCAT]
        bn_scale = vec_l[1:2, :HID]                  # [1, HID]
        bn_shift = vec_l[2:3, :HID]                  # [1, HID]

        # One fused projection matmul (Q | K | V | skip), bf16 operands, f32 accumulation.
        xb = x.astype(jnp.bfloat16)
        proj = jnp.dot(xb, w_l, preferred_element_type=jnp.float32) + bias   # [n, DCAT]
        q = proj[:, 0:QKV]
        k = proj[:, QKV:2 * QKV]
        v = proj[:, 2 * QKV:3 * QKV]
        skip = proj[:, 3 * QKV:]                     # [n, HID] (includes lin_skip bias)

        acc = jnp.zeros((x.shape[0], HID), jnp.float32)
        for h in range(HEADS):
            sl = slice(h * HID, (h + 1) * HID)
            qh = q[:, sl].astype(jnp.bfloat16)
            kh = k[:, sl].astype(jnp.bfloat16)
            vh = v[:, sl].astype(jnp.bfloat16)
            # scores[i, j] = (q_i . k_j) / sqrt(d), masked to in-neighbors via additive -1e9
            scores = lax.dot_general(qh, kh, (((1,), (1,)), ((), ())),
                                     preferred_element_type=jnp.float32)
            scores = scores * inv_sqrt_d + mask_bias
            m = jnp.max(scores, axis=-1, keepdims=True)
            probs = jnp.exp(scores - m)
            alpha = (probs / jnp.sum(probs, axis=-1, keepdims=True)).astype(jnp.bfloat16)
            acc = acc + jnp.dot(alpha, vh, preferred_element_type=jnp.float32)

        conv = acc * (1.0 / HEADS) + skip            # mean over heads (concat=False) + root
        bn = conv * bn_scale + bn_shift              # BatchNorm (eval, running stats, pre-folded)
        x = x + jnp.maximum(bn, 0.0)                 # ReLU + residual; dropout = identity in eval
    return x


# ---------------- Pallas kernel: layer stack + pool + MLP for one node block --------
def transformer_net_kernel(x_ref, maskb_ref, pool_ref, wcat_ref, vec_ref, mlp_ref, out_ref):
    x = _layer_stack(x_ref[...], maskb_ref[...], wcat_ref[...], vec_ref[...])   # [NB, HID]
    pooled = jnp.dot(pool_ref[...], x, preferred_element_type=jnp.float32)       # [GB, HID]
    mlp = mlp_ref[...]                                                           # [HID+1, OUT_PAD]
    out_ref[...] = (jnp.dot(pooled, mlp[:HID, :], preferred_element_type=jnp.float32)
                    + mlp[HID:, :])                                              # [GB, OUT_PAD]


def transformer_net_forward(x_emb, mask_blocks, pool_blocks, packed):
    out_pad = pl.pallas_call(
        transformer_net_kernel,
        out_shape=jax.ShapeDtypeStruct((NUM_GRAPHS, OUT_PAD), jnp.float32),
        grid=(NBLK,),
        in_specs=[
            pl.BlockSpec((NODE_BLOCK, HID), lambda b: (b, 0)),                       # x_emb
            pl.BlockSpec((pl.Squeezed(), NODE_BLOCK, NODE_BLOCK), lambda b: (b, 0, 0)),  # mask
            pl.BlockSpec((pl.Squeezed(), GRAPH_BLOCK, NODE_BLOCK), lambda b: (b, 0, 0)),  # pool
            pl.BlockSpec((NUM_LAYERS, HID, DCAT), lambda b: (0, 0, 0)),              # w_cat
            pl.BlockSpec((NUM_LAYERS, 3, DCAT), lambda b: (0, 0, 0)),                # vec_cat
            pl.BlockSpec((HID + 1, OUT_PAD), lambda b: (0, 0)),                      # mlp_cat
        ],
        out_specs=pl.BlockSpec((GRAPH_BLOCK, OUT_PAD), lambda b: (b, 0)),
        compiler_params=pltpu.CompilerParams(
            dimension_semantics=("parallel",),       # independent graph blocks (v7x megacore)
            vmem_limit_bytes=32 << 20,
        ),
    )(x_emb, mask_blocks, pool_blocks, packed["w_cat"], packed["vec_cat"], packed["mlp_cat"])
    return out_pad[:, :OUT]


# ---------------- plain-JAX glue: embeddings, adjacency, pooling, packing -----------
def atom_encoder(x_int, emb_tables):
    out = jnp.zeros((x_int.shape[0], HID), jnp.float32)
    for f, table in enumerate(emb_tables):
        out = out + jnp.take(table, x_int[:, f], axis=0)
    return out


def build_attention_mask(edge_index, num_nodes):
    # Additive mask: 0 for in-neighbor (edge j->i) or self-loop, -1e9 otherwise.
    src, dst = edge_index[0], edge_index[1]
    adj = jnp.zeros((num_nodes, num_nodes), jnp.float32).at[dst, src].set(1.0)
    adj = adj + jnp.eye(num_nodes, dtype=jnp.float32)   # honors add_self_loops=True intent
    return jnp.where(adj > 0, 0.0, NEG_BIG).astype(jnp.float32)


def mean_pool_matrix(batch, num_graphs):
    onehot = (batch[None, :] == jnp.arange(num_graphs)[:, None]).astype(jnp.float32)  # [G, N]
    counts = jnp.maximum(jnp.sum(onehot, axis=1, keepdims=True), 1.0)
    return onehot / counts


def pack_params(p):
    # Fuse all per-layer projections into one weight slab / one bias row; pre-fold BatchNorm.
    w_cat = jnp.concatenate([p["wq"], p["wk"], p["wv"], p["wskip"]], axis=2).astype(jnp.bfloat16)
    bias_cat = jnp.concatenate([p["bq"], p["bk"], p["bv"], p["bskip"]], axis=1)      # [L, DCAT]
    bn_scale = p["bn_gamma"] * lax.rsqrt(p["bn_var"] + BN_EPS)                       # [L, HID]
    bn_shift = p["bn_beta"] - p["bn_mean"] * bn_scale
    pad = lambda a: jnp.pad(a, ((0, 0), (0, DCAT - HID)))
    vec_cat = jnp.stack([bias_cat, pad(bn_scale), pad(bn_shift)], axis=1)            # [L, 3, DCAT]
    w_mlp_pad = jnp.pad(p["w_mlp"], ((0, 0), (0, OUT_PAD - OUT)))
    b_mlp_pad = jnp.pad(p["b_mlp"][None, :], ((0, 0), (0, OUT_PAD - OUT)))
    mlp_cat = jnp.concatenate([w_mlp_pad, b_mlp_pad], axis=0)                        # [HID+1, 128]
    return {"w_cat": w_cat, "vec_cat": vec_cat, "mlp_cat": mlp_cat}


def reference_forward(x_emb, mask_bias_full, pool_full, packed):
    # Dense JAX reference using identical (bf16-operand / f32-accumulate) math on the full graph.
    x = _layer_stack(x_emb, mask_bias_full, packed["w_cat"], packed["vec_cat"])
    pooled = jnp.dot(pool_full, x, preferred_element_type=jnp.float32)
    mlp = packed["mlp_cat"]
    out = jnp.dot(pooled, mlp[:HID, :], preferred_element_type=jnp.float32) + mlp[HID:, :]
    return out[:, :OUT]


def init_params(key):
    ks = jax.random.split(key, 15)
    nrm = lambda k, shp: 0.1 * jax.random.normal(k, shp, jnp.float32)
    params = {
        "wq": nrm(ks[0], (NUM_LAYERS, HID, QKV)),
        "wk": nrm(ks[1], (NUM_LAYERS, HID, QKV)),
        "wv": nrm(ks[2], (NUM_LAYERS, HID, QKV)),
        "wskip": nrm(ks[3], (NUM_LAYERS, HID, HID)),
        "bq": nrm(ks[4], (NUM_LAYERS, QKV)),
        "bk": nrm(ks[5], (NUM_LAYERS, QKV)),
        "bv": nrm(ks[6], (NUM_LAYERS, QKV)),
        "bskip": nrm(ks[7], (NUM_LAYERS, HID)),
        "bn_gamma": 1.0 + nrm(ks[8], (NUM_LAYERS, HID)),
        "bn_beta": nrm(ks[9], (NUM_LAYERS, HID)),
        "bn_mean": nrm(ks[10], (NUM_LAYERS, HID)),
        "bn_var": jnp.abs(1.0 + nrm(ks[11], (NUM_LAYERS, HID))),
        "w_mlp": nrm(ks[12], (HID, OUT)),
        "b_mlp": nrm(ks[13], (OUT,)),
    }
    emb_keys = jax.random.split(ks[14], len(ATOM_VOCABS))
    emb_tables = [nrm(k, (v, HID)) for k, v in zip(emb_keys, ATOM_VOCABS)]
    return params, emb_tables


if __name__ == "__main__":
    key = jax.random.PRNGKey(0)
    k_params, k_feat = jax.random.split(key)
    params, emb_tables = init_params(k_params)
    packed = pack_params(params)

    # Integer atom features (AtomEncoder input), deterministic.
    feat_keys = jax.random.split(k_feat, len(ATOM_VOCABS))
    x_int = jnp.stack(
        [jax.random.randint(fk, (N_NODES,), 0, v) for fk, v in zip(feat_keys, ATOM_VOCABS)],
        axis=1).astype(jnp.int32)                                      # [N, 3]

    # 16 ring graphs of 16 nodes each (undirected edges); graphs stay within a node block.
    src_list, dst_list = [], []
    for g in range(NUM_GRAPHS):
        base = g * NODES_PER_GRAPH
        for i in range(NODES_PER_GRAPH):
            a, b = base + i, base + (i + 1) % NODES_PER_GRAPH
            src_list += [a, b]
            dst_list += [b, a]
    edge_index = jnp.array([src_list, dst_list], dtype=jnp.int32)      # [2, E]
    batch = jnp.repeat(jnp.arange(NUM_GRAPHS, dtype=jnp.int32), NODES_PER_GRAPH)

    # Glue: embedding sum, attention mask, pooling matrix; extract block-diagonal tiles.
    x_emb = atom_encoder(x_int, emb_tables)                            # [N, HID]
    mask_full = build_attention_mask(edge_index, N_NODES)              # [N, N]
    pool_full = mean_pool_matrix(batch, NUM_GRAPHS)                    # [G, N]
    mask_blocks = jnp.stack(
        [mask_full[b * NODE_BLOCK:(b + 1) * NODE_BLOCK,
                   b * NODE_BLOCK:(b + 1) * NODE_BLOCK] for b in range(NBLK)])       # [NBLK,128,128]
    pool_blocks = jnp.stack(
        [pool_full[b * GRAPH_BLOCK:(b + 1) * GRAPH_BLOCK,
                   b * NODE_BLOCK:(b + 1) * NODE_BLOCK] for b in range(NBLK)])       # [NBLK,8,128]

    # TODO(synk): F.dropout and BatchNorm batch-statistic updates are training-mode stochastic
    # ops; this kernel implements eval mode (dropout=identity, BN uses running stats).

    out = transformer_net_forward(x_emb, mask_blocks, pool_blocks, packed)
    out = jax.block_until_ready(out)

    ref = reference_forward(x_emb, mask_full, pool_full, packed)
    np.testing.assert_allclose(np.asarray(out), np.asarray(ref), rtol=1e-3, atol=1e-3)

    print("KERNEL_OK")
</pallas_src>

<mosaic_0001>
module attributes {stable_mosaic.version = 11 : i64} {
  func.func @transformer_net_kernel(%arg0: i32, %arg1: memref<128x32xf32, #tpu.memory_space<vmem>>, %arg2: memref<1x128x128xf32, #tpu.memory_space<vmem>>, %arg3: memref<1x8x128xf32, #tpu.memory_space<vmem>>, %arg4: memref<2x32x416xbf16, #tpu.memory_space<vmem>>, %arg5: memref<2x3x416xf32, #tpu.memory_space<vmem>>, %arg6: memref<33x128xf32, #tpu.memory_space<vmem>>, %arg7: memref<8x128xf32, #tpu.memory_space<vmem>>) attributes {dimension_semantics = [#tpu.dimension_semantics<parallel>], iteration_bounds = array<i64: 2>, scalar_prefetch = 0 : i64, scratch_operands = 0 : i64, tpu.core_type = #tpu.core_type<tc>, window_params = [{transform_indices = @transform_0, window_bounds = array<i64: 128, 32>}, {transform_indices = @transform_1, window_bounds = array<i64: 1, 128, 128>}, {transform_indices = @transform_2, window_bounds = array<i64: 1, 8, 128>}, {pipeline_mode = #tpu.pipeline_mode<synchronous>, transform_indices = @transform_3, window_bounds = array<i64: 2, 32, 416>}, {pipeline_mode = #tpu.pipeline_mode<synchronous>, transform_indices = @transform_4, window_bounds = array<i64: 2, 3, 416>}, {pipeline_mode = #tpu.pipeline_mode<synchronous>, transform_indices = @transform_5, window_bounds = array<i64: 33, 128>}, {transform_indices = @transform_6, window_bounds = array<i64: 8, 128>}]} {
    %c0 = arith.constant 0 : index
    %c0_0 = arith.constant 0 : index
    %0 = vector.load %arg1[%c0, %c0_0] : memref<128x32xf32, #tpu.memory_space<vmem>>, vector<128x32xf32>
    %c0_1 = arith.constant 0 : index
    %c0_2 = arith.constant 0 : index
    %c0_3 = arith.constant 0 : index
    %1 = vector.load %arg2[%c0_1, %c0_2, %c0_3] : memref<1x128x128xf32, #tpu.memory_space<vmem>>, vector<1x128x128xf32>
    %2 = vector.shape_cast %1 : vector<1x128x128xf32> to vector<128x128xf32>
    %c0_4 = arith.constant 0 : index
    %c0_5 = arith.constant 0 : index
    %c0_6 = arith.constant 0 : index
    %3 = vector.load %arg4[%c0_4, %c0_5, %c0_6] : memref<2x32x416xbf16, #tpu.memory_space<vmem>>, vector<2x32x416xbf16>
    %c0_7 = arith.constant 0 : index
    %c0_8 = arith.constant 0 : index
    %c0_9 = arith.constant 0 : index
    %4 = vector.load %arg5[%c0_7, %c0_8, %c0_9] : memref<2x3x416xf32, #tpu.memory_space<vmem>>, vector<2x3x416xf32>
    %5 = vector.extract_strided_slice %3 {offsets = [0, 0, 0], sizes = [1, 32, 416], strides = [1, 1, 1]} : vector<2x32x416xbf16> to vector<1x32x416xbf16>
    %6 = vector.shape_cast %5 : vector<1x32x416xbf16> to vector<32x416xbf16>
    %7 = vector.extract_strided_slice %4 {offsets = [0, 0, 0], sizes = [1, 3, 416], strides = [1, 1, 1]} : vector<2x3x416xf32> to vector<1x3x416xf32>
    %8 = vector.shape_cast %7 : vector<1x3x416xf32> to vector<3x416xf32>
    %9 = vector.extract_strided_slice %8 {offsets = [0, 0], sizes = [1, 416], strides = [1, 1]} : vector<3x416xf32> to vector<1x416xf32>
    %10 = vector.extract_strided_slice %8 {offsets = [1, 0], sizes = [1, 32], strides = [1, 1]} : vector<3x416xf32> to vector<1x32xf32>
    %11 = vector.extract_strided_slice %8 {offsets = [2, 0], sizes = [1, 32], strides = [1, 1]} : vector<3x416xf32> to vector<1x32xf32>
    %12 = arith.truncf %0 : vector<128x32xf32> to vector<128x32xbf16>
    %cst = arith.constant dense<0.000000e+00> : vector<128x416xf32>
    %13 = tpu.matmul %12, %6, %cst {dimension_numbers = #tpu.dot_dimension_numbers<[1], [0], [0], [1], [0, 0, 1, 1], [], []>} : vector<128x32xbf16>, vector<32x416xbf16>, vector<128x416xf32> -> vector<128x416xf32>
    %14 = vector.broadcast %9 : vector<1x416xf32> to vector<128x416xf32>
    %15 = arith.addf %13, %14 : vector<128x416xf32>
    %16 = vector.extract_strided_slice %15 {offsets = [0, 0], sizes = [128, 128], strides = [1, 1]} : vector<128x416xf32> to vector<128x128xf32>
    %17 = vector.extract_strided_slice %15 {offsets = [0, 128], sizes = [128, 128], strides = [1, 1]} : vector<128x416xf32> to vector<128x128xf32>
    %18 = vector.extract_strided_slice %15 {offsets = [0, 256], sizes = [128, 128], strides = [1, 1]} : vector<128x416xf32> to vector<128x128xf32>
    %19 = vector.extract_strided_slice %15 {offsets = [0, 384], sizes = [128, 32], strides = [1, 1]} : vector<128x416xf32> to vector<128x32xf32>
    %cst_10 = arith.constant 0.000000e+00 : f32
    %20 = vector.broadcast %cst_10 : f32 to vector<128x32xf32>
    %21 = vector.extract_strided_slice %16 {offsets = [0, 0], sizes = [128, 32], strides = [1, 1]} : vector<128x128xf32> to vector<128x32xf32>
    %22 = arith.truncf %21 : vector<128x32xf32> to vector<128x32xbf16>
    %23 = vector.extract_strided_slice %17 {offsets = [0, 0], sizes = [128, 32], strides = [1, 1]} : vector<128x128xf32> to vector<128x32xf32>
    %24 = arith.truncf %23 : vector<128x32xf32> to vector<128x32xbf16>
    %25 = vector.extract_strided_slice %18 {offsets = [0, 0], sizes = [128, 32], strides = [1, 1]} : vector<128x128xf32> to vector<128x32xf32>
    %26 = arith.truncf %25 : vector<128x32xf32> to vector<128x32xbf16>
    %cst_11 = arith.constant dense<0.000000e+00> : vector<128x128xf32>
    %27 = tpu.matmul %22, %24, %cst_11 {dimension_numbers = #tpu.dot_dimension_numbers<[1], [1], [0], [0], [0, 0, 1, 0], [], []>} : vector<128x32xbf16>, vector<128x32xbf16>, vector<128x128xf32> -> vector<128x128xf32>
    %cst_12 = arith.constant 0.176776692 : f32
    %28 = vector.broadcast %cst_12 : f32 to vector<128x128xf32>
    %29 = arith.mulf %27, %28 : vector<128x128xf32>
    %30 = arith.addf %29, %2 : vector<128x128xf32>
    %cst_13 = arith.constant dense<0xFF800000> : vector<128xf32>
    %31 = vector.multi_reduction <maximumf>, %30, %cst_13 [1] : vector<128x128xf32> to vector<128xf32>
    %32 = vector.shape_cast %31 : vector<128xf32> to vector<128x1xf32>
    %33 = vector.broadcast %32 : vector<128x1xf32> to vector<128x128xf32>
    %34 = arith.subf %30, %33 : vector<128x128xf32>
    %35 = math.exp %34 : vector<128x128xf32>
    %cst_14 = arith.constant dense<0.000000e+00> : vector<128xf32>
    %36 = vector.multi_reduction <add>, %35, %cst_14 [1] : vector<128x128xf32> to vector<128xf32>
    %37 = vector.shape_cast %36 : vector<128xf32> to vector<128x1xf32>
    %38 = vector.broadcast %37 : vector<128x1xf32> to vector<128x128xf32>
    %39 = arith.divf %35, %38 : vector<128x128xf32>
    %40 = arith.truncf %39 : vector<128x128xf32> to vector<128x128xbf16>
    %cst_15 = arith.constant dense<0.000000e+00> : vector<128x32xf32>
    %41 = tpu.matmul %40, %26, %cst_15 {dimension_numbers = #tpu.dot_dimension_numbers<[1], [0], [0], [1], [0, 0, 1, 1], [], []>} : vector<128x128xbf16>, vector<128x32xbf16>, vector<128x32xf32> -> vector<128x32xf32>
    %42 = arith.addf %20, %41 : vector<128x32xf32>
    %43 = vector.extract_strided_slice %16 {offsets = [0, 32], sizes = [128, 32], strides = [1, 1]} : vector<128x128xf32> to vector<128x32xf32>
    %44 = arith.truncf %43 : vector<128x32xf32> to vector<128x32xbf16>
    %45 = vector.extract_strided_slice %17 {offsets = [0, 32], sizes = [128, 32], strides = [1, 1]} : vector<128x128xf32> to vector<128x32xf32>
    %46 = arith.truncf %45 : vector<128x32xf32> to vector<128x32xbf16>
    %47 = vector.extract_strided_slice %18 {offsets = [0, 32], sizes = [128, 32], strides = [1, 1]} : vector<128x128xf32> to vector<128x32xf32>
    %48 = arith.truncf %47 : vector<128x32xf32> to vector<128x32xbf16>
    %cst_16 = arith.constant dense<0.000000e+00> : vector<128x128xf32>
    %49 = tpu.matmul %44, %46, %cst_16 {dimension_numbers = #tpu.dot_dimension_numbers<[1], [1], [0], [0], [0, 0, 1, 0], [], []>} : vector<128x32xbf16>, vector<128x32xbf16>, vector<128x128xf32> -> vector<128x128xf32>
    %cst_17 = arith.constant 0.176776692 : f32
    %50 = vector.broadcast %cst_17 : f32 to vector<128x128xf32>
    %51 = arith.mulf %49, %50 : vector<128x128xf32>
    %52 = arith.addf %51, %2 : vector<128x128xf32>
    %cst_18 = arith.constant dense<0xFF800000> : vector<128xf32>
    %53 = vector.multi_reduction <maximumf>, %52, %cst_18 [1] : vector<128x128xf32> to vector<128xf32>
    %54 = vector.shape_cast %53 : vector<128xf32> to vector<128x1xf32>
    %55 = vector.broadcast %54 : vector<128x1xf32> to vector<128x128xf32>
    %56 = arith.subf %52, %55 : vector<128x128xf32>
    %57 = math.exp %56 : vector<128x128xf32>
    %cst_19 = arith.constant dense<0.000000e+00> : vector<128xf32>
    %58 = vector.multi_reduction <add>, %57, %cst_19 [1] : vector<128x128xf32> to vector<128xf32>
    %59 = vector.shape_cast %58 : vector<128xf32> to vector<128x1xf32>
    %60 = vector.broadcast %59 : vector<128x1xf32> to vector<128x128xf32>
    %61 = arith.divf %57, %60 : vector<128x128xf32>
    %62 = arith.truncf %61 : vector<128x128xf32> to vector<128x128xbf16>
    %cst_20 = arith.constant dense<0.000000e+00> : vector<128x32xf32>
    %63 = tpu.matmul %62, %48, %cst_20 {dimension_numbers = #tpu.dot_dimension_numbers<[1], [0], [0], [1], [0, 0, 1, 1], [], []>} : vector<128x128xbf16>, vector<128x32xbf16>, vector<128x32xf32> -> vector<128x32xf32>
    %64 = arith.addf %42, %63 : vector<128x32xf32>
    %65 = vector.extract_strided_slice %16 {offsets = [0, 64], sizes = [128, 32], strides = [1, 1]} : vector<128x128xf32> to vector<128x32xf32>
    %66 = arith.truncf %65 : vector<128x32xf32> to vector<128x32xbf16>
    %67 = vector.extract_strided_slice %17 {offsets = [0, 64], sizes = [128, 32], strides = [1, 1]} : vector<128x128xf32> to vector<128x32xf32>
    %68 = arith.truncf %67 : vector<128x32xf32> to vector<128x32xbf16>
    %69 = vector.extract_strided_slice %18 {offsets = [0, 64], sizes = [128, 32], strides = [1, 1]} : vector<128x128xf32> to vector<128x32xf32>
    %70 = arith.truncf %69 : vector<128x32xf32> to vector<128x32xbf16>
    %cst_21 = arith.constant dense<0.000000e+00> : vector<128x128xf32>
    %71 = tpu.matmul %66, %68, %cst_21 {dimension_numbers = #tpu.dot_dimension_numbers<[1], [1], [0], [0], [0, 0, 1, 0], [], []>} : vector<128x32xbf16>, vector<128x32xbf16>, vector<128x128xf32> -> vector<128x128xf32>
    %cst_22 = arith.constant 0.176776692 : f32
    %72 = vector.broadcast %cst_22 : f32 to vector<128x128xf32>
    %73 = arith.mulf %71, %72 : vector<128x128xf32>
    %74 = arith.addf %73, %2 : vector<128x128xf32>
    %cst_23 = arith.constant dense<0xFF800000> : vector<128xf32>
    %75 = vector.multi_reduction <maximumf>, %74, %cst_23 [1] : vector<128x128xf32> to vector<128xf32>
    %76 = vector.shape_cast %75 : vector<128xf32> to vector<128x1xf32>
    %77 = vector.broadcast %76 : vector<128x1xf32> to vector<128x128xf32>
    %78 = arith.subf %74, %77 : vector<128x128xf32>
    %79 = math.exp %78 : vector<128x128xf32>
    %cst_24 = arith.constant dense<0.000000e+00> : vector<128xf32>
    %80 = vector.multi_reduction <add>, %79, %cst_24 [1] : vector<128x128xf32> to vector<128xf32>
    %81 = vector.shape_cast %80 : vector<128xf32> to vector<128x1xf32>
    %82 = vector.broadcast %81 : vector<128x1xf32> to vector<128x128xf32>
    %83 = arith.divf %79, %82 : vector<128x128xf32>
    %84 = arith.truncf %83 : vector<128x128xf32> to vector<128x128xbf16>
    %cst_25 = arith.constant dense<0.000000e+00> : vector<128x32xf32>
    %85 = tpu.matmul %84, %70, %cst_25 {dimension_numbers = #tpu.dot_dimension_numbers<[1], [0], [0], [1], [0, 0, 1, 1], [], []>} : vector<128x128xbf16>, vector<128x32xbf16>, vector<128x32xf32> -> vector<128x32xf32>
    %86 = arith.addf %64, %85 : vector<128x32xf32>
    %87 = vector.extract_strided_slice %16 {offsets = [0, 96], sizes = [128, 32], strides = [1, 1]} : vector<128x128xf32> to vector<128x32xf32>
    %88 = arith.truncf %87 : vector<128x32xf32> to vector<128x32xbf16>
    %89 = vector.extract_strided_slice %17 {offsets = [0, 96], sizes = [128, 32], strides = [1, 1]} : vector<128x128xf32> to vector<128x32xf32>
    %90 = arith.truncf %89 : vector<128x32xf32> to vector<128x32xbf16>
    %91 = vector.extract_strided_slice %18 {offsets = [0, 96], sizes = [128, 32], strides = [1, 1]} : vector<128x128xf32> to vector<128x32xf32>
    %92 = arith.truncf %91 : vector<128x32xf32> to vector<128x32xbf16>
    %cst_26 = arith.constant dense<0.000000e+00> : vector<128x128xf32>
    %93 = tpu.matmul %88, %90, %cst_26 {dimension_numbers = #tpu.dot_dimension_numbers<[1], [1], [0], [0], [0, 0, 1, 0], [], []>} : vector<128x32xbf16>, vector<128x32xbf16>, vector<128x128xf32> -> vector<128x128xf32>
    %cst_27 = arith.constant 0.176776692 : f32
    %94 = vector.broadcast %cst_27 : f32 to vector<128x128xf32>
    %95 = arith.mulf %93, %94 : vector<128x128xf32>
    %96 = arith.addf %95, %2 : vector<128x128xf32>
    %cst_28 = arith.constant dense<0xFF800000> : vector<128xf32>
    %97 = vector.multi_reduction <maximumf>, %96, %cst_28 [1] : vector<128x128xf32> to vector<128xf32>
    %98 = vector.shape_cast %97 : vector<128xf32> to vector<128x1xf32>
    %99 = vector.broadcast %98 : vector<128x1xf32> to vector<128x128xf32>
    %100 = arith.subf %96, %99 : vector<128x128xf32>
    %101 = math.exp %100 : vector<128x128xf32>
    %cst_29 = arith.constant dense<0.000000e+00> : vector<128xf32>
    %102 = vector.multi_reduction <add>, %101, %cst_29 [1] : vector<128x128xf32> to vector<128xf32>
    %103 = vector.shape_cast %102 : vector<128xf32> to vector<128x1xf32>
    %104 = vector.broadcast %103 : vector<128x1xf32> to vector<128x128xf32>
    %105 = arith.divf %101, %104 : vector<128x128xf32>
    %106 = arith.truncf %105 : vector<128x128xf32> to vector<128x128xbf16>
    %cst_30 = arith.constant dense<0.000000e+00> : vector<128x32xf32>
    %107 = tpu.matmul %106, %92, %cst_30 {dimension_numbers = #tpu.dot_dimension_numbers<[1], [0], [0], [1], [0, 0, 1, 1], [], []>} : vector<128x128xbf16>, vector<128x32xbf16>, vector<128x32xf32> -> vector<128x32xf32>
    %108 = arith.addf %86, %107 : vector<128x32xf32>
    %cst_31 = arith.constant 2.500000e-01 : f32
    %109 = vector.broadcast %cst_31 : f32 to vector<128x32xf32>
    %110 = arith.mulf %108, %109 : vector<128x32xf32>
    %111 = arith.addf %110, %19 : vector<128x32xf32>
    %112 = vector.broadcast %10 : vector<1x32xf32> to vector<128x32xf32>
    %113 = arith.mulf %111, %112 : vector<128x32xf32>
    %114 = vector.broadcast %11 : vector<1x32xf32> to vector<128x32xf32>
    %115 = arith.addf %113, %114 : vector<128x32xf32>
    %cst_32 = arith.constant 0.000000e+00 : f32
    %116 = vector.broadcast %cst_32 : f32 to vector<128x32xf32>
    %117 = arith.maximumf %115, %116 : vector<128x32xf32>
    %118 = arith.addf %0, %117 : vector<128x32xf32>
    %119 = vector.extract_strided_slice %3 {offsets = [1, 0, 0], sizes = [1, 32, 416], strides = [1, 1, 1]} : vector<2x32x416xbf16> to vector<1x32x416xbf16>
    %120 = vector.shape_cast %119 : vector<1x32x416xbf16> to vector<32x416xbf16>
    %121 = vector.extract_strided_slice %4 {offsets = [1, 0, 0], sizes = [1, 3, 416], strides = [1, 1, 1]} : vector<2x3x416xf32> to vector<1x3x416xf32>
    %122 = vector.shape_cast %121 : vector<1x3x416xf32> to vector<3x416xf32>
    %123 = vector.extract_strided_slice %122 {offsets = [0, 0], sizes = [1, 416], strides = [1, 1]} : vector<3x416xf32> to vector<1x416xf32>
    %124 = vector.extract_strided_slice %122 {offsets = [1, 0], sizes = [1, 32], strides = [1, 1]} : vector<3x416xf32> to vector<1x32xf32>
    %125 = vector.extract_strided_slice %122 {offsets = [2, 0], sizes = [1, 32], strides = [1, 1]} : vector<3x416xf32> to vector<1x32xf32>
    %126 = arith.truncf %118 : vector<128x32xf32> to vector<128x32xbf16>
    %cst_33 = arith.constant dense<0.000000e+00> : vector<128x416xf32>
    %127 = tpu.matmul %126, %120, %cst_33 {dimension_numbers = #tpu.dot_dimension_numbers<[1], [0], [0], [1], [0, 0, 1, 1], [], []>} : vector<128x32xbf16>, vector<32x416xbf16>, vector<128x416xf32> -> vector<128x416xf32>
    %128 = vector.broadcast %123 : vector<1x416xf32> to vector<128x416xf32>
    %129 = arith.addf %127, %128 : vector<128x416xf32>
    %130 = vector.extract_strided_slice %129 {offsets = [0, 0], sizes = [128, 128], strides = [1, 1]} : vector<128x416xf32> to vector<128x128xf32>
    %131 = vector.extract_strided_slice %129 {offsets = [0, 128], sizes = [128, 128], strides = [1, 1]} : vector<128x416xf32> to vector<128x128xf32>
    %132 = vector.extract_strided_slice %129 {offsets = [0, 256], sizes = [128, 128], strides = [1, 1]} : vector<128x416xf32> to vector<128x128xf32>
    %133 = vector.extract_strided_slice %129 {offsets = [0, 384], sizes = [128, 32], strides = [1, 1]} : vector<128x416xf32> to vector<128x32xf32>
    %cst_34 = arith.constant 0.000000e+00 : f32
    %134 = vector.broadcast %cst_34 : f32 to vector<128x32xf32>
    %135 = vector.extract_strided_slice %130 {offsets = [0, 0], sizes = [128, 32], strides = [1, 1]} : vector<128x128xf32> to vector<128x32xf32>
    %136 = arith.truncf %135 : vector<128x32xf32> to vector<128x32xbf16>
    %137 = vector.extract_strided_slice %131 {offsets = [0, 0], sizes = [128, 32], strides = [1, 1]} : vector<128x128xf32> to vector<128x32xf32>
    %138 = arith.truncf %137 : vector<128x32xf32> to vector<128x32xbf16>
    %139 = vector.extract_strided_slice %132 {offsets = [0, 0], sizes = [128, 32], strides = [1, 1]} : vector<128x128xf32> to vector<128x32xf32>
    %140 = arith.truncf %139 : vector<128x32xf32> to vector<128x32xbf16>
    %cst_35 = arith.constant dense<0.000000e+00> : vector<128x128xf32>
    %141 = tpu.matmul %136, %138, %cst_35 {dimension_numbers = #tpu.dot_dimension_numbers<[1], [1], [0], [0], [0, 0, 1, 0], [], []>} : vector<128x32xbf16>, vector<128x32xbf16>, vector<128x128xf32> -> vector<128x128xf32>
    %cst_36 = arith.constant 0.176776692 : f32
    %142 = vector.broadcast %cst_36 : f32 to vector<128x128xf32>
    %143 = arith.mulf %141, %142 : vector<128x128xf32>
    %144 = arith.addf %143, %2 : vector<128x128xf32>
    %cst_37 = arith.constant dense<0xFF800000> : vector<128xf32>
    %145 = vector.multi_reduction <maximumf>, %144, %cst_37 [1] : vector<128x128xf32> to vector<128xf32>
    %146 = vector.shape_cast %145 : vector<128xf32> to vector<128x1xf32>
    %147 = vector.broadcast %146 : vector<128x1xf32> to vector<128x128xf32>
    %148 = arith.subf %144, %147 : vector<128x128xf32>
    %149 = math.exp %148 : vector<128x128xf32>
    %cst_38 = arith.constant dense<0.000000e+00> : vector<128xf32>
    %150 = vector.multi_reduction <add>, %149, %cst_38 [1] : vector<128x128xf32> to vector<128xf32>
    %151 = vector.shape_cast %150 : vector<128xf32> to vector<128x1xf32>
    %152 = vector.broadcast %151 : vector<128x1xf32> to vector<128x128xf32>
    %153 = arith.divf %149, %152 : vector<128x128xf32>
    %154 = arith.truncf %153 : vector<128x128xf32> to vector<128x128xbf16>
    %cst_39 = arith.constant dense<0.000000e+00> : vector<128x32xf32>
    %155 = tpu.matmul %154, %140, %cst_39 {dimension_numbers = #tpu.dot_dimension_numbers<[1], [0], [0], [1], [0, 0, 1, 1], [], []>} : vector<128x128xbf16>, vector<128x32xbf16>, vector<128x32xf32> -> vector<128x32xf32>
    %156 = arith.addf %134, %155 : vector<128x32xf32>
    %157 = vector.extract_strided_slice %130 {offsets = [0, 32], sizes = [128, 32], strides = [1, 1]} : vector<128x128xf32> to vector<128x32xf32>
    %158 = arith.truncf %157 : vector<128x32xf32> to vector<128x32xbf16>
    %159 = vector.extract_strided_slice %131 {offsets = [0, 32], sizes = [128, 32], strides = [1, 1]} : vector<128x128xf32> to vector<128x32xf32>
    %160 = arith.truncf %159 : vector<128x32xf32> to vector<128x32xbf16>
    %161 = vector.extract_strided_slice %132 {offsets = [0, 32], sizes = [128, 32], strides = [1, 1]} : vector<128x128xf32> to vector<128x32xf32>
    %162 = arith.truncf %161 : vector<128x32xf32> to vector<128x32xbf16>
    %cst_40 = arith.constant dense<0.000000e+00> : vector<128x128xf32>
    %163 = tpu.matmul %158, %160, %cst_40 {dimension_numbers = #tpu.dot_dimension_numbers<[1], [1], [0], [0], [0, 0, 1, 0], [], []>} : vector<128x32xbf16>, vector<128x32xbf16>, vector<128x128xf32> -> vector<128x128xf32>
    %cst_41 = arith.constant 0.176776692 : f32
    %164 = vector.broadcast %cst_41 : f32 to vector<128x128xf32>
    %165 = arith.mulf %163, %164 : vector<128x128xf32>
    %166 = arith.addf %165, %2 : vector<128x128xf32>
    %cst_42 = arith.constant dense<0xFF800000> : vector<128xf32>
    %167 = vector.multi_reduction <maximumf>, %166, %cst_42 [1] : vector<128x128xf32> to vector<128xf32>
    %168 = vector.shape_cast %167 : vector<128xf32> to vector<128x1xf32>
    %169 = vector.broadcast %168 : vector<128x1xf32> to vector<128x128xf32>
    %170 = arith.subf %166, %169 : vector<128x128xf32>
    %171 = math.exp %170 : vector<128x128xf32>
    %cst_43 = arith.constant dense<0.000000e+00> : vector<128xf32>
    %172 = vector.multi_reduction <add>, %171, %cst_43 [1] : vector<128x128xf32> to vector<128xf32>
    %173 = vector.shape_cast %172 : vector<128xf32> to vector<128x1xf32>
    %174 = vector.broadcast %173 : vector<128x1xf32> to vector<128x128xf32>
    %175 = arith.divf %171, %174 : vector<128x128xf32>
    %176 = arith.truncf %175 : vector<128x128xf32> to vector<128x128xbf16>
    %cst_44 = arith.constant dense<0.000000e+00> : vector<128x32xf32>
    %177 = tpu.matmul %176, %162, %cst_44 {dimension_numbers = #tpu.dot_dimension_numbers<[1], [0], [0], [1], [0, 0, 1, 1], [], []>} : vector<128x128xbf16>, vector<128x32xbf16>, vector<128x32xf32> -> vector<128x32xf32>
    %178 = arith.addf %156, %177 : vector<128x32xf32>
    %179 = vector.extract_strided_slice %130 {offsets = [0, 64], sizes = [128, 32], strides = [1, 1]} : vector<128x128xf32> to vector<128x32xf32>
    %180 = arith.truncf %179 : vector<128x32xf32> to vector<128x32xbf16>
    %181 = vector.extract_strided_slice %131 {offsets = [0, 64], sizes = [128, 32], strides = [1, 1]} : vector<128x128xf32> to vector<128x32xf32>
    %182 = arith.truncf %181 : vector<128x32xf32> to vector<128x32xbf16>
    %183 = vector.extract_strided_slice %132 {offsets = [0, 64], sizes = [128, 32], strides = [1, 1]} : vector<128x128xf32> to vector<128x32xf32>
    %184 = arith.truncf %183 : vector<128x32xf32> to vector<128x32xbf16>
    %cst_45 = arith.constant dense<0.000000e+00> : vector<128x128xf32>
    %185 = tpu.matmul %180, %182, %cst_45 {dimension_numbers = #tpu.dot_dimension_numbers<[1], [1], [0], [0], [0, 0, 1, 0], [], []>} : vector<128x32xbf16>, vector<128x32xbf16>, vector<128x128xf32> -> vector<128x128xf32>
    %cst_46 = arith.constant 0.176776692 : f32
    %186 = vector.broadcast %cst_46 : f32 to vector<128x128xf32>
    %187 = arith.mulf %185, %186 : vector<128x128xf32>
    %188 = arith.addf %187, %2 : vector<128x128xf32>
    %cst_47 = arith.constant dense<0xFF800000> : vector<128xf32>
    %189 = vector.multi_reduction <maximumf>, %188, %cst_47 [1] : vector<128x128xf32> to vector<128xf32>
    %190 = vector.shape_cast %189 : vector<128xf32> to vector<128x1xf32>
    %191 = vector.broadcast %190 : vector<128x1xf32> to vector<128x128xf32>
    %192 = arith.subf %188, %191 : vector<128x128xf32>
    %193 = math.exp %192 : vector<128x128xf32>
    %cst_48 = arith.constant dense<0.000000e+00> : vector<128xf32>
    %194 = vector.multi_reduction <add>, %193, %cst_48 [1] : vector<128x128xf32> to vector<128xf32>
    %195 = vector.shape_cast %194 : vector<128xf32> to vector<128x1xf32>
    %196 = vector.broadcast %195 : vector<128x1xf32> to vector<128x128xf32>
    %197 = arith.divf %193, %196 : vector<128x128xf32>
    %198 = arith.truncf %197 : vector<128x128xf32> to vector<128x128xbf16>
    %cst_49 = arith.constant dense<0.000000e+00> : vector<128x32xf32>
    %199 = tpu.matmul %198, %184, %cst_49 {dimension_numbers = #tpu.dot_dimension_numbers<[1], [0], [0], [1], [0, 0, 1, 1], [], []>} : vector<128x128xbf16>, vector<128x32xbf16>, vector<128x32xf32> -> vector<128x32xf32>
    %200 = arith.addf %178, %199 : vector<128x32xf32>
    %201 = vector.extract_strided_slice %130 {offsets = [0, 96], sizes = [128, 32], strides = [1, 1]} : vector<128x128xf32> to vector<128x32xf32>
    %202 = arith.truncf %201 : vector<128x32xf32> to vector<128x32xbf16>
    %203 = vector.extract_strided_slice %131 {offsets = [0, 96], sizes = [128, 32], strides = [1, 1]} : vector<128x128xf32> to vector<128x32xf32>
    %204 = arith.truncf %203 : vector<128x32xf32> to vector<128x32xbf16>
    %205 = vector.extract_strided_slice %132 {offsets = [0, 96], sizes = [128, 32], strides = [1, 1]} : vector<128x128xf32> to vector<128x32xf32>
    %206 = arith.truncf %205 : vector<128x32xf32> to vector<128x32xbf16>
    %cst_50 = arith.constant dense<0.000000e+00> : vector<128x128xf32>
    %207 = tpu.matmul %202, %204, %cst_50 {dimension_numbers = #tpu.dot_dimension_numbers<[1], [1], [0], [0], [0, 0, 1, 0], [], []>} : vector<128x32xbf16>, vector<128x32xbf16>, vector<128x128xf32> -> vector<128x128xf32>
    %cst_51 = arith.constant 0.176776692 : f32
    %208 = vector.broadcast %cst_51 : f32 to vector<128x128xf32>
    %209 = arith.mulf %207, %208 : vector<128x128xf32>
    %210 = arith.addf %209, %2 : vector<128x128xf32>
    %cst_52 = arith.constant dense<0xFF800000> : vector<128xf32>
    %211 = vector.multi_reduction <maximumf>, %210, %cst_52 [1] : vector<128x128xf32> to vector<128xf32>
    %212 = vector.shape_cast %211 : vector<128xf32> to vector<128x1xf32>
    %213 = vector.broadcast %212 : vector<128x1xf32> to vector<128x128xf32>
    %214 = arith.subf %210, %213 : vector<128x128xf32>
    %215 = math.exp %214 : vector<128x128xf32>
    %cst_53 = arith.constant dense<0.000000e+00> : vector<128xf32>
    %216 = vector.multi_reduction <add>, %215, %cst_53 [1] : vector<128x128xf32> to vector<128xf32>
    %217 = vector.shape_cast %216 : vector<128xf32> to vector<128x1xf32>
    %218 = vector.broadcast %217 : vector<128x1xf32> to vector<128x128xf32>
    %219 = arith.divf %215, %218 : vector<128x128xf32>
    %220 = arith.truncf %219 : vector<128x128xf32> to vector<128x128xbf16>
    %cst_54 = arith.constant dense<0.000000e+00> : vector<128x32xf32>
    %221 = tpu.matmul %220, %206, %cst_54 {dimension_numbers = #tpu.dot_dimension_numbers<[1], [0], [0], [1], [0, 0, 1, 1], [], []>} : vector<128x128xbf16>, vector<128x32xbf16>, vector<128x32xf32> -> vector<128x32xf32>
    %222 = arith.addf %200, %221 : vector<128x32xf32>
    %cst_55 = arith.constant 2.500000e-01 : f32
    %223 = vector.broadcast %cst_55 : f32 to vector<128x32xf32>
    %224 = arith.mulf %222, %223 : vector<128x32xf32>
    %225 = arith.addf %224, %133 : vector<128x32xf32>
    %226 = vector.broadcast %124 : vector<1x32xf32> to vector<128x32xf32>
    %227 = arith.mulf %225, %226 : vector<128x32xf32>
    %228 = vector.broadcast %125 : vector<1x32xf32> to vector<128x32xf32>
    %229 = arith.addf %227, %228 : vector<128x32xf32>
    %cst_56 = arith.constant 0.000000e+00 : f32
    %230 = vector.broadcast %cst_56 : f32 to vector<128x32xf32>
    %231 = arith.maximumf %229, %230 : vector<128x32xf32>
    %232 = arith.addf %118, %231 : vector<128x32xf32>
    %c0_57 = arith.constant 0 : index
    %c0_58 = arith.constant 0 : index
    %c0_59 = arith.constant 0 : index
    %233 = vector.load %arg3[%c0_57, %c0_58, %c0_59] : memref<1x8x128xf32, #tpu.memory_space<vmem>>, vector<1x8x128xf32>
    %234 = vector.shape_cast %233 : vector<1x8x128xf32> to vector<8x128xf32>
    %cst_60 = arith.constant dense<0.000000e+00> : vector<8x32xf32>
    %235 = tpu.matmul %234, %232, %cst_60 {dimension_numbers = #tpu.dot_dimension_numbers<[1], [0], [0], [1], [0, 0, 1, 1], [], []>} : vector<8x128xf32>, vector<128x32xf32>, vector<8x32xf32> -> vector<8x32xf32>
    %c0_61 = arith.constant 0 : index
    %c0_62 = arith.constant 0 : index
    %236 = vector.load %arg6[%c0_61, %c0_62] : memref<33x128xf32, #tpu.memory_space<vmem>>, vector<33x128xf32>
    %237 = vector.extract_strided_slice %236 {offsets = [0, 0], sizes = [32, 128], strides = [1, 1]} : vector<33x128xf32> to vector<32x128xf32>
    %cst_63 = arith.constant dense<0.000000e+00> : vector<8x128xf32>
    %238 = tpu.matmul %235, %237, %cst_63 {dimension_numbers = #tpu.dot_dimension_numbers<[1], [0], [0], [1], [0, 0, 1, 1], [], []>} : vector<8x32xf32>, vector<32x128xf32>, vector<8x128xf32> -> vector<8x128xf32>
    %239 = vector.extract_strided_slice %236 {offsets = [32, 0], sizes = [1, 128], strides = [1, 1]} : vector<33x128xf32> to vector<1x128xf32>
    %240 = vector.broadcast %239 : vector<1x128xf32> to vector<8x128xf32>
    %241 = arith.addf %238, %240 : vector<8x128xf32>
    %c0_64 = arith.constant 0 : index
    %c0_65 = arith.constant 0 : index
    %242 = vector.load %arg7[%c0_64, %c0_65] : memref<8x128xf32, #tpu.memory_space<vmem>>, vector<8x128xf32>
    tpu.vector_store %arg7[%c0_64, %c0_65], %241 {strides = array<i32>} : memref<8x128xf32, #tpu.memory_space<vmem>>, vector<8x128xf32>,
    return
  }
  func.func @transform_0(%arg0: i32) -> (i32, i32) {
    %c0_i32 = arith.constant 0 : i32
    %c0_i32_0 = arith.constant 0 : i32
    return %arg0, %c0_i32 : i32, i32
  }
  func.func @transform_1(%arg0: i32) -> (i32, i32, i32) {
    %c0_i32 = arith.constant 0 : i32
    %c0_i32_0 = arith.constant 0 : i32
    %c0_i32_1 = arith.constant 0 : i32
    return %arg0, %c0_i32, %c0_i32_0 : i32, i32, i32
  }
  func.func @transform_2(%arg0: i32) -> (i32, i32, i32) {
    %c0_i32 = arith.constant 0 : i32
    %c0_i32_0 = arith.constant 0 : i32
    %c0_i32_1 = arith.constant 0 : i32
    return %arg0, %c0_i32, %c0_i32_0 : i32, i32, i32
  }
  func.func @transform_3(%arg0: i32) -> (i32, i32, i32) {
    %c0_i32 = arith.constant 0 : i32
    %c0_i32_0 = arith.constant 0 : i32
    %c0_i32_1 = arith.constant 0 : i32
    %c0_i32_2 = arith.constant 0 : i32
    return %c0_i32, %c0_i32_0, %c0_i32_1 : i32, i32, i32
  }
  func.func @transform_4(%arg0: i32) -> (i32, i32, i32) {
    %c0_i32 = arith.constant 0 : i32
    %c0_i32_0 = arith.constant 0 : i32
    %c0_i32_1 = arith.constant 0 : i32
    %c0_i32_2 = arith.constant 0 : i32
    return %c0_i32, %c0_i32_0, %c0_i32_1 : i32, i32, i32
  }
  func.func @transform_5(%arg0: i32) -> (i32, i32) {
    %c0_i32 = arith.constant 0 : i32
    %c0_i32_0 = arith.constant 0 : i32
    %c0_i32_1 = arith.constant 0 : i32
    return %c0_i32, %c0_i32_0 : i32, i32
  }
  func.func @transform_6(%arg0: i32) -> (i32, i32) {
    %c0_i32 = arith.constant 0 : i32
    %c0_i32_0 = arith.constant 0 : i32
    return %arg0, %c0_i32 : i32, i32
  }
}

</mosaic_0001>

<bundles_post_ra>
// kernel: tpu_custom_call.1
= control target key start
LH: loop header
LB: loop body
LE: loop exit
PB: predicated region body
PF: predicated region fallthrough
CT: control target
= control target key end

     0   :  { %11 = vsyncpa [#allocation3], 0  ;;  %s11707_s0 = inlined_call_operand.vmem [shape: f32[256,32], index: 0, kind: input, shape index: {}]   ;;  %s11708_s1 = inlined_call_operand.vmem [shape: f32[2,128,128], index: 1, kind: input, shape index: {}]   ;;  %s11709_s2 = inlined_call_operand.vmem [shape: f32[2,8,128], index: 2, kind: input, shape index: {}]   ;;  %s11710_s3 = inlined_call_operand.hbm [shape: bf16[2,32,416], index: 3, kind: input, shape index: {}]   ;;  %s11711_s4 = inlined_call_operand.vmem [shape: f32[2,3,416], index: 4, kind: input, shape index: {}]   ;;  %s11712_s5 = inlined_call_operand.vmem [shape: f32[33,128], index: 5, kind: input, shape index: {}]   ;;  %s11713_s6 = inlined_call_operand.hbm [shape: f32[16,128], index: 6, kind: output, shape index: {}]  }
   0x1   :  { %12 = vsyncpa [#allocation4], 0 }
   0x2   :  { %14 = vsyncpa [#allocation4 + $0x1], 0  ;;  %s7082_s21 = smov 0   ;;  %s7084_s22 = smov 0  }
   0x3   :  { %s7086_s23 = smov 0   ;;  %s7088_s24 = smov 0  }
   0x4 LB: > { %s7103_s25 = sadd.s32 4294967295, %s7039_s24   ;;  %s6082_s26 = sadd.s32 4294967294, %s7039_s24   ;;  %s7039_s24 = sphi %s7088_s24, %s12148_s24   ;;  %s7035_s23 = sphi %s7086_s23, %s12147_s23   ;;  %s7031_s22 = sphi %s7084_s22, %s12146_s22   ;;  %s7027_s21 = sphi %s7082_s21, %s12145_s21  }
   0x5   : > { %s7107_s27 = sadd.s32 1, %s7039_s24   ;;  %s168_s28 = sadd.s32 1, %s7035_s23 }
   0x6   : > { %s165_s29 = ssub.s32 %s7039_s24, %s7107_s27  ;;  %p178_p0 = scmp.ne.s32.totalorder %s7035_s23, %s7031_s22 }
   0x7   : > { %p166_p1 = scmp.eq.s32.totalorder %s165_s29, 0  ;;  %p179_p2 = scmp.eq.s32.totalorder %s7103_s25, 1 }
   0x8   : > { %p184_p3 = scmp.ne.s32.totalorder %s7031_s22, %s7027_s21  ;;  %p185_p4 = scmp.eq.s32.totalorder %s6082_s26, 1 }
   0x9   : > { %s7118_s30 = scalar_select %p166_p1, %s7035_s23, %s168_s28  }
   0xa   : > { %p7120_p5 = por %p179_p2, %p178_p0  ;;  %p7124_p6 = por %p185_p4, %p184_p3 }
   0xb   : > { %p6083_p7 = scmp.ge.s32.totalorder %s7039_s24, 1  ;;  %p192_p8 = scmp.lt.s32.totalorder %s7039_s24, 3 }
   0xc   : > { %p6322_p9 = scmp.eq.s32.totalorder %s7103_s25, 0  ;;  %s203_s11 = sshll.u32 %s11710_s3, 4  ;;  %s204_s11 = int_to_ptr.hbm [resolvable:$true] %s203_s11 }
   0xd   : > { %p193_p10 = pnand %p6083_p7, %p192_p8  ;;  %s7041_s12 = smov [#allocation2]  }
   0xe   : > { %s205_s13 = sshll.u32 %s7041_s12, 4  ;;  %s7042_s14 = smov 256   ;;  %s206_s13 = int_to_ptr.vmem [resolvable:$true] %s205_s13 }
   0xf   : > { %p6314_p11 = pneg %p193_p10  ;;  %s7043_s15 = smov 16  }
  0x10   : > { %251 = sbr.rel (%p193_p10) target bundleno = 4043 (0xfcb), region = 44 }
  0x11   : > { %p6315_p12 = pnand %p6322_p9, %p6314_p11 }
  0x13   : > { %6317 = dma.hbm_to_vmem [thread:$0]  (!%p6315_p12), %s204_s11, 2048, %s206_s13, [#allocation3], %s7042_s14, %s7042_s14, %s7043_s15  }
  0x15   : > { %7018 = dma.done.wait (%p6322_p9), [#allocation3], 2048  }
  0x16   : > { %7020 = vsyncadd (%p6322_p9), [#allocation3], 4294965248  ;;  %s6089_s16 = sshll.u32 %s7103_s25, 4  ;;  %v6112_v0 = vld [vmem:[#allocation2 + $0x20] sm:$0xf]  ;;  %vm421_vm0 = vcmask 261120  }
  0x17   : > { %p292_p13 = scmp.lt.s32.totalorder %s6089_s16, 31  ;;  %v6298_v1 = vld [vmem:[#allocation2 + $0x2c] sm:$0xf0]  ;;  %v6296_v2 = vld [vmem:[#allocation2 + $0x24] sm:$0xf]  ;;  %s7044_s29 = smov 96  }
  0x18   : > { %v6113_v3 = vor.u32 %v6298_v1, %v6112_v0  ;;  %v6114_v4 = vld [vmem:[#allocation2 + $0x30] sm:$0xf0]  ;;  %v6120_v5 = vld [vmem:[#allocation2 + $0x28] sm:$0xf]  ;;  %v6299_v6 = vld [vmem:[#allocation2 + $0x34] sm:$0xf0] }
  0x19   : > { %s12150_s16 = smov (!%p292_p13, %s6089_s16), 31  ;;  %v6117_v7 = vor.u32 %v6296_v2, %v6114_v4  ;;  %v6121_v8 = vor.u32 %v6299_v6, %v6120_v5  ;;  %v6096_v9 = vld [vmem:[#allocation2] sm:$0xf]  ;;  %v6294_v10 = vld [vmem:[#allocation2 + $0xc] sm:$0xf0]  ;;  %s7045_s11 = smov 64  }
  0x1a   : > { %s6090_s17 = sshll.u32 %s12150_s16, 3  ;;  %v6292_v11 = vld [vmem:[#allocation2 + $0x4] sm:$0xf]  ;;  %452 = vmatpush.bf16.msra.mxu0 %v6113_v3  ;;  %v6097_v12 = vor.u32 %v6294_v10, %v6096_v9  ;;  %v6098_v13 = vld [vmem:[#allocation2 + $0x10] sm:$0xf0]  ;;  %s7046_s12 = smov 32  }
  0x1b   : > { %s7144_s20 = scalar_lea.vmem %s11707_s0, %s6090_s17  ;;  %v6104_v14 = vld [vmem:[#allocation2 + $0x8] sm:$0xf]  ;;  %v6295_v15 = vld [vmem:[#allocation2 + $0x14] sm:$0xf0]  ;;  %501 = vmatpush.bf16.msra.mxu1 %v6117_v7  ;;  %550 = vmatpush.bf16.msra.mxu2 %v6121_v8  ;;  %v6101_v16 = vor.u32 %v6292_v11, %v6098_v13  ;;  %v355_v61 = vld [vmem:[%s11711_s4] sm:$0x77] }
  0x1c   : > { %v6105_v17 = vor.u32 %v6295_v15, %v6104_v14  ;;  %v307_v18 = vld [vmem:[%s7144_s20] sm:$0xff]  ;;  %v308_v19 = vld [vmem:[%s7144_s20 + $0x8] sm:$0xff]  ;;  %v309_v21 = vld [vmem:[%s7144_s20 + $0x10] sm:$0xff]  ;;  %v370_v63 = vperm.slane %v355_v61, 4  ;;  %v369_v7 = vperm.slane %v355_v61, 0  ;;  %p297_p0 = scmp.lt.s32.totalorder %s7103_s25, 1 }
  0x1d   : > { %v7148_v20 = vpack.c.bf16 %v308_v19, %v307_v18  ;;  %v310_v22 = vld [vmem:[%s7144_s20 + $0x18] sm:$0xff]  ;;  %v311_v24 = vld [vmem:[%s7144_s20 + $0x20] sm:$0xff]  ;;  %v312_v25 = vld [vmem:[%s7144_s20 + $0x28] sm:$0xff] }
  0x1e   : > { %453 = vmatpush.bf16.msra.mxu0 %v6097_v12  ;;  %v7158_v23 = vpack.c.bf16 %v310_v22, %v309_v21  ;;  %v7168_v26 = vpack.c.bf16 %v312_v25, %v311_v24  ;;  %v313_v27 = vld [vmem:[%s7144_s20 + $0x30] sm:$0xff]  ;;  %v314_v28 = vld [vmem:[%s7144_s20 + $0x38] sm:$0xff]  ;;  %v315_v30 = vld [vmem:[%s7144_s20 + $0x40] sm:$0xff]  ;;  %v7259_v1 = vperm.slane %v370_v63, 0  ;;  %v7270_v12 = vperm.slane %v369_v7, 0  ;;  %s7584_s13 = scalar_select %p297_p0, %s7103_s25, 1 }
  0x1f   : > { %502 = vmatpush.bf16.msra.mxu1 %v6101_v16  ;;  %551 = vmatpush.bf16.msra.mxu2 %v6105_v17  ;;  %v7178_v29 = vpack.c.bf16 %v314_v28, %v313_v27  ;;  %v316_v31 = vld [vmem:[%s7144_s20 + $0x48] sm:$0xff]  ;;  %v317_v33 = vld [vmem:[%s7144_s20 + $0x50] sm:$0xff]  ;;  %v318_v34 = vld [vmem:[%s7144_s20 + $0x58] sm:$0xff] }
  0x20   : > { %v7188_v32 = vpack.c.bf16 %v316_v31, %v315_v30  ;;  %v7198_v35 = vpack.c.bf16 %v318_v34, %v317_v33  ;;  %v319_v36 = vld [vmem:[%s7144_s20 + $0x60] sm:$0xff]  ;;  %v320_v37 = vld [vmem:[%s7144_s20 + $0x68] sm:$0xff]  ;;  %v321_v39 = vld [vmem:[%s7144_s20 + $0x70] sm:$0xff]  ;;  %s6291_s14 = sshll.u32 %s7584_s13, 7  ;;  %s6093_s9 = sshll.u32 %s7584_s13, 3 }
  0x21   : > { %6126 = vmatmul.msk.bf16.vlgmr.msra.gmra.mxu0 %vm421_vm0, %v7148_v20  ;;  %v7208_v38 = vpack.c.bf16 %v320_v37, %v319_v36  ;;  %v322_v40 = vld [vmem:[%s7144_s20 + $0x78] sm:$0xff]  ;;  %v6293_v61 = vld [vmem:[#allocation2 + $0xc] sm:$0xf]  ;;  %s7594_s17 = scalar_lea.vmem %s11708_s1, %s6291_s14  ;;  %s305_s14 = scalar_lea.vmem %s11709_s2, %s6093_s9 }
  0x22   : > { %6134 = vmatmul.msk.bf16.vlgmr.msra.gmra.mxu1 %vm421_vm0, %v7148_v20  ;;  %6142 = vmatmul.msk.bf16.vlgmr.msra.gmra.mxu2 %vm421_vm0, %v7148_v20  ;;  %v7218_v41 = vpack.c.bf16 %v322_v40, %v321_v39  ;;  %v6297_v40 = vld [vmem:[#allocation2 + $0x2c] sm:$0xf]  ;;  %s288_s13 = sand.u32 1, %s7031_s22  }
  0x23   : > { %s5972_s9 = scalar_lea.sflag [#allocation4], %s288_s13 }
  0x31   : > { %6127 = vmatmul.msk.bf16.gmra.mxu0 %vm421_vm0, %v7158_v23 }
  0x32   : > { %6135 = vmatmul.msk.bf16.gmra.mxu1 %vm421_vm0, %v7158_v23  ;;  %6143 = vmatmul.msk.bf16.gmra.mxu2 %vm421_vm0, %v7158_v23 }
  0x41   : > { %6128 = vmatmul.msk.bf16.gmra.mxu0 %vm421_vm0, %v7168_v26 }
  0x42   : > { %6136 = vmatmul.msk.bf16.gmra.mxu1 %vm421_vm0, %v7168_v26  ;;  %6144 = vmatmul.msk.bf16.gmra.mxu2 %vm421_vm0, %v7168_v26 }
  0x51   : > { %6129 = vmatmul.msk.bf16.gmra.mxu0 %vm421_vm0, %v7178_v29 }
  0x52   : > { %6137 = vmatmul.msk.bf16.gmra.mxu1 %vm421_vm0, %v7178_v29  ;;  %6145 = vmatmul.msk.bf16.gmra.mxu2 %vm421_vm0, %v7178_v29 }
  0x61   : > { %6130 = vmatmul.msk.bf16.gmra.mxu0 %vm421_vm0, %v7188_v32 }
  0x62   : > { %6138 = vmatmul.msk.bf16.gmra.mxu1 %vm421_vm0, %v7188_v32  ;;  %6146 = vmatmul.msk.bf16.gmra.mxu2 %vm421_vm0, %v7188_v32 }
  0x71   : > { %6131 = vmatmul.msk.bf16.gmra.mxu0 %vm421_vm0, %v7198_v35 }
  0x72   : > { %6139 = vmatmul.msk.bf16.gmra.mxu1 %vm421_vm0, %v7198_v35  ;;  %6147 = vmatmul.msk.bf16.gmra.mxu2 %vm421_vm0, %v7198_v35 }
  0x81   : > { %6132 = vmatmul.msk.bf16.gmra.mxu0 %vm421_vm0, %v7208_v38 }
  0x82   : > { %6140 = vmatmul.msk.bf16.gmra.mxu1 %vm421_vm0, %v7208_v38  ;;  %6148 = vmatmul.msk.bf16.gmra.mxu2 %vm421_vm0, %v7208_v38 }
  0x91   : > { %6133 = vmatmul.msk.bf16.gmra.mxu0 %vm421_vm0, %v7218_v41 }
  0x92   : > { %6141 = vmatmul.msk.bf16.gmra.mxu1 %vm421_vm0, %v7218_v41  ;;  %6149 = vmatmul.msk.bf16.gmra.mxu2 %vm421_vm0, %v7218_v41 }
  0x9e   : > { %v455_v42 = vpop.f32.mrf.mxu0 }
  0x9f   : > { %v7226_v43 = vpop.f32.mrf.mxu1  ;;  %v456_v15 = vadd.f32 %v455_v42, %v7270_v12  ;;  %v6122_v42 = vld [vmem:[#allocation2 + $0x38] sm:$0xf0] }
  0xa5   : > { %v7228_v44 = vpop.f32.mrf.mxu2 }
  0xa6   : > { %v457_v45 = vpop.f32.mrf.mxu0 }
  0xa7   : > { %v7230_v46 = vpop.f32.mrf.mxu1  ;;  %v458_v16 = vadd.f32 %v457_v45, %v7270_v12  ;;  %v6125_v45 = vor.u32 %v6297_v40, %v6122_v42 }
  0xa9   : > { %v7283_v21 = vpack.c.bf16 %v458_v16, %v456_v15  ;;  %599 = vmatpush.bf16.msra.mxu3 %v6125_v45 }
  0xad   : > { %v7232_v47 = vpop.f32.mrf.mxu2 }
  0xae   : > { %v7234_v48 = vpop.f32.mrf.mxu0 }
  0xaf   : > { %v7236_v49 = vpop.f32.mrf.mxu1 }
  0xb5   : > { %v7238_v50 = vpop.f32.mrf.mxu2 }
  0xb6   : > { %v7240_v51 = vpop.f32.mrf.mxu0 }
  0xb7   : > { %v7242_v52 = vpop.f32.mrf.mxu1 }
  0xbd   : > { %v7244_v53 = vpop.f32.mrf.mxu2 }
  0xbe   : > { %v7246_v54 = vpop.f32.mrf.mxu0 }
  0xbf   : > { %v514_v55 = vpop.f32.mrf.mxu1 }
  0xc0   : > { %v515_v13 = vadd.f32 %v514_v55, %v7259_v1 }
  0xc5   : > { %v7248_v56 = vpop.f32.mrf.mxu2 }
  0xc6   : > { %v7250_v57 = vpop.f32.mrf.mxu0 }
  0xc7   : > { %v516_v58 = vpop.f32.mrf.mxu1 }
  0xc8   : > { %v517_v9 = vadd.f32 %v516_v58, %v7259_v1 }
  0xca   : > { %v7273_v14 = vpack.c.bf16 %v517_v9, %v515_v13 }
  0xcd   : > { %v7252_v59 = vpop.f32.mrf.mxu2 }
  0xce   : > { %v470_v60 = vpop.f32.mrf.mxu0 }
  0xcf   : > { %v519_v62 = vpop.f32.mrf.mxu1  ;;  %v471_v22 = vadd.f32 %v470_v60, %v7270_v12 }
  0xd0   : > { %v520_v4 = vadd.f32 %v519_v62, %v7259_v1  ;;  %v6106_v62 = vld [vmem:[#allocation2 + $0x18] sm:$0xf0] }
  0xd5   : > { %v7257_v0 = vpop.f32.mrf.mxu2 }
  0xd6   : > { %v472_v2 = vpop.f32.mrf.mxu0 }
  0xd7   : > { %v521_v3 = vpop.f32.mrf.mxu1  ;;  %v473_v24 = vadd.f32 %v472_v2, %v7270_v12  ;;  %v6109_v2 = vor.u32 %v6293_v61, %v6106_v62 }
  0xd8   : > { %v522_v5 = vadd.f32 %v521_v3, %v7259_v1 }
  0xd9   : > { %v7291_v30 = vpack.c.bf16 %v473_v24, %v471_v22  ;;  %600 = vmatpush.bf16.msra.mxu3 %v6109_v2  ;;  %v505_v22 = vadd.f32 %v7226_v43, %v7259_v1  ;;  %v468_v43 = vadd.f32 %v7250_v57, %v7270_v12 }
  0xda   : > { %v7263_v6 = vpack.c.bf16 %v522_v5, %v520_v4  ;;  %v356_v4 = vld [vmem:[%s11711_s4 + $0x8] sm:$0x77] }
  0xdb   : > { %v371_v7 = vperm.slane %v356_v4, 0 }
  0xdc   : > { %1193 = vrot.lane.b32.xlu2 %v7263_v6, %s7044_s29  ;;  %6150 = vmatmul.msk.bf16.vlgmr.msra.gmra.mxu3 %vm421_vm0, %v7148_v20 }
  0xdd   : > { %v570_v8 = vpop.f32.mrf.mxu2  ;;  %v7322_v24 = vperm.slane %v371_v7, 0 }
  0xde   : > { %v7268_v10 = vpop.f32.mrf.mxu0 }
  0xdf   : > { %v524_v11 = vpop.f32.mrf.mxu1  ;;  %v569_v20 = vadd.f32 %v7257_v0, %v7322_v24 }
  0xe0   : > { %v525_v3 = vadd.f32 %v524_v11, %v7259_v1  ;;  %v507_v11 = vadd.f32 %v7230_v46, %v7259_v1  ;;  %v466_v46 = vadd.f32 %v7246_v54, %v7270_v12 }
  0xe2   : > { %v7341_v45 = vpack.c.bf16 %v468_v43, %v466_v46 }
  0xe4   : > { %1191 = vrot.lane.b32.xlu2 %v7273_v14, %s7044_s29 }
  0xe5   : > { %v7279_v17 = vpop.f32.mrf.mxu2 }
  0xe6   : > { %v7281_v18 = vpop.f32.mrf.mxu0 }
  0xe7   : > { %v526_v19 = vpop.f32.mrf.mxu1 }
  0xe8   : > { %v527_v58 = vadd.f32 %v526_v19, %v7259_v1 }
  0xea   : > { %v7310_v5 = vpack.c.bf16 %v527_v58, %v525_v3 }
  0xec   : > { %1163 = vrot.lane.b32.xlu2 %v7283_v21, %s7044_s29  ;;  %6151 = vmatmul.msk.bf16.gmra.mxu3 %vm421_vm0, %v7158_v23 }
  0xed   : > { %v7289_v25 = vpop.f32.mrf.mxu2 }
  0xee   : > { %v480_v27 = vpop.f32.mrf.mxu0 }
  0xef   : > { %v529_v28 = vpop.f32.mrf.mxu1  ;;  %v481_v0 = vadd.f32 %v480_v27, %v7270_v12 }
  0xf0   : > { %v530_v36 = vadd.f32 %v529_v28, %v7259_v1 }
  0xf4   : > { %1169 = vrot.lane.b32.xlu2 %v7291_v30, %s7044_s29 }
  0xf5   : > { %v7295_v31 = vpop.f32.mrf.mxu2 }
  0xf6   : > { %v482_v33 = vpop.f32.mrf.mxu0 }
  0xf7   : > { %v531_v34 = vpop.f32.mrf.mxu1 }
  0xf8   : > { %v532_v37 = vadd.f32 %v531_v34, %v7259_v1  ;;  %v7326_v34 = vpack.c.bf16 %v507_v11, %v505_v22  ;;  %v561_v22 = vadd.f32 %v7244_v53, %v7322_v24 }
  0xfa   : > { %v7299_v39 = vpack.c.bf16 %v532_v37, %v530_v36  ;;  %v571_v36 = vadd.f32 %v570_v8, %v7322_v24  ;;  %v483_v8 = vadd.f32 %v482_v33, %v7270_v12 }
  0xfc   : > { %1197 = vrot.lane.b32.xlu1 %v7299_v39, %s7044_s29  ;;  %v7339_v40 = vpack.c.bf16 %v571_v36, %v569_v20  ;;  %v7353_v61 = vpack.c.bf16 %v483_v8, %v481_v0  ;;  %6152 = vmatmul.msk.bf16.gmra.mxu3 %vm421_vm0, %v7168_v26  ;;  %v574_v20 = vadd.f32 %v7279_v17, %v7322_v24  ;;  %v706_v53 = vsel %vm421_vm0, %v7299_v39, 0 }
  0xfd   : > { %v7303_v55 = vpop.f32.mrf.mxu2  ;;  %v576_v36 = vadd.f32 %v7289_v25, %v7322_v24  ;;  %v564_v17 = vadd.f32 %v7248_v56, %v7322_v24  ;;  %v566_v25 = vadd.f32 %v7252_v59, %v7322_v24  ;;  %v703_v56 = vsel %vm421_vm0, %v7310_v5, 0 }
  0xfe   : > { %v485_v60 = vpop.f32.mrf.mxu0  ;;  %11776 = vst [vmem:[#allocation8_spill] sm:$0xff] %v7339_v40  ;;  %v554_v59 = vadd.f32 %v7228_v44, %v7322_v24  ;;  %v697_v44 = vsel %vm421_vm0, %v7273_v14, 0 }
  0xff   : > { %v534_v63 = vpop.f32.mrf.mxu1  ;;  %v486_v9 = vadd.f32 %v485_v60, %v7270_v12  ;;  %v7409_v26 = vpack.c.bf16 %v576_v36, %v574_v20 }
 0x100   : > { %v535_v58 = vadd.f32 %v534_v63, %v7259_v1 }
 0x101   : > { %11781 = vst [vmem:[#allocation13_spill] sm:$0xff] %v7409_v26 }
 0x104   : > { %1195 = vrot.lane.b32.xlu1 %v7310_v5, %s7044_s29 }
 0x105   : > { %v583_v13 = vpop.f32.mrf.mxu2 }
 0x106   : > { %v487_v15 = vpop.f32.mrf.mxu0  ;;  %v584_v23 = vadd.f32 %v583_v13, %v7322_v24 }
 0x107   : > { %v488_v16 = vadd.f32 %v487_v15, %v7270_v12  ;;  %v536_v19 = vpop.f32.mrf.mxu1  ;;  %v579_v15 = vadd.f32 %v7295_v31, %v7322_v24  ;;  %v559_v31 = vadd.f32 %v7238_v50, %v7322_v24  ;;  %v510_v50 = vadd.f32 %v7236_v49, %v7259_v1 }
 0x108   : > { %v537_v54 = vadd.f32 %v536_v19, %v7259_v1  ;;  %v461_v49 = vadd.f32 %v7234_v48, %v7270_v12  ;;  %v476_v48 = vadd.f32 %v7268_v10, %v7270_v12  ;;  %v556_v10 = vadd.f32 %v7232_v47, %v7322_v24 }
 0x109   : > { %v7324_v28 = vpack.c.bf16 %v488_v16, %v486_v9  ;;  %v581_v16 = vadd.f32 %v7303_v55, %v7322_v24  ;;  %v512_v55 = vadd.f32 %v7242_v52, %v7259_v1  ;;  %v7407_v43 = vpack.c.bf16 %v561_v22, %v559_v31 }
 0x10a   : > { %v7357_v2 = vpack.c.bf16 %v537_v54, %v535_v58  ;;  %v7453_v0 = vpack.c.bf16 %v556_v10, %v554_v59  ;;  %v7609_v10 = vld [vmem:[%s7594_s17 + $0x8] sm:$0xff] }
 0x10b   : > { %1175 = vrot.lane.b32.xlu2 %v7324_v28, %s7044_s29  ;;  %v7402_v46 = vpack.c.bf16 %v581_v16, %v579_v15  ;;  %v651_v52 = vpack.c.bf16 %v512_v55, %v510_v50  ;;  %11780 = vst [vmem:[#allocation12_spill] sm:$0xff] %v7407_v43 }
 0x10c   : > { %1187 = vrot.lane.b32.xlu1 %v7326_v34, %s7044_s29  ;;  %v709_v19 = vsel %vm421_vm0, %v7357_v2, 0  ;;  %6153 = vmatmul.msk.bf16.gmra.mxu3 %vm421_vm0, %v7178_v29  ;;  %11783 = vst [vmem:[#allocation15_spill] sm:$0xff] %v7453_v0  ;;  %v700_v29 = vsel %vm421_vm0, %v7263_v6, 0 }
 0x10d   : > { %v585_v37 = vpop.f32.mrf.mxu2  ;;  %11779 = vst [vmem:[#allocation11_spill] sm:$0xff] %v7402_v46  ;;  %v694_v47 = vsel %vm421_vm0, %v651_v52, 0 }
 0x10e   : > { %v586_v3 = vadd.f32 %v585_v37, %v7322_v24 }
 0x10f   : > { %v539_v42 = vpop.f32.mrf.mxu1 }
 0x110   : > { %v540_v62 = vadd.f32 %v539_v42, %v7259_v1  ;;  %v7373_v11 = vpack.c.bf16 %v586_v3, %v584_v23  ;;  %v7430_v42 = vpack.c.bf16 %v566_v25, %v564_v17  ;;  %v7597_v17 = vld [vmem:[%s7594_s17] sm:$0xff] }
 0x112   : > { %11777 = vst [vmem:[#allocation9_spill] sm:$0xff] %v7373_v11 }
 0x113   : > { %1706 = vrot.lane.b32.xlu2 %v7339_v40, %s7044_s29  ;;  %11782 = vst [vmem:[#allocation14_spill] sm:$0xff] %v7430_v42 }
 0x114   : > { %1167 = vrot.lane.b32.xlu1 %v7341_v45, %s7044_s29 }
 0x115   : > { %v588_v57 = vpop.f32.mrf.mxu2 }
 0x116   : > { %v589_v63 = vadd.f32 %v588_v57, %v7322_v24 }
 0x117   : > { %v541_v60 = vpop.f32.mrf.mxu1 }
 0x118   : > { %v542_v27 = vadd.f32 %v541_v60, %v7259_v1  ;;  %v463_v1 = vadd.f32 %v7240_v51, %v7270_v12  ;;  %v478_v51 = vadd.f32 %v7281_v18, %v7270_v12 }
 0x11a   : > { %v7359_v33 = vpack.c.bf16 %v542_v27, %v540_v62  ;;  %v643_v37 = vpack.c.bf16 %v463_v1, %v461_v49  ;;  %v7448_v18 = vpack.c.bf16 %v478_v51, %v476_v48 }
 0x11b   : > { %1850 = vrot.lane.b32.xlu2 %v7357_v2, %s7045_s11 }
 0x11c   : > { %1201 = vrot.lane.b32.xlu0 %v7359_v33, %s7044_s29  ;;  %1173 = vrot.lane.b32.xlu1 %v7353_v61, %s7044_s29  ;;  %v712_v4 = vsel %vm421_vm0, %v7359_v33, 0 }
 0x11d   : > { %v590_v7 = vpop.f32.mrf.mxu2  ;;  %714 = vmatpush.bf16.xpose.msrb.mxu0 %v712_v4  ;;  %6154 = vmatmul.msk.bf16.gmra.mxu3 %vm421_vm0, %v7188_v32  ;;  %v691_v32 = vsel %vm421_vm0, %v7326_v34, 0 }
 0x11e   : > { %v591_v9 = vadd.f32 %v590_v7, %v7322_v24 }
 0x120   : > { %v7375_v13 = vpack.c.bf16 %v591_v9, %v589_v63 }
 0x122   : > { %11778 = vst [vmem:[#allocation10_spill] sm:$0xff] %v7375_v13  ;;  %1773 = vmatpush.bf16.msrb.mxu3 %v7375_v13 }
 0x123   : > { %1844 = vrot.lane.b32.xlu2 %v7263_v6, %s7045_s11 }
 0x124   : > { %1199 = vrot.lane.b32.xlu0 %v7357_v2, %s7044_s29  ;;  %1712 = vrot.lane.b32.xlu1 %v7373_v11, %s7044_s29 }
 0x125   : > { %715 = vmatpush.bf16.xpose.msrb.mxu0 %v709_v19 }
 0x126   : > { %1774 = vmatpush.bf16.msrb.mxu3 %v7373_v11 }
 0x12a   : > { %1775 = vmatpush.bf16.msrb.mxu3 %v7402_v46 }
 0x12b   : > { %2432 = vrot.lane.b32.xlu2 %v7283_v21, %s7046_s12 }
 0x12c   : > { %1189 = vrot.lane.b32.xlu0 %v651_v52, %s7044_s29  ;;  %1702 = vrot.lane.b32.xlu1 %v7407_v43, %s7044_s29 }
 0x12d   : > { %716 = vmatpush.bf16.xpose.msrb.mxu0 %v706_v53  ;;  %6155 = vmatmul.msk.bf16.gmra.mxu3 %vm421_vm0, %v7198_v35 }
 0x12e   : > { %1776 = vmatpush.bf16.msrb.mxu3 %v7409_v26 }
 0x132   : > { %1777 = vmatpush.bf16.msrb.mxu3 %v7339_v40 }
 0x133   : > { %2434 = vrot.lane.b32.xlu2 %v643_v37, %s7046_s12 }
 0x134   : > { %1848 = vrot.lane.b32.xlu1 %v7299_v39, %s7045_s11  ;;  %1165 = vrot.lane.b32.xlu0 %v643_v37, %s7044_s29 }
 0x135   : > { %717 = vmatpush.bf16.xpose.msrb.mxu0 %v703_v56 }
 0x136   : > { %1778 = vmatpush.bf16.msrb.mxu3 %v7430_v42  ;;  %v1194_v23 = vpop.permute.xlu2 %1193 }
 0x13a   : > { %1779 = vmatpush.bf16.msrb.mxu3 %v7407_v43 }
 0x13b   : > { %1826 = vrot.lane.b32.xlu2 %v7341_v45, %s7045_s11 }
 0x13c   : > { %2454 = vrot.lane.b32.xlu1 %v7263_v6, %s7046_s12  ;;  %1171 = vrot.lane.b32.xlu0 %v7448_v18, %s7044_s29 }
 0x13d   : > { %718 = vmatpush.bf16.xpose.msrb.mxu0 %v700_v29  ;;  %6156 = vmatmul.msk.bf16.gmra.mxu3 %vm421_vm0, %v7208_v38 }
 0x13e   : > { %1780 = vmatpush.bf16.msrb.mxu3 %v7453_v0  ;;  %v1192_v4 = vpop.permute.xlu2 %1191 }
 0x13f   : > { %v1234_v15 = vsel %vm421_vm0, %v1192_v4, 0 }
 0x143   : > { %1830 = vrot.lane.b32.xlu2 %v7448_v18, %s7045_s11 }
 0x144   : > { %1846 = vrot.lane.b32.xlu1 %v7310_v5, %s7045_s11  ;;  %1710 = vrot.lane.b32.xlu0 %v7402_v46, %s7044_s29 }
 0x145   : > { %719 = vmatpush.bf16.xpose.msrb.mxu0 %v697_v44 }
 0x146   : > { %v1164_v36 = vpop.permute.xlu2 %1163 }
 0x14b   : > { %2462 = vrot.lane.b32.xlu2 %v7359_v33, %s7046_s12 }
 0x14c   : > { %2452 = vrot.lane.b32.xlu1 %v7273_v14, %s7046_s12  ;;  %1708 = vrot.lane.b32.xlu0 %v7409_v26, %s7044_s29 }
 0x14d   : > { %720 = vmatpush.bf16.xpose.msrb.mxu0 %v694_v47  ;;  %6157 = vmatmul.msk.bf16.gmra.mxu3 %vm421_vm0, %v7218_v41 }
 0x154   : > { %2450 = vrot.lane.b32.xlu1 %v651_v52, %s7046_s12  ;;  %1704 = vrot.lane.b32.xlu0 %v7430_v42, %s7044_s29 }
 0x155   : > { %721 = vmatpush.bf16.xpose.msrb.mxu0 %v691_v32 }
 0x15c   : > { %2448 = vrot.lane.b32.xlu1 %v7326_v34, %s7046_s12  ;;  %1700 = vrot.lane.b32.xlu0 %v7453_v0, %s7044_s29 }
 0x15d   : > { %6158 = vmatmul.msk.bf16.vlgmr.msrb.gmra.mxu0 %vm421_vm0, %v7283_v21 }
 0x164   : > { %1840 = vrot.lane.b32.xlu1 %v651_v52, %s7045_s11  ;;  %2460 = vrot.lane.b32.xlu0 %v7357_v2, %s7046_s12 }
 0x16c   : > { %2458 = vrot.lane.b32.xlu0 %v7299_v39, %s7046_s12  ;;  %1822 = vrot.lane.b32.xlu1 %v7283_v21, %s7045_s11 }
 0x16d   : > { %6159 = vmatmul.msk.bf16.gmra.mxu0 %vm421_vm0, %v643_v37 }
 0x16e   : > { %v1198_v35 = vpop.permute.xlu1 %1197 }
 0x16f   : > { %v1243_v57 = vsel %vm421_vm0, %v1198_v35, 0 }
 0x174   : > { %2456 = vrot.lane.b32.xlu0 %v7310_v5, %s7046_s12  ;;  %2436 = vrot.lane.b32.xlu1 %v7341_v45, %s7046_s12 }
 0x176   : > { %v1196_v6 = vpop.permute.xlu1 %1195 }
 0x177   : > { %v1240_v2 = vsel %vm421_vm0, %v1196_v6, 0  ;;  %v7620_v6 = vld [vmem:[%s7594_s17 + $0x10] sm:$0xff] }
 0x17c   : > { %1842 = vrot.lane.b32.xlu0 %v7273_v14, %s7045_s11  ;;  %2442 = vrot.lane.b32.xlu1 %v7353_v61, %s7046_s12 }
 0x17d   : > { %6160 = vmatmul.msk.bf16.gmra.mxu0 %vm421_vm0, %v7341_v45  ;;  %v490_v45 = vpop.f32.mrf.mxu0 }
 0x17e   : > { %v1188_v38 = vpop.permute.xlu1 %1187  ;;  %v491_v60 = vadd.f32 %v490_v45, %v7270_v12 }
 0x17f   : > { %v1228_v20 = vsel %vm421_vm0, %v1188_v38, 0 }
 0x184   : > { %1838 = vrot.lane.b32.xlu0 %v7326_v34, %s7045_s11  ;;  %1852 = vrot.lane.b32.xlu1 %v7359_v33, %s7045_s11 }
 0x185   : > { %v492_v58 = vpop.f32.mrf.mxu0 }
 0x186   : > { %v7518_v21 = vpop.permute.xlu1 %1167  ;;  %v493_v62 = vadd.f32 %v492_v58, %v7270_v12  ;;  %v1237_v12 = vsel %vm421_vm0, %v1194_v23, 0  ;;  %v7639_v23 = vld [vmem:[%s7594_s17 + $0x20] sm:$0xff] }
 0x188   : > { %v7545_v33 = vpack.c.bf16 %v493_v62, %v491_v60 }
 0x18c   : > { %1824 = vrot.lane.b32.xlu0 %v643_v37, %s7045_s11  ;;  %v1170_v37 = vpop.permute.xlu2 %1169 }
 0x18d   : > { %6161 = vmatmul.msk.bf16.gmra.mxu0 %vm421_vm0, %v7291_v30 }
 0x18e   : > { %v1202_v41 = vpop.permute.xlu0 %1201  ;;  %v7523_v14 = vpop.permute.xlu1 %1173 }
 0x18f   : > { %v1249_v39 = vsel %vm421_vm0, %v1202_v41, 0 }
 0x190   : > { %1251 = vmatpush.bf16.xpose.msrb.mxu1 %v1249_v39 }
 0x194   : > { %2438 = vrot.lane.b32.xlu0 %v7291_v30, %s7046_s12  ;;  %v1176_v32 = vpop.permute.xlu2 %1175 }
 0x196   : > { %v1200_v5 = vpop.permute.xlu0 %1199  ;;  %v7528_v24 = vpop.permute.xlu1 %1712 }
 0x197   : > { %v1246_v34 = vsel %vm421_vm0, %v1200_v5, 0 }
 0x198   : > { %1252 = vmatpush.bf16.xpose.msrb.mxu1 %v1246_v34 }
 0x19c   : > { %1828 = vrot.lane.b32.xlu0 %v7291_v30, %s7045_s11  ;;  %v1707_v34 = vpop.permute.xlu2 %1706 }
 0x19d   : > { %6162 = vmatmul.msk.bf16.gmra.mxu0 %vm421_vm0, %v7448_v18 }
 0x19e   : > { %v1190_v8 = vpop.permute.xlu0 %1189  ;;  %v7535_v54 = vpop.permute.xlu1 %1702 }
 0x19f   : > { %v1231_v31 = vsel %vm421_vm0, %v1190_v8, 0  ;;  %v7631_v8 = vld [vmem:[%s7594_s17 + $0x18] sm:$0xff] }
 0x1a0   : > { %1253 = vmatpush.bf16.xpose.msrb.mxu1 %v1243_v57 }
 0x1a4   : > { %2440 = vrot.lane.b32.xlu0 %v7448_v18, %s7046_s12 }
 0x1a6   : > { %v7542_v27 = vpop.permute.xlu1 %1848  ;;  %v1166_v30 = vpop.permute.xlu0 %1165 }
 0x1a8   : > { %1254 = vmatpush.bf16.xpose.msrb.mxu1 %v1240_v2 }
 0x1ac   : > { %1177 = vrot.lane.b32.xlu0 %v7545_v33, %s7044_s29 }
 0x1ad   : > { %6163 = vmatmul.msk.bf16.gmra.mxu0 %vm421_vm0, %v7353_v61 }
 0x1ae   : > { %v7551_v3 = vpop.permute.xlu1 %2454  ;;  %v7553_v63 = vpop.permute.xlu0 %1171 }
 0x1b0   : > { %1255 = vmatpush.bf16.xpose.msrb.mxu1 %v1237_v12  ;;  %v1851_v12 = vpop.permute.xlu2 %1850 }
 0x1b4   : > { %1714 = vrot.lane.b32.xlu0 %v7375_v13, %s7044_s29 }
 0x1b6   : > { %v7558_v7 = vpop.permute.xlu1 %1846  ;;  %v7560_v9 = vpop.permute.xlu0 %1710 }
 0x1b8   : > { %1256 = vmatpush.bf16.xpose.msrb.mxu1 %v1234_v15 }
 0x1bd   : > { %6164 = vmatmul.msk.bf16.gmra.mxu0 %vm421_vm0, %v7324_v28 }
 0x1be   : > { %v7565_v16 = vpop.permute.xlu1 %2452  ;;  %v7567_v19 = vpop.permute.xlu0 %1708 }
 0x1c0   : > { %1257 = vmatpush.bf16.xpose.msrb.mxu1 %v1231_v31  ;;  %v1897_v31 = vsel %vm421_vm0, %v1851_v12, 0 }
 0x1c6   : > { %v7570_v55 = vpop.permute.xlu1 %2450  ;;  %v7572_v22 = vpop.permute.xlu0 %1704 }
 0x1c8   : > { %1258 = vmatpush.bf16.xpose.msrb.mxu1 %v1228_v20 }
 0x1cd   : > { %6165 = vmatmul.msk.bf16.gmra.mxu0 %vm421_vm0, %v7545_v33 }
 0x1ce   : > { %v7578_v50 = vpop.permute.xlu1 %2448  ;;  %v7580_v52 = vpop.permute.xlu0 %1700 }
 0x1cf   : > { %6166 = vmatmul.msk.bf16.vlgmr.msrb.gmra.mxu1 %vm421_vm0, %v1164_v36  ;;  %v7648_v36 = vld [vmem:[%s7594_s17 + $0x28] sm:$0xff] }
 0x1d6   : > { %v7587_v53 = vpop.permute.xlu1 %1840  ;;  %v7589_v49 = vpop.permute.xlu0 %2460 }
 0x1da   : > { %v723_v1 = vpop.f32.mrf.mxu0 }
 0x1db   : > { %v763_v25 = vmul.f32 0.17677669, %v723_v1 }
 0x1dd   : > { %v7600_v48 = vadd.f32 %v763_v25, %v7597_v17 }
 0x1de   : > { %v7602_v51 = vpop.permute.xlu0 %2458  ;;  %v7604_v56 = vpop.permute.xlu1 %1822 }
 0x1df   : > { %795 = vmax.xlane.f32.xlu1 %v7600_v48  ;;  %6167 = vmatmul.msk.bf16.gmra.mxu1 %vm421_vm0, %v1166_v30 }
 0x1e2   : > { %v725_v59 = vpop.f32.mrf.mxu0 }
 0x1e3   : > { %v764_v18 = vmul.f32 0.17677669, %v725_v59 }
 0x1e5   : > { %v7612_v29 = vadd.f32 %v764_v18, %v7609_v10  ;;  %v1894_v18 = vsel %vm421_vm0, %v7542_v27, 0 }
 0x1e6   : > { %v7614_v44 = vpop.permute.xlu0 %2456  ;;  %v7616_v47 = vpop.permute.xlu1 %2436 }
 0x1e7   : > { %11784 = vst [vmem:[#allocation16_spill] sm:$0xff] %v7616_v47  ;;  %797 = vmax.xlane.f32.xlu2 %v7612_v29 }
 0x1ea   : > { %v728_v35 = vpop.f32.mrf.mxu0 }
 0x1eb   : > { %v765_v38 = vmul.f32 0.17677669, %v728_v35  ;;  %v1845_v35 = vpop.permute.xlu2 %1844 }
 0x1ed   : > { %v7623_v41 = vadd.f32 %v765_v38, %v7620_v6  ;;  %v1891_v38 = vsel %vm421_vm0, %v7558_v7, 0  ;;  %v1882_v7 = vsel %vm421_vm0, %v7587_v53, 0 }
 0x1ee   : > { %v1843_v39 = vpop.permute.xlu0 %1842  ;;  %v7625_v5 = vpop.permute.xlu1 %2442 }
 0x1ef   : > { %11785 = vst [vmem:[#allocation17_spill] sm:$0xff] %v7625_v5  ;;  %799 = vmax.xlane.f32.xlu0 %v7623_v41  ;;  %6168 = vmatmul.msk.bf16.gmra.mxu1 %vm421_vm0, %v7518_v21  ;;  %v1885_v27 = vsel %vm421_vm0, %v1843_v39, 0 }
 0x1f2   : > { %v730_v45 = vpop.f32.mrf.mxu0 }
 0x1f3   : > { %v766_v57 = vmul.f32 0.17677669, %v730_v45 }
 0x1f5   : > { %v7634_v58 = vadd.f32 %v766_v57, %v7631_v8  ;;  %v1888_v57 = vsel %vm421_vm0, %v1845_v35, 0 }
 0x1f6   : > { %v1839_v60 = vpop.permute.xlu0 %1838  ;;  %v1853_v62 = vpop.permute.xlu1 %1852 }
 0x1f7   : > { %v1900_v30 = vsel %vm421_vm0, %v1853_v62, 0  ;;  %801 = vmax.xlane.f32.xlu1 %v7634_v58  ;;  %v7667_v62 = vpop.permute.xlu2 %2432 }
 0x1f8   : > { %1902 = vmatpush.bf16.xpose.msra.mxu0 %v1900_v30  ;;  %11788 = vst [vmem:[#allocation20_spill] sm:$0xff] %v7667_v62 }
 0x1fa   : > { %v733_v2 = vpop.f32.mrf.mxu0 }
 0x1fb   : > { %v767_v21 = vmul.f32 0.17677669, %v733_v2 }
 0x1fd   : > { %v7642_v4 = vadd.f32 %v767_v21, %v7639_v23 }
 0x1fe   : > { %v1825_v15 = vpop.permute.xlu0 %1824 }
 0x1ff   : > { %803 = vmax.xlane.f32.xlu0 %v7642_v4  ;;  %6169 = vmatmul.msk.bf16.gmra.mxu1 %vm421_vm0, %v1170_v37  ;;  %v7672_v2 = vpop.permute.xlu2 %2434 }
 0x200   : > { %1903 = vmatpush.bf16.xpose.msra.mxu0 %v1897_v31  ;;  %11789 = vst [vmem:[#allocation21_spill] sm:$0xff] %v7672_v2 }
 0x202   : > { %v735_v20 = vpop.f32.mrf.mxu0 }
 0x203   : > { %v768_v1 = vmul.f32 0.17677669, %v735_v20 }
 0x205   : > { %v7651_v25 = vadd.f32 %v768_v1, %v7648_v36 }
 0x206   : > { %v7653_v59 = vpop.permute.xlu0 %2438 }
 0x207   : > { %11786 = vst [vmem:[#allocation18_spill] sm:$0xff] %v7653_v59  ;;  %805 = vmax.xlane.f32.xlu2 %v7651_v25  ;;  %v1827_v21 = vpop.permute.xlu2 %1826 }
 0x208   : > { %1904 = vmatpush.bf16.xpose.msra.mxu0 %v1894_v18 }
 0x20e   : > { %v7658_v37 = vpop.permute.xlu0 %1828 }
 0x20f   : > { %6170 = vmatmul.msk.bf16.gmra.mxu1 %vm421_vm0, %v7553_v63  ;;  %v1831_v39 = vpop.permute.xlu2 %1830 }
 0x210   : > { %1905 = vmatpush.bf16.xpose.msra.mxu0 %v1891_v38 }
 0x216   : > { %v7664_v45 = vpop.permute.xlu0 %2440 }
 0x217   : > { %11787 = vst [vmem:[#allocation19_spill] sm:$0xff] %v7664_v45 }
 0x218   : > { %1906 = vmatpush.bf16.xpose.msra.mxu0 %v1888_v57  ;;  %v2495_v57 = vsel %vm421_vm0, %v7565_v16, 0 }
 0x21e   : > { %v1178_v30 = vpop.permute.xlu0 %1177 }
 0x21f   : > { %6171 = vmatmul.msk.bf16.gmra.mxu1 %vm421_vm0, %v7523_v14  ;;  %v1879_v14 = vsel %vm421_vm0, %v1839_v60, 0 }
 0x220   : > { %1907 = vmatpush.bf16.xpose.msra.mxu0 %v1885_v27 }
 0x226   : > { %v1715_v63 = vpop.permute.xlu0 %1714 }
 0x227   : > { %1724 = vmatpush.bf16.msrb.mxu2 %v1715_v63 }
 0x228   : > { %1908 = vmatpush.bf16.xpose.msra.mxu0 %v1882_v7 }
 0x22b   : > { %1725 = vmatpush.bf16.msrb.mxu2 %v7528_v24  ;;  %v2463_v24 = vpop.permute.xlu2 %2462 }
 0x22c   : > { %v2510_v53 = vsel %vm421_vm0, %v2463_v24, 0 }
 0x22f   : > { %6172 = vmatmul.msk.bf16.gmra.mxu1 %vm421_vm0, %v1176_v32  ;;  %1726 = vmatpush.bf16.msrb.mxu2 %v7560_v9  ;;  %v2507_v9 = vsel %vm421_vm0, %v7589_v49, 0 }
 0x230   : > { %1909 = vmatpush.bf16.xpose.msra.mxu0 %v1879_v14 }
 0x233   : > { %1727 = vmatpush.bf16.msrb.mxu2 %v7567_v19 }
 0x237   : > { %1728 = vmatpush.bf16.msrb.mxu2 %v1707_v34  ;;  %6174 = vmatmul.msk.bf16.vlgmr.msra.gmra.mxu0 %vm421_vm0, %v7604_v56 }
 0x23b   : > { %1729 = vmatpush.bf16.msrb.mxu2 %v7572_v22 }
 0x23f   : > { %6173 = vmatmul.msk.bf16.gmra.mxu1 %vm421_vm0, %v1178_v30  ;;  %1730 = vmatpush.bf16.msrb.mxu2 %v7535_v54 }
 0x243   : > { %1731 = vmatpush.bf16.msrb.mxu2 %v7580_v52  ;;  %v2504_v52 = vsel %vm421_vm0, %v7602_v51, 0 }
 0x247   : > { %2512 = vmatpush.bf16.xpose.msra.mxu2 %v2510_v53  ;;  %6175 = vmatmul.msk.bf16.gmra.mxu0 %vm421_vm0, %v1825_v15  ;;  %v738_v53 = vpop.f32.mrf.mxu0 }
 0x24c   : > { %v1260_v19 = vpop.f32.mrf.mxu1 }
 0x24d   : > { %v1300_v56 = vmul.f32 0.17677669, %v1260_v19 }
 0x24f   : > { %2513 = vmatpush.bf16.xpose.msra.mxu2 %v2507_v9  ;;  %v7692_v22 = vadd.f32 %v1300_v56, %v7597_v17  ;;  %v769_v9 = vmul.f32 0.17677669, %v738_v53 }
 0x251   : > { %1332 = vmax.xlane.f32.xlu1 %v7692_v22 }
 0x252   : > { %v796_v54 = vpop.xlane.xlu1 %795 }
 0x253   : > { %v827_v32 = vsub.f32 %v7600_v48, %v796_v54  ;;  %v2501_v48 = vsel %vm421_vm0, %v7614_v44, 0 }
 0x254   : > { %v1262_v34 = vpop.f32.mrf.mxu1 }
 0x255   : > { %v1301_v60 = vmul.f32 0.17677669, %v1262_v34  ;;  %v843_v12 = vmul.f32 1.442695, %v827_v32  ;;  %v740_v32 = vpop.f32.mrf.mxu0  ;;  %v7754_v34 = vld [vmem:[%s7594_s17 + $0x48] sm:$0xff] }
 0x257   : > { %2514 = vmatpush.bf16.xpose.msra.mxu2 %v2504_v52  ;;  %6176 = vmatmul.msk.bf16.gmra.mxu0 %vm421_vm0, %v1827_v21  ;;  %v7700_v49 = vadd.f32 %v1301_v60, %v7609_v10  ;;  %6364 = vpow2.f32 %v843_v12  ;;  %v2498_v10 = vsel %vm421_vm0, %v7551_v3, 0  ;;  %v329_v21 = vld [vmem:[%s7594_s17 + $0x30] sm:$0xff]  ;;  %v770_v12 = vmul.f32 0.17677669, %v740_v32 }
 0x258   : > { %v7750_v19 = vadd.f32 %v769_v9, %v329_v21 }
 0x259   : > { %1334 = vmax.xlane.f32.xlu2 %v7700_v49 }
 0x25a   : > { %v798_v15 = vpop.xlane.xlu2 %797 }
 0x25b   : > { %v828_v31 = vsub.f32 %v7612_v29, %v798_v15 }
 0x25c   : > { %v1265_v20 = vpop.f32.mrf.mxu1 }
 0x25d   : > { %v1302_v51 = vmul.f32 0.17677669, %v1265_v20  ;;  %v845_v1 = vmul.f32 1.442695, %v828_v31  ;;  %v7709_v35 = vpop.eup %6364 }
 0x25f   : > { %2515 = vmatpush.bf16.xpose.msra.mxu2 %v2501_v48  ;;  %v7707_v18 = vadd.f32 %v1302_v51, %v7620_v6  ;;  %6366 = vpow2.f32 %v845_v1  ;;  %v7768_v51 = vld [vmem:[%s7594_s17 + $0x50] sm:$0xff] }
 0x261   : > { %1336 = vmax.xlane.f32.xlu0 %v7707_v18  ;;  %875 = vadd.xlane.f32.xlu2 %v7709_v35 }
 0x264   : > { %v1267_v29 = vpop.f32.mrf.mxu1 }
 0x265   : > { %v7717_v44 = vpop.eup %6366  ;;  %v1303_v38 = vmul.f32 0.17677669, %v1267_v29 }
 0x267   : > { %2516 = vmatpush.bf16.xpose.msra.mxu2 %v2498_v10  ;;  %6177 = vmatmul.msk.bf16.gmra.mxu0 %vm421_vm0, %v7658_v37  ;;  %v7725_v3 = vadd.f32 %v1303_v38, %v7631_v8  ;;  %v2492_v37 = vsel %vm421_vm0, %v7570_v55, 0  ;;  %v2489_v8 = vsel %vm421_vm0, %v7578_v50, 0  ;;  %v7776_v38 = vld [vmem:[%s7594_s17 + $0x40] sm:$0xff] }
 0x269   : > { %877 = vadd.xlane.f32.xlu2 %v7717_v44 }
 0x26a   : > { %2444 = vrot.lane.b32.xlu1 %v7324_v28, %s7046_s12 }
 0x26c   : > { %v1270_v30 = vpop.f32.mrf.mxu1 }
 0x26d   : > { %v1304_v52 = vmul.f32 0.17677669, %v1270_v30 }
 0x26f   : > { %2517 = vmatpush.bf16.xpose.msra.mxu2 %v2495_v57  ;;  %v7761_v15 = vadd.f32 %v1304_v52, %v7639_v23  ;;  %v7812_v52 = vpop.xlane.xlu0 %799 }
 0x271   : > { %1338 = vmax.xlane.f32.xlu2 %v7725_v3 }
 0x274   : > { %v1272_v27 = vpop.f32.mrf.mxu1 }
 0x275   : > { %v1305_v63 = vmul.f32 0.17677669, %v1272_v27  ;;  %1832 = vrot.lane.b32.xlu0 %v7353_v61, %s7045_s11 }
 0x277   : > { %2518 = vmatpush.bf16.xpose.msra.mxu2 %v2492_v37  ;;  %6178 = vmatmul.msk.bf16.gmra.mxu0 %vm421_vm0, %v1831_v39  ;;  %v7734_v16 = vadd.f32 %v1305_v63, %v7648_v36  ;;  %v7744_v39 = vld [vmem:[%s7594_s17 + $0x38] sm:$0xff] }
 0x278   : > { %11790 = vst [vmem:[#allocation22_spill] sm:$0xff] %v7744_v39  ;;  %v7765_v20 = vadd.f32 %v770_v12, %v7744_v39  ;;  %v7782_v37 = vld [vmem:[%s7594_s17 + $0x58] sm:$0xff] }
 0x279   : > { %1342 = vmax.xlane.f32.xlu2 %v7734_v16 }
 0x27a   : > { %v7814_v12 = vpop.xlane.xlu2 %805 }
 0x27c   : > { %v1275_v7 = vpop.f32.mrf.mxu1 }
 0x27d   : > { %v1306_v55 = vmul.f32 0.17677669, %v1275_v7  ;;  %v7790_v7 = vld [vmem:[%s7594_s17 + $0x60] sm:$0xff] }
 0x27f   : > { %2519 = vmatpush.bf16.xpose.msra.mxu2 %v2489_v8  ;;  %v7740_v14 = vadd.f32 %v1306_v55, %v329_v21 }
 0x281   : > { %1344 = vmax.xlane.f32.xlu2 %v7740_v14 }
 0x284   : > { %v1277_v61 = vpop.f32.mrf.mxu1 }
 0x285   : > { %v1307_v24 = vmul.f32 0.17677669, %v1277_v61 }
 0x287   : > { %v7747_v36 = vadd.f32 %v1307_v24, %v7744_v39  ;;  %v7797_v24 = vld [vmem:[%s7594_s17 + $0x68] sm:$0xff] }
 0x289   : > { %1346 = vmax.xlane.f32.xlu2 %v7747_v36 }
 0x28c   : > { %v1280_v50 = vpop.f32.mrf.mxu1 }
 0x28d   : > { %v1308_v10 = vmul.f32 0.17677669, %v1280_v50  ;;  %v7803_v50 = vpop.xlane.xlu1 %801 }
 0x28f   : > { %v7779_v30 = vadd.f32 %v1308_v10, %v7776_v38 }
 0x294   : > { %v1282_v56 = vpop.f32.mrf.mxu1  ;;  %807 = vmax.xlane.f32.xlu1 %v7750_v19 }
 0x295   : > { %v1309_v54 = vmul.f32 0.17677669, %v1282_v56 }
 0x297   : > { %v7757_v60 = vadd.f32 %v1309_v54, %v7754_v34  ;;  %v7806_v54 = vld [vmem:[%s7594_s17 + $0x70] sm:$0xff] }
 0x299   : > { %1350 = vmax.xlane.f32.xlu2 %v7757_v60 }
 0x29c   : > { %v1285_v31 = vpop.f32.mrf.mxu1  ;;  %1340 = vmax.xlane.f32.xlu1 %v7761_v15 }
 0x29d   : > { %v1310_v48 = vmul.f32 0.17677669, %v1285_v31 }
 0x29f   : > { %809 = vmax.xlane.f32.xlu0 %v7765_v20  ;;  %v7772_v1 = vadd.f32 %v1310_v48, %v7768_v51 }
 0x2a1   : > { %1352 = vmax.xlane.f32.xlu2 %v7772_v1 }
 0x2a4   : > { %v1287_v29 = vpop.f32.mrf.mxu1 }
 0x2a5   : > { %v1311_v57 = vmul.f32 0.17677669, %v1287_v29 }
 0x2a7   : > { %1348 = vmax.xlane.f32.xlu0 %v7779_v30  ;;  %v7786_v27 = vadd.f32 %v1311_v57, %v7782_v37  ;;  %v7818_v57 = vld [vmem:[%s7594_s17 + $0x78] sm:$0xff] }
 0x2a9   : > { %1354 = vmax.xlane.f32.xlu2 %v7786_v27 }
 0x2ac   : > { %v1290_v63 = vpop.f32.mrf.mxu1 }
 0x2ad   : > { %v1312_v8 = vmul.f32 0.17677669, %v1290_v63 }
 0x2af   : > { %v7793_v55 = vadd.f32 %v1312_v8, %v7790_v7 }
 0x2b1   : > { %1356 = vmax.xlane.f32.xlu2 %v7793_v55 }
 0x2b4   : > { %v1292_v21 = vpop.f32.mrf.mxu1 }
 0x2b5   : > { %v1313_v61 = vmul.f32 0.17677669, %v1292_v21  ;;  %v7824_v21 = vpop.xlane.xlu0 %803 }
 0x2b7   : > { %v7800_v53 = vadd.f32 %v1313_v61, %v7797_v24 }
 0x2b9   : > { %1358 = vmax.xlane.f32.xlu2 %v7800_v53 }
 0x2bc   : > { %v1295_v9 = vpop.f32.mrf.mxu1 }
 0x2bd   : > { %v1314_v56 = vmul.f32 0.17677669, %v1295_v9 }
 0x2bf   : > { %v7809_v32 = vadd.f32 %v1314_v56, %v7806_v54 }
 0x2c1   : > { %1360 = vmax.xlane.f32.xlu1 %v7809_v32 }
 0x2c4   : > { %v1297_v31 = vpop.f32.mrf.mxu1  ;;  %v1333_v48 = vpop.xlane.xlu1 %1332 }
 0x2c5   : > { %v1315_v10 = vmul.f32 0.17677669, %v1297_v31  ;;  %v1364_v29 = vsub.f32 %v7692_v22, %v1333_v48 }
 0x2c7   : > { %v1380_v63 = vmul.f32 1.442695, %v1364_v29  ;;  %v7821_v8 = vadd.f32 %v1315_v10, %v7818_v57 }
 0x2c9   : > { %6368 = vpow2.f32 %v1380_v63  ;;  %1362 = vmax.xlane.f32.xlu2 %v7821_v8 }
 0x2cc   : > { %v1335_v61 = vpop.xlane.xlu2 %1334 }
 0x2cd   : > { %v1365_v9 = vsub.f32 %v7700_v49, %v1335_v61 }
 0x2cf   : > { %v7827_v56 = vpop.eup %6368  ;;  %v1382_v0 = vmul.f32 1.442695, %v1365_v9 }
 0x2d1   : > { %6370 = vpow2.f32 %v1382_v0  ;;  %1412 = vadd.xlane.f32.xlu2 %v7827_v56 }
 0x2d4   : > { %v1337_v22 = vpop.xlane.xlu0 %1336  ;;  %v876_v31 = vpop.xlane.xlu2 %875 }
 0x2d5   : > { %v1366_v48 = vsub.f32 %v7707_v18, %v1337_v22  ;;  %6372 = vrcp.f32 %v876_v31  ;;  %v918_v45 = vand.u32 2147483648, %v876_v31  ;;  %vm912_vm2 = vweird.f32 %v876_v31 }
 0x2d6   : > { %v916_v59 = vand.u32 2147483647, %v876_v31 }
 0x2d7   : > { %v7831_v10 = vpop.eup %6370  ;;  %v1384_v29 = vmul.f32 1.442695, %v1366_v48  ;;  %v919_v11 = vor.u32 1.1754944e-38, %v918_v45 }
 0x2d8   : > { %1414 = vadd.xlane.f32.xlu1 %v7831_v10  ;;  %vm917_vm6 = vcmp.eq.f32.partialorder %v916_v59, 8.507059e+37 }
 0x2d9   : > { %6374 = vpow2.f32 %v1384_v29 }
 0x2db   : > { %v6373_v63 = vpop.eup %6372 }
 0x2dc   : > { %v908_v43 = vmul.f32 %v6373_v63, %v876_v31  ;;  %v878_v49 = vpop.xlane.xlu2 %877  ;;  %vm913_vm1 = vweird.f32 %v6373_v63 }
 0x2dd   : > { %6376 = vrcp.f32 %v878_v49  ;;  %v933_v47 = vand.u32 2147483648, %v878_v49  ;;  %vm914_vm3 = vmor %vm912_vm2, %vm913_vm1  ;;  %v931_v62 = vand.u32 2147483647, %v878_v49  ;;  %vm927_vm5 = vweird.f32 %v878_v49 }
 0x2de   : > { %v909_v61 = vsub.f32 1.0, %v908_v43 }
 0x2df   : > { %v7834_v9 = vpop.eup %6374  ;;  %vm932_vm8 = vcmp.eq.f32.partialorder %v931_v62, 8.507059e+37 }
 0x2e0   : > { %v910_v0 = vmul.f32 %v6373_v63, %v909_v61  ;;  %1416 = vadd.xlane.f32.xlu0 %v7834_v9 }
 0x2e2   : > { %v911_v22 = vadd.f32 %v6373_v63, %v910_v0 }
 0x2e3   : > { %v6377_v5 = vpop.eup %6376 }
 0x2e4   : > { %v923_v42 = vmul.f32 %v6377_v5, %v878_v49  ;;  %v1339_v18 = vpop.xlane.xlu2 %1338  ;;  %v915_v61 = vsel %vm914_vm3, %v6373_v63, %v911_v22  ;;  %vm928_vm4 = vweird.f32 %v6377_v5  ;;  %v7854_v49 = vpop.permute.xlu1 %2444 }
 0x2e5   : > { %v1367_v48 = vsub.f32 %v7725_v3, %v1339_v18  ;;  %v920_v40 = vsel %vm917_vm6, %v919_v11, %v915_v61  ;;  %vm929_vm7 = vmor %vm927_vm5, %vm928_vm4  ;;  %v934_v3 = vor.u32 1.1754944e-38, %v933_v47  ;;  %v743_v47 = vpop.f32.mrf.mxu0  ;;  %11792 = vst [vmem:[#allocation24_spill] sm:$0xff] %v7854_v49 }
 0x2e6   : > { %v924_v29 = vsub.f32 1.0, %v923_v42 }
 0x2e7   : > { %v1386_v2 = vmul.f32 1.442695, %v1367_v48  ;;  %v1833_v46 = vpop.permute.xlu0 %1832 }
 0x2e8   : > { %v925_v43 = vmul.f32 %v6377_v5, %v924_v29  ;;  %6179 = vmatmul.msk.bf16.gmra.mxu0 %vm421_vm0, %v1833_v46  ;;  %v921_v29 = vmul.f32 %v7709_v35, %v920_v40  ;;  %v771_v40 = vmul.f32 0.17677669, %v743_v47 }
 0x2e9   : > { %6378 = vpow2.f32 %v1386_v2 }
 0x2ea   : > { %v926_v0 = vadd.f32 %v6377_v5, %v925_v43  ;;  %v7850_v35 = vadd.f32 %v771_v40, %v7776_v38 }
 0x2ec   : > { %v1343_v42 = vpop.xlane.xlu2 %1342  ;;  %v930_v31 = vsel %vm929_vm7, %v6377_v5, %v926_v0 }
 0x2ed   : > { %v1369_v18 = vsub.f32 %v7734_v16, %v1343_v42  ;;  %v935_v48 = vsel %vm932_vm8, %v934_v3, %v930_v31  ;;  %v745_v16 = vpop.f32.mrf.mxu0 }
 0x2ee   : > { %v936_v46 = vmul.f32 %v7717_v44, %v935_v48 }
 0x2ef   : > { %v7842_v63 = vpop.eup %6378  ;;  %v1390_v2 = vmul.f32 1.442695, %v1369_v18 }
 0x2f0   : > { %1418 = vadd.xlane.f32.xlu1 %v7842_v63  ;;  %v1147_v59 = vpack.c.bf16 %v936_v46, %v921_v29 }
 0x2f1   : > { %6380 = vpow2.f32 %v1390_v2 }
 0x2f2   : > { %1781 = vmatmul.bf16.vlgmr.msrb.gmra.mxu3 %v1147_v59 }
 0x2f4   : > { %v1345_v11 = vpop.xlane.xlu2 %1344 }
 0x2f5   : > { %v1370_v5 = vsub.f32 %v7740_v14, %v1345_v11  ;;  %v772_v14 = vmul.f32 0.17677669, %v745_v16  ;;  %v748_v16 = vpop.f32.mrf.mxu0 }
 0x2f7   : > { %v7846_v45 = vpop.eup %6380  ;;  %v1392_v62 = vmul.f32 1.442695, %v1370_v5  ;;  %v7859_v43 = vadd.f32 %v772_v14, %v7754_v34 }
 0x2f8   : > { %1422 = vadd.xlane.f32.xlu0 %v7846_v45 }
 0x2f9   : > { %6382 = vpow2.f32 %v1392_v62 }
 0x2fc   : > { %v1347_v22 = vpop.xlane.xlu2 %1346 }
 0x2fd   : > { %v1371_v18 = vsub.f32 %v7747_v36, %v1347_v22  ;;  %v7894_v22 = vpop.f32.mrf.mxu0 }
 0x2ff   : > { %v7852_v44 = vpop.eup %6382  ;;  %v1394_v34 = vmul.f32 1.442695, %v1371_v18 }
 0x300   : > { %11791 = vst [vmem:[#allocation23_spill] sm:$0xff] %v7852_v44  ;;  %1424 = vadd.xlane.f32.xlu1 %v7852_v44  ;;  %811 = vmax.xlane.f32.xlu0 %v7850_v35 }
 0x307   : > { %v7861_v61 = vpop.xlane.xlu1 %807 }
 0x308   : > { %813 = vmax.xlane.f32.xlu0 %v7859_v43 }
 0x30c   : > { %v1351_v38 = vpop.xlane.xlu2 %1350 }
 0x30f   : > { %v1341_v0 = vpop.xlane.xlu1 %1340 }
 0x310   : > { %v1368_v3 = vsub.f32 %v7761_v15, %v1341_v0  ;;  %v1373_v15 = vsub.f32 %v7757_v60, %v1351_v38  ;;  %v7898_v0 = vpop.f32.mrf.mxu0 }
 0x312   : > { %v1388_v42 = vmul.f32 1.442695, %v1368_v3  ;;  %v7865_v31 = vpop.xlane.xlu0 %809  ;;  %v1398_v36 = vmul.f32 1.442695, %v1373_v15 }
 0x314   : > { %6384 = vpow2.f32 %v1388_v42  ;;  %v1353_v48 = vpop.xlane.xlu2 %1352 }
 0x315   : > { %v1374_v29 = vsub.f32 %v7772_v1, %v1353_v48 }
 0x317   : > { %v1400_v46 = vmul.f32 1.442695, %v1374_v29 }
 0x318   : > { %v7904_v29 = vpop.f32.mrf.mxu0 }
 0x319   : > { %6386 = vpow2.f32 %v1400_v46 }
 0x31a   : > { %v7869_v2 = vpop.eup %6384  ;;  %v1349_v59 = vpop.xlane.xlu0 %1348  ;;  %6388 = vpow2.f32 %v1394_v34 }
 0x31b   : > { %v1372_v11 = vsub.f32 %v7779_v30, %v1349_v59  ;;  %1420 = vadd.xlane.f32.xlu2 %v7869_v2 }
 0x31c   : > { %v7876_v62 = vpop.xlane.xlu2 %1354 }
 0x31d   : > { %v1396_v47 = vmul.f32 1.442695, %v1372_v11 }
 0x31f   : > { %v7874_v5 = vpop.eup %6386  ;;  %6390 = vpow2.f32 %v1396_v47 }
 0x320   : > { %11793 = vst [vmem:[#allocation25_spill] sm:$0xff] %v7874_v5  ;;  %1432 = vadd.xlane.f32.xlu0 %v7874_v5  ;;  %v7879_v1 = vpop.eup %6388  ;;  %6392 = vpow2.f32 %v1398_v36  ;;  %v7908_v36 = vpop.f32.mrf.mxu0 }
 0x321   : > { %11794 = vst [vmem:[#allocation26_spill] sm:$0xff] %v7879_v1 }
 0x323   : > { %1426 = vadd.xlane.f32.xlu2 %v7879_v1  ;;  %v830_v1 = vsub.f32 %v7634_v58, %v7803_v50 }
 0x324   : > { %v7887_v60 = vpop.xlane.xlu2 %1356 }
 0x325   : > { %v7882_v30 = vpop.eup %6390  ;;  %v849_v58 = vmul.f32 1.442695, %v830_v1 }
 0x326   : > { %11795 = vst [vmem:[#allocation27_spill] sm:$0xff] %v7882_v30  ;;  %1428 = vadd.xlane.f32.xlu1 %v7882_v30  ;;  %v7885_v40 = vpop.eup %6392 }
 0x327   : > { %11796 = vst [vmem:[#allocation28_spill] sm:$0xff] %v7885_v40 }
 0x328   : > { %v7923_v50 = vpop.f32.mrf.mxu0 }
 0x32b   : > { %1430 = vadd.xlane.f32.xlu2 %v7885_v40  ;;  %v773_v40 = vmul.f32 0.17677669, %v748_v16 }
 0x32c   : > { %v7890_v14 = vpop.xlane.xlu2 %1358 }
 0x334   : > { %1836 = vrot.lane.b32.xlu0 %v7545_v33, %s7045_s11  ;;  %v7900_v3 = vpop.xlane.xlu1 %1360 }
 0x33c   : > { %v1363_v38 = vpop.xlane.xlu2 %1362 }
 0x33d   : > { %v1379_v26 = vsub.f32 %v7821_v8, %v1363_v38 }
 0x33f   : > { %2446 = vrot.lane.b32.xlu1 %v7545_v33, %s7046_s12  ;;  %v1410_v8 = vmul.f32 1.442695, %v1379_v26  ;;  %v834_v26 = vsub.f32 %v7765_v20, %v7865_v31  ;;  %v7934_v20 = vpop.f32.mrf.mxu0 }
 0x343   : > { %1834 = vrot.lane.b32.xlu2 %v7324_v28, %s7045_s11 }
 0x344   : > { %v1413_v42 = vpop.xlane.xlu2 %1412 }
 0x345   : > { %6394 = vrcp.f32 %v1413_v42  ;;  %v1455_v49 = vand.u32 2147483648, %v1413_v42  ;;  %vm1449_vm10 = vweird.f32 %v1413_v42  ;;  %v1453_v5 = vand.u32 2147483647, %v1413_v42 }
 0x347   : > { %v1456_v44 = vor.u32 1.1754944e-38, %v1455_v49  ;;  %vm1454_vm14 = vcmp.eq.f32.partialorder %v1453_v5, 8.507059e+37  ;;  %v829_v49 = vsub.f32 %v7623_v41, %v7812_v52  ;;  %v831_v41 = vsub.f32 %v7642_v4, %v7824_v21 }
 0x348   : > { %v857_v52 = vmul.f32 1.442695, %v834_v26  ;;  %v833_v26 = vsub.f32 %v7750_v19, %v7861_v61 }
 0x34b   : > { %v6395_v18 = vpop.eup %6394  ;;  %v1415_v48 = vpop.xlane.xlu1 %1414 }
 0x34c   : > { %v1445_v46 = vmul.f32 %v6395_v18, %v1413_v42  ;;  %6396 = vrcp.f32 %v1415_v48  ;;  %vm1450_vm9 = vweird.f32 %v6395_v18  ;;  %v1470_v39 = vand.u32 2147483648, %v1415_v48 }
 0x34d   : > { %vm1451_vm11 = vmor %vm1449_vm10, %vm1450_vm9  ;;  %v1468_v30 = vand.u32 2147483647, %v1415_v48  ;;  %vm1464_vm13 = vweird.f32 %v1415_v48 }
 0x34e   : > { %v1446_v34 = vsub.f32 1.0, %v1445_v46  ;;  %v1471_v42 = vor.u32 1.1754944e-38, %v1470_v39 }
 0x34f   : > { %vm1469_vm1 = vcmp.eq.f32.partialorder %v1468_v30, 8.507059e+37  ;;  %v851_v30 = vmul.f32 1.442695, %v831_v41 }
 0x350   : > { %v1447_v59 = vmul.f32 %v6395_v18, %v1446_v34 }
 0x352   : > { %v6397_v11 = vpop.eup %6396  ;;  %v1448_v47 = vadd.f32 %v6395_v18, %v1447_v59 }
 0x353   : > { %v1460_v15 = vmul.f32 %v6397_v11, %v1415_v48  ;;  %v7906_v33 = vpop.xlane.xlu0 %1416  ;;  %vm1465_vm12 = vweird.f32 %v6397_v11 }
 0x354   : > { %6398 = vrcp.f32 %v7906_v33  ;;  %v1452_v34 = vsel %vm1451_vm11, %v6395_v18, %v1448_v47  ;;  %vm1466_vm15 = vmor %vm1464_vm13, %vm1465_vm12  ;;  %v7917_v18 = vadd.f32 %v773_v40, %v7768_v51  ;;  %vm1479_vm3 = vweird.f32 %v7906_v33 }
 0x355   : > { %v1461_v28 = vsub.f32 1.0, %v1460_v15  ;;  %v1457_v15 = vsel %vm1454_vm14, %v1456_v44, %v1452_v34  ;;  %6400 = vpow2.f32 %v1410_v8  ;;  %v847_v44 = vmul.f32 1.442695, %v829_v49 }
 0x356   : > { %v1458_v5 = vmul.f32 %v7827_v56, %v1457_v15  ;;  %6402 = vpow2.f32 %v849_v58  ;;  %v774_v8 = vmul.f32 0.17677669, %v7894_v22 }
 0x357   : > { %v1462_v46 = vmul.f32 %v6397_v11, %v1461_v28 }
 0x359   : > { %v1463_v59 = vadd.f32 %v6397_v11, %v1462_v46  ;;  %v1485_v46 = vand.u32 2147483648, %v7906_v33 }
 0x35a   : > { %v7914_v13 = vpop.eup %6398 }
 0x35b   : > { %v1467_v38 = vsel %vm1466_vm15, %v6397_v11, %v1463_v59  ;;  %v1475_v39 = vmul.f32 %v7914_v13, %v7906_v33  ;;  %v7932_v1 = vpop.eup %6400  ;;  %vm1480_vm2 = vweird.f32 %v7914_v13  ;;  %v832_v59 = vsub.f32 %v7651_v25, %v7814_v12 }
 0x35c   : > { %v1472_v47 = vsel %vm1469_vm1, %v1471_v42, %v1467_v38  ;;  %v7938_v40 = vpop.eup %6402  ;;  %v1483_v42 = vand.u32 2147483647, %v7906_v33  ;;  %vm7957_vm4 = vmor %vm1479_vm3, %vm1480_vm2  ;;  %v1486_v33 = vor.u32 1.1754944e-38, %v1485_v46 }
 0x35d   : > { %v1473_v16 = vmul.f32 %v7831_v10, %v1472_v47  ;;  %v1476_v56 = vsub.f32 1.0, %v1475_v39  ;;  %v853_v22 = vmul.f32 1.442695, %v832_v59  ;;  %v7972_v39 = vadd.f32 %v774_v8, %v7782_v37 }
 0x35e   : > { %815 = vmax.xlane.f32.xlu0 %v7917_v18  ;;  %vm1484_vm6 = vcmp.eq.f32.partialorder %v1483_v42, 8.507059e+37  ;;  %v855_v37 = vmul.f32 1.442695, %v833_v26  ;;  %v1376_v59 = vsub.f32 %v7793_v55, %v7887_v60 }
 0x35f   : > { %v1684_v51 = vpack.c.bf16 %v1473_v16, %v1458_v5  ;;  %v1477_v31 = vmul.f32 %v7914_v13, %v1476_v56  ;;  %v7966_v16 = vpop.f32.mrf.mxu0 }
 0x361   : > { %1732 = vmatmul.bf16.vlgmr.msrb.gmra.mxu2 %v1684_v51  ;;  %v1478_v28 = vadd.f32 %v7914_v13, %v1477_v31 }
 0x363   : > { %v1419_v10 = vpop.xlane.xlu1 %1418  ;;  %v1482_v49 = vsel %vm7957_vm4, %v7914_v13, %v1478_v28 }
 0x364   : > { %6404 = vrcp.f32 %v1419_v10  ;;  %v1500_v47 = vand.u32 2147483648, %v1419_v10  ;;  %v1498_v25 = vand.u32 2147483647, %v1419_v10  ;;  %vm1494_vm7 = vweird.f32 %v1419_v10 }
 0x365   : > { %6406 = vpow2.f32 %v847_v44  ;;  %v1487_v13 = vsel %vm1484_vm6, %v1486_v33, %v1482_v49  ;;  %v775_v44 = vmul.f32 0.17677669, %v7898_v0  ;;  %v1375_v0 = vsub.f32 %v7786_v27, %v7876_v62 }
 0x366   : > { %1442 = vadd.xlane.f32.xlu0 %v7932_v1  ;;  %6408 = vpow2.f32 %v857_v52  ;;  %v1501_v51 = vor.u32 1.1754944e-38, %v1500_v47  ;;  %vm1499_vm9 = vcmp.eq.f32.partialorder %v1498_v25, 8.507059e+37  ;;  %v1951_v62 = vmul.f32 0.17677669, %v7934_v20 }
 0x367   : > { %6410 = vpow2.f32 %v851_v30  ;;  %v1404_v20 = vmul.f32 1.442695, %v1376_v59 }
 0x368   : > { %6412 = vpow2.f32 %v853_v22 }
 0x369   : > { %881 = vadd.xlane.f32.xlu1 %v7938_v40 }
 0x36a   : > { %v6405_v4 = vpop.eup %6404 }
 0x36b   : > { %v7941_v21 = vpop.eup %6406  ;;  %v1490_v48 = vmul.f32 %v6405_v4, %v1419_v10  ;;  %v7943_v11 = vpop.xlane.xlu0 %1422  ;;  %vm1495_vm5 = vweird.f32 %v6405_v4  ;;  %v1488_v10 = vmul.f32 %v7834_v9, %v1487_v13  ;;  %v1402_v9 = vmul.f32 1.442695, %v1375_v0 }
 0x36c   : > { %879 = vadd.xlane.f32.xlu2 %v7941_v21  ;;  %v7949_v34 = vpop.eup %6408  ;;  %vm1496_vm8 = vmor %vm1494_vm7, %vm1495_vm5  ;;  %vm1524_vm11 = vweird.f32 %v7943_v11 }
 0x36d   : > { %v1491_v15 = vsub.f32 1.0, %v1490_v48  ;;  %v7964_v12 = vpop.eup %6410  ;;  %v7980_v48 = vadd.f32 %v775_v44, %v7790_v7  ;;  %v776_v7 = vmul.f32 0.17677669, %v7904_v29  ;;  %v8008_v29 = vadd.f32 %v1951_v62, %v7597_v17 }
 0x36e   : > { %889 = vadd.xlane.f32.xlu0 %v7949_v34 }
 0x36f   : > { %v1492_v5 = vmul.f32 %v6405_v4, %v1491_v15 }
 0x371   : > { %883 = vadd.xlane.f32.xlu1 %v7964_v12  ;;  %v1493_v58 = vadd.f32 %v6405_v4, %v1492_v5  ;;  %v777_v5 = vmul.f32 0.17677669, %v7908_v36 }
 0x373   : > { %v812_v41 = vpop.xlane.xlu0 %811  ;;  %v1497_v52 = vsel %vm1496_vm8, %v6405_v4, %v1493_v58  ;;  %v7985_v4 = vpop.eup %6412 }
 0x374   : > { %v835_v56 = vsub.f32 %v7850_v35, %v812_v41  ;;  %817 = vmax.xlane.f32.xlu2 %v7972_v39  ;;  %v1502_v30 = vsel %vm1499_vm9, %v1501_v51, %v1497_v52  ;;  %v1916_v35 = vpop.f32.mrf.mxu0  ;;  %v8028_v33 = vpop.xlane.xlu1 %1424 }
 0x375   : > { %v1503_v19 = vmul.f32 %v7842_v63, %v1502_v30  ;;  %v1378_v63 = vsub.f32 %v7809_v32, %v7900_v3  ;;  %v8002_v32 = vadd.f32 %v776_v7, %v7797_v24  ;;  %v1953_v55 = vmul.f32 0.17677669, %v1916_v35 }
 0x376   : > { %v859_v61 = vmul.f32 1.442695, %v835_v56  ;;  %v1377_v24 = vsub.f32 %v7800_v53, %v7890_v14  ;;  %v1530_v30 = vand.u32 2147483648, %v7943_v11  ;;  %vm1539_vm7 = vweird.f32 %v8028_v33 }
 0x377   : > { %v1685_v31 = vpack.c.bf16 %v1503_v19, %v1488_v10  ;;  %v1408_v46 = vmul.f32 1.442695, %v1378_v63  ;;  %v8025_v49 = vadd.f32 %v1953_v55, %v7620_v6  ;;  %v8036_v6 = vadd.f32 %v777_v5, %v7806_v54 }
 0x378   : > { %6414 = vpow2.f32 %v859_v61  ;;  %v1406_v38 = vmul.f32 1.442695, %v1377_v24  ;;  %v1531_v63 = vor.u32 1.1754944e-38, %v1530_v30 }
 0x379   : > { %1737 = vmatmul.bf16.gmra.mxu2 %v1685_v31  ;;  %819 = vmax.xlane.f32.xlu1 %v7980_v48  ;;  %6416 = vpow2.f32 %v855_v37  ;;  %v778_v31 = vmul.f32 0.17677669, %v7923_v50 }
 0x37a   : > { %6418 = vpow2.f32 %v1402_v9 }
 0x37b   : > { %6420 = vrcp.f32 %v7943_v11  ;;  %v814_v60 = vpop.xlane.xlu0 %813 }
 0x37c   : > { %885 = vadd.xlane.f32.xlu2 %v7985_v4  ;;  %v8004_v3 = vpop.f32.mrf.mxu0  ;;  %6422 = vpow2.f32 %v1408_v46  ;;  %v836_v47 = vsub.f32 %v7859_v43, %v814_v60 }
 0x37d   : > { %6424 = vpow2.f32 %v1404_v20 }
 0x37e   : > { %v7990_v28 = vpop.eup %6414  ;;  %v861_v26 = vmul.f32 1.442695, %v836_v47 }
 0x37f   : > { %891 = vadd.xlane.f32.xlu0 %v7990_v28  ;;  %v7994_v27 = vpop.eup %6416 }
 0x380   : > { %v8010_v15 = vpop.eup %6418 }
 0x381   : > { %887 = vadd.xlane.f32.xlu1 %v7994_v27  ;;  %v8013_v42 = vpop.eup %6420 }
 0x382   : > { %v8018_v8 = vpop.eup %6422  ;;  %v1520_v17 = vmul.f32 %v8013_v42, %v7943_v11  ;;  %vm1525_vm10 = vweird.f32 %v8013_v42 }
 0x383   : > { %v8031_v22 = vpop.eup %6424  ;;  %vm8057_vm13 = vmor %vm1524_vm11, %vm1525_vm10 }
 0x384   : > { %821 = vmax.xlane.f32.xlu2 %v8002_v32  ;;  %v1921_v53 = vpop.f32.mrf.mxu0  ;;  %v1521_v25 = vsub.f32 1.0, %v1520_v17 }
 0x385   : > { %v1955_v58 = vmul.f32 0.17677669, %v1921_v53 }
 0x386   : > { %v1522_v43 = vmul.f32 %v8013_v42, %v1521_v25 }
 0x387   : > { %1983 = vmax.xlane.f32.xlu0 %v8008_v29  ;;  %v8041_v13 = vadd.f32 %v1955_v58, %v7639_v23  ;;  %v1528_v23 = vand.u32 2147483647, %v7943_v11 }
 0x388   : > { %v1523_v54 = vadd.f32 %v8013_v42, %v1522_v43 }
 0x389   : > { %1434 = vadd.xlane.f32.xlu1 %v8010_v15  ;;  %vm1529_vm1 = vcmp.eq.f32.partialorder %v1528_v23, 8.507059e+37 }
 0x38a   : > { %v1527_v9 = vsel %vm8057_vm13, %v8013_v42, %v1523_v54  ;;  %v8076_v42 = vadd.f32 %v778_v31, %v7818_v57  ;;  %v1543_v54 = vand.u32 2147483647, %v8028_v33 }
 0x38b   : > { %v1532_v20 = vsel %vm1529_vm1, %v1531_v63, %v1527_v9 }
 0x38c   : > { %1440 = vadd.xlane.f32.xlu2 %v8018_v8  ;;  %v1533_v47 = vmul.f32 %v7846_v45, %v1532_v20  ;;  %vm1544_vm10 = vcmp.eq.f32.partialorder %v1543_v54, 8.507059e+37 }
 0x38e   : > { %v1421_v14 = vpop.xlane.xlu2 %1420 }
 0x38f   : > { %6426 = vrcp.f32 %v1421_v14  ;;  %1987 = vmax.xlane.f32.xlu0 %v8025_v49  ;;  %v1515_v19 = vand.u32 2147483648, %v1421_v14  ;;  %v1513_v35 = vand.u32 2147483647, %v1421_v14  ;;  %vm1509_vm14 = vweird.f32 %v1421_v14 }
 0x390   : > { %6428 = vpow2.f32 %v1406_v38 }
 0x391   : > { %1436 = vadd.xlane.f32.xlu1 %v8031_v22  ;;  %6430 = vrcp.f32 %v8028_v33  ;;  %v1516_v59 = vor.u32 1.1754944e-38, %v1515_v19  ;;  %vm1514_vm2 = vcmp.eq.f32.partialorder %v1513_v35, 8.507059e+37 }
 0x392   : > { %6432 = vpow2.f32 %v861_v26 }
 0x394   : > { %823 = vmax.xlane.f32.xlu2 %v8036_v6 }
 0x395   : > { %v6427_v36 = vpop.eup %6426 }
 0x396   : > { %v1505_v51 = vmul.f32 %v6427_v36, %v1421_v14  ;;  %v8043_v44 = vpop.xlane.xlu2 %1426  ;;  %v8045_v41 = vpop.eup %6428  ;;  %vm1510_vm12 = vweird.f32 %v6427_v36 }
 0x397   : > { %6434 = vrcp.f32 %v8043_v44  ;;  %1991 = vmax.xlane.f32.xlu0 %v8041_v13  ;;  %v8051_v52 = vpop.eup %6430  ;;  %vm1511_vm15 = vmor %vm1509_vm14, %vm1510_vm12  ;;  %v1560_v26 = vand.u32 2147483648, %v8043_v44  ;;  %vm1554_vm5 = vweird.f32 %v8043_v44  ;;  %v1558_v45 = vand.u32 2147483647, %v8043_v44 }
 0x398   : > { %v1506_v56 = vsub.f32 1.0, %v1505_v51  ;;  %v8061_v61 = vpop.eup %6432  ;;  %v1535_v0 = vmul.f32 %v8051_v52, %v8028_v33  ;;  %vm1540_vm4 = vweird.f32 %v8051_v52 }
 0x399   : > { %1438 = vadd.xlane.f32.xlu1 %v8045_v41  ;;  %v8073_v24 = vpop.xlane.xlu1 %1428  ;;  %vm1541_vm8 = vmor %vm1539_vm7, %vm1540_vm4  ;;  %v1561_v30 = vor.u32 1.1754944e-38, %v1560_v26  ;;  %vm1559_vm9 = vcmp.eq.f32.partialorder %v1558_v45, 8.507059e+37  ;;  %v11804_v45 = vld [vmem:[#allocation28_spill] sm:$0xff] }
 0x39a   : > { %v1507_v10 = vmul.f32 %v6427_v36, %v1506_v56  ;;  %v1536_v55 = vsub.f32 1.0, %v1535_v0  ;;  %v8098_v0 = vpop.xlane.xlu0 %1432 }
 0x39c   : > { %893 = vadd.xlane.f32.xlu2 %v8061_v61  ;;  %v1508_v11 = vadd.f32 %v6427_v36, %v1507_v10  ;;  %v1537_v14 = vmul.f32 %v8051_v52, %v1536_v55  ;;  %v11801_v10 = vld [vmem:[#allocation10_spill] sm:$0xff] }
 0x39d   : > { %v6435_v7 = vpop.eup %6434 }
 0x39e   : > { %v1550_v62 = vmul.f32 %v6435_v7, %v8043_v44  ;;  %v8071_v46 = vpop.xlane.xlu2 %1430  ;;  %v1512_v50 = vsel %vm1511_vm15, %v6427_v36, %v1508_v11  ;;  %vm1555_vm3 = vweird.f32 %v6435_v7  ;;  %v1538_v43 = vadd.f32 %v8051_v52, %v1537_v14 }
 0x39f   : > { %6436 = vrcp.f32 %v8071_v46  ;;  %v1517_v17 = vsel %vm1514_vm2, %v1516_v59, %v1512_v50  ;;  %v1545_v36 = vand.u32 2147483648, %v8028_v33  ;;  %vm1556_vm6 = vmor %vm1554_vm5, %vm1555_vm3  ;;  %v11802_v33 = vld [vmem:[#allocation26_spill] sm:$0xff]  ;;  %vm1584_vm12 = vweird.f32 %v8071_v46 }
 0x3a0   : > { %v1551_v60 = vsub.f32 1.0, %v1550_v62  ;;  %v1518_v38 = vmul.f32 %v7869_v2, %v1517_v17  ;;  %6438 = vrcp.f32 %v8073_v24  ;;  %v1542_v44 = vsel %vm1541_vm8, %v8051_v52, %v1538_v43 }
 0x3a1   : > { %825 = vmax.xlane.f32.xlu1 %v8076_v42  ;;  %v1546_v19 = vor.u32 1.1754944e-38, %v1545_v36  ;;  %v1590_v52 = vand.u32 2147483648, %v8071_v46  ;;  %v1588_v17 = vand.u32 2147483647, %v8071_v46  ;;  %vm1569_vm15 = vweird.f32 %v8073_v24  ;;  %v11805_v36 = vld [vmem:[#allocation27_spill] sm:$0xff] }
 0x3a2   : > { %v1552_v5 = vmul.f32 %v6435_v7, %v1551_v60  ;;  %v1686_v53 = vpack.c.bf16 %v1533_v47, %v1518_v38  ;;  %v8106_v38 = vpop.f32.mrf.mxu0  ;;  %v1575_v47 = vand.u32 2147483648, %v8073_v24 }
 0x3a3   : > { %v1547_v35 = vsel %vm1544_vm10, %v1546_v19, %v1542_v44  ;;  %v1591_v14 = vor.u32 1.1754944e-38, %v1590_v52  ;;  %vm1589_vm2 = vcmp.eq.f32.partialorder %v1588_v17, 8.507059e+37 }
 0x3a4   : > { %1742 = vmatmul.bf16.gmra.mxu2 %v1686_v53  ;;  %v1553_v57 = vadd.f32 %v6435_v7, %v1552_v5  ;;  %v1573_v5 = vand.u32 2147483647, %v8073_v24 }
 0x3a5   : > { %v6437_v25 = vpop.eup %6436 }
 0x3a6   : > { %v1835_v58 = vpop.permute.xlu2 %1834  ;;  %v6439_v2 = vpop.eup %6438  ;;  %v1580_v51 = vmul.f32 %v6437_v25, %v8071_v46  ;;  %v1557_v56 = vsel %vm1556_vm6, %v6435_v7, %v1553_v57  ;;  %v11803_v7 = vld [vmem:[#allocation23_spill] sm:$0xff]  ;;  %vm1585_vm11 = vweird.f32 %v6437_v25  ;;  %vm1574_vm3 = vcmp.eq.f32.partialorder %v1573_v5, 8.507059e+37  ;;  %v11808_v5 = vld [vmem:[#allocation13_spill] sm:$0xff] }
 0x3a7   : > { %6180 = vmatmul.msk.bf16.gmra.mxu0 %vm421_vm0, %v1835_v58  ;;  %v1565_v23 = vmul.f32 %v6439_v2, %v8073_v24  ;;  %v1562_v37 = vsel %vm1559_vm9, %v1561_v30, %v1557_v56  ;;  %v1548_v62 = vmul.f32 %v11803_v7, %v1547_v35  ;;  %v1837_v55 = vpop.permute.xlu0 %1836  ;;  %vm1570_vm13 = vweird.f32 %v6439_v2  ;;  %vm1586_vm14 = vmor %vm1584_vm12, %vm1585_vm11 }
 0x3a8   : > { %v1581_v31 = vsub.f32 1.0, %v1580_v51  ;;  %v1563_v11 = vmul.f32 %v11802_v33, %v1562_v37  ;;  %vm1571_vm1 = vmor %vm1569_vm15, %vm1570_vm13  ;;  %v1576_v58 = vor.u32 1.1754944e-38, %v1575_v47 }
 0x3a9   : > { %v1566_v9 = vsub.f32 1.0, %v1565_v23 }
 0x3aa   : > { %v1582_v63 = vmul.f32 %v6437_v25, %v1581_v31  ;;  %v1687_v59 = vpack.c.bf16 %v1563_v11, %v1548_v62  ;;  %v8113_v54 = vpop.f32.mrf.mxu0 }
 0x3ab   : > { %2357 = vrot.lane.b32.xlu0 %v11801_v10, %s7045_s11  ;;  %v1567_v50 = vmul.f32 %v6439_v2, %v1566_v9  ;;  %v1952_v9 = vmul.f32 0.17677669, %v7966_v16 }
 0x3ac   : > { %v1583_v20 = vadd.f32 %v6437_v25, %v1582_v63  ;;  %v8129_v63 = vld [vmem:[%s7594_s17 + $0x8] sm:$0xff] }
 0x3ad   : > { %v1568_v60 = vadd.f32 %v6439_v2, %v1567_v50  ;;  %v8132_v7 = vadd.f32 %v8129_v63, %v1952_v9 }
 0x3ae   : > { %v1587_v53 = vsel %vm1586_vm14, %v6437_v25, %v1583_v20 }
 0x3af   : > { %v1572_v57 = vsel %vm1571_vm1, %v6439_v2, %v1568_v60  ;;  %v1592_v26 = vsel %vm1589_vm2, %v1591_v14, %v1587_v53  ;;  %v11806_v2 = vld [vmem:[#allocation22_spill] sm:$0xff] }
 0x3b0   : > { %v1577_v43 = vsel %vm1574_vm3, %v1576_v58, %v1572_v57  ;;  %v1593_v46 = vmul.f32 %v11804_v45, %v1592_v26 }
 0x3b1   : > { %v1578_v51 = vmul.f32 %v11805_v36, %v1577_v43  ;;  %v8119_v19 = vpop.permute.xlu1 %2446 }
 0x3b2   : > { %v1928_v30 = vpop.f32.mrf.mxu0 }
 0x3b3   : > { %v1688_v56 = vpack.c.bf16 %v1593_v46, %v1578_v51  ;;  %v1958_v23 = vmul.f32 0.17677669, %v1928_v30 }
 0x3b4   : > { %1747 = vmatmul.bf16.gmra.mxu2 %v1687_v59 }
 0x3b5   : > { %v8117_v44 = vadd.f32 %v1958_v23, %v11806_v2 }
 0x3b7   : > { %6181 = vmatmul.msk.bf16.gmra.mxu0 %vm421_vm0, %v1837_v55  ;;  %11807 = vst [vmem:[#allocation10_spill] sm:$0xff] %v8117_v44 }
 0x3c4   : > { %1752 = vmatmul.bf16.gmra.mxu2 %v1688_v56 }
 0x3d1   : > { %v816_v24 = vpop.xlane.xlu0 %815 }
 0x3d2   : > { %v837_v25 = vsub.f32 %v7917_v18, %v816_v24 }
 0x3d4   : > { %v863_v37 = vmul.f32 1.442695, %v837_v25 }
 0x3d5   : > { %1997 = vmax.xlane.f32.xlu0 %v8117_v44 }
 0x3d6   : > { %6440 = vpow2.f32 %v863_v37 }
 0x3d9   : > { %v8126_v18 = vpop.xlane.xlu0 %1442 }
 0x3dc   : > { %v8122_v31 = vpop.eup %6440  ;;  %v882_v35 = vpop.xlane.xlu1 %881 }
 0x3dd   : > { %6442 = vrcp.f32 %v882_v35  ;;  %895 = vadd.xlane.f32.xlu2 %v8122_v31  ;;  %v963_v17 = vand.u32 2147483648, %v882_v35  ;;  %v961_v53 = vand.u32 2147483647, %v882_v35  ;;  %vm957_vm5 = vweird.f32 %v882_v35 }
 0x3df   : > { %v880_v33 = vpop.xlane.xlu2 %879  ;;  %v964_v30 = vor.u32 1.1754944e-38, %v963_v17  ;;  %vm962_vm9 = vcmp.eq.f32.partialorder %v961_v53, 8.507059e+37 }
 0x3e0   : > { %6444 = vrcp.f32 %v880_v33  ;;  %v948_v58 = vand.u32 2147483648, %v880_v33  ;;  %v946_v46 = vand.u32 2147483647, %v880_v33  ;;  %vm942_vm8 = vweird.f32 %v880_v33 }
 0x3e1   : > { %6446 = vrcp.f32 %v8098_v0 }
 0x3e2   : > { %v949_v2 = vor.u32 1.1754944e-38, %v948_v58  ;;  %vm947_vm11 = vcmp.eq.f32.partialorder %v946_v46, 8.507059e+37 }
 0x3e3   : > { %v6443_v11 = vpop.eup %6442 }
 0x3e4   : > { %v953_v62 = vmul.f32 %v6443_v11, %v882_v35  ;;  %v8135_v50 = vpop.xlane.xlu1 %883  ;;  %vm958_vm4 = vweird.f32 %v6443_v11 }
 0x3e5   : > { %6448 = vrcp.f32 %v8135_v50  ;;  %1985 = vmax.xlane.f32.xlu2 %v8132_v7  ;;  %vm959_vm7 = vmor %vm957_vm5, %vm958_vm4  ;;  %vm972_vm13 = vweird.f32 %v8135_v50  ;;  %vm1599_vm5 = vweird.f32 %v8098_v0 }
 0x3e6   : > { %v6445_v16 = vpop.eup %6444  ;;  %v954_v59 = vsub.f32 1.0, %v953_v62 }
 0x3e7   : > { %v938_v20 = vmul.f32 %v6445_v16, %v880_v33  ;;  %v818_v52 = vpop.xlane.xlu2 %817  ;;  %v8142_v14 = vpop.eup %6446  ;;  %vm943_vm6 = vweird.f32 %v6445_v16  ;;  %v11809_v33 = vld [vmem:[#allocation8_spill] sm:$0xff] }
 0x3e8   : > { %v838_v55 = vsub.f32 %v7972_v39, %v818_v52  ;;  %v955_v60 = vmul.f32 %v6443_v11, %v954_v59  ;;  %v8146_v39 = vpop.xlane.xlu0 %889  ;;  %v1595_v25 = vmul.f32 %v8142_v14, %v8098_v0  ;;  %vm944_vm10 = vmor %vm942_vm8, %vm943_vm6  ;;  %vm1600_vm14 = vweird.f32 %v8142_v14 }
 0x3e9   : > { %v939_v47 = vsub.f32 1.0, %v938_v20  ;;  %2961 = vrot.lane.b32.xlu0 %v11808_v5, %s7046_s12 }
 0x3ea   : > { %v865_v57 = vmul.f32 1.442695, %v838_v55  ;;  %v956_v26 = vadd.f32 %v6443_v11, %v955_v60  ;;  %v1596_v55 = vsub.f32 1.0, %v1595_v25 }
 0x3eb   : > { %v8144_v43 = vpop.eup %6448  ;;  %v940_v45 = vmul.f32 %v6445_v16, %v939_v47 }
 0x3ec   : > { %v968_v36 = vmul.f32 %v8144_v43, %v8135_v50  ;;  %6450 = vpow2.f32 %v865_v57  ;;  %v820_v51 = vpop.xlane.xlu1 %819  ;;  %v960_v56 = vsel %vm959_vm7, %v6443_v11, %v956_v26  ;;  %v1597_v57 = vmul.f32 %v8142_v14, %v1596_v55  ;;  %vm8224_vm7 = vmor %vm1599_vm5, %vm1600_vm14 }
 0x3ed   : > { %v839_v23 = vsub.f32 %v7980_v48, %v820_v51  ;;  %v941_v24 = vadd.f32 %v6445_v16, %v940_v45  ;;  %v965_v37 = vsel %vm962_vm9, %v964_v30, %v960_v56  ;;  %6452 = vrcp.f32 %v8146_v39 }
 0x3ee   : > { %v969_v11 = vsub.f32 1.0, %v968_v36  ;;  %v966_v20 = vmul.f32 %v7938_v40, %v965_v37  ;;  %vm973_vm12 = vweird.f32 %v8144_v43  ;;  %v976_v56 = vand.u32 2147483647, %v8135_v50 }
 0x3ef   : > { %v867_v35 = vmul.f32 1.442695, %v839_v23  ;;  %v8154_v9 = vpop.xlane.xlu2 %885  ;;  %v945_v62 = vsel %vm944_vm10, %v6445_v16, %v941_v24  ;;  %v978_v30 = vand.u32 2147483648, %v8135_v50  ;;  %v8186_v24 = vld [vmem:[%s7594_s17 + $0x18] sm:$0xff]  ;;  %vm8195_vm15 = vmor %vm972_vm13, %vm973_vm12 }
 0x3f0   : > { %6454 = vrcp.f32 %v8154_v9  ;;  %v950_v48 = vsel %vm947_vm11, %v949_v2, %v945_v62  ;;  %v970_v17 = vmul.f32 %v8144_v43, %v969_v11  ;;  %v993_v62 = vand.u32 2147483648, %v8154_v9 }
 0x3f1   : > { %6456 = vpow2.f32 %v867_v35  ;;  %2349 = vrot.lane.b32.xlu0 %v11809_v33, %s7045_s11  ;;  %v951_v59 = vmul.f32 %v7941_v21, %v950_v48  ;;  %v1954_v21 = vmul.f32 0.17677669, %v8004_v3  ;;  %v991_v35 = vand.u32 2147483647, %v8154_v9 }
 0x3f2   : > { %v8161_v52 = vpop.eup %6450  ;;  %v8175_v26 = vpop.xlane.xlu0 %891  ;;  %v971_v36 = vadd.f32 %v8144_v43, %v970_v17  ;;  %v1598_v11 = vadd.f32 %v8142_v14, %v1597_v57  ;;  %vm977_vm2 = vcmp.eq.f32.partialorder %v976_v56, 8.507059e+37  ;;  %v979_v55 = vor.u32 1.1754944e-38, %v978_v30 }
 0x3f3   : > { %897 = vadd.xlane.f32.xlu1 %v8161_v52  ;;  %v1148_v60 = vpack.c.bf16 %v966_v20, %v951_v59  ;;  %v8167_v47 = vpop.eup %6452  ;;  %v8189_v25 = vadd.f32 %v8186_v24, %v1954_v21  ;;  %vm987_vm3 = vweird.f32 %v8154_v9  ;;  %v1605_v21 = vand.u32 2147483648, %v8098_v0 }
 0x3f4   : > { %v8164_v16 = vpop.xlane.xlu1 %887  ;;  %v1013_v3 = vmul.f32 %v8167_v47, %v8146_v39  ;;  %v975_v59 = vsel %vm8195_vm15, %v8144_v43, %v971_v36  ;;  %vm992_vm6 = vcmp.eq.f32.partialorder %v991_v35, 8.507059e+37  ;;  %v8218_v36 = vpop.f32.mrf.mxu0  ;;  %v8238_v35 = vmul.f32 0.17677669, %v8106_v38 }
 0x3f5   : > { %6458 = vrcp.f32 %v8164_v16  ;;  %1786 = vmatmul.bf16.gmra.mxu3 %v1148_v60  ;;  %vm1018_vm9 = vweird.f32 %v8167_v47  ;;  %vm1017_vm11 = vweird.f32 %v8146_v39  ;;  %vm1002_vm12 = vweird.f32 %v8164_v16 }
 0x3f6   : > { %v6455_v53 = vpop.eup %6454  ;;  %v1014_v20 = vsub.f32 1.0, %v1013_v3  ;;  %vm8262_vm14 = vmor %vm1017_vm11, %vm1018_vm9 }
 0x3f7   : > { %v8171_v40 = vpop.eup %6456  ;;  %v983_v58 = vmul.f32 %v6455_v53, %v8154_v9  ;;  %v822_v45 = vpop.xlane.xlu2 %821  ;;  %vm988_vm1 = vweird.f32 %v6455_v53 }
 0x3f8   : > { %v840_v46 = vsub.f32 %v8002_v32, %v822_v45  ;;  %899 = vadd.xlane.f32.xlu2 %v8171_v40  ;;  %vm989_vm4 = vmor %vm987_vm3, %vm988_vm1  ;;  %v994_v45 = vor.u32 1.1754944e-38, %v993_v62  ;;  %v1015_v56 = vmul.f32 %v8167_v47, %v1014_v20  ;;  %v1606_v62 = vor.u32 1.1754944e-38, %v1605_v21 }
 0x3f9   : > { %v984_v51 = vsub.f32 1.0, %v983_v58  ;;  %v980_v58 = vsel %vm977_vm2, %v979_v55, %v975_v59  ;;  %v1008_v21 = vand.u32 2147483648, %v8164_v16 }
 0x3fa   : > { %v869_v23 = vmul.f32 1.442695, %v840_v46  ;;  %v1603_v46 = vand.u32 2147483647, %v8098_v0  ;;  %v8220_v3 = vpop.xlane.xlu0 %1983  ;;  %v1602_v0 = vsel %vm8224_vm7, %v8142_v14, %v1598_v11  ;;  %v1016_v11 = vadd.f32 %v8167_v47, %v1015_v56 }
 0x3fb   : > { %v8193_v32 = vpop.eup %6458  ;;  %v985_v37 = vmul.f32 %v6455_v53, %v984_v51  ;;  %v1021_v56 = vand.u32 2147483647, %v8146_v39 }
 0x3fc   : > { %v998_v48 = vmul.f32 %v8193_v32, %v8164_v16  ;;  %6460 = vpow2.f32 %v869_v23  ;;  %v8204_v50 = vpop.xlane.xlu1 %1434  ;;  %vm1604_vm8 = vcmp.eq.f32.partialorder %v1603_v46, 8.507059e+37  ;;  %vm1003_vm10 = vweird.f32 %v8193_v32  ;;  %v11818_v46 = vld [vmem:[#allocation25_spill] sm:$0xff] }
 0x3fd   : > { %6462 = vrcp.f32 %v8204_v50  ;;  %v986_v17 = vadd.f32 %v6455_v53, %v985_v37  ;;  %v1607_v14 = vsel %vm1604_vm8, %v1606_v62, %v1602_v0  ;;  %vm8267_vm15 = vmor %vm1002_vm12, %vm1003_vm10  ;;  %vm1614_vm1 = vweird.f32 %v8204_v50 }
 0x3fe   : > { %6464 = vrcp.f32 %v8175_v26  ;;  %v999_v60 = vsub.f32 1.0, %v998_v48  ;;  %vm1022_vm5 = vcmp.eq.f32.partialorder %v1021_v56, 8.507059e+37  ;;  %v1608_v51 = vmul.f32 %v11818_v46, %v1607_v14 }
 0x3ff   : > { %v8213_v57 = vpop.xlane.xlu2 %1440  ;;  %v990_v43 = vsel %vm989_vm4, %v6455_v53, %v986_v17  ;;  %v981_v53 = vmul.f32 %v7964_v12, %v980_v58  ;;  %6466 = vrcp.f32 %v8126_v18  ;;  %v1006_v17 = vand.u32 2147483647, %v8164_v16 }
 0x400   : > { %1989 = vmax.xlane.f32.xlu2 %v8189_v25  ;;  %v995_v9 = vsel %vm992_vm6, %v994_v45, %v990_v43  ;;  %v1000_v2 = vmul.f32 %v8193_v32, %v999_v60  ;;  %v1620_v45 = vand.u32 2147483648, %v8204_v50  ;;  %v1020_v16 = vsel %vm8262_vm14, %v8167_v47, %v1016_v11 }
 0x401   : > { %v996_v23 = vmul.f32 %v7985_v4, %v995_v9  ;;  %v1618_v9 = vand.u32 2147483647, %v8204_v50  ;;  %vm1007_vm3 = vcmp.eq.f32.partialorder %v1006_v17, 8.507059e+37  ;;  %vm1032_vm6 = vweird.f32 %v8175_v26 }
 0x402   : > { %v8229_v30 = vpop.eup %6460  ;;  %v1001_v20 = vadd.f32 %v8193_v32, %v1000_v2  ;;  %v8285_v47 = vpop.xlane.xlu0 %1987 }
 0x403   : > { %v6463_v37 = vpop.eup %6462  ;;  %901 = vadd.xlane.f32.xlu1 %v8229_v30  ;;  %v1149_v59 = vpack.c.bf16 %v996_v23, %v981_v53  ;;  %vm1619_vm4 = vcmp.eq.f32.partialorder %v1618_v9, 8.507059e+37 }
 0x404   : > { %v8241_v48 = vpop.eup %6464  ;;  %v1610_v12 = vmul.f32 %v6463_v37, %v8204_v50  ;;  %v8245_v4 = vpop.xlane.xlu1 %1436  ;;  %vm1615_vm13 = vweird.f32 %v6463_v37  ;;  %v1005_v2 = vsel %vm8267_vm15, %v8193_v32, %v1001_v20  ;;  %v1621_v32 = vor.u32 1.1754944e-38, %v1620_v45 }
 0x405   : > { %6468 = vrcp.f32 %v8245_v4  ;;  %1791 = vmatmul.bf16.gmra.mxu3 %v1149_v59  ;;  %v1028_v55 = vmul.f32 %v8241_v48, %v8175_v26  ;;  %v8276_v53 = vpop.eup %6466  ;;  %vm1616_vm2 = vmor %vm1614_vm1, %vm1615_vm13  ;;  %vm1033_vm7 = vweird.f32 %v8241_v48  ;;  %vm1629_vm9 = vweird.f32 %v8245_v4 }
 0x406   : > { %v1611_v38 = vsub.f32 1.0, %v1610_v12  ;;  %v1933_v12 = vpop.f32.mrf.mxu0  ;;  %6470 = vrcp.f32 %v8213_v57  ;;  %vm8344_vm10 = vmor %vm1032_vm6, %vm1033_vm7 }
 0x407   : > { %v824_v60 = vpop.xlane.xlu2 %823  ;;  %v1029_v59 = vsub.f32 1.0, %v1028_v55 }
 0x408   : > { %v1612_v58 = vmul.f32 %v6463_v37, %v1611_v38  ;;  %v841_v43 = vsub.f32 %v8036_v6, %v824_v60  ;;  %v1023_v6 = vand.u32 2147483648, %v8146_v39  ;;  %v1009_v39 = vor.u32 1.1754944e-38, %v1008_v21 }
 0x409   : > { %v1960_v60 = vmul.f32 0.17677669, %v1933_v12  ;;  %v1030_v17 = vmul.f32 %v8241_v48, %v1029_v59  ;;  %v8311_v12 = vld [vmem:[%s7594_s17 + $0x28] sm:$0xff] }
 0x40a   : > { %v871_v23 = vmul.f32 1.442695, %v841_v43  ;;  %v1613_v0 = vadd.f32 %v6463_v37, %v1612_v58  ;;  %v1010_v20 = vsel %vm1007_vm3, %v1009_v39, %v1005_v2  ;;  %v1024_v55 = vor.u32 1.1754944e-38, %v1023_v6 }
 0x40b   : > { %v8282_v62 = vpop.eup %6468  ;;  %v1011_v9 = vmul.f32 %v7994_v27, %v1010_v20  ;;  %v8307_v2 = vmul.f32 %v8276_v53, %v8126_v18  ;;  %v1635_v39 = vand.u32 2147483648, %v8245_v4  ;;  %v1038_v20 = vand.u32 2147483648, %v8175_v26 }
 0x40c   : > { %v1625_v50 = vmul.f32 %v8282_v62, %v8245_v4  ;;  %6472 = vpow2.f32 %v871_v23  ;;  %v8290_v11 = vpop.xlane.xlu1 %1438  ;;  %v1617_v38 = vsel %vm1616_vm2, %v6463_v37, %v1613_v0  ;;  %v1025_v45 = vsel %vm1022_vm5, %v1024_v55, %v1020_v16  ;;  %v8301_v6 = vpop.eup %6470  ;;  %v8318_v16 = vld [vmem:[%s7594_s17 + $0x48] sm:$0xff] }
 0x40d   : > { %6474 = vrcp.f32 %v8290_v11  ;;  %v1622_v43 = vsel %vm1619_vm4, %v1621_v32, %v1617_v38  ;;  %v1026_v14 = vmul.f32 %v7949_v34, %v1025_v45  ;;  %v8321_v27 = vadd.f32 %v8318_v16, %v1960_v60  ;;  %v8334_v60 = vpop.xlane.xlu0 %1991 }
 0x40e   : > { %v1626_v58 = vsub.f32 1.0, %v1625_v50  ;;  %v1623_v37 = vmul.f32 %v8010_v15, %v1622_v43  ;;  %v8315_v15 = vadd.f32 %v8311_v12, %v8238_v35  ;;  %v1031_v34 = vadd.f32 %v8241_v48, %v1030_v17 }
 0x40f   : > { %v8294_v21 = vpop.xlane.xlu2 %893  ;;  %v1150_v38 = vpack.c.bf16 %v1026_v14, %v1011_v9  ;;  %vm1630_vm8 = vweird.f32 %v8282_v62  ;;  %v1655_v55 = vmul.f32 %v8301_v6, %v8213_v57  ;;  %v1633_v43 = vand.u32 2147483647, %v8245_v4 }
 0x410   : > { %v1627_v23 = vmul.f32 %v8282_v62, %v1626_v58  ;;  %6476 = vrcp.f32 %v8294_v21  ;;  %v1689_v0 = vpack.c.bf16 %v1623_v37, %v1608_v51  ;;  %v1650_v51 = vand.u32 2147483648, %v8290_v11  ;;  %vm8352_vm11 = vmor %vm1629_vm9, %vm1630_vm8 }
 0x411   : > { %v1036_v45 = vand.u32 2147483647, %v8175_v26  ;;  %v1636_v9 = vor.u32 1.1754944e-38, %v1635_v39  ;;  %v1648_v26 = vand.u32 2147483647, %v8290_v11  ;;  %vm1634_vm13 = vcmp.eq.f32.partialorder %v1633_v43, 8.507059e+37 }
 0x412   : > { %v8303_v56 = vpop.eup %6472  ;;  %1757 = vmatmul.bf16.gmra.mxu2 %v1689_v0  ;;  %v1628_v32 = vadd.f32 %v8282_v62, %v1627_v23  ;;  %v1035_v0 = vsel %vm8344_vm10, %v8241_v48, %v1031_v34  ;;  %vm1644_vm14 = vweird.f32 %v8290_v11  ;;  %v1053_v39 = vand.u32 2147483648, %v8294_v21  ;;  %v8368_v34 = vpop.f32.mrf.mxu3 }
 0x413   : > { %v6475_v59 = vpop.eup %6474  ;;  %903 = vadd.xlane.f32.xlu2 %v8303_v56  ;;  %v1651_v44 = vor.u32 1.1754944e-38, %v1650_v51  ;;  %vm1649_vm2 = vcmp.eq.f32.partialorder %v1648_v26, 8.507059e+37  ;;  %vm1047_vm3 = vweird.f32 %v8294_v21  ;;  %vm1037_vm4 = vcmp.eq.f32.partialorder %v1036_v45, 8.507059e+37 }
 0x414   : > { %v1640_v35 = vmul.f32 %v6475_v59, %v8290_v11  ;;  %v826_v50 = vpop.xlane.xlu1 %825  ;;  %vm1645_vm12 = vweird.f32 %v6475_v59  ;;  %v1039_v11 = vor.u32 1.1754944e-38, %v1038_v20  ;;  %vm1660_vm7 = vweird.f32 %v8301_v6 }
 0x415   : > { %v842_v58 = vsub.f32 %v8076_v42, %v826_v50  ;;  %1796 = vmatmul.bf16.gmra.mxu3 %v1150_v38  ;;  %v1656_v50 = vsub.f32 1.0, %v1655_v55  ;;  %vm1646_vm15 = vmor %vm1644_vm14, %vm1645_vm12  ;;  %vm1659_vm8 = vweird.f32 %v8213_v57  ;;  %vm1675_vm9 = vweird.f32 %v8276_v53 }
 0x416   : > { %v6477_v17 = vpop.eup %6476  ;;  %v1641_v46 = vsub.f32 1.0, %v1640_v35  ;;  %v1632_v35 = vsel %vm8352_vm11, %v8282_v62, %v1628_v32  ;;  %v1051_v62 = vand.u32 2147483647, %v8294_v21  ;;  %v1671_v32 = vsub.f32 1.0, %v8307_v2  ;;  %vm1661_vm10 = vmor %vm1659_vm8, %vm1660_vm7 }
 0x417   : > { %v1043_v42 = vmul.f32 %v6477_v17, %v8294_v21  ;;  %v873_v23 = vmul.f32 1.442695, %v842_v58  ;;  %v1637_v48 = vsel %vm1634_vm13, %v1636_v9, %v1632_v35  ;;  %vm1048_vm1 = vweird.f32 %v6477_v17 }
 0x418   : > { %v1642_v14 = vmul.f32 %v6475_v59, %v1641_v46  ;;  %v1040_v4 = vsel %vm1037_vm4, %v1039_v11, %v1035_v0  ;;  %vm1049_vm5 = vmor %vm1047_vm3, %vm1048_vm1  ;;  %v1054_v9 = vor.u32 1.1754944e-38, %v1053_v39  ;;  %v1657_v2 = vmul.f32 %v8301_v6, %v1656_v50  ;;  %v11823_v11 = vld [vmem:[#allocation9_spill] sm:$0xff] }
 0x419   : > { %v1044_v38 = vsub.f32 1.0, %v1043_v42  ;;  %6478 = vpow2.f32 %v873_v23  ;;  %v1638_v42 = vmul.f32 %v8031_v22, %v1637_v48  ;;  %vm1052_vm6 = vcmp.eq.f32.partialorder %v1051_v62, 8.507059e+37 }
 0x41a   : > { %v1643_v58 = vadd.f32 %v6475_v59, %v1642_v14  ;;  %v1672_v20 = vmul.f32 %v8276_v53, %v1671_v32  ;;  %v1041_v22 = vmul.f32 %v7990_v28, %v1040_v4  ;;  %v1658_v0 = vadd.f32 %v8301_v6, %v1657_v2  ;;  %v8389_v50 = vpop.f32.mrf.mxu3  ;;  %v8424_v2 = vld [vmem:[%s7594_s17 + $0x30] sm:$0xff] }
 0x41b   : > { %v1045_v37 = vmul.f32 %v6477_v17, %v1044_v38  ;;  %1993 = vmax.xlane.f32.xlu2 %v8315_v15  ;;  %2001 = vmax.xlane.f32.xlu0 %v8321_v27  ;;  %v1665_v35 = vand.u32 2147483648, %v8213_v57  ;;  %v1680_v28 = vand.u32 2147483648, %v8126_v18  ;;  %vm1674_vm11 = vweird.f32 %v8126_v18 }
 0x41c   : > { %v1647_v55 = vsel %vm1646_vm15, %v6475_v59, %v1643_v58  ;;  %v1673_v26 = vadd.f32 %v8276_v53, %v1672_v20  ;;  %v1678_v38 = vand.u32 2147483647, %v8126_v18  ;;  %vm1676_vm12 = vmor %vm1674_vm11, %vm1675_vm9  ;;  %v11827_v20 = vld [vmem:[#allocation16_spill] sm:$0xff] }
 0x41d   : > { %v2358_v43 = vpop.permute.xlu0 %2357  ;;  %v1652_v46 = vsel %vm1649_vm2, %v1651_v44, %v1647_v55  ;;  %v1046_v51 = vadd.f32 %v6477_v17, %v1045_v37  ;;  %v1666_v39 = vor.u32 1.1754944e-38, %v1665_v35  ;;  %v1681_v37 = vor.u32 1.1754944e-38, %v1680_v28 }
 0x41e   : > { %2367 = vmatpush.bf16.msra.mxu1 %v2358_v43  ;;  %v1653_v23 = vmul.f32 %v8045_v41, %v1652_v46  ;;  %vm1679_vm14 = vcmp.eq.f32.partialorder %v1678_v38, 8.507059e+37  ;;  %v11826_v43 = vld [vmem:[#allocation21_spill] sm:$0xff] }
 0x41f   : > { %v8375_v14 = vpop.eup %6478  ;;  %v1050_v59 = vsel %vm1049_vm5, %v6477_v17, %v1046_v51  ;;  %v1663_v17 = vand.u32 2147483647, %v8213_v57  ;;  %v1677_v57 = vsel %vm1676_vm12, %v8276_v53, %v1673_v26  ;;  %v11824_v53 = vld [vmem:[#allocation20_spill] sm:$0xff] }
 0x420   : > { %905 = vadd.xlane.f32.xlu1 %v8375_v14  ;;  %v1690_v44 = vpack.c.bf16 %v1653_v23, %v1638_v42  ;;  %v1055_v21 = vsel %vm1052_vm6, %v1054_v9, %v1050_v59  ;;  %v1682_v48 = vsel %vm1679_vm14, %v1681_v37, %v1677_v57  ;;  %v1957_v42 = vmul.f32 0.17677669, %v8113_v54 }
 0x421   : > { %v1056_v41 = vmul.f32 %v8061_v61, %v1055_v21  ;;  %v1662_v61 = vsel %vm1661_vm10, %v8301_v6, %v1658_v0  ;;  %vm1664_vm13 = vcmp.eq.f32.partialorder %v1663_v17, 8.507059e+37  ;;  %v1683_v32 = vmul.f32 %v7932_v1, %v1682_v48  ;;  %v8400_v6 = vpop.f32.mrf.mxu2  ;;  %v11825_v1 = vld [vmem:[#allocation11_spill] sm:$0xff] }
 0x422   : > { %1762 = vmatmul.bf16.gmra.mxu2 %v1690_v44  ;;  %v1667_v58 = vsel %vm1664_vm13, %v1666_v39, %v1662_v61  ;;  %v2015_v23 = vsub.f32 %v8008_v29, %v8220_v3  ;;  %v8427_v59 = vadd.f32 %v8424_v2, %v1957_v42  ;;  %v8441_v28 = vpop.f32.mrf.mxu3 }
 0x423   : > { %v1151_v45 = vpack.c.bf16 %v1056_v41, %v1041_v22  ;;  %v1668_v62 = vmul.f32 %v8018_v8, %v1667_v58 }
 0x424   : > { %v2031_v9 = vmul.f32 1.442695, %v2015_v23 }
 0x425   : > { %1801 = vmatmul.bf16.gmra.mxu3 %v1151_v45  ;;  %v1691_v55 = vpack.c.bf16 %v1683_v32, %v1668_v62 }
 0x429   : > { %v8406_v18 = vpop.f32.mrf.mxu2 }
 0x431   : > { %v8412_v8 = vpop.f32.mrf.mxu2 }
 0x432   : > { %1767 = vmatmul.bf16.gmra.mxu2 %v1691_v55 }
 0x433   : > { %2965 = vrot.lane.b32.xlu2 %v11823_v11, %s7046_s12 }
 0x439   : > { %2967 = vrot.lane.b32.xlu1 %v11801_v10, %s7046_s12  ;;  %v8416_v46 = vpop.f32.mrf.mxu2 }
 0x43b   : > { %2355 = vrot.lane.b32.xlu2 %v11823_v11, %s7045_s11  ;;  %v11832_v11 = vld [vmem:[#allocation18_spill] sm:$0xff] }
 0x441   : > { %v8418_v10 = vpop.f32.mrf.mxu2 }
 0x442   : > { %6182 = vmatmul.msk.bf16.vlgmr.msra.gmra.mxu2 %vm421_vm0, %v11824_v53 }
 0x443   : > { %2963 = vrot.lane.b32.xlu2 %v11825_v1, %s7046_s12 }
 0x449   : > { %v8433_v22 = vpop.f32.mrf.mxu2 }
 0x44a   : > { %11828 = vst [vmem:[#allocation26_spill] sm:$0xff] %v8433_v22 }
 0x450   : > { %v896_v51 = vpop.xlane.xlu2 %895 }
 0x451   : > { %6480 = vrcp.f32 %v896_v51  ;;  %v8443_v61 = vpop.f32.mrf.mxu2  ;;  %v1068_v38 = vand.u32 2147483648, %v896_v51  ;;  %vm1062_vm1 = vweird.f32 %v896_v51  ;;  %v1066_v57 = vand.u32 2147483647, %v896_v51 }
 0x452   : > { %6183 = vmatmul.msk.bf16.gmra.mxu2 %vm421_vm0, %v11826_v43  ;;  %6482 = vpow2.f32 %v2031_v9  ;;  %11829 = vst [vmem:[#allocation23_spill] sm:$0xff] %v8443_v61 }
 0x453   : > { %vm1067_vm5 = vcmp.eq.f32.partialorder %v1066_v57, 8.507059e+37 }
 0x457   : > { %v6481_v4 = vpop.eup %6480 }
 0x458   : > { %v1986_v44 = vpop.xlane.xlu2 %1985  ;;  %v1058_v21 = vmul.f32 %v6481_v4, %v896_v51  ;;  %v8435_v45 = vpop.eup %6482  ;;  %vm1063_vm15 = vweird.f32 %v6481_v4  ;;  %v1069_v51 = vor.u32 1.1754944e-38, %v1068_v38 }
 0x459   : > { %v2016_v54 = vsub.f32 %v8132_v7, %v1986_v44  ;;  %vm8445_vm2 = vmor %vm1062_vm1, %vm1063_vm15 }
 0x45a   : > { %v1059_v3 = vsub.f32 1.0, %v1058_v21 }
 0x45b   : > { %v2033_v41 = vmul.f32 1.442695, %v2016_v54 }
 0x45c   : > { %v1060_v0 = vmul.f32 %v6481_v4, %v1059_v3  ;;  %v8457_v3 = vpop.f32.mrf.mxu3 }
 0x45e   : > { %v1061_v7 = vadd.f32 %v6481_v4, %v1060_v0 }
 0x460   : > { %v1065_v53 = vsel %vm8445_vm2, %v6481_v4, %v1061_v7 }
 0x461   : > { %v1070_v44 = vsel %vm1067_vm5, %v1069_v51, %v1065_v53 }
 0x462   : > { %6184 = vmatmul.msk.bf16.gmra.mxu2 %vm421_vm0, %v11827_v20  ;;  %v1071_v4 = vmul.f32 %v8122_v31, %v1070_v44 }
 0x463   : > { %1995 = vmax.xlane.f32.xlu1 %v8427_v59 }
 0x466   : > { %v898_v29 = vpop.xlane.xlu1 %897 }
 0x467   : > { %6484 = vrcp.f32 %v898_v29  ;;  %v1083_v48 = vand.u32 2147483648, %v898_v29  ;;  %v1081_v43 = vand.u32 2147483647, %v898_v29  ;;  %vm1077_vm4 = vweird.f32 %v898_v29 }
 0x469   : > { %v1084_v20 = vor.u32 1.1754944e-38, %v1083_v48  ;;  %vm1082_vm7 = vcmp.eq.f32.partialorder %v1081_v43, 8.507059e+37 }
 0x46b   : > { %v8437_v35 = vpop.xlane.xlu2 %899 }
 0x46c   : > { %6486 = vrcp.f32 %v8437_v35  ;;  %2063 = vadd.xlane.f32.xlu2 %v8435_v45  ;;  %v1098_v57 = vand.u32 2147483648, %v8437_v35  ;;  %vm1092_vm9 = vweird.f32 %v8437_v35 }
 0x46d   : > { %v6485_v17 = vpop.eup %6484  ;;  %6488 = vpow2.f32 %v2033_v41  ;;  %v8461_v41 = vpop.f32.mrf.mxu2 }
 0x46e   : > { %v1073_v26 = vmul.f32 %v6485_v17, %v898_v29  ;;  %vm1078_vm3 = vweird.f32 %v6485_v17  ;;  %11833 = vst [vmem:[#allocation28_spill] sm:$0xff] %v8461_v41  ;;  %v1099_v53 = vor.u32 1.1754944e-38, %v1098_v57 }
 0x46f   : > { %vm1079_vm6 = vmor %vm1077_vm4, %vm1078_vm3 }
 0x470   : > { %v1074_v39 = vsub.f32 1.0, %v1073_v26 }
 0x472   : > { %v6487_v58 = vpop.eup %6486  ;;  %v1075_v37 = vmul.f32 %v6485_v17, %v1074_v39  ;;  %6185 = vmatmul.msk.bf16.gmra.mxu2 %vm421_vm0, %v11832_v11  ;;  %v11835_v11 = vld [vmem:[#allocation19_spill] sm:$0xff] }
 0x473   : > { %v8449_v32 = vpop.eup %6488  ;;  %v1088_v55 = vmul.f32 %v6487_v58, %v8437_v35  ;;  %vm1093_vm8 = vweird.f32 %v6487_v58 }
 0x474   : > { %2065 = vadd.xlane.f32.xlu2 %v8449_v32  ;;  %v1076_v42 = vadd.f32 %v6485_v17, %v1075_v37  ;;  %vm1094_vm10 = vmor %vm1092_vm9, %vm1093_vm8 }
 0x475   : > { %v1089_v23 = vsub.f32 1.0, %v1088_v55  ;;  %v8470_v55 = vpop.f32.mrf.mxu3  ;;  %v8474_v43 = vpop.f32.mrf.mxu2 }
 0x476   : > { %v902_v9 = vpop.xlane.xlu1 %901  ;;  %v1080_v21 = vsel %vm1079_vm6, %v6485_v17, %v1076_v42  ;;  %v8465_v17 = vpop.xlane.xlu2 %1989  ;;  %11834 = vst [vmem:[#allocation27_spill] sm:$0xff] %v8470_v55 }
 0x477   : > { %6490 = vrcp.f32 %v902_v9  ;;  %v1085_v54 = vsel %vm1082_vm7, %v1084_v20, %v1080_v21  ;;  %v1090_v0 = vmul.f32 %v6487_v58, %v1089_v23  ;;  %v1113_v37 = vand.u32 2147483648, %v902_v9  ;;  %11836 = vst [vmem:[#allocation22_spill] sm:$0xff] %v8474_v43 }
 0x478   : > { %v1086_v29 = vmul.f32 %v8161_v52, %v1085_v54  ;;  %v1096_v52 = vand.u32 2147483647, %v8437_v35  ;;  %vm1107_vm12 = vweird.f32 %v902_v9 }
 0x479   : > { %v1091_v39 = vadd.f32 %v6487_v58, %v1090_v0  ;;  %v1114_v42 = vor.u32 1.1754944e-38, %v1113_v37 }
 0x47a   : > { %v1152_v26 = vpack.c.bf16 %v1086_v29, %v1071_v4  ;;  %vm1097_vm13 = vcmp.eq.f32.partialorder %v1096_v52, 8.507059e+37  ;;  %v11842_v52 = vld [vmem:[#allocation12_spill] sm:$0xff] }
 0x47b   : > { %v1095_v62 = vsel %vm1094_vm10, %v6487_v58, %v1091_v39 }
 0x47c   : > { %2353 = vrot.lane.b32.xlu1 %v11825_v1, %s7045_s11  ;;  %1806 = vmatmul.bf16.gmra.mxu3 %v1152_v26  ;;  %v1111_v1 = vand.u32 2147483647, %v902_v9  ;;  %v1100_v51 = vsel %vm1097_vm13, %v1099_v53, %v1095_v62 }
 0x47d   : > { %v6491_v7 = vpop.eup %6490  ;;  %v1101_v21 = vmul.f32 %v8171_v40, %v1100_v51  ;;  %v8484_v4 = vpop.f32.mrf.mxu3 }
 0x47e   : > { %v1103_v38 = vmul.f32 %v6491_v7, %v902_v9  ;;  %vm1108_vm11 = vweird.f32 %v6491_v7  ;;  %vm1112_vm15 = vcmp.eq.f32.partialorder %v1111_v1, 8.507059e+37  ;;  %11838 = vst [vmem:[#allocation13_spill] sm:$0xff] %v8484_v4  ;;  %v8486_v29 = vpop.f32.mrf.mxu2 }
 0x47f   : > { %vm1109_vm14 = vmor %vm1107_vm12, %vm1108_vm11  ;;  %11839 = vst [vmem:[#allocation8_spill] sm:$0xff] %v8486_v29 }
 0x480   : > { %v1104_v31 = vsub.f32 1.0, %v1103_v38 }
 0x482   : > { %v1105_v48 = vmul.f32 %v6491_v7, %v1104_v31  ;;  %6186 = vmatmul.msk.bf16.gmra.mxu2 %vm421_vm0, %v11835_v11 }
 0x484   : > { %2351 = vrot.lane.b32.xlu1 %v11808_v5, %s7045_s11  ;;  %v1106_v35 = vadd.f32 %v6491_v7, %v1105_v48  ;;  %v11837_v5 = vld [vmem:[#allocation14_spill] sm:$0xff] }
 0x485   : > { %v8500_v51 = vpop.f32.mrf.mxu3 }
 0x486   : > { %v904_v58 = vpop.xlane.xlu2 %903  ;;  %v1110_v23 = vsel %vm1109_vm14, %v6491_v7, %v1106_v35  ;;  %v11840_v7 = vld [vmem:[#allocation17_spill] sm:$0xff]  ;;  %11844 = vst [vmem:[#allocation20_spill] sm:$0xff] %v8500_v51 }
 0x487   : > { %6492 = vrcp.f32 %v904_v58  ;;  %v1115_v44 = vsel %vm1112_vm15, %v1114_v42, %v1110_v23  ;;  %v1128_v48 = vand.u32 2147483648, %v904_v58  ;;  %vm1122_vm2 = vweird.f32 %v904_v58 }
 0x488   : > { %v1116_v20 = vmul.f32 %v8229_v30, %v1115_v44  ;;  %v1126_v53 = vand.u32 2147483647, %v904_v58 }
 0x48a   : > { %v1153_v54 = vpack.c.bf16 %v1116_v20, %v1101_v21  ;;  %v1129_v21 = vor.u32 1.1754944e-38, %v1128_v48  ;;  %vm1127_vm6 = vcmp.eq.f32.partialorder %v1126_v53, 8.507059e+37  ;;  %v2017_v53 = vsub.f32 %v8025_v49, %v8285_v47 }
 0x48c   : > { %2959 = vrot.lane.b32.xlu2 %v11809_v33, %s7046_s12  ;;  %2957 = vrot.lane.b32.xlu1 %v11837_v5, %s7046_s12 }
 0x48d   : > { %v6493_v9 = vpop.eup %6492  ;;  %1811 = vmatmul.bf16.gmra.mxu3 %v1153_v54  ;;  %v11845_v54 = vld [vmem:[#allocation24_spill] sm:$0xff] }
 0x48e   : > { %v8488_v0 = vpop.xlane.xlu2 %1993  ;;  %v1118_v26 = vmul.f32 %v6493_v9, %v904_v58  ;;  %vm1123_vm1 = vweird.f32 %v6493_v9 }
 0x48f   : > { %vm1124_vm3 = vmor %vm1122_vm2, %vm1123_vm1 }
 0x490   : > { %v1119_v30 = vsub.f32 1.0, %v1118_v26 }
 0x492   : > { %6187 = vmatmul.msk.bf16.gmra.mxu2 %vm421_vm0, %v11840_v7  ;;  %v1120_v39 = vmul.f32 %v6493_v9, %v1119_v30 }
 0x493   : > { %v906_v40 = vpop.xlane.xlu1 %905 }
 0x494   : > { %2347 = vrot.lane.b32.xlu2 %v11837_v5, %s7045_s11  ;;  %6494 = vrcp.f32 %v906_v40  ;;  %v1121_v37 = vadd.f32 %v6493_v9, %v1120_v39  ;;  %v1143_v35 = vand.u32 2147483648, %v906_v40  ;;  %v1141_v44 = vand.u32 2147483647, %v906_v40 }
 0x495   : > { %v8494_v33 = vpop.f32.mrf.mxu2  ;;  %vm1137_vm5 = vweird.f32 %v906_v40 }
 0x496   : > { %11841 = vst [vmem:[#allocation25_spill] sm:$0xff] %v8494_v33  ;;  %v2966_v38 = vpop.permute.xlu2 %2965  ;;  %v1125_v23 = vsel %vm1124_vm3, %v6493_v9, %v1121_v37  ;;  %v1144_v26 = vor.u32 1.1754944e-38, %v1143_v35  ;;  %vm1142_vm8 = vcmp.eq.f32.partialorder %v1141_v44, 8.507059e+37 }
 0x497   : > { %v1130_v5 = vsel %vm1127_vm6, %v1129_v21, %v1125_v23 }
 0x498   : > { %v1131_v9 = vmul.f32 %v8303_v56, %v1130_v5  ;;  %v8518_v56 = vld [vmem:[%s7594_s17 + $0x40] sm:$0xff] }
 0x49a   : > { %v6495_v57 = vpop.eup %6494 }
 0x49b   : > { %v1133_v31 = vmul.f32 %v6495_v57, %v906_v40  ;;  %vm1138_vm4 = vweird.f32 %v6495_v57  ;;  %v8508_v40 = vpop.f32.mrf.mxu3 }
 0x49c   : > { %2955 = vrot.lane.b32.xlu2 %v11842_v52, %s7046_s12  ;;  %vm1139_vm7 = vmor %vm1137_vm5, %vm1138_vm4  ;;  %11847 = vst [vmem:[#allocation21_spill] sm:$0xff] %v8508_v40 }
 0x49d   : > { %v1134_v62 = vsub.f32 1.0, %v1133_v31  ;;  %v8498_v1 = vpop.f32.mrf.mxu2 }
 0x49e   : > { %11843 = vst [vmem:[#allocation9_spill] sm:$0xff] %v8498_v1  ;;  %v2356_v11 = vpop.permute.xlu2 %2355 }
 0x49f   : > { %2368 = vmatpush.bf16.msra.mxu1 %v2356_v11  ;;  %v1135_v42 = vmul.f32 %v6495_v57, %v1134_v62  ;;  %v8512_v62 = vpop.xlane.xlu0 %1997 }
 0x4a1   : > { %v1136_v20 = vadd.f32 %v6495_v57, %v1135_v42 }
 0x4a2   : > { %6188 = vmatmul.msk.bf16.gmra.mxu2 %vm421_vm0, %v11845_v54 }
 0x4a3   : > { %v1140_v58 = vsel %vm1139_vm7, %v6495_v57, %v1136_v20  ;;  %v1959_v57 = vmul.f32 0.17677669, %v8218_v36  ;;  %v2035_v36 = vmul.f32 1.442695, %v2017_v53 }
 0x4a4   : > { %v1145_v7 = vsel %vm1142_vm8, %v1144_v26, %v1140_v58  ;;  %v11851_v58 = vld [vmem:[#allocation15_spill] sm:$0xff] }
 0x4a5   : > { %v8504_v30 = vpop.f32.mrf.mxu2  ;;  %v1146_v39 = vmul.f32 %v8375_v14, %v1145_v7  ;;  %v8521_v14 = vadd.f32 %v8518_v56, %v1959_v57  ;;  %6496 = vpow2.f32 %v2035_v36  ;;  %v6882_v57 = vld [vmem:[%s7594_s17] sm:$0xff] }
 0x4a6   : > { %11846 = vst [vmem:[#allocation11_spill] sm:$0xff] %v8504_v30  ;;  %v2964_v11 = vpop.permute.xlu2 %2963 }
 0x4a7   : > { %v1154_v31 = vpack.c.bf16 %v1146_v39, %v1131_v9  ;;  %v2962_v42 = vpop.permute.xlu0 %2961 }
 0x4a9   : > { %1816 = vmatmul.bf16.gmra.mxu3 %v1154_v31 }
 0x4ab   : > { %v2968_v37 = vpop.permute.xlu1 %2967 }
 0x4ac   : > { %2977 = vmatpush.bf16.msra.mxu3 %v2968_v37 }
 0x4ad   : > { %v8510_v48 = vpop.f32.mrf.mxu2 }
 0x4ae   : > { %11848 = vst [vmem:[#allocation16_spill] sm:$0xff] %v8510_v48 }
 0x4b0   : > { %2978 = vmatpush.bf16.msra.mxu3 %v2966_v38 }
 0x4b2   : > { %6189 = vmatmul.msk.bf16.gmra.mxu2 %vm421_vm0, %v8119_v19  ;;  %v8530_v19 = vpop.eup %6496 }
 0x4b4   : > { %2979 = vmatpush.bf16.msra.mxu3 %v2964_v11 }
 0x4b5   : > { %v8525_v35 = vpop.f32.mrf.mxu2 }
 0x4b6   : > { %11849 = vst [vmem:[#allocation18_spill] sm:$0xff] %v8525_v35  ;;  %1999 = vmax.xlane.f32.xlu1 %v8521_v14  ;;  %v6885_v35 = vld [vmem:[%s7594_s17 + $0x38] sm:$0xff] }
 0x4b8   : > { %2980 = vmatpush.bf16.msra.mxu3 %v2962_v42  ;;  %v2350_v42 = vpop.permute.xlu0 %2349 }
 0x4bd   : > { %v8528_v38 = vpop.f32.mrf.mxu2 }
 0x4be   : > { %11850 = vst [vmem:[#allocation19_spill] sm:$0xff] %v8528_v38  ;;  %v6883_v38 = vld [vmem:[%s7594_s17 + $0x10] sm:$0xff] }
 0x4c5   : > { %2067 = vadd.xlane.f32.xlu2 %v8530_v19  ;;  %v2521_v23 = vpop.f32.mrf.mxu2 }
 0x4cd   : > { %v2523_v44 = vpop.f32.mrf.mxu2 }
 0x4ce   : > { %v2562_v21 = vmul.f32 0.17677669, %v2523_v44 }
 0x4cf   : > { %2345 = vrot.lane.b32.xlu1 %v11842_v52, %s7045_s11 }
 0x4d0   : > { %v8536_v49 = vadd.f32 %v8129_v63, %v2562_v21  ;;  %v2561_v63 = vmul.f32 0.17677669, %v2521_v23 }
 0x4d2   : > { %2595 = vmax.xlane.f32.xlu0 %v8536_v49  ;;  %v8548_v11 = vadd.f32 %v6882_v57, %v2561_v63 }
 0x4d5   : > { %v2526_v47 = vpop.f32.mrf.mxu2 }
 0x4d6   : > { %v8541_v5 = vpop.xlane.xlu1 %1995  ;;  %v2563_v36 = vmul.f32 0.17677669, %v2526_v47 }
 0x4dd   : > { %v2528_v20 = vpop.f32.mrf.mxu2 }
 0x4de   : > { %v2564_v47 = vmul.f32 0.17677669, %v2528_v20 }
 0x4df   : > { %v8539_v54 = vpop.xlane.xlu2 %2063 }
 0x4e0   : > { %vm2100_vm13 = vweird.f32 %v8539_v54 }
 0x4e5   : > { %v2531_v26 = vpop.f32.mrf.mxu2 }
 0x4e6   : > { %2953 = vrot.lane.b32.xlu0 %v11851_v58, %s7046_s12 }
 0x4e7   : > { %v8545_v7 = vpop.xlane.xlu2 %2065 }
 0x4e8   : > { %vm2115_vm11 = vweird.f32 %v8545_v7 }
 0x4ed   : > { %v2533_v9 = vpop.f32.mrf.mxu2 }
 0x4ee   : > { %v2354_v52 = vpop.permute.xlu1 %2353 }
 0x4ef   : > { %v2960_v39 = vpop.permute.xlu2 %2959  ;;  %2369 = vmatpush.bf16.msra.mxu1 %v2354_v52  ;;  %v8552_v52 = vadd.f32 %v6883_v38, %v2563_v36  ;;  %v8563_v38 = vadd.f32 %v8186_v24, %v2564_v47  ;;  %v2018_v47 = vsub.f32 %v8189_v25, %v8465_v17 }
 0x4f0   : > { %2981 = vmatpush.bf16.msra.mxu3 %v2960_v39  ;;  %v2565_v39 = vmul.f32 0.17677669, %v2531_v26  ;;  %v2566_v26 = vmul.f32 0.17677669, %v2533_v9 }
 0x4f5   : > { %v2536_v31 = vpop.f32.mrf.mxu2 }
 0x4f6   : > { %v2352_v37 = vpop.permute.xlu1 %2351 }
 0x4f7   : > { %2370 = vmatpush.bf16.msra.mxu1 %v2352_v37  ;;  %v2348_v53 = vpop.permute.xlu2 %2347  ;;  %v6884_v37 = vld [vmem:[%s7594_s17 + $0x20] sm:$0xff] }
 0x4f8   : > { %v8556_v57 = vadd.f32 %v6884_v37, %v2565_v39 }
 0x4f9   : > { %2593 = vmax.xlane.f32.xlu1 %v8548_v11 }
 0x4fb   : > { %2371 = vmatpush.bf16.msra.mxu1 %v2350_v42 }
 0x4fd   : > { %v2538_v44 = vpop.f32.mrf.mxu2 }
 0x4fe   : > { %v2958_v21 = vpop.permute.xlu1 %2957  ;;  %v2568_v42 = vmul.f32 0.17677669, %v2538_v44  ;;  %v1936_v44 = vpop.f32.mrf.mxu0 }
 0x4ff   : > { %2372 = vmatpush.bf16.msra.mxu1 %v2348_v53  ;;  %2982 = vmatpush.bf16.msra.mxu3 %v2958_v21  ;;  %v2956_v23 = vpop.permute.xlu2 %2955 }
 0x500   : > { %v8560_v48 = vadd.f32 %v6885_v35, %v2568_v42  ;;  %v2567_v35 = vmul.f32 0.17677669, %v2536_v31  ;;  %v2037_v42 = vmul.f32 1.442695, %v2018_v47 }
 0x501   : > { %2597 = vmax.xlane.f32.xlu1 %v8552_v52 }
 0x502   : > { %v8576_v24 = vadd.f32 %v8424_v2, %v2567_v35 }
 0x503   : > { %2983 = vmatpush.bf16.msra.mxu3 %v2956_v23  ;;  %v8571_v23 = vadd.f32 %v8311_v12, %v2566_v26 }
 0x505   : > { %v2541_v63 = vpop.f32.mrf.mxu2 }
 0x506   : > { %v2569_v20 = vmul.f32 0.17677669, %v2541_v63  ;;  %v1938_v63 = vpop.f32.mrf.mxu0 }
 0x508   : > { %v8580_v9 = vadd.f32 %v8518_v56, %v2569_v20  ;;  %v6886_v20 = vld [vmem:[%s7594_s17 + $0x58] sm:$0xff] }
 0x509   : > { %2601 = vmax.xlane.f32.xlu1 %v8556_v57 }
 0x50d   : > { %v2543_v53 = vpop.f32.mrf.mxu2 }
 0x50e   : > { %v2570_v36 = vmul.f32 0.17677669, %v2543_v53  ;;  %v8594_v53 = vpop.f32.mrf.mxu0 }
 0x510   : > { %2599 = vmax.xlane.f32.xlu0 %v8563_v38  ;;  %v8568_v21 = vadd.f32 %v8318_v16, %v2570_v36  ;;  %v8587_v16 = vpop.xlane.xlu0 %2001 }
 0x511   : > { %2607 = vmax.xlane.f32.xlu1 %v8560_v48 }
 0x515   : > { %v2546_v37 = vpop.f32.mrf.mxu2 }
 0x516   : > { %v1943_v25 = vpop.f32.mrf.mxu0 }
 0x517   : > { %v1964_v17 = vmul.f32 0.17677669, %v1943_v25 }
 0x518   : > { %2603 = vmax.xlane.f32.xlu0 %v8571_v23 }
 0x519   : > { %2611 = vmax.xlane.f32.xlu1 %v8568_v21 }
 0x51d   : > { %v2548_v26 = vpop.f32.mrf.mxu2 }
 0x51e   : > { %v2572_v36 = vmul.f32 0.17677669, %v2548_v26 }
 0x520   : > { %2605 = vmax.xlane.f32.xlu0 %v8576_v24 }
 0x525   : > { %v2551_v29 = vpop.f32.mrf.mxu2 }
 0x528   : > { %2609 = vmax.xlane.f32.xlu0 %v8580_v9 }
 0x529   : > { %v8585_v12 = vpop.xlane.xlu1 %1999 }
 0x532   : > { %2343 = vrot.lane.b32.xlu1 %v11851_v58, %s7045_s11 }
 0x541   : > { %v2346_v31 = vpop.permute.xlu1 %2345 }
 0x542   : > { %2373 = vmatpush.bf16.msra.mxu1 %v2346_v31  ;;  %v8600_v31 = vadd.f32 %v6886_v20, %v2572_v36  ;;  %v2571_v36 = vmul.f32 0.17677669, %v2546_v37  ;;  %v2019_v37 = vsub.f32 %v8041_v13, %v8334_v60 }
 0x545   : > { %v2596_v2 = vpop.xlane.xlu0 %2595 }
 0x546   : > { %v2626_v39 = vsub.f32 %v8536_v49, %v2596_v2  ;;  %v8605_v2 = vld [vmem:[%s7594_s17 + $0x68] sm:$0xff] }
 0x548   : > { %v2643_v56 = vmul.f32 1.442695, %v2626_v39  ;;  %v8608_v39 = vadd.f32 %v8605_v2, %v1964_v17  ;;  %v1961_v17 = vmul.f32 0.17677669, %v1936_v44 }
 0x54a   : > { %6498 = vpow2.f32 %v2643_v56 }
 0x54b   : > { %6500 = vpow2.f32 %v2037_v42 }
 0x550   : > { %v8592_v58 = vpop.eup %6498 }
 0x551   : > { %2675 = vadd.xlane.f32.xlu0 %v8592_v58  ;;  %v8597_v35 = vpop.eup %6500 }
 0x558   : > { %v2954_v49 = vpop.permute.xlu0 %2953 }
 0x559   : > { %2069 = vadd.xlane.f32.xlu0 %v8597_v35  ;;  %2984 = vmatpush.bf16.msra.mxu3 %v2954_v49  ;;  %v6888_v49 = vld [vmem:[%s7594_s17 + $0x50] sm:$0xff] }
 0x55a   : > { %v8616_v30 = vadd.f32 %v6888_v49, %v2571_v36  ;;  %v1962_v36 = vmul.f32 0.17677669, %v1938_v63 }
 0x55c   : > { %2615 = vmax.xlane.f32.xlu1 %v8600_v31  ;;  %v8636_v13 = vadd.f32 %v6886_v20, %v1962_v36 }
 0x564   : > { %2009 = vmax.xlane.f32.xlu1 %v8608_v39 }
 0x56c   : > { %v2594_v56 = vpop.xlane.xlu1 %2593 }
 0x56d   : > { %v2625_v47 = vsub.f32 %v8548_v11, %v2594_v56  ;;  %v8621_v11 = vadd.f32 %v6888_v49, %v1961_v17 }
 0x56f   : > { %v2641_v42 = vmul.f32 1.442695, %v2625_v47 }
 0x571   : > { %6502 = vpow2.f32 %v2641_v42 }
 0x572   : > { %6504 = vrcp.f32 %v8545_v7 }
 0x573   : > { %6506 = vrcp.f32 %v8539_v54 }
 0x574   : > { %v2598_v25 = vpop.xlane.xlu1 %2597 }
 0x575   : > { %v2627_v42 = vsub.f32 %v8552_v52, %v2598_v25  ;;  %v2020_v25 = vsub.f32 %v8315_v15, %v8488_v0  ;;  %v2021_v15 = vsub.f32 %v8427_v59, %v8541_v5  ;;  %v2119_v59 = vand.u32 2147483647, %v8545_v7  ;;  %v8667_v5 = vpop.f32.mrf.mxu3 }
 0x576   : > { %11852 = vst [vmem:[#allocation14_spill] sm:$0xff] %v8667_v5 }
 0x577   : > { %v8612_v26 = vpop.eup %6502  ;;  %v2645_v49 = vmul.f32 1.442695, %v2627_v42  ;;  %v8647_v42 = vpop.f32.mrf.mxu2  ;;  %vm2120_vm15 = vcmp.eq.f32.partialorder %v2119_v59, 8.507059e+37 }
 0x578   : > { %2673 = vadd.xlane.f32.xlu2 %v8612_v26  ;;  %v8628_v44 = vpop.eup %6504 }
 0x579   : > { %v8630_v43 = vpop.eup %6506  ;;  %vm2116_vm9 = vweird.f32 %v8628_v44 }
 0x57a   : > { %v2096_v52 = vmul.f32 %v8630_v43, %v8539_v54  ;;  %vm2101_vm10 = vweird.f32 %v8630_v43  ;;  %vm8670_vm12 = vmor %vm2115_vm11, %vm2116_vm9 }
 0x57b   : > { %vm8679_vm14 = vmor %vm2100_vm13, %vm2101_vm10 }
 0x57c   : > { %v2602_v47 = vpop.xlane.xlu1 %2601 }
 0x580   : > { %2613 = vmax.xlane.f32.xlu2 %v8616_v30 }
 0x583   : > { %v2600_v1 = vpop.xlane.xlu0 %2599 }
 0x584   : > { %v2628_v33 = vsub.f32 %v8563_v38, %v2600_v1  ;;  %v2039_v1 = vmul.f32 1.442695, %v2019_v37  ;;  %v2608_v17 = vpop.xlane.xlu1 %2607 }
 0x586   : > { %v2647_v56 = vmul.f32 1.442695, %v2628_v33  ;;  %v2111_v33 = vmul.f32 %v8628_v44, %v8545_v7 }
 0x588   : > { %2003 = vmax.xlane.f32.xlu2 %v8621_v11  ;;  %6508 = vpow2.f32 %v2647_v56  ;;  %v2112_v63 = vsub.f32 1.0, %v2111_v33  ;;  %v2097_v56 = vsub.f32 1.0, %v2096_v52  ;;  %v2573_v52 = vmul.f32 0.17677669, %v2551_v29 }
 0x589   : > { %6510 = vpow2.f32 %v2039_v1  ;;  %v2041_v1 = vmul.f32 1.442695, %v2020_v25 }
 0x58a   : > { %6512 = vpow2.f32 %v2645_v49  ;;  %v2113_v20 = vmul.f32 %v8628_v44, %v2112_v63  ;;  %v2098_v33 = vmul.f32 %v8630_v43, %v2097_v56  ;;  %v2629_v63 = vsub.f32 %v8556_v57, %v2602_v47 }
 0x58b   : > { %v8632_v38 = vpop.xlane.xlu0 %2603  ;;  %v2106_v56 = vand.u32 2147483648, %v8539_v54  ;;  %v2104_v57 = vand.u32 2147483647, %v8539_v54 }
 0x58c   : > { %v2114_v0 = vadd.f32 %v8628_v44, %v2113_v20  ;;  %v2099_v25 = vadd.f32 %v8630_v43, %v2098_v33  ;;  %v2612_v29 = vpop.xlane.xlu1 %2611  ;;  %v2043_v20 = vmul.f32 1.442695, %v2021_v15 }
 0x58d   : > { %vm2105_vm1 = vcmp.eq.f32.partialorder %v2104_v57, 8.507059e+37  ;;  %v6890_v57 = vld [vmem:[%s7594_s17 + $0x70] sm:$0xff] }
 0x58e   : > { %v8638_v60 = vpop.eup %6508  ;;  %v2118_v47 = vsel %vm8670_vm12, %v8628_v44, %v2114_v0  ;;  %v2103_v54 = vsel %vm8679_vm14, %v8630_v43, %v2099_v25  ;;  %v2107_v0 = vor.u32 1.1754944e-38, %v2106_v56  ;;  %v2630_v25 = vsub.f32 %v8571_v23, %v8632_v38 }
 0x58f   : > { %2679 = vadd.xlane.f32.xlu0 %v8638_v60  ;;  %v8650_v40 = vpop.eup %6510 }
 0x590   : > { %2005 = vmax.xlane.f32.xlu2 %v8636_v13  ;;  %v8652_v41 = vpop.eup %6512  ;;  %v2108_v43 = vsel %vm2105_vm1, %v2107_v0, %v2103_v54  ;;  %v6891_v0 = vld [vmem:[%s7594_s17 + $0x78] sm:$0xff] }
 0x593   : > { %v2606_v37 = vpop.xlane.xlu0 %2605 }
 0x594   : > { %v2631_v36 = vsub.f32 %v8576_v24, %v2606_v37  ;;  %v2121_v24 = vand.u32 2147483648, %v8545_v7  ;;  %v2556_v37 = vpop.f32.mrf.mxu2 }
 0x596   : > { %v2653_v49 = vmul.f32 1.442695, %v2631_v36  ;;  %v2122_v36 = vor.u32 1.1754944e-38, %v2121_v24  ;;  %v2632_v24 = vsub.f32 %v8560_v48, %v2608_v17 }
 0x597   : > { %2071 = vadd.xlane.f32.xlu0 %v8650_v40 }
 0x598   : > { %2677 = vadd.xlane.f32.xlu2 %v8652_v41  ;;  %6514 = vpow2.f32 %v2653_v49  ;;  %v2649_v49 = vmul.f32 1.442695, %v2629_v63  ;;  %v2123_v5 = vsel %vm2120_vm15, %v2122_v36, %v2118_v47  ;;  %v2575_v63 = vmul.f32 0.17677669, %v2556_v37 }
 0x599   : > { %6516 = vpow2.f32 %v2041_v1  ;;  %v8684_v1 = vld [vmem:[%s7594_s17 + $0x60] sm:$0xff]  ;;  %v2124_v59 = vmul.f32 %v8449_v32, %v2123_v5  ;;  %v2655_v48 = vmul.f32 1.442695, %v2632_v24  ;;  %v2109_v47 = vmul.f32 %v8435_v45, %v2108_v43  ;;  %v1946_v43 = vpop.f32.mrf.mxu0 }
 0x59a   : > { %v8687_v33 = vadd.f32 %v8684_v1, %v2573_v52  ;;  %6518 = vpow2.f32 %v2043_v20  ;;  %v2634_v52 = vsub.f32 %v8568_v21, %v2612_v29  ;;  %v8705_v20 = vpop.f32.mrf.mxu3  ;;  %v8708_v21 = vadd.f32 %v6890_v57, %v2575_v63 }
 0x59b   : > { %6520 = vpow2.f32 %v2649_v49  ;;  %11857 = vst [vmem:[#allocation17_spill] sm:$0xff] %v8705_v20  ;;  %v2651_v29 = vmul.f32 1.442695, %v2630_v25  ;;  %v2335_v36 = vpack.c.bf16 %v2124_v59, %v2109_v47  ;;  %v2023_v32 = vsub.f32 %v8521_v14, %v8585_v12 }
 0x59c   : > { %v2659_v56 = vmul.f32 1.442695, %v2634_v52  ;;  %6522 = vpow2.f32 %v2655_v48  ;;  %v2558_v5 = vpop.f32.mrf.mxu2  ;;  %v2574_v12 = vmul.f32 0.17677669, %v8647_v42  ;;  %v2024_v25 = vsub.f32 %v8321_v27, %v8587_v16  ;;  %v11860_v48 = vld [vmem:[#allocation10_spill] sm:$0xff] }
 0x59d   : > { %v2047_v45 = vmul.f32 1.442695, %v2023_v32  ;;  %v2576_v14 = vmul.f32 0.17677669, %v2558_v5  ;;  %v1965_v42 = vmul.f32 0.17677669, %v1946_v43 }
 0x59e   : > { %v8689_v15 = vpop.eup %6514  ;;  %6524 = vpow2.f32 %v2659_v56  ;;  %v8737_v63 = vadd.f32 %v8605_v2, %v2574_v12  ;;  %v1963_v56 = vmul.f32 0.17677669, %v8594_v53  ;;  %v2049_v47 = vmul.f32 1.442695, %v2024_v25  ;;  %v2068_v2 = vpop.xlane.xlu2 %2067 }
 0x59f   : > { %v8694_v44 = vpop.eup %6516  ;;  %2617 = vmax.xlane.f32.xlu0 %v8687_v33  ;;  %2685 = vadd.xlane.f32.xlu1 %v8689_v15  ;;  %6526 = vpow2.f32 %v2651_v29  ;;  %v8732_v24 = vadd.f32 %v6891_v0, %v2576_v14  ;;  %v2610_v29 = vpop.xlane.xlu0 %2609  ;;  %vm2130_vm3 = vweird.f32 %v2068_v2 }
 0x5a0   : > { %2073 = vadd.xlane.f32.xlu2 %v8694_v44  ;;  %v8710_v7 = vpop.eup %6518  ;;  %6528 = vpow2.f32 %v2047_v45  ;;  %v8752_v45 = vadd.f32 %v8684_v1, %v1963_v56  ;;  %v2633_v27 = vsub.f32 %v8580_v9, %v2610_v29 }
 0x5a1   : > { %v8712_v49 = vpop.eup %6520  ;;  %6530 = vrcp.f32 %v2068_v2 }
 0x5a2   : > { %v8719_v23 = vpop.eup %6522  ;;  %v8725_v37 = vpop.f32.mrf.mxu3  ;;  %6532 = vpow2.f32 %v2049_v47 }
 0x5a3   : > { %11858 = vst [vmem:[#allocation12_spill] sm:$0xff] %v8725_v37 }
 0x5a4   : > { %v2344_v17 = vpop.permute.xlu1 %2343  ;;  %v8721_v38 = vpop.eup %6524 }
 0x5a5   : > { %2374 = vmatpush.bf16.msra.mxu1 %v2344_v17  ;;  %v8723_v54 = vpop.eup %6526  ;;  %v2022_v17 = vsub.f32 %v11860_v48, %v8512_v62  ;;  %v1948_v48 = vpop.f32.mrf.mxu0 }
 0x5a6   : > { %v8734_v52 = vpop.eup %6528  ;;  %v1966_v29 = vmul.f32 0.17677669, %v1948_v48 }
 0x5a7   : > { %2621 = vmax.xlane.f32.xlu1 %v8708_v21  ;;  %2075 = vadd.xlane.f32.xlu0 %v8710_v7  ;;  %v2045_v32 = vmul.f32 1.442695, %v2022_v17  ;;  %v6531_v53 = vpop.eup %6530 }
 0x5a8   : > { %2681 = vadd.xlane.f32.xlu2 %v8712_v49  ;;  %2375 = vmatmul.bf16.vlgmr.msra.gmra.mxu1 %v2335_v36  ;;  %v8749_v36 = vadd.f32 %v6890_v57, %v1965_v42  ;;  %v2657_v57 = vmul.f32 1.442695, %v2633_v27  ;;  %v8761_v5 = vpop.eup %6532  ;;  %v2126_v1 = vmul.f32 %v6531_v53, %v2068_v2  ;;  %vm2131_vm2 = vweird.f32 %v6531_v53 }
 0x5a9   : > { %6534 = vpow2.f32 %v2045_v32  ;;  %vm2132_vm4 = vmor %vm2130_vm3, %vm2131_vm2 }
 0x5aa   : > { %v8744_v59 = vpop.f32.mrf.mxu3  ;;  %6536 = vpow2.f32 %v2657_v57  ;;  %v2127_v12 = vsub.f32 1.0, %v2126_v1  ;;  %v2136_v1 = vand.u32 2147483648, %v2068_v2 }
 0x5ab   : > { %11859 = vst [vmem:[#allocation24_spill] sm:$0xff] %v8744_v59  ;;  %v2134_v59 = vand.u32 2147483647, %v2068_v2 }
 0x5ac   : > { %v2128_v56 = vmul.f32 %v6531_v53, %v2127_v12 }
 0x5ad   : > { %vm2135_vm7 = vcmp.eq.f32.partialorder %v2134_v59, 8.507059e+37 }
 0x5ae   : > { %v2129_v57 = vadd.f32 %v6531_v53, %v2128_v56 }
 0x5af   : > { %2687 = vadd.xlane.f32.xlu0 %v8719_v23  ;;  %2691 = vadd.xlane.f32.xlu1 %v8721_v38  ;;  %v8763_v14 = vpop.eup %6534 }
 0x5b0   : > { %2683 = vadd.xlane.f32.xlu2 %v8723_v54  ;;  %v8769_v42 = vpop.eup %6536  ;;  %v2133_v12 = vsel %vm2132_vm4, %v6531_v53, %v2129_v57 }
 0x5b2   : > { %v8757_v62 = vpop.f32.mrf.mxu3 }
 0x5b3   : > { %11861 = vst [vmem:[#allocation15_spill] sm:$0xff] %v8757_v62  ;;  %v8773_v62 = vadd.f32 %v6891_v0, %v1966_v29 }
 0x5b7   : > { %2623 = vmax.xlane.f32.xlu0 %v8732_v24  ;;  %2079 = vadd.xlane.f32.xlu1 %v8734_v52 }
 0x5b8   : > { %2619 = vmax.xlane.f32.xlu2 %v8737_v63 }
 0x5ba   : > { %v8767_v25 = vpop.f32.mrf.mxu3 }
 0x5bb   : > { %11862 = vst [vmem:[#allocation10_spill] sm:$0xff] %v8767_v25 }
 0x5bf   : > { %2011 = vmax.xlane.f32.xlu0 %v8749_v36 }
 0x5c0   : > { %2007 = vmax.xlane.f32.xlu2 %v8752_v45 }
 0x5c2   : > { %v8775_v37 = vpop.f32.mrf.mxu3 }
 0x5c3   : > { %11863 = vst [vmem:[#allocation29_spill] sm:$0xff] %v8775_v37 }
 0x5c4   : > { %v8759_v16 = vpop.xlane.xlu0 %2675 }
 0x5c5   : > { %vm2725_vm11 = vweird.f32 %v8759_v16 }
 0x5c7   : > { %2081 = vadd.xlane.f32.xlu0 %v8761_v5 }
 0x5c8   : > { %2077 = vadd.xlane.f32.xlu2 %v8763_v14 }
 0x5ca   : > { %v8784_v57 = vpop.f32.mrf.mxu3 }
 0x5cb   : > { %11864 = vst [vmem:[#allocation30_spill] sm:$0xff] %v8784_v57 }
 0x5cc   : > { %v2070_v43 = vpop.xlane.xlu0 %2069 }
 0x5cd   : > { %6538 = vrcp.f32 %v2070_v43  ;;  %v2151_v20 = vand.u32 2147483648, %v2070_v43  ;;  %vm2145_vm6 = vweird.f32 %v2070_v43 }
 0x5cf   : > { %v2616_v9 = vpop.xlane.xlu1 %2615  ;;  %v2152_v2 = vor.u32 1.1754944e-38, %v2151_v20 }
 0x5d0   : > { %v2636_v17 = vsub.f32 %v8600_v31, %v2616_v9  ;;  %2689 = vadd.xlane.f32.xlu2 %v8769_v42  ;;  %v2149_v9 = vand.u32 2147483647, %v2070_v43 }
 0x5d2   : > { %v2663_v47 = vmul.f32 1.442695, %v2636_v17  ;;  %v2137_v17 = vor.u32 1.1754944e-38, %v2136_v1  ;;  %vm2150_vm9 = vcmp.eq.f32.partialorder %v2149_v9, 8.507059e+37 }
 0x5d3   : > { %v6539_v32 = vpop.eup %6538 }
 0x5d4   : > { %6540 = vpow2.f32 %v2663_v47  ;;  %v2141_v27 = vmul.f32 %v6539_v32, %v2070_v43  ;;  %vm2146_vm5 = vweird.f32 %v6539_v32  ;;  %v2138_v56 = vsel %vm2135_vm7, %v2137_v17, %v2133_v12  ;;  %v8787_v12 = vpop.f32.mrf.mxu3 }
 0x5d5   : > { %vm2147_vm8 = vmor %vm2145_vm6, %vm2146_vm5  ;;  %6542 = vrcp.f32 %v8759_v16  ;;  %v2139_v53 = vmul.f32 %v8530_v19, %v2138_v56  ;;  %v2729_v56 = vand.u32 2147483647, %v8759_v16 }
 0x5d6   : > { %v2142_v25 = vsub.f32 1.0, %v2141_v27 }
 0x5d7   : > { %vm2730_vm14 = vcmp.eq.f32.partialorder %v2729_v56, 8.507059e+37 }
 0x5d8   : > { %v2143_v31 = vmul.f32 %v6539_v32, %v2142_v25  ;;  %2013 = vmax.xlane.f32.xlu2 %v8773_v62 }
 0x5da   : > { %v8778_v48 = vpop.eup %6540  ;;  %v2144_v0 = vadd.f32 %v6539_v32, %v2143_v31 }
 0x5db   : > { %2695 = vadd.xlane.f32.xlu1 %v8778_v48  ;;  %v6543_v43 = vpop.eup %6542 }
 0x5dc   : > { %v2148_v47 = vsel %vm2147_vm8, %v6539_v32, %v2144_v0  ;;  %v2721_v59 = vmul.f32 %v6543_v43, %v8759_v16  ;;  %vm2726_vm10 = vweird.f32 %v6543_v43 }
 0x5dd   : > { %v2153_v25 = vsel %vm2150_vm9, %v2152_v2, %v2148_v47  ;;  %v8793_v47 = vpop.f32.mrf.mxu3  ;;  %vm2727_vm12 = vmor %vm2725_vm11, %vm2726_vm10 }
 0x5de   : > { %v2154_v29 = vmul.f32 %v8597_v35, %v2153_v25  ;;  %v2722_v1 = vsub.f32 1.0, %v2721_v59  ;;  %v2731_v35 = vand.u32 2147483648, %v8759_v16 }
 0x5e0   : > { %v2336_v27 = vpack.c.bf16 %v2154_v29, %v2139_v53  ;;  %v2723_v20 = vmul.f32 %v6543_v43, %v2722_v1  ;;  %v2732_v1 = vor.u32 1.1754944e-38, %v2731_v35 }
 0x5e2   : > { %2380 = vmatmul.bf16.gmra.mxu1 %v2336_v27  ;;  %v2724_v9 = vadd.f32 %v6543_v43, %v2723_v20 }
 0x5e4   : > { %v2728_v29 = vsel %vm2727_vm12, %v6543_v43, %v2724_v9 }
 0x5e5   : > { %v8800_v35 = vpop.f32.mrf.mxu3 }
 0x5eb   : > { %v2674_v31 = vpop.xlane.xlu2 %2673 }
 0x5ec   : > { %6544 = vrcp.f32 %v2674_v31  ;;  %v2716_v25 = vand.u32 2147483648, %v2674_v31  ;;  %v2714_v59 = vand.u32 2147483647, %v2674_v31  ;;  %vm2710_vm15 = vweird.f32 %v2674_v31 }
 0x5ee   : > { %vm2715_vm2 = vcmp.eq.f32.partialorder %v2714_v59, 8.507059e+37 }
 0x5f2   : > { %v6545_v32 = vpop.eup %6544 }
 0x5f3   : > { %v2706_v17 = vmul.f32 %v6545_v32, %v2674_v31  ;;  %v2614_v19 = vpop.xlane.xlu2 %2613  ;;  %vm2711_vm13 = vweird.f32 %v6545_v32 }
 0x5f4   : > { %v2635_v0 = vsub.f32 %v8616_v30, %v2614_v19  ;;  %v2733_v30 = vsel %vm2730_vm14, %v2732_v1, %v2728_v29  ;;  %vm2712_vm1 = vmor %vm2710_vm15, %vm2711_vm13  ;;  %v2717_v19 = vor.u32 1.1754944e-38, %v2716_v25 }
 0x5f5   : > { %v2707_v2 = vsub.f32 1.0, %v2706_v17  ;;  %v2734_v43 = vmul.f32 %v8592_v58, %v2733_v30  ;;  %v8807_v58 = vpop.f32.mrf.mxu3 }
 0x5f6   : > { %v2661_v53 = vmul.f32 1.442695, %v2635_v0 }
 0x5f7   : > { %v2708_v27 = vmul.f32 %v6545_v32, %v2707_v2 }
 0x5f8   : > { %6546 = vpow2.f32 %v2661_v53 }
 0x5f9   : > { %v2709_v20 = vadd.f32 %v6545_v32, %v2708_v27 }
 0x5fb   : > { %v2713_v57 = vsel %vm2712_vm1, %v6545_v32, %v2709_v20  ;;  %v2004_v16 = vpop.xlane.xlu2 %2003 }
 0x5fc   : > { %v2718_v17 = vsel %vm2715_vm2, %v2717_v19, %v2713_v57  ;;  %v2025_v37 = vsub.f32 %v8621_v11, %v2004_v16 }
 0x5fd   : > { %v2719_v0 = vmul.f32 %v8612_v26, %v2718_v17  ;;  %v8817_v1 = vpop.f32.mrf.mxu3  ;;  %v2010_v17 = vpop.xlane.xlu1 %2009 }
 0x5fe   : > { %v8798_v9 = vpop.eup %6546  ;;  %v2051_v56 = vmul.f32 1.442695, %v2025_v37 }
 0x5ff   : > { %2693 = vadd.xlane.f32.xlu2 %v8798_v9  ;;  %v2945_v31 = vpack.c.bf16 %v2734_v43, %v2719_v0 }
 0x600   : > { %6548 = vpow2.f32 %v2051_v56 }
 0x601   : > { %2985 = vmatmul.bf16.vlgmr.msra.gmra.mxu3 %v2945_v31 }
 0x602   : > { %v2680_v32 = vpop.xlane.xlu0 %2679 }
 0x603   : > { %v2006_v2 = vpop.xlane.xlu2 %2005  ;;  %6550 = vrcp.f32 %v2680_v32  ;;  %vm2755_vm4 = vweird.f32 %v2680_v32  ;;  %v2759_v61 = vand.u32 2147483647, %v2680_v32 }
 0x604   : > { %v2026_v57 = vsub.f32 %v8636_v13, %v2006_v2 }
 0x605   : > { %vm2760_vm8 = vcmp.eq.f32.partialorder %v2759_v61, 8.507059e+37 }
 0x606   : > { %v8804_v11 = vpop.eup %6548  ;;  %v2053_v26 = vmul.f32 1.442695, %v2026_v57 }
 0x607   : > { %2083 = vadd.xlane.f32.xlu0 %v8804_v11 }
 0x608   : > { %6552 = vpow2.f32 %v2053_v26  ;;  %v2028_v26 = vsub.f32 %v8608_v39, %v2010_v17 }
 0x609   : > { %v6551_v25 = vpop.eup %6550 }
 0x60a   : > { %v2751_v37 = vmul.f32 %v6551_v25, %v2680_v32  ;;  %v8809_v53 = vpop.xlane.xlu0 %2071  ;;  %vm2756_vm3 = vweird.f32 %v6551_v25 }
 0x60b   : > { %v2678_v29 = vpop.xlane.xlu2 %2677  ;;  %6554 = vrcp.f32 %v8809_v53  ;;  %vm8826_vm5 = vmor %vm2755_vm4, %vm2756_vm3  ;;  %v2166_v61 = vand.u32 2147483648, %v8809_v53  ;;  %vm2160_vm12 = vweird.f32 %v8809_v53 }
 0x60c   : > { %6556 = vrcp.f32 %v2678_v29  ;;  %v2752_v59 = vsub.f32 1.0, %v2751_v37  ;;  %v2761_v37 = vand.u32 2147483648, %v2680_v32  ;;  %v2746_v4 = vand.u32 2147483648, %v2678_v29 }
 0x60d   : > { %vm2740_vm7 = vweird.f32 %v2678_v29 }
 0x60e   : > { %v8812_v27 = vpop.eup %6552  ;;  %v2753_v20 = vmul.f32 %v6551_v25, %v2752_v59  ;;  %v2762_v17 = vor.u32 1.1754944e-38, %v2761_v37  ;;  %v2747_v22 = vor.u32 1.1754944e-38, %v2746_v4 }
 0x60f   : > { %2085 = vadd.xlane.f32.xlu2 %v8812_v27 }
 0x610   : > { %v2754_v57 = vadd.f32 %v6551_v25, %v2753_v20 }
 0x611   : > { %v8815_v13 = vpop.eup %6554 }
 0x612   : > { %v6557_v30 = vpop.eup %6556  ;;  %v2156_v19 = vmul.f32 %v8815_v13, %v8809_v53  ;;  %v2618_v16 = vpop.xlane.xlu0 %2617  ;;  %v2758_v20 = vsel %vm8826_vm5, %v6551_v25, %v2754_v57  ;;  %vm2161_vm11 = vweird.f32 %v8815_v13 }
 0x613   : > { %v2736_v0 = vmul.f32 %v6557_v30, %v2678_v29  ;;  %v2637_v43 = vsub.f32 %v8687_v33, %v2618_v16  ;;  %v8822_v56 = vpop.xlane.xlu2 %2073  ;;  %vm2741_vm6 = vweird.f32 %v6557_v30  ;;  %v2744_v16 = vand.u32 2147483647, %v2678_v29  ;;  %vm8855_vm13 = vmor %vm2160_vm12, %vm2161_vm11 }
 0x614   : > { %6558 = vrcp.f32 %v8822_v56  ;;  %v2157_v59 = vsub.f32 1.0, %v2156_v19  ;;  %vm2742_vm9 = vmor %vm2740_vm7, %vm2741_vm6  ;;  %v2763_v25 = vsel %vm2760_vm8, %v2762_v17, %v2758_v20  ;;  %v2179_v17 = vand.u32 2147483647, %v8822_v56 }
 0x615   : > { %v2737_v31 = vsub.f32 1.0, %v2736_v0  ;;  %v2665_v2 = vmul.f32 1.442695, %v2637_v43  ;;  %v2057_v43 = vmul.f32 1.442695, %v2028_v26  ;;  %vm2745_vm10 = vcmp.eq.f32.partialorder %v2744_v16, 8.507059e+37 }
 0x616   : > { %v2158_v39 = vmul.f32 %v8815_v13, %v2157_v59  ;;  %v2764_v4 = vmul.f32 %v8638_v60, %v2763_v25  ;;  %vm2175_vm15 = vweird.f32 %v8822_v56  ;;  %vm2180_vm3 = vcmp.eq.f32.partialorder %v2179_v17, 8.507059e+37 }
 0x617   : > { %v2738_v51 = vmul.f32 %v6557_v30, %v2737_v31  ;;  %6560 = vpow2.f32 %v2665_v2  ;;  %v8835_v31 = vpop.f32.mrf.mxu3 }
 0x618   : > { %11867 = vst [vmem:[#allocation31_spill] sm:$0xff] %v8835_v31  ;;  %v2159_v59 = vadd.f32 %v8815_v13, %v2158_v39 }
 0x619   : > { %v2739_v33 = vadd.f32 %v6557_v30, %v2738_v51  ;;  %v8840_v51 = vpop.xlane.xlu1 %2685 }
 0x61a   : > { %v6559_v0 = vpop.eup %6558  ;;  %v8833_v19 = vpop.xlane.xlu0 %2075 }
 0x61b   : > { %v2171_v32 = vmul.f32 %v6559_v0, %v8822_v56  ;;  %v8838_v2 = vpop.xlane.xlu2 %2681  ;;  %v2743_v37 = vsel %vm2742_vm9, %v6557_v30, %v2739_v33  ;;  %v2164_v30 = vand.u32 2147483647, %v8809_v53  ;;  %v2181_v33 = vand.u32 2147483648, %v8822_v56 }
 0x61c   : > { %6562 = vrcp.f32 %v8838_v2  ;;  %v2748_v29 = vsel %vm2745_vm10, %v2747_v22, %v2743_v37  ;;  %vm2176_vm14 = vweird.f32 %v6559_v0  ;;  %vm2770_vm5 = vweird.f32 %v8838_v2 }
 0x61d   : > { %v8844_v57 = vpop.eup %6560  ;;  %v2172_v26 = vsub.f32 1.0, %v2171_v32  ;;  %6564 = vpow2.f32 %v2057_v43  ;;  %v2749_v55 = vmul.f32 %v8652_v41, %v2748_v29  ;;  %v2163_v41 = vsel %vm8855_vm13, %v8815_v13, %v2159_v59  ;;  %vm2177_vm2 = vmor %vm2175_vm15, %vm2176_vm14 }
 0x61e   : > { %2697 = vadd.xlane.f32.xlu1 %v8844_v57  ;;  %v2167_v32 = vor.u32 1.1754944e-38, %v2166_v61  ;;  %vm2165_vm1 = vcmp.eq.f32.partialorder %v2164_v30, 8.507059e+37  ;;  %v2776_v17 = vand.u32 2147483648, %v8838_v2  ;;  %vm2800_vm15 = vweird.f32 %v8840_v51 }
 0x61f   : > { %v2173_v31 = vmul.f32 %v6559_v0, %v2172_v26  ;;  %v2946_v16 = vpack.c.bf16 %v2764_v4, %v2749_v55  ;;  %v8875_v25 = vpop.f32.mrf.mxu3  ;;  %v2182_v26 = vor.u32 1.1754944e-38, %v2181_v33 }
 0x620   : > { %11871 = vst [vmem:[#allocation33_spill] sm:$0xff] %v8875_v25 }
 0x621   : > { %v2174_v60 = vadd.f32 %v6559_v0, %v2173_v31  ;;  %2990 = vmatmul.bf16.gmra.mxu3 %v2946_v16  ;;  %v2168_v31 = vsel %vm2165_vm1, %v2167_v32, %v2163_v41  ;;  %v2622_v37 = vpop.xlane.xlu1 %2621 }
 0x622   : > { %v8859_v43 = vpop.eup %6562  ;;  %v8861_v39 = vpop.xlane.xlu0 %2687  ;;  %v2169_v61 = vmul.f32 %v8650_v40, %v2168_v31  ;;  %v2639_v41 = vsub.f32 %v8708_v21, %v2622_v37  ;;  %v2774_v31 = vand.u32 2147483647, %v8838_v2 }
 0x623   : > { %v2766_v53 = vmul.f32 %v8859_v43, %v8838_v2  ;;  %v8869_v55 = vpop.xlane.xlu2 %2683  ;;  %v8871_v22 = vpop.eup %6564  ;;  %6566 = vrcp.f32 %v8861_v39  ;;  %v2178_v29 = vsel %vm2177_vm2, %v6559_v0, %v2174_v60  ;;  %vm2771_vm4 = vweird.f32 %v8859_v43 }
 0x624   : > { %11870 = vst [vmem:[#allocation32_spill] sm:$0xff] %v8871_v22  ;;  %6568 = vrcp.f32 %v8869_v55  ;;  %v2183_v59 = vsel %vm2180_vm3, %v2182_v26, %v2178_v29  ;;  %v2669_v37 = vmul.f32 1.442695, %v2639_v41  ;;  %v2791_v29 = vand.u32 2147483648, %v8869_v55  ;;  %vm8905_vm6 = vmor %vm2770_vm5, %vm2771_vm4 }
 0x625   : > { %v2767_v13 = vsub.f32 1.0, %v2766_v53  ;;  %6570 = vrcp.f32 %v8840_v51  ;;  %v2184_v4 = vmul.f32 %v8694_v44, %v2183_v59  ;;  %v2777_v41 = vor.u32 1.1754944e-38, %v2776_v17 }
 0x626   : > { %2089 = vadd.xlane.f32.xlu1 %v8871_v22  ;;  %6572 = vrcp.f32 %v8833_v19  ;;  %vm2785_vm8 = vweird.f32 %v8869_v55  ;;  %vm2775_vm9 = vcmp.eq.f32.partialorder %v2774_v31, 8.507059e+37  ;;  %vm2815_vm14 = vweird.f32 %v8861_v39 }
 0x627   : > { %v2768_v56 = vmul.f32 %v8859_v43, %v2767_v13  ;;  %v2337_v16 = vpack.c.bf16 %v2184_v4, %v2169_v61  ;;  %v8900_v26 = vpop.f32.mrf.mxu3 }
 0x628   : > { %11872 = vst [vmem:[#allocation34_spill] sm:$0xff] %v8900_v26 }
 0x629   : > { %v8883_v30 = vpop.eup %6566  ;;  %2385 = vmatmul.bf16.gmra.mxu1 %v2337_v16  ;;  %v2769_v44 = vadd.f32 %v8859_v43, %v2768_v56  ;;  %v2789_v56 = vand.u32 2147483647, %v8869_v55  ;;  %v8910_v61 = vpop.xlane.xlu1 %2691 }
 0x62a   : > { %v8885_v20 = vpop.xlane.xlu0 %2623  ;;  %v6569_v33 = vpop.eup %6568  ;;  %v2811_v32 = vmul.f32 %v8883_v30, %v8861_v39  ;;  %vm2816_vm12 = vweird.f32 %v8883_v30 }
 0x62b   : > { %v2620_v53 = vpop.xlane.xlu2 %2619  ;;  %v8889_v0 = vpop.eup %6570  ;;  %v2781_v60 = vmul.f32 %v6569_v33, %v8869_v55  ;;  %v2773_v2 = vsel %vm8905_vm6, %v8859_v43, %v2769_v44  ;;  %vm2786_vm7 = vweird.f32 %v6569_v33  ;;  %vm2790_vm11 = vcmp.eq.f32.partialorder %v2789_v56, 8.507059e+37  ;;  %vm8961_vm1 = vmor %vm2815_vm14, %vm2816_vm12 }
 0x62c   : > { %v2638_v40 = vsub.f32 %v8737_v63, %v2620_v53  ;;  %v2796_v63 = vmul.f32 %v8889_v0, %v8840_v51  ;;  %v8915_v16 = vpop.eup %6572  ;;  %v2812_v53 = vsub.f32 1.0, %v2811_v32  ;;  %vm2787_vm10 = vmor %vm2785_vm8, %vm2786_vm7  ;;  %v2806_v56 = vand.u32 2147483648, %v8840_v51 }
 0x62d   : > { %v2782_v21 = vsub.f32 1.0, %v2781_v60  ;;  %v2186_v17 = vmul.f32 %v8915_v16, %v8833_v19  ;;  %vm2801_vm13 = vweird.f32 %v8889_v0  ;;  %vm2191_vm5 = vweird.f32 %v8915_v16 }
 0x62e   : > { %v2667_v13 = vmul.f32 1.442695, %v2638_v40  ;;  %v2797_v26 = vsub.f32 1.0, %v2796_v63  ;;  %vm2802_vm2 = vmor %vm2800_vm15, %vm2801_vm13  ;;  %vm2190_vm6 = vweird.f32 %v8833_v19  ;;  %vm2845_vm13 = vweird.f32 %v8910_v61 }
 0x62f   : > { %v2783_v4 = vmul.f32 %v6569_v33, %v2782_v21  ;;  %v2778_v21 = vsel %vm2775_vm9, %v2777_v41, %v2773_v2  ;;  %vm8996_vm7 = vmor %vm2190_vm6, %vm2191_vm5 }
 0x630   : > { %6574 = vpow2.f32 %v2667_v13  ;;  %v2792_v13 = vor.u32 1.1754944e-38, %v2791_v29  ;;  %v2779_v59 = vmul.f32 %v8712_v49, %v2778_v21  ;;  %v2804_v21 = vand.u32 2147483647, %v8840_v51 }
 0x631   : > { %v2784_v40 = vadd.f32 %v6569_v33, %v2783_v4  ;;  %6576 = vpow2.f32 %v2669_v37  ;;  %v2187_v4 = vsub.f32 1.0, %v2186_v17  ;;  %v8937_v49 = vpop.xlane.xlu1 %2079 }
 0x632   : > { %v2012_v60 = vpop.xlane.xlu0 %2011  ;;  %6578 = vrcp.f32 %v8910_v61  ;;  %vm2805_vm4 = vcmp.eq.f32.partialorder %v2804_v21, 8.507059e+37 }
 0x633   : > { %v2029_v25 = vsub.f32 %v8749_v36, %v2012_v60  ;;  %v2008_v22 = vpop.xlane.xlu2 %2007  ;;  %v2788_v44 = vsel %vm2787_vm10, %v6569_v33, %v2784_v40  ;;  %v2813_v36 = vmul.f32 %v8883_v30, %v2812_v53  ;;  %v8932_v33 = vpop.f32.mrf.mxu3  ;;  %v2819_v60 = vand.u32 2147483647, %v8861_v39 }
 0x634   : > { %v2027_v43 = vsub.f32 %v8752_v45, %v2008_v22  ;;  %v2793_v32 = vsel %vm2790_vm11, %v2792_v13, %v2788_v44  ;;  %v2798_v45 = vmul.f32 %v8889_v0, %v2797_v26  ;;  %v2640_v22 = vsub.f32 %v8732_v24, %v8885_v20 }
 0x635   : > { %v2059_v55 = vmul.f32 1.442695, %v2029_v25  ;;  %v2794_v37 = vmul.f32 %v8723_v54, %v2793_v32  ;;  %v2814_v26 = vadd.f32 %v8883_v30, %v2813_v36  ;;  %v2821_v24 = vand.u32 2147483648, %v8861_v39 }
 0x636   : > { %v8923_v31 = vpop.eup %6574  ;;  %v2055_v63 = vmul.f32 1.442695, %v2027_v43  ;;  %v2799_v41 = vadd.f32 %v8889_v0, %v2798_v45  ;;  %v2671_v53 = vmul.f32 1.442695, %v2640_v22  ;;  %v2188_v44 = vmul.f32 %v8915_v16, %v2187_v4 }
 0x637   : > { %6580 = vpow2.f32 %v2059_v55  ;;  %2699 = vadd.xlane.f32.xlu0 %v8923_v31  ;;  %v2947_v25 = vpack.c.bf16 %v2794_v37, %v2779_v59  ;;  %v8934_v29 = vpop.eup %6576  ;;  %v2818_v51 = vsel %vm8961_vm1, %v8883_v30, %v2814_v26  ;;  %v2822_v55 = vor.u32 1.1754944e-38, %v2821_v24 }
 0x638   : > { %6582 = vpow2.f32 %v2055_v63  ;;  %v8943_v2 = vpop.eup %6578  ;;  %v2803_v17 = vsel %vm2802_vm2, %v8889_v0, %v2799_v41  ;;  %v2807_v32 = vor.u32 1.1754944e-38, %v2806_v56  ;;  %vm2820_vm3 = vcmp.eq.f32.partialorder %v2819_v60, 8.507059e+37 }
 0x639   : > { %2995 = vmatmul.bf16.gmra.mxu3 %v2947_v25  ;;  %v2841_v39 = vmul.f32 %v8943_v2, %v8910_v61  ;;  %v2823_v63 = vsel %vm2820_vm3, %v2822_v55, %v2818_v51  ;;  %v2189_v22 = vadd.f32 %v8915_v16, %v2188_v44  ;;  %v2196_v0 = vand.u32 2147483648, %v8833_v19 }
 0x63a   : > { %v8939_v54 = vpop.xlane.xlu0 %2081  ;;  %v2808_v45 = vsel %vm2805_vm4, %v2807_v32, %v2803_v17  ;;  %v2824_v26 = vmul.f32 %v8719_v23, %v2823_v63  ;;  %v2194_v24 = vand.u32 2147483647, %v8833_v19  ;;  %vm2846_vm12 = vweird.f32 %v8943_v2 }
 0x63b   : > { %6584 = vrcp.f32 %v8939_v54  ;;  %v8947_v20 = vpop.xlane.xlu2 %2077  ;;  %v2842_v37 = vsub.f32 1.0, %v2841_v39  ;;  %v8983_v25 = vpop.f32.mrf.mxu3  ;;  %v2809_v60 = vmul.f32 %v8689_v15, %v2808_v45  ;;  %v2193_v19 = vsel %vm8996_vm7, %v8915_v16, %v2189_v22  ;;  %vm9026_vm15 = vmor %vm2845_vm13, %vm2846_vm12 }
 0x63c   : > { %6586 = vrcp.f32 %v8947_v20  ;;  %v2211_v23 = vand.u32 2147483648, %v8947_v20  ;;  %v2197_v15 = vor.u32 1.1754944e-38, %v2196_v0  ;;  %v2209_v17 = vand.u32 2147483647, %v8947_v20 }
 0x63d   : > { %v8954_v40 = vpop.eup %6580  ;;  %6588 = vrcp.f32 %v8937_v49  ;;  %v2843_v44 = vmul.f32 %v8943_v2, %v2842_v37  ;;  %v2948_v55 = vpack.c.bf16 %v2824_v26, %v2809_v60  ;;  %vm2195_vm9 = vcmp.eq.f32.partialorder %v2194_v24, 8.507059e+37 }
 0x63e   : > { %v8965_v43 = vpop.eup %6582  ;;  %2091 = vadd.xlane.f32.xlu1 %v8954_v40  ;;  %6590 = vpow2.f32 %v2671_v53  ;;  %vm2205_vm10 = vweird.f32 %v8947_v20  ;;  %v2198_v63 = vsel %vm2195_vm9, %v2197_v15, %v2193_v19  ;;  %v2212_v21 = vor.u32 1.1754944e-38, %v2211_v23 }
 0x63f   : > { %2087 = vadd.xlane.f32.xlu2 %v8965_v43  ;;  %2701 = vadd.xlane.f32.xlu0 %v8934_v29  ;;  %v2844_v16 = vadd.f32 %v8943_v2, %v2843_v44  ;;  %vm2210_vm14 = vcmp.eq.f32.partialorder %v2209_v17, 8.507059e+37  ;;  %v2849_v60 = vand.u32 2147483647, %v8910_v61  ;;  %v2199_v23 = vmul.f32 %v8710_v7, %v2198_v63 }
 0x640   : > { %vm2235_vm7 = vweird.f32 %v8939_v54  ;;  %vm2220_vm9 = vweird.f32 %v8937_v49 }
 0x641   : > { %v8977_v36 = vpop.eup %6584  ;;  %vm2850_vm2 = vcmp.eq.f32.partialorder %v2849_v60, 8.507059e+37 }
 0x642   : > { %v6587_v59 = vpop.eup %6586  ;;  %v2231_v41 = vmul.f32 %v8977_v36, %v8939_v54  ;;  %vm2236_vm5 = vweird.f32 %v8977_v36 }
 0x643   : > { %v8981_v30 = vpop.eup %6588  ;;  %v2201_v56 = vmul.f32 %v6587_v59, %v8947_v20  ;;  %v8987_v4 = vpop.xlane.xlu2 %2689  ;;  %vm2206_vm8 = vweird.f32 %v6587_v59  ;;  %v2851_v20 = vand.u32 2147483648, %v8910_v61  ;;  %v2848_v61 = vsel %vm9026_vm15, %v8943_v2, %v2844_v16 }
 0x644   : > { %6592 = vrcp.f32 %v8987_v4  ;;  %v9000_v13 = vpop.eup %6590  ;;  %v2216_v39 = vmul.f32 %v8981_v30, %v8937_v49  ;;  %v2232_v32 = vsub.f32 1.0, %v2231_v41  ;;  %vm2207_vm11 = vmor %vm2205_vm10, %vm2206_vm8  ;;  %v9014_v22 = vpop.f32.mrf.mxu3  ;;  %v2834_v7 = vand.u32 2147483647, %v8987_v4 }
 0x645   : > { %v2202_v53 = vsub.f32 1.0, %v2201_v56  ;;  %vm2221_vm3 = vweird.f32 %v8981_v30  ;;  %vm2830_vm4 = vweird.f32 %v8987_v4  ;;  %v2241_v2 = vand.u32 2147483648, %v8939_v54  ;;  %vm2237_vm10 = vmor %vm2235_vm7, %vm2236_vm5 }
 0x646   : > { %v2217_v56 = vsub.f32 1.0, %v2216_v39  ;;  %v2233_v44 = vmul.f32 %v8977_v36, %v2232_v32  ;;  %vm2835_vm8 = vcmp.eq.f32.partialorder %v2834_v7, 8.507059e+37 }
 0x647   : > { %v2203_v51 = vmul.f32 %v6587_v59, %v2202_v53  ;;  %2703 = vadd.xlane.f32.xlu2 %v9000_v13 }
 0x648   : > { %v2234_v63 = vadd.f32 %v8977_v36, %v2233_v44 }
 0x649   : > { %v2204_v37 = vadd.f32 %v6587_v59, %v2203_v51  ;;  %3000 = vmatmul.bf16.gmra.mxu3 %v2948_v55 }
 0x64a   : > { %v6593_v45 = vpop.eup %6592  ;;  %v2238_v60 = vsel %vm2237_vm10, %v8977_v36, %v2234_v63 }
 0x64b   : > { %v2826_v0 = vmul.f32 %v6593_v45, %v8987_v4  ;;  %v2014_v26 = vpop.xlane.xlu2 %2013  ;;  %v2208_v24 = vsel %vm2207_vm11, %v6587_v59, %v2204_v37  ;;  %v2218_v59 = vmul.f32 %v8981_v30, %v2217_v56  ;;  %vm2831_vm1 = vweird.f32 %v6593_v45  ;;  %vm2222_vm11 = vmor %vm2220_vm9, %vm2221_vm3 }
 0x64c   : > { %v2030_v41 = vsub.f32 %v8773_v62, %v2014_v26  ;;  %v2213_v53 = vsel %vm2210_vm14, %v2212_v21, %v2208_v24  ;;  %v2836_v62 = vand.u32 2147483648, %v8987_v4  ;;  %vm2832_vm6 = vmor %vm2830_vm4, %vm2831_vm1  ;;  %v2226_v4 = vand.u32 2147483648, %v8937_v49  ;;  %v9046_v24 = vpop.f32.mrf.mxu3 }
 0x64d   : > { %v2827_v39 = vsub.f32 1.0, %v2826_v0  ;;  %v2214_v19 = vmul.f32 %v8763_v14, %v2213_v53  ;;  %v2852_v14 = vor.u32 1.1754944e-38, %v2851_v20  ;;  %v2219_v21 = vadd.f32 %v8981_v30, %v2218_v59 }
 0x64e   : > { %v2061_v15 = vmul.f32 1.442695, %v2030_v41  ;;  %v2837_v37 = vor.u32 1.1754944e-38, %v2836_v62  ;;  %v2239_v0 = vand.u32 2147483647, %v8939_v54  ;;  %v2242_v54 = vor.u32 1.1754944e-38, %v2241_v2  ;;  %v2696_v59 = vpop.xlane.xlu1 %2695 }
 0x64f   : > { %v2828_v17 = vmul.f32 %v6593_v45, %v2827_v39  ;;  %v2338_v55 = vpack.c.bf16 %v2214_v19, %v2199_v23  ;;  %v2853_v56 = vsel %vm2850_vm2, %v2852_v14, %v2848_v61  ;;  %v2224_v53 = vand.u32 2147483647, %v8937_v49 }
 0x650   : > { %6594 = vpow2.f32 %v2061_v15  ;;  %v2854_v41 = vmul.f32 %v8721_v38, %v2853_v56  ;;  %v2223_v39 = vsel %vm2222_vm11, %v8981_v30, %v2219_v21  ;;  %vm2240_vm12 = vcmp.eq.f32.partialorder %v2239_v0, 8.507059e+37  ;;  %v6192_v0 = vld [vmem:[#allocation2 + $0x40] sm:$0xf] }
 0x651   : > { %2390 = vmatmul.bf16.gmra.mxu1 %v2338_v55  ;;  %v2829_v32 = vadd.f32 %v6593_v45, %v2828_v17  ;;  %v2227_v23 = vor.u32 1.1754944e-38, %v2226_v4  ;;  %vm2225_vm13 = vcmp.eq.f32.partialorder %v2224_v53, 8.507059e+37  ;;  %6596 = vrcp.f32 %v2696_v59  ;;  %v2376_v4 = vpop.f32.mrf.mxu1  ;;  %v6306_v53 = vld [vmem:[#allocation2 + $0x6c] sm:$0xf0] }
 0x652   : > { %v2881_v63 = vand.u32 2147483648, %v2696_v59  ;;  %vm2875_vm15 = vweird.f32 %v2696_v59  ;;  %v2879_v56 = vand.u32 2147483647, %v2696_v59 }
 0x653   : > { %v2833_v16 = vsel %vm2832_vm6, %v6593_v45, %v2829_v32  ;;  %v2228_v38 = vsel %vm2225_vm13, %v2227_v23, %v2223_v39 }
 0x654   : > { %v2838_v26 = vsel %vm2835_vm8, %v2837_v37, %v2833_v16  ;;  %v2229_v36 = vmul.f32 %v8734_v52, %v2228_v38  ;;  %v9060_v19 = vpop.f32.mrf.mxu3  ;;  %v2882_v39 = vor.u32 1.1754944e-38, %v2881_v63  ;;  %vm2880_vm4 = vcmp.eq.f32.partialorder %v2879_v56, 8.507059e+37 }
 0x655   : > { %v2839_v20 = vmul.f32 %v8769_v42, %v2838_v26  ;;  %v2243_v42 = vsel %vm2240_vm12, %v2242_v54, %v2238_v60  ;;  %v6216_v60 = vld [vmem:[#allocation2 + $0x68] sm:$0xf] }
 0x656   : > { %v9052_v45 = vpop.eup %6594  ;;  %v2244_v49 = vmul.f32 %v8761_v5, %v2243_v42  ;;  %v6892_v54 = vld [vmem:[%s11711_s4 + $0x8] sm:$0x77]  ;;  %v6307_v42 = vld [vmem:[#allocation2 + $0x74] sm:$0xf0] }
 0x657   : > { %2093 = vadd.xlane.f32.xlu0 %v9052_v45  ;;  %v2949_v44 = vpack.c.bf16 %v2854_v41, %v2839_v20  ;;  %v6597_v15 = vpop.eup %6596  ;;  %v6208_v41 = vld [vmem:[#allocation2 + $0x60] sm:$0xf] }
 0x658   : > { %v2339_v51 = vpack.c.bf16 %v2244_v49, %v2229_v36  ;;  %v2871_v30 = vmul.f32 %v6597_v15, %v2696_v59  ;;  %vm2876_vm14 = vweird.f32 %v6597_v15  ;;  %v6209_v23 = vor.u32 %v6306_v53, %v6208_v41  ;;  %v6200_v41 = vld [vmem:[#allocation2 + $0x48] sm:$0xf]  ;;  %v6303_v53 = vld [vmem:[#allocation2 + $0x54] sm:$0xf0] }
 0x659   : > { %3005 = vmatmul.bf16.gmra.mxu3 %v2949_v44  ;;  %vm9071_vm1 = vmor %vm2875_vm15, %vm2876_vm14  ;;  %v372_v44 = vperm.slane %v6892_v54, 4  ;;  %v6217_v49 = vor.u32 %v6307_v42, %v6216_v60  ;;  %v2378_v60 = vpop.f32.mrf.mxu1  ;;  %v6201_v54 = vor.u32 %v6303_v53, %v6200_v41 }
 0x65a   : > { %v2872_v17 = vsub.f32 1.0, %v2871_v30  ;;  %3232 = vmatpush.bf16.msrb.mxu0 %v6209_v23 }
 0x65b   : > { %3330 = vmatpush.bf16.msrb.mxu2 %v6217_v49 }
 0x65c   : > { %v9062_v62 = vpop.f32.mrf.mxu3  ;;  %v2873_v7 = vmul.f32 %v6597_v15, %v2872_v17 }
 0x65e   : > { %v2874_v52 = vadd.f32 %v6597_v15, %v2873_v7 }
 0x65f   : > { %3331 = vmatpush.bf16.msrb.mxu2 %v6201_v54  ;;  %v6894_v54 = vld [vmem:[%s7144_s20] sm:$0xff] }
 0x660   : > { %v2878_v20 = vsel %vm9071_vm1, %v6597_v15, %v2874_v52 }
 0x661   : > { %2395 = vmatmul.bf16.gmra.mxu1 %v2339_v51  ;;  %v1783_v51 = vadd.f32 %v8787_v12, %v8400_v6  ;;  %v2883_v15 = vsel %vm2880_vm4, %v2882_v39, %v2878_v20  ;;  %v6893_v39 = vld [vmem:[%s11711_s4] sm:$0x77] }
 0x662   : > { %v9102_v23 = vperm.slane %v6893_v39, 1 }
 0x664   : > { %v9064_v61 = vpop.f32.mrf.mxu3 }
 0x66c   : > { %v9069_v2 = vpop.f32.mrf.mxu3 }
 0x672   : > { %v2694_v55 = vpop.xlane.xlu2 %2693 }
 0x673   : > { %6598 = vrcp.f32 %v2694_v55  ;;  %v2866_v21 = vand.u32 2147483648, %v2694_v55  ;;  %v2864_v16 = vand.u32 2147483647, %v2694_v55  ;;  %vm2860_vm3 = vweird.f32 %v2694_v55 }
 0x675   : > { %v2867_v59 = vor.u32 1.1754944e-38, %v2866_v21  ;;  %vm2865_vm6 = vcmp.eq.f32.partialorder %v2864_v16, 8.507059e+37 }
 0x679   : > { %v6599_v14 = vpop.eup %6598 }
 0x67a   : > { %v2856_v5 = vmul.f32 %v6599_v14, %v2694_v55  ;;  %v9066_v32 = vpop.xlane.xlu0 %2083  ;;  %vm2861_vm2 = vweird.f32 %v6599_v14  ;;  %v9089_v55 = vperm.slane %v372_v44, 0 }
 0x67b   : > { %6600 = vrcp.f32 %v9066_v32  ;;  %vm2862_vm5 = vmor %vm2860_vm3, %vm2861_vm2  ;;  %v2256_v49 = vand.u32 2147483648, %v9066_v32  ;;  %vm2250_vm8 = vweird.f32 %v9066_v32 }
 0x67c   : > { %v2857_v37 = vsub.f32 1.0, %v2856_v5  ;;  %v2416_v5 = vadd.f32 %v2376_v4, %v1783_v51 }
 0x67e   : > { %v2858_v26 = vmul.f32 %v6599_v14, %v2857_v37  ;;  %v2884_v37 = vmul.f32 %v8778_v48, %v2883_v15  ;;  %v1785_v48 = vadd.f32 %v8793_v47, %v8406_v18  ;;  %v9108_v18 = vperm.slane %v6893_v39, 2 }
 0x680   : > { %v2859_v38 = vadd.f32 %v6599_v14, %v2858_v26  ;;  %v6302_v26 = vld [vmem:[#allocation2 + $0x4c] sm:$0xf0]  ;;  %v2417_v42 = vadd.f32 %v2378_v60, %v1785_v48 }
 0x681   : > { %v9080_v36 = vpop.eup %6600  ;;  %v6193_v4 = vor.u32 %v6302_v26, %v6192_v0 }
 0x682   : > { %v2246_v30 = vmul.f32 %v9080_v36, %v9066_v32  ;;  %v9087_v17 = vpop.xlane.xlu2 %2085  ;;  %v2863_v7 = vsel %vm2862_vm5, %v6599_v14, %v2859_v38  ;;  %v603_v14 = vadd.f32 %v8368_v34, %v9089_v55  ;;  %vm2251_vm7 = vweird.f32 %v9080_v36 }
 0x683   : > { %6602 = vrcp.f32 %v9087_v17  ;;  %v2868_v52 = vsel %vm2865_vm6, %v2867_v59, %v2863_v7  ;;  %3233 = vmatpush.bf16.msrb.mxu0 %v6193_v4  ;;  %vm2252_vm9 = vmor %vm2250_vm8, %vm2251_vm7  ;;  %vm2265_vm11 = vweird.f32 %v9087_v17 }
 0x684   : > { %v2247_v6 = vsub.f32 1.0, %v2246_v30  ;;  %v2986_v12 = vpop.f32.mrf.mxu3  ;;  %v2869_v63 = vmul.f32 %v8798_v9, %v2868_v52  ;;  %v2254_v30 = vand.u32 2147483647, %v9066_v32  ;;  %v605_v52 = vadd.f32 %v8389_v50, %v9089_v55 }
 0x685   : > { %v3026_v56 = vadd.f32 %v2986_v12, %v2416_v5  ;;  %v2271_v5 = vand.u32 2147483648, %v9087_v17 }
 0x686   : > { %v2950_v21 = vpack.c.bf16 %v2884_v37, %v2869_v63  ;;  %v2248_v16 = vmul.f32 %v9080_v36, %v2247_v6  ;;  %v2269_v63 = vand.u32 2147483647, %v9087_v17  ;;  %v2257_v37 = vor.u32 1.1754944e-38, %v2256_v49 }
 0x687   : > { %v3042_v20 = vmul.f32 0.25, %v3026_v56  ;;  %vm2255_vm12 = vcmp.eq.f32.partialorder %v2254_v30, 8.507059e+37 }
 0x688   : > { %3010 = vmatmul.bf16.gmra.mxu3 %v2950_v21  ;;  %v2249_v38 = vadd.f32 %v9080_v36, %v2248_v16  ;;  %vm2270_vm14 = vcmp.eq.f32.partialorder %v2269_v63, 8.507059e+37 }
 0x689   : > { %v6603_v44 = vpop.eup %6602  ;;  %v3058_v9 = vadd.f32 %v3042_v20, %v603_v14  ;;  %v2272_v14 = vor.u32 1.1754944e-38, %v2271_v5 }
 0x68a   : > { %v2261_v34 = vmul.f32 %v6603_v44, %v9087_v17  ;;  %vm2266_vm10 = vweird.f32 %v6603_v44  ;;  %v2253_v12 = vsel %vm2252_vm9, %v9080_v36, %v2249_v38 }
 0x68b   : > { %v3075_v59 = vmul.f32 %v9102_v23, %v3058_v9  ;;  %vm2267_vm13 = vmor %vm2265_vm11, %vm2266_vm10  ;;  %v2258_v0 = vsel %vm2255_vm12, %v2257_v37, %v2253_v12 }
 0x68c   : > { %v2262_v51 = vsub.f32 1.0, %v2261_v34  ;;  %v2988_v47 = vpop.f32.mrf.mxu3  ;;  %v2259_v4 = vmul.f32 %v8804_v11, %v2258_v0 }
 0x68d   : > { %v3027_v15 = vadd.f32 %v2988_v47, %v2417_v42  ;;  %v3092_v21 = vadd.f32 %v9108_v18, %v3075_v59  ;;  %v1788_v42 = vadd.f32 %v8800_v35, %v8412_v8  ;;  %v1790_v8 = vadd.f32 %v8807_v58, %v8416_v46 }
 0x68e   : > { %v2263_v7 = vmul.f32 %v6603_v44, %v2262_v51  ;;  %v610_v46 = vadd.f32 %v8457_v3, %v9089_v55 }
 0x68f   : > { %v3043_v6 = vmul.f32 0.25, %v3027_v15  ;;  %v3108_v20 = vmax.f32 %v3092_v21, 0.0 }
 0x690   : > { %v2264_v56 = vadd.f32 %v6603_v44, %v2263_v7  ;;  %v608_v7 = vadd.f32 %v8441_v28, %v9089_v55 }
 0x691   : > { %v3059_v32 = vadd.f32 %v3043_v6, %v605_v52  ;;  %v9121_v16 = vpop.xlane.xlu1 %2697  ;;  %v9127_v48 = vadd.f32 %v6894_v54, %v3108_v20 }
 0x692   : > { %v2268_v26 = vsel %vm2267_vm13, %v6603_v44, %v2264_v56  ;;  %v6895_v44 = vld [vmem:[%s7144_s20 + $0x8] sm:$0xff]  ;;  %6604 = vrcp.f32 %v9121_v16  ;;  %v2896_v56 = vand.u32 2147483648, %v9121_v16  ;;  %vm2890_vm1 = vweird.f32 %v9121_v16 }
 0x693   : > { %v3076_v50 = vmul.f32 %v9102_v23, %v3059_v32  ;;  %v2273_v36 = vsel %vm2270_vm14, %v2272_v14, %v2268_v26  ;;  %11883 = vst [vmem:[#allocation35_spill] sm:$0xff] %v9127_v48 }
 0x694   : > { %v2274_v41 = vmul.f32 %v8812_v27, %v2273_v36  ;;  %v2381_v27 = vpop.f32.mrf.mxu1 }
 0x695   : > { %v3093_v17 = vadd.f32 %v9108_v18, %v3076_v50  ;;  %v2418_v51 = vadd.f32 %v2381_v27, %v1788_v42  ;;  %v2894_v50 = vand.u32 2147483647, %v9121_v16 }
 0x696   : > { %v2340_v60 = vpack.c.bf16 %v2274_v41, %v2259_v4 }
 0x697   : > { %v3109_v53 = vmax.f32 %v3093_v17, 0.0  ;;  %vm2895_vm5 = vcmp.eq.f32.partialorder %v2894_v50, 8.507059e+37 }
 0x698   : > { %2400 = vmatmul.bf16.gmra.mxu1 %v2340_v60  ;;  %v6605_v11 = vpop.eup %6604 }
 0x699   : > { %v9130_v9 = vadd.f32 %v6895_v44, %v3109_v53  ;;  %v9137_v34 = vpop.xlane.xlu1 %2089  ;;  %v2886_v38 = vmul.f32 %v6605_v11, %v9121_v16  ;;  %vm2891_vm15 = vweird.f32 %v6605_v11  ;;  %v2897_v53 = vor.u32 1.1754944e-38, %v2896_v56 }
 0x69a   : > { %6606 = vrcp.f32 %v9137_v34  ;;  %v2301_v36 = vand.u32 2147483648, %v9137_v34  ;;  %vm9171_vm2 = vmor %vm2890_vm1, %vm2891_vm15  ;;  %vm2295_vm4 = vweird.f32 %v9137_v34  ;;  %v2299_v42 = vand.u32 2147483647, %v9137_v34 }
 0x69b   : > { %11884 = vst [vmem:[#allocation36_spill] sm:$0xff] %v9130_v9  ;;  %v9134_v39 = vpack.c.bf16 %v9130_v9, %v9127_v48  ;;  %v2887_v59 = vsub.f32 1.0, %v2886_v38 }
 0x69c   : > { %v2383_v52 = vpop.f32.mrf.mxu1  ;;  %vm2300_vm10 = vcmp.eq.f32.partialorder %v2299_v42, 8.507059e+37  ;;  %v11894_v42 = vld [vmem:[#allocation26_spill] sm:$0xff] }
 0x69d   : > { %6222 = vmatmul.msk.bf16.vlgmr.msrb.gmra.mxu0 %vm421_vm0, %v9134_v39  ;;  %6238 = vmatmul.msk.bf16.vlgmr.msrb.gmra.mxu2 %vm421_vm0, %v9134_v39  ;;  %v2888_v35 = vmul.f32 %v6605_v11, %v2887_v59  ;;  %v2419_v37 = vadd.f32 %v2383_v52, %v1790_v8  ;;  %v1793_v59 = vadd.f32 %v8817_v1, %v8418_v10 }
 0x69f   : > { %v2889_v0 = vadd.f32 %v6605_v11, %v2888_v35 }
 0x6a0   : > { %v9147_v49 = vpop.eup %6606 }
 0x6a1   : > { %v2291_v30 = vmul.f32 %v9147_v49, %v9137_v34  ;;  %v2893_v3 = vsel %vm9171_vm2, %v6605_v11, %v2889_v0  ;;  %vm2296_vm3 = vweird.f32 %v9147_v49  ;;  %v2302_v34 = vor.u32 1.1754944e-38, %v2301_v36 }
 0x6a2   : > { %vm9194_vm7 = vmor %vm2295_vm4, %vm2296_vm3 }
 0x6a3   : > { %v2292_v63 = vsub.f32 1.0, %v2291_v30 }
 0x6a4   : > { %v2991_v47 = vpop.f32.mrf.mxu3 }
 0x6a5   : > { %v3028_v15 = vadd.f32 %v2991_v47, %v2418_v51  ;;  %v2293_v28 = vmul.f32 %v9147_v49, %v2292_v63  ;;  %v2898_v47 = vsel %vm2895_vm5, %v2897_v53, %v2893_v3 }
 0x6a6   : > { %v2386_v38 = vpop.f32.mrf.mxu1  ;;  %v2899_v63 = vmul.f32 %v8844_v57, %v2898_v47 }
 0x6a7   : > { %v3044_v5 = vmul.f32 0.25, %v3028_v15  ;;  %v2294_v44 = vadd.f32 %v9147_v49, %v2293_v28  ;;  %v2420_v35 = vadd.f32 %v2386_v38, %v1793_v59  ;;  %v11895_v38 = vld [vmem:[#allocation31_spill] sm:$0xff] }
 0x6a9   : > { %v3060_v12 = vadd.f32 %v3044_v5, %v608_v7  ;;  %v2298_v10 = vsel %vm9194_vm7, %v9147_v49, %v2294_v44  ;;  %v11893_v44 = vld [vmem:[#allocation27_spill] sm:$0xff]  ;;  %v11896_v5 = vld [vmem:[#allocation32_spill] sm:$0xff] }
 0x6aa   : > { %v9153_v6 = vpop.xlane.xlu0 %2699  ;;  %v2303_v0 = vsel %vm2300_vm10, %v2302_v34, %v2298_v10 }
 0x6ab   : > { %6608 = vrcp.f32 %v9153_v6  ;;  %v3077_v26 = vmul.f32 %v9102_v23, %v3060_v12  ;;  %v2911_v11 = vand.u32 2147483648, %v9153_v6  ;;  %v2909_v7 = vand.u32 2147483647, %v9153_v6 }
 0x6ac   : > { %v2993_v21 = vpop.f32.mrf.mxu3  ;;  %vm2905_vm8 = vweird.f32 %v9153_v6  ;;  %v2304_v34 = vmul.f32 %v11896_v5, %v2303_v0 }
 0x6ad   : > { %v3029_v32 = vadd.f32 %v2993_v21, %v2419_v37  ;;  %v3094_v16 = vadd.f32 %v9108_v18, %v3077_v26  ;;  %vm2910_vm11 = vcmp.eq.f32.partialorder %v2909_v7, 8.507059e+37  ;;  %v6896_v26 = vld [vmem:[%s7144_s20 + $0x10] sm:$0xff] }
 0x6af   : > { %v3045_v58 = vmul.f32 0.25, %v3029_v32  ;;  %v3110_v52 = vmax.f32 %v3094_v16, 0.0  ;;  %v2912_v32 = vor.u32 1.1754944e-38, %v2911_v11 }
 0x6b1   : > { %v6609_v14 = vpop.eup %6608  ;;  %v3061_v60 = vadd.f32 %v3045_v58, %v610_v46  ;;  %v9189_v30 = vpop.xlane.xlu1 %2091  ;;  %v9220_v46 = vadd.f32 %v6896_v26, %v3110_v52  ;;  %v6897_v58 = vld [vmem:[%s7144_s20 + $0x18] sm:$0xff] }
 0x6b2   : > { %v2901_v20 = vmul.f32 %v6609_v14, %v9153_v6  ;;  %v9167_v17 = vpop.xlane.xlu2 %2087  ;;  %v9169_v4 = vpop.xlane.xlu0 %2701  ;;  %vm2906_vm6 = vweird.f32 %v6609_v14  ;;  %vm2310_vm10 = vweird.f32 %v9189_v30 }
 0x6b3   : > { %6610 = vrcp.f32 %v9167_v17  ;;  %v3078_v27 = vmul.f32 %v9102_v23, %v3061_v60  ;;  %vm9204_vm9 = vmor %vm2905_vm8, %vm2906_vm6  ;;  %11891 = vst [vmem:[#allocation37_spill] sm:$0xff] %v9220_v46  ;;  %v2284_v60 = vand.u32 2147483647, %v9167_v17  ;;  %vm2280_vm13 = vweird.f32 %v9167_v17 }
 0x6b4   : > { %v2902_v54 = vsub.f32 1.0, %v2901_v20  ;;  %6612 = vrcp.f32 %v9169_v4  ;;  %v2286_v20 = vand.u32 2147483648, %v9167_v17  ;;  %vm2920_vm2 = vweird.f32 %v9169_v4 }
 0x6b5   : > { %v3095_v15 = vadd.f32 %v9108_v18, %v3078_v27  ;;  %6614 = vrcp.f32 %v9189_v30  ;;  %v613_v27 = vadd.f32 %v11893_v44, %v9089_v55  ;;  %vm2285_vm1 = vcmp.eq.f32.partialorder %v2284_v60, 8.507059e+37  ;;  %v11899_v44 = vld [vmem:[#allocation13_spill] sm:$0xff] }
 0x6b6   : > { %v2903_v51 = vmul.f32 %v6609_v14, %v2902_v54  ;;  %v2287_v10 = vor.u32 1.1754944e-38, %v2286_v20  ;;  %v6202_v20 = vld [vmem:[#allocation2 + $0x58] sm:$0xf0] }
 0x6b7   : > { %v3111_v12 = vmax.f32 %v3095_v15, 0.0 }
 0x6b8   : > { %v2904_v8 = vadd.f32 %v6609_v14, %v2903_v51  ;;  %v1795_v51 = vadd.f32 %v11895_v38, %v11894_v42 }
 0x6b9   : > { %v6611_v1 = vpop.eup %6610  ;;  %v9223_v50 = vadd.f32 %v6897_v58, %v3111_v12 }
 0x6ba   : > { %v9208_v56 = vpop.eup %6612  ;;  %v2276_v6 = vmul.f32 %v6611_v1, %v9167_v17  ;;  %v9212_v49 = vpop.xlane.xlu2 %2703  ;;  %v2908_v21 = vsel %vm9204_vm9, %v6609_v14, %v2904_v8  ;;  %vm2281_vm12 = vweird.f32 %v6611_v1  ;;  %v2926_v8 = vand.u32 2147483648, %v9169_v4 }
 0x6bb   : > { %v2916_v57 = vmul.f32 %v9208_v56, %v9169_v4  ;;  %6616 = vrcp.f32 %v9212_v49  ;;  %11892 = vst [vmem:[#allocation38_spill] sm:$0xff] %v9223_v50  ;;  %v2913_v36 = vsel %vm2910_vm11, %v2912_v32, %v2908_v21  ;;  %v9230_v54 = vpack.c.bf16 %v9223_v50, %v9220_v46  ;;  %v9237_v59 = vpop.eup %6614  ;;  %vm2282_vm14 = vmor %vm2280_vm13, %vm2281_vm12  ;;  %v6305_v32 = vld [vmem:[#allocation2 + $0x6c] sm:$0xf] }
 0x6bc   : > { %v2277_v28 = vsub.f32 1.0, %v2276_v6  ;;  %v2996_v14 = vpop.f32.mrf.mxu3  ;;  %v2914_v53 = vmul.f32 %v8923_v31, %v2913_v36  ;;  %v2388_v31 = vpop.f32.mrf.mxu1  ;;  %vm2921_vm15 = vweird.f32 %v9208_v56  ;;  %v2924_v21 = vand.u32 2147483647, %v9169_v4  ;;  %v6301_v36 = vld [vmem:[#allocation2 + $0x4c] sm:$0xf] }
 0x6bd   : > { %v2917_v41 = vsub.f32 1.0, %v2916_v57  ;;  %v3030_v16 = vadd.f32 %v2996_v14, %v2420_v35  ;;  %6223 = vmatmul.msk.bf16.gmra.mxu0 %vm421_vm0, %v9230_v54  ;;  %6239 = vmatmul.msk.bf16.gmra.mxu2 %vm421_vm0, %v9230_v54  ;;  %v2421_v37 = vadd.f32 %v2388_v31, %v1795_v51  ;;  %v6218_v57 = vld [vmem:[#allocation2 + $0x78] sm:$0xf0]  ;;  %v2306_v0 = vmul.f32 %v9237_v59, %v9189_v30  ;;  %vm9258_vm3 = vmor %vm2920_vm2, %vm2921_vm15 }
 0x6be   : > { %v2278_v3 = vmul.f32 %v6611_v1, %v2277_v28  ;;  %v2951_v47 = vpack.c.bf16 %v2914_v53, %v2899_v63  ;;  %v2941_v26 = vand.u32 2147483648, %v9212_v49  ;;  %v2939_v14 = vand.u32 2147483647, %v9212_v49 }
 0x6bf   : > { %v2918_v11 = vmul.f32 %v9208_v56, %v2917_v41  ;;  %v3046_v15 = vmul.f32 0.25, %v3030_v16  ;;  %v6221_v53 = vor.u32 %v6305_v32, %v6218_v57  ;;  %v2927_v42 = vor.u32 1.1754944e-38, %v2926_v8 }
 0x6c0   : > { %v2279_v7 = vadd.f32 %v6611_v1, %v2278_v3  ;;  %3015 = vmatmul.bf16.gmra.mxu3 %v2951_v47  ;;  %v6205_v38 = vor.u32 %v6301_v36, %v6202_v20  ;;  %vm2935_vm5 = vweird.f32 %v9212_v49  ;;  %vm2925_vm6 = vcmp.eq.f32.partialorder %v2924_v21, 8.507059e+37  ;;  %v6899_v20 = vld [vmem:[%s7144_s20 + $0x28] sm:$0xff] }
 0x6c1   : > { %v6617_v52 = vpop.eup %6616  ;;  %v2919_v35 = vadd.f32 %v9208_v56, %v2918_v11  ;;  %v3062_v12 = vadd.f32 %v3046_v15, %v613_v27  ;;  %v615_v27 = vadd.f32 %v11899_v44, %v9089_v55  ;;  %3379 = vmatpush.bf16.msrb.mxu3 %v6221_v53  ;;  %v2307_v11 = vsub.f32 1.0, %v2306_v0 }
 0x6c2   : > { %v2931_v17 = vmul.f32 %v6617_v52, %v9212_v49  ;;  %v2283_v63 = vsel %vm2282_vm14, %v6611_v1, %v2279_v7  ;;  %vm2936_vm4 = vweird.f32 %v6617_v52  ;;  %v2942_v31 = vor.u32 1.1754944e-38, %v2941_v26  ;;  %v6898_v1 = vld [vmem:[%s7144_s20 + $0x20] sm:$0xff] }
 0x6c3   : > { %v2288_v6 = vsel %vm2285_vm1, %v2287_v10, %v2283_v63  ;;  %v2923_v4 = vsel %vm9258_vm3, %v9208_v56, %v2919_v35  ;;  %vm2937_vm7 = vmor %vm2935_vm5, %vm2936_vm4  ;;  %vm2940_vm8 = vcmp.eq.f32.partialorder %v2939_v14, 8.507059e+37  ;;  %vm2311_vm9 = vweird.f32 %v9237_v59  ;;  %v11904_v14 = vld [vmem:[#allocation20_spill] sm:$0xff] }
 0x6c4   : > { %v2932_v28 = vsub.f32 1.0, %v2931_v17  ;;  %v2289_v58 = vmul.f32 %v8965_v43, %v2288_v6  ;;  %v2998_v41 = vpop.f32.mrf.mxu3  ;;  %v3079_v43 = vmul.f32 %v9102_v23, %v3062_v12  ;;  %v2928_v47 = vsel %vm2925_vm6, %v2927_v42, %v2923_v4  ;;  %v11900_v17 = vld [vmem:[#allocation23_spill] sm:$0xff]  ;;  %v11901_v12 = vld [vmem:[#allocation33_spill] sm:$0xff]  ;;  %vm9305_vm11 = vmor %vm2310_vm10, %vm2311_vm9 }
 0x6c5   : > { %v3031_v3 = vadd.f32 %v2998_v41, %v2421_v37  ;;  %3380 = vmatpush.bf16.msrb.mxu3 %v6205_v38  ;;  %v2929_v10 = vmul.f32 %v8934_v29, %v2928_v47  ;;  %v1798_v63 = vadd.f32 %v11901_v12, %v11900_v17  ;;  %v2308_v6 = vmul.f32 %v9237_v59, %v2307_v11  ;;  %v6300_v38 = vld [vmem:[#allocation2 + $0x44] sm:$0xf] }
 0x6c6   : > { %v2933_v60 = vmul.f32 %v6617_v52, %v2932_v28  ;;  %v2341_v16 = vpack.c.bf16 %v2304_v34, %v2289_v58  ;;  %v3096_v15 = vadd.f32 %v9108_v18, %v3079_v43  ;;  %v2314_v29 = vand.u32 2147483647, %v9189_v30  ;;  %v11906_v11 = vld [vmem:[#allocation34_spill] sm:$0xff] }
 0x6c7   : > { %v3047_v51 = vmul.f32 0.25, %v3031_v3  ;;  %v2309_v4 = vadd.f32 %v9237_v59, %v2308_v6  ;;  %v618_v53 = vadd.f32 %v11904_v14, %v9089_v55  ;;  %v6304_v3 = vld [vmem:[#allocation2 + $0x64] sm:$0xf] }
 0x6c8   : > { %2405 = vmatmul.bf16.gmra.mxu1 %v2341_v16  ;;  %v2934_v56 = vadd.f32 %v6617_v52, %v2933_v60  ;;  %v2316_v60 = vand.u32 2147483648, %v9189_v30  ;;  %v6210_v16 = vld [vmem:[#allocation2 + $0x70] sm:$0xf0]  ;;  %vm2315_vm14 = vcmp.eq.f32.partialorder %v2314_v29, 8.507059e+37  ;;  %v11910_v29 = vld [vmem:[#allocation22_spill] sm:$0xff] }
 0x6c9   : > { %v3063_v7 = vadd.f32 %v3047_v51, %v615_v27  ;;  %v6213_v42 = vor.u32 %v6304_v3, %v6210_v16  ;;  %v6194_v51 = vld [vmem:[#allocation2 + $0x50] sm:$0xf0] }
 0x6ca   : > { %v9272_v5 = vpop.xlane.xlu0 %2093  ;;  %v2938_v34 = vsel %vm2937_vm7, %v6617_v52, %v2934_v56  ;;  %v3112_v52 = vmax.f32 %v3096_v15, 0.0  ;;  %v11905_v56 = vld [vmem:[#allocation28_spill] sm:$0xff]  ;;  %v2317_v17 = vor.u32 1.1754944e-38, %v2316_v60  ;;  %v6197_v12 = vor.u32 %v6300_v38, %v6194_v51 }
 0x6cb   : > { %6618 = vrcp.f32 %v9272_v5  ;;  %v2943_v8 = vsel %vm2940_vm8, %v2942_v31, %v2938_v34  ;;  %v3080_v49 = vmul.f32 %v9102_v23, %v3063_v7  ;;  %v1800_v47 = vadd.f32 %v11906_v11, %v11905_v56  ;;  %3281 = vmatpush.bf16.msrb.mxu1 %v6213_v42  ;;  %v11912_v42 = vld [vmem:[#allocation8_spill] sm:$0xff] }
 0x6cc   : > { %v2944_v35 = vmul.f32 %v9000_v13, %v2943_v8  ;;  %v3001_v37 = vpop.f32.mrf.mxu3  ;;  %v9286_v36 = vadd.f32 %v6898_v1, %v3112_v52  ;;  %v2331_v31 = vand.u32 2147483648, %v9272_v5  ;;  %vm2325_vm13 = vweird.f32 %v9272_v5  ;;  %v6900_v56 = vld [vmem:[%s7144_s20 + $0x30] sm:$0xff] }
 0x6cd   : > { %v3097_v21 = vadd.f32 %v9108_v18, %v3080_v49  ;;  %v2313_v49 = vsel %vm9305_vm11, %v9237_v59, %v2309_v4  ;;  %v11909_v59 = vld [vmem:[#allocation21_spill] sm:$0xff]  ;;  %v1805_v38 = vadd.f32 %v8983_v25, %v11912_v42 }
 0x6ce   : > { %v2391_v32 = vpop.f32.mrf.mxu1  ;;  %v2952_v57 = vpack.c.bf16 %v2944_v35, %v2929_v10  ;;  %11902 = vst [vmem:[#allocation27_spill] sm:$0xff] %v9286_v36  ;;  %v2329_v10 = vand.u32 2147483647, %v9272_v5  ;;  %v2318_v52 = vsel %vm2315_vm14, %v2317_v17, %v2313_v49  ;;  %v11915_v25 = vld [vmem:[#allocation17_spill] sm:$0xff] }
 0x6cf   : > { %v2422_v0 = vadd.f32 %v2391_v32, %v1798_v63  ;;  %v3113_v28 = vmax.f32 %v3097_v21, 0.0  ;;  %v2332_v21 = vor.u32 1.1754944e-38, %v2331_v31  ;;  %3282 = vmatpush.bf16.msrb.mxu1 %v6197_v12 }
 0x6d0   : > { %3020 = vmatmul.bf16.gmra.mxu3 %v2952_v57  ;;  %vm2330_vm1 = vcmp.eq.f32.partialorder %v2329_v10, 8.507059e+37  ;;  %v620_v57 = vadd.f32 %v11909_v59, %v9089_v55  ;;  %v625_v10 = vadd.f32 %v11915_v25, %v9089_v55  ;;  %v6903_v59 = vld [vmem:[%s7144_s20 + $0x48] sm:$0xff] }
 0x6d1   : > { %v6619_v26 = vpop.eup %6618  ;;  %v3032_v58 = vadd.f32 %v3001_v37, %v2422_v0  ;;  %v9289_v41 = vadd.f32 %v6899_v20, %v3113_v28 }
 0x6d2   : > { %v2321_v13 = vmul.f32 %v6619_v26, %v9272_v5  ;;  %vm2326_vm12 = vweird.f32 %v6619_v26 }
 0x6d3   : > { %11903 = vst [vmem:[#allocation26_spill] sm:$0xff] %v9289_v41  ;;  %v3048_v43 = vmul.f32 0.25, %v3032_v58  ;;  %v9298_v27 = vpack.c.bf16 %v9289_v41, %v9286_v36  ;;  %vm2327_vm15 = vmor %vm2325_vm13, %vm2326_vm12  ;;  %v2319_v58 = vmul.f32 %v8954_v40, %v2318_v52 }
 0x6d4   : > { %v2322_v44 = vsub.f32 1.0, %v2321_v13  ;;  %v3003_v7 = vpop.f32.mrf.mxu3  ;;  %v1803_v13 = vadd.f32 %v8932_v33, %v11910_v29  ;;  %v11911_v33 = vld [vmem:[#allocation14_spill] sm:$0xff] }
 0x6d5   : > { %v3064_v15 = vadd.f32 %v3048_v43, %v618_v53  ;;  %6224 = vmatmul.msk.bf16.gmra.mxu0 %vm421_vm0, %v9298_v27  ;;  %6240 = vmatmul.msk.bf16.gmra.mxu2 %vm421_vm0, %v9298_v27 }
 0x6d6   : > { %v2323_v30 = vmul.f32 %v6619_v26, %v2322_v44  ;;  %v2393_v8 = vpop.f32.mrf.mxu1 }
 0x6d7   : > { %v2423_v35 = vadd.f32 %v2393_v8, %v1800_v47  ;;  %v3081_v37 = vmul.f32 %v9102_v23, %v3064_v15  ;;  %v6901_v47 = vld [vmem:[%s7144_s20 + $0x38] sm:$0xff] }
 0x6d8   : > { %v2324_v63 = vadd.f32 %v6619_v26, %v2323_v30 }
 0x6d9   : > { %v3033_v6 = vadd.f32 %v3003_v7, %v2423_v35  ;;  %v3098_v1 = vadd.f32 %v9108_v18, %v3081_v37 }
 0x6da   : > { %v2328_v32 = vsel %vm2327_vm15, %v6619_v26, %v2324_v63 }
 0x6db   : > { %v3049_v0 = vmul.f32 0.25, %v3033_v6  ;;  %v2333_v28 = vsel %vm2330_vm1, %v2332_v21, %v2328_v32  ;;  %v3114_v43 = vmax.f32 %v3098_v1, 0.0  ;;  %v6902_v21 = vld [vmem:[%s7144_s20 + $0x40] sm:$0xff]  ;;  %v11919_v1 = vld [vmem:[#allocation12_spill] sm:$0xff] }
 0x6dc   : > { %v2334_v5 = vmul.f32 %v9052_v45, %v2333_v28  ;;  %v3006_v4 = vpop.f32.mrf.mxu3  ;;  %v623_v45 = vadd.f32 %v11911_v33, %v9089_v55 }
 0x6dd   : > { %v3065_v20 = vadd.f32 %v3049_v0, %v620_v57  ;;  %v9335_v11 = vadd.f32 %v6900_v56, %v3114_v43 }
 0x6de   : > { %v2396_v26 = vpop.f32.mrf.mxu1  ;;  %v2342_v14 = vpack.c.bf16 %v2334_v5, %v2319_v58 }
 0x6df   : > { %v3082_v53 = vmul.f32 %v9102_v23, %v3065_v20  ;;  %v2424_v60 = vadd.f32 %v2396_v26, %v1803_v13  ;;  %11913 = vst [vmem:[#allocation31_spill] sm:$0xff] %v9335_v11  ;;  %v628_v20 = vadd.f32 %v11919_v1, %v9089_v55 }
 0x6e0   : > { %2410 = vmatmul.bf16.gmra.mxu1 %v2342_v14  ;;  %6246 = vmatmul.msk.bf16.vlgmr.msrb.gmra.mxu3 %vm421_vm0, %v9134_v39 }
 0x6e1   : > { %v3099_v40 = vadd.f32 %v9108_v18, %v3082_v53  ;;  %v3034_v3 = vadd.f32 %v3006_v4, %v2424_v60 }
 0x6e3   : > { %v3115_v16 = vmax.f32 %v3099_v40, 0.0  ;;  %v3050_v44 = vmul.f32 0.25, %v3034_v3  ;;  %v11921_v40 = vld [vmem:[#allocation24_spill] sm:$0xff] }
 0x6e4   : > { %v3008_v30 = vpop.f32.mrf.mxu3  ;;  %v630_v3 = vadd.f32 %v11921_v40, %v9089_v55 }
 0x6e5   : > { %v3066_v51 = vadd.f32 %v3050_v44, %v623_v45  ;;  %v9338_v31 = vadd.f32 %v6901_v47, %v3115_v16  ;;  %v6905_v47 = vld [vmem:[%s7144_s20 + $0x58] sm:$0xff] }
 0x6e6   : > { %v2398_v15 = vpop.f32.mrf.mxu1 }
 0x6e7   : > { %11914 = vst [vmem:[#allocation32_spill] sm:$0xff] %v9338_v31  ;;  %v2425_v7 = vadd.f32 %v2398_v15, %v1805_v38  ;;  %v3143_v34 = vpack.c.bf16 %v9338_v31, %v9335_v11  ;;  %v3083_v8 = vmul.f32 %v9102_v23, %v3066_v51  ;;  %v6904_v51 = vld [vmem:[%s7144_s20 + $0x50] sm:$0xff] }
 0x6e9   : > { %v3035_v49 = vadd.f32 %v3008_v30, %v2425_v7  ;;  %6225 = vmatmul.msk.bf16.gmra.mxu0 %vm421_vm0, %v3143_v34  ;;  %6241 = vmatmul.msk.bf16.gmra.mxu2 %vm421_vm0, %v3143_v34  ;;  %v3100_v17 = vadd.f32 %v9108_v18, %v3083_v8 }
 0x6eb   : > { %v3051_v35 = vmul.f32 0.25, %v3035_v49  ;;  %v3116_v37 = vmax.f32 %v3100_v17, 0.0 }
 0x6ed   : > { %v3067_v12 = vadd.f32 %v3051_v35, %v625_v10  ;;  %v9355_v32 = vadd.f32 %v6902_v21, %v3116_v37  ;;  %v11925_v35 = vld [vmem:[#allocation15_spill] sm:$0xff] }
 0x6ee   : > { %v633_v17 = vadd.f32 %v11925_v35, %v9089_v55 }
 0x6ef   : > { %v3084_v63 = vmul.f32 %v9102_v23, %v3067_v12  ;;  %11916 = vst [vmem:[#allocation13_spill] sm:$0xff] %v9355_v32 }
 0x6f0   : > { %6230 = vmatmul.msk.bf16.vlgmr.msrb.gmra.mxu1 %vm421_vm0, %v9134_v39  ;;  %6247 = vmatmul.msk.bf16.gmra.mxu3 %vm421_vm0, %v9230_v54  ;;  %v11918_v39 = vld [vmem:[#allocation25_spill] sm:$0xff] }
 0x6f1   : > { %v3101_v6 = vadd.f32 %v9108_v18, %v3084_v63  ;;  %v1808_v28 = vadd.f32 %v9014_v22, %v11918_v39  ;;  %v11926_v63 = vld [vmem:[#allocation16_spill] sm:$0xff]  ;;  %v11927_v39 = vld [vmem:[#allocation10_spill] sm:$0xff] }
 0x6f2   : > { %v1815_v37 = vadd.f32 %v9062_v62, %v11926_v63 }
 0x6f3   : > { %v3117_v52 = vmax.f32 %v3101_v6, 0.0 }
 0x6f5   : > { %v9358_v57 = vadd.f32 %v6903_v59, %v3117_v52 }
 0x6f7   : > { %11917 = vst [vmem:[#allocation23_spill] sm:$0xff] %v9358_v57  ;;  %v3144_v0 = vpack.c.bf16 %v9358_v57, %v9355_v32 }
 0x6f9   : > { %6226 = vmatmul.msk.bf16.gmra.mxu0 %vm421_vm0, %v3144_v0  ;;  %6242 = vmatmul.msk.bf16.gmra.mxu2 %vm421_vm0, %v3144_v0 }
 0x700   : > { %6231 = vmatmul.msk.bf16.gmra.mxu1 %vm421_vm0, %v9230_v54  ;;  %6248 = vmatmul.msk.bf16.gmra.mxu3 %vm421_vm0, %v9298_v27  ;;  %v11920_v54 = vld [vmem:[#allocation9_spill] sm:$0xff] }
 0x701   : > { %v1810_v26 = vadd.f32 %v9046_v24, %v11920_v54  ;;  %v11928_v54 = vld [vmem:[#allocation18_spill] sm:$0xff] }
 0x70b   : > { %v3011_v58 = vpop.f32.mrf.mxu3 }
 0x710   : > { %6232 = vmatmul.msk.bf16.gmra.mxu1 %vm421_vm0, %v9298_v27  ;;  %6249 = vmatmul.msk.bf16.gmra.mxu3 %vm421_vm0, %v3143_v34 }
 0x713   : > { %v3013_v60 = vpop.f32.mrf.mxu3 }
 0x715   : > { %v2401_v5 = vpop.f32.mrf.mxu1 }
 0x716   : > { %v2426_v29 = vadd.f32 %v2401_v5, %v1808_v28  ;;  %v635_v28 = vadd.f32 %v11927_v39, %v9089_v55  ;;  %v6908_v39 = vld [vmem:[%s7144_s20 + $0x70] sm:$0xff] }
 0x718   : > { %v3036_v13 = vadd.f32 %v3011_v58, %v2426_v29 }
 0x71a   : > { %v3052_v4 = vmul.f32 0.25, %v3036_v13 }
 0x71c   : > { %v3068_v14 = vadd.f32 %v3052_v4, %v628_v20 }
 0x71d   : > { %v2403_v53 = vpop.f32.mrf.mxu1 }
 0x71e   : > { %v2427_v27 = vadd.f32 %v2403_v53, %v1810_v26  ;;  %v3085_v43 = vmul.f32 %v9102_v23, %v3068_v14  ;;  %v1818_v26 = vadd.f32 %v9064_v61, %v11928_v54  ;;  %v9415_v14 = vld [vmem:[%s11711_s4 + $0x18] sm:$0x77] }
 0x720   : > { %v3037_v22 = vadd.f32 %v3013_v60, %v2427_v27  ;;  %6233 = vmatmul.msk.bf16.gmra.mxu1 %vm421_vm0, %v3143_v34  ;;  %6250 = vmatmul.msk.bf16.gmra.mxu3 %vm421_vm0, %v3144_v0  ;;  %v3102_v45 = vadd.f32 %v9108_v18, %v3085_v43  ;;  %v11924_v34 = vld [vmem:[#allocation11_spill] sm:$0xff]  ;;  %v6906_v27 = vld [vmem:[%s7144_s20 + $0x60] sm:$0xff] }
 0x721   : > { %v1813_v30 = vadd.f32 %v9060_v19, %v11924_v34  ;;  %v6907_v43 = vld [vmem:[%s7144_s20 + $0x68] sm:$0xff] }
 0x722   : > { %v3053_v33 = vmul.f32 0.25, %v3037_v22  ;;  %v3118_v44 = vmax.f32 %v3102_v45, 0.0 }
 0x724   : > { %v3069_v24 = vadd.f32 %v3053_v33, %v630_v3  ;;  %v9386_v56 = vadd.f32 %v6904_v51, %v3118_v44  ;;  %v3153_v3 = vperm.slane %v9415_v14, 4 }
 0x726   : > { %v3086_v16 = vmul.f32 %v9102_v23, %v3069_v24  ;;  %11922 = vst [vmem:[#allocation33_spill] sm:$0xff] %v9386_v56  ;;  %v9430_v24 = vperm.slane %v3153_v3, 0 }
 0x728   : > { %v3103_v42 = vadd.f32 %v9108_v18, %v3086_v16  ;;  %11931 = vst [vmem:[#allocation21_spill] sm:$0xff] %v9430_v24  ;;  %v11932_v16 = vld [vmem:[#allocation29_spill] sm:$0xff] }
 0x729   : > { %v638_v44 = vadd.f32 %v11932_v16, %v9089_v55 }
 0x72a   : > { %v3119_v38 = vmax.f32 %v3103_v42, 0.0 }
 0x72c   : > { %v9389_v15 = vadd.f32 %v6905_v47, %v3119_v38  ;;  %v11933_v38 = vld [vmem:[#allocation19_spill] sm:$0xff] }
 0x72d   : > { %v1820_v51 = vadd.f32 %v9069_v2, %v11933_v38 }
 0x72e   : > { %11923 = vst [vmem:[#allocation20_spill] sm:$0xff] %v9389_v15  ;;  %v3145_v7 = vpack.c.bf16 %v9389_v15, %v9386_v56 }
 0x730   : > { %6227 = vmatmul.msk.bf16.gmra.mxu0 %vm421_vm0, %v3145_v7  ;;  %6234 = vmatmul.msk.bf16.gmra.mxu1 %vm421_vm0, %v3144_v0 }
 0x731   : > { %6243 = vmatmul.msk.bf16.gmra.mxu2 %vm421_vm0, %v3145_v7  ;;  %6251 = vmatmul.msk.bf16.gmra.mxu3 %vm421_vm0, %v3145_v7 }
 0x740   : > { %6235 = vmatmul.msk.bf16.gmra.mxu1 %vm421_vm0, %v3145_v7 }
 0x743   : > { %v3016_v8 = vpop.f32.mrf.mxu3 }
 0x745   : > { %v2406_v49 = vpop.f32.mrf.mxu1 }
 0x746   : > { %v2428_v25 = vadd.f32 %v2406_v49, %v1813_v30 }
 0x748   : > { %v3038_v10 = vadd.f32 %v3016_v8, %v2428_v25 }
 0x74a   : > { %v3054_v12 = vmul.f32 0.25, %v3038_v10  ;;  %v11935_v10 = vld [vmem:[#allocation30_spill] sm:$0xff] }
 0x74b   : > { %v3018_v52 = vpop.f32.mrf.mxu3  ;;  %v640_v35 = vadd.f32 %v11935_v10, %v9089_v55  ;;  %v6909_v55 = vld [vmem:[%s7144_s20 + $0x78] sm:$0xff] }
 0x74c   : > { %v3070_v6 = vadd.f32 %v3054_v12, %v633_v17 }
 0x74d   : > { %v2408_v21 = vpop.f32.mrf.mxu1 }
 0x74e   : > { %v2429_v59 = vadd.f32 %v2408_v21, %v1815_v37  ;;  %v3087_v0 = vmul.f32 %v9102_v23, %v3070_v6 }
 0x750   : > { %v3039_v19 = vadd.f32 %v3018_v52, %v2429_v59  ;;  %v3104_v5 = vadd.f32 %v9108_v18, %v3087_v0  ;;  %v9446_v52 = vpop.f32.mrf.mxu0 }
 0x752   : > { %v3055_v58 = vmul.f32 0.25, %v3039_v19  ;;  %v3120_v62 = vmax.f32 %v3104_v5, 0.0 }
 0x753   : > { %v3021_v13 = vpop.f32.mrf.mxu3 }
 0x754   : > { %v3071_v29 = vadd.f32 %v3055_v58, %v635_v28  ;;  %v9418_v60 = vadd.f32 %v6906_v27, %v3120_v62 }
 0x756   : > { %v3088_v1 = vmul.f32 %v9102_v23, %v3071_v29  ;;  %11929 = vst [vmem:[#allocation28_spill] sm:$0xff] %v9418_v60 }
 0x758   : > { %v3105_v20 = vadd.f32 %v9108_v18, %v3088_v1 }
 0x75a   : > { %v3121_v4 = vmax.f32 %v3105_v20, 0.0 }
 0x75b   : > { %v3023_v53 = vpop.f32.mrf.mxu3 }
 0x75c   : > { %v9421_v22 = vadd.f32 %v6907_v43, %v3121_v4 }
 0x75d   : > { %v2411_v40 = vpop.f32.mrf.mxu1 }
 0x75e   : > { %11930 = vst [vmem:[#allocation34_spill] sm:$0xff] %v9421_v22  ;;  %v2430_v33 = vadd.f32 %v2411_v40, %v1818_v26  ;;  %v3146_v45 = vpack.c.bf16 %v9421_v22, %v9418_v60 }
 0x760   : > { %v3040_v61 = vadd.f32 %v3021_v13, %v2430_v33  ;;  %6228 = vmatmul.msk.bf16.gmra.mxu0 %vm421_vm0, %v3146_v45  ;;  %6236 = vmatmul.msk.bf16.gmra.mxu1 %vm421_vm0, %v3146_v45  ;;  %v9458_v13 = vpop.f32.mrf.mxu2 }
 0x761   : > { %6244 = vmatmul.msk.bf16.gmra.mxu2 %vm421_vm0, %v3146_v45  ;;  %6252 = vmatmul.msk.bf16.gmra.mxu3 %vm421_vm0, %v3146_v45 }
 0x762   : > { %v3056_v42 = vmul.f32 0.25, %v3040_v61 }
 0x763   : > { %v3382_v7 = vpop.f32.mrf.mxu3 }
 0x764   : > { %v3072_v47 = vadd.f32 %v3056_v42, %v638_v44  ;;  %v9437_v34 = vadd.f32 %v3382_v7, %v9430_v24  ;;  %v357_v7 = vld [vmem:[%s11711_s4 + $0x10] sm:$0x77] }
 0x765   : > { %v2413_v30 = vpop.f32.mrf.mxu1 }
 0x766   : > { %11934 = vst [vmem:[#allocation22_spill] sm:$0xff] %v9437_v34  ;;  %v2431_v8 = vadd.f32 %v2413_v30, %v1820_v51  ;;  %v3089_v49 = vmul.f32 %v9102_v23, %v3072_v47  ;;  %v3151_v30 = vperm.slane %v357_v7, 4 }
 0x768   : > { %v3041_v25 = vadd.f32 %v3023_v53, %v2431_v8  ;;  %v3106_v12 = vadd.f32 %v9108_v18, %v3089_v49  ;;  %v9470_v20 = vpop.f32.mrf.mxu2  ;;  %v9495_v49 = vperm.slane %v3151_v30, 0 }
 0x76a   : > { %v3057_v17 = vmul.f32 0.25, %v3041_v25  ;;  %v3122_v21 = vmax.f32 %v3106_v12, 0.0 }
 0x76b   : > { %v9443_v2 = vpop.f32.mrf.mxu3 }
 0x76c   : > { %v3073_v63 = vadd.f32 %v3057_v17, %v640_v35  ;;  %11936 = vst [vmem:[#allocation14_spill] sm:$0xff] %v9443_v2  ;;  %v9450_v28 = vadd.f32 %v6908_v39, %v3122_v21  ;;  %v3150_v39 = vperm.slane %v357_v7, 0 }
 0x76d   : > { %v3284_v37 = vpop.f32.mrf.mxu1 }
 0x76e   : > { %v3090_v6 = vmul.f32 %v9102_v23, %v3073_v63  ;;  %11937 = vst [vmem:[#allocation8_spill] sm:$0xff] %v9450_v28 }
 0x770   : > { %v3107_v59 = vadd.f32 %v9108_v18, %v3090_v6  ;;  %v9464_v18 = vpop.f32.mrf.mxu0  ;;  %v9475_v27 = vpop.f32.mrf.mxu2 }
 0x772   : > { %v3123_v0 = vmax.f32 %v3107_v59, 0.0 }
 0x773   : > { %v3387_v19 = vpop.f32.mrf.mxu3 }
 0x774   : > { %v9453_v58 = vadd.f32 %v6909_v55, %v3123_v0  ;;  %v9456_v5 = vadd.f32 %v3387_v19, %v9430_v24  ;;  %v3285_v55 = vadd.f32 %v3284_v37, %v9495_v49 }
 0x775   : > { %v3286_v29 = vpop.f32.mrf.mxu1 }
 0x776   : > { %11938 = vst [vmem:[#allocation17_spill] sm:$0xff] %v9453_v58  ;;  %v3147_v23 = vpack.c.bf16 %v9453_v58, %v9450_v28  ;;  %v3287_v59 = vadd.f32 %v3286_v29, %v9495_v49 }
 0x777   : > { %11939 = vst [vmem:[#allocation25_spill] sm:$0xff] %v9456_v5 }
 0x778   : > { %6229 = vmatmul.msk.bf16.gmra.mxu0 %vm421_vm0, %v3147_v23  ;;  %6237 = vmatmul.msk.bf16.gmra.mxu1 %vm421_vm0, %v3147_v23  ;;  %v3240_v4 = vpop.f32.mrf.mxu0  ;;  %v9481_v33 = vpop.f32.mrf.mxu2 }
 0x779   : > { %6245 = vmatmul.msk.bf16.gmra.mxu2 %vm421_vm0, %v3147_v23  ;;  %6253 = vmatmul.msk.bf16.gmra.mxu3 %vm421_vm0, %v3147_v23 }
 0x77b   : > { %v9468_v1 = vpop.f32.mrf.mxu3 }
 0x77c   : > { %11940 = vst [vmem:[#allocation12_spill] sm:$0xff] %v9468_v1  ;;  %v10027_v1 = vld [vmem:[%s7594_s17 + $0x78] sm:$0xff] }
 0x77d   : > { %v3289_v62 = vpop.f32.mrf.mxu1 }
 0x780   : > { %v3242_v43 = vpop.f32.mrf.mxu0  ;;  %v9486_v42 = vpop.f32.mrf.mxu2 }
 0x783   : > { %v3392_v54 = vpop.f32.mrf.mxu3 }
 0x784   : > { %v9473_v26 = vadd.f32 %v3392_v54, %v9430_v24  ;;  %v9514_v54 = vpack.c.bf16 %v3287_v59, %v3285_v55  ;;  %v3290_v55 = vadd.f32 %v3289_v62, %v9495_v49 }
 0x785   : > { %v3291_v53 = vpop.f32.mrf.mxu1 }
 0x786   : > { %11941 = vst [vmem:[#allocation9_spill] sm:$0xff] %v9473_v26 }
 0x788   : > { %v3245_v45 = vpop.f32.mrf.mxu0  ;;  %v9493_v8 = vpop.f32.mrf.mxu2 }
 0x78b   : > { %v9477_v40 = vpop.f32.mrf.mxu3 }
 0x78c   : > { %11942 = vst [vmem:[#allocation24_spill] sm:$0xff] %v9477_v40 }
 0x78d   : > { %v9479_v3 = vpop.f32.mrf.mxu1 }
 0x790   : > { %v3247_v51 = vpop.f32.mrf.mxu0  ;;  %v9508_v21 = vpop.f32.mrf.mxu2 }
 0x793   : > { %v3397_v61 = vpop.f32.mrf.mxu3 }
 0x794   : > { %v9484_v16 = vadd.f32 %v3397_v61, %v9430_v24  ;;  %v9516_v61 = vperm.slane %v3150_v39, 0 }
 0x795   : > { %v3296_v44 = vpop.f32.mrf.mxu1 }
 0x796   : > { %11943 = vst [vmem:[#allocation11_spill] sm:$0xff] %v9484_v16 }
 0x798   : > { %v9497_v10 = vpop.f32.mrf.mxu0  ;;  %v9525_v7 = vpop.f32.mrf.mxu2 }
 0x799   : > { %v3251_v46 = vadd.f32 %v9497_v10, %v9516_v61 }
 0x79b   : > { %v9488_v38 = vpop.f32.mrf.mxu3 }
 0x79c   : > { %11944 = vst [vmem:[#allocation15_spill] sm:$0xff] %v9488_v38 }
 0x79d   : > { %v3299_v47 = vpop.f32.mrf.mxu1 }
 0x79e   : > { %v3300_v12 = vadd.f32 %v3299_v47, %v9495_v49  ;;  %v3248_v47 = vadd.f32 %v3247_v51, %v9516_v61 }
 0x7a0   : > { %v3252_v23 = vpop.f32.mrf.mxu0 }
 0x7a3   : > { %v3402_v25 = vpop.f32.mrf.mxu3 }
 0x7a4   : > { %v9500_v35 = vadd.f32 %v3402_v25, %v9430_v24 }
 0x7a5   : > { %v3301_v17 = vpop.f32.mrf.mxu1 }
 0x7a6   : > { %11945 = vst [vmem:[#allocation16_spill] sm:$0xff] %v9500_v35  ;;  %v3302_v63 = vadd.f32 %v3301_v17, %v9495_v49  ;;  %v3246_v17 = vadd.f32 %v3245_v45, %v9516_v61  ;;  %v3292_v45 = vadd.f32 %v3291_v53, %v9495_v49  ;;  %v10017_v35 = vld [vmem:[%s7594_s17 + $0x70] sm:$0xff] }
 0x7a8   : > { %v9504_v6 = vpack.c.bf16 %v3302_v63, %v3300_v12  ;;  %v9529_v63 = vpack.c.bf16 %v3248_v47, %v3246_v17  ;;  %v9533_v39 = vpop.f32.mrf.mxu0 }
 0x7aa   : > { %3973 = vrot.lane.b32.xlu1 %v9504_v6, %s7044_s29 }
 0x7ab   : > { %v9511_v0 = vpop.f32.mrf.mxu3 }
 0x7ac   : > { %11946 = vst [vmem:[#allocation10_spill] sm:$0xff] %v9511_v0 }
 0x7ad   : > { %v3304_v19 = vpop.f32.mrf.mxu1 }
 0x7ae   : > { %v3305_v37 = vadd.f32 %v3304_v19, %v9495_v49  ;;  %v9541_v19 = vpop.f32.mrf.mxu2 }
 0x7b0   : > { %v9547_v47 = vpop.f32.mrf.mxu0 }
 0x7b2   : > { %3967 = vrot.lane.b32.xlu1 %v9514_v54, %s7044_s29 }
 0x7b4   : > { %v3407_v30 = vpop.f32.mrf.mxu3 }
 0x7b5   : > { %v9522_v25 = vadd.f32 %v3407_v30, %v9430_v24  ;;  %v3306_v29 = vpop.f32.mrf.mxu1  ;;  %v9543_v30 = vpack.c.bf16 %v3292_v45, %v3290_v55  ;;  %v3297_v55 = vadd.f32 %v3296_v44, %v9495_v49 }
 0x7b6   : > { %v3307_v12 = vadd.f32 %v3306_v29, %v9495_v49  ;;  %v3243_v29 = vadd.f32 %v3242_v43, %v9516_v61  ;;  %v9557_v45 = vpop.f32.mrf.mxu2 }
 0x7b7   : > { %11947 = vst [vmem:[#allocation18_spill] sm:$0xff] %v9522_v25 }
 0x7b8   : > { %v9531_v59 = vpack.c.bf16 %v3307_v12, %v3305_v37  ;;  %v3241_v37 = vadd.f32 %v3240_v4, %v9516_v61  ;;  %v3260_v43 = vpop.f32.mrf.mxu0  ;;  %v3295_v4 = vadd.f32 %v9479_v3, %v9495_v49  ;;  %v3253_v3 = vadd.f32 %v3252_v23, %v9516_v61 }
 0x7ba   : > { %3975 = vrot.lane.b32.xlu2 %v9531_v59, %s7044_s29  ;;  %3947 = vrot.lane.b32.xlu1 %v9529_v63, %s7044_s29  ;;  %v9553_v48 = vpack.c.bf16 %v3243_v29, %v3241_v37 }
 0x7bd   : > { %v3309_v51 = vpop.f32.mrf.mxu1 }
 0x7be   : > { %v3310_v12 = vadd.f32 %v3309_v51, %v9495_v49  ;;  %v9566_v51 = vpack.c.bf16 %v3297_v55, %v3295_v4  ;;  %v9568_v29 = vpop.f32.mrf.mxu2  ;;  %v9581_v55 = vpop.f32.mrf.mxu3 }
 0x7bf   : > { %11948 = vst [vmem:[#allocation29_spill] sm:$0xff] %v9581_v55 }
 0x7c0   : > { %v3262_v37 = vpop.f32.mrf.mxu0 }
 0x7c2   : > { %3969 = vrot.lane.b32.xlu2 %v9543_v30, %s7044_s29 }
 0x7c5   : > { %v3311_v17 = vpop.f32.mrf.mxu1 }
 0x7c6   : > { %v3312_v53 = vadd.f32 %v3311_v17, %v9495_v49  ;;  %v3238_v17 = vadd.f32 %v9464_v18, %v9516_v61  ;;  %v3360_v44 = vpop.f32.mrf.mxu2  ;;  %v9585_v18 = vpack.c.bf16 %v3253_v3, %v3251_v46  ;;  %v3152_v46 = vperm.slane %v9415_v14, 0 }
 0x7c8   : > { %v9555_v62 = vpack.c.bf16 %v3312_v53, %v3310_v12  ;;  %v3236_v12 = vadd.f32 %v9446_v52, %v9516_v61 }
 0x7ca   : > { %3977 = vrot.lane.b32.xlu0 %v9555_v62, %s7044_s29  ;;  %3945 = vrot.lane.b32.xlu2 %v9553_v48, %s7044_s29  ;;  %v9576_v53 = vpack.c.bf16 %v3238_v17, %v3236_v12 }
 0x7d2   : > { %3971 = vrot.lane.b32.xlu0 %v9566_v51, %s7044_s29 }
 0x7da   : > { %3943 = vrot.lane.b32.xlu0 %v9576_v53, %s7044_s29 }
 0x7dd   : > { %v3265_v4 = vpop.f32.mrf.mxu0  ;;  %v3314_v9 = vpop.f32.mrf.mxu1 }
 0x7de   : > { %v3266_v36 = vadd.f32 %v3265_v4, %v9516_v61  ;;  %v3315_v41 = vadd.f32 %v3314_v9, %v9495_v49  ;;  %v3263_v4 = vadd.f32 %v3262_v37, %v9516_v61 }
 0x7e2   : > { %3949 = vrot.lane.b32.xlu0 %v9585_v18, %s7044_s29 }
 0x7e4   : > { %v3363_v52 = vpop.f32.mrf.mxu2  ;;  %v3412_v17 = vpop.f32.mrf.mxu3 }
 0x7e5   : > { %v9590_v12 = vadd.f32 %v3412_v17, %v9430_v24  ;;  %v3267_v50 = vpop.f32.mrf.mxu0  ;;  %v3316_v23 = vpop.f32.mrf.mxu1  ;;  %v9602_v17 = vperm.slane %v3152_v46, 0 }
 0x7e6   : > { %v3268_v11 = vadd.f32 %v3267_v50, %v9516_v61  ;;  %v3317_v10 = vadd.f32 %v3316_v23, %v9495_v49  ;;  %v3261_v50 = vadd.f32 %v3260_v43, %v9516_v61 }
 0x7e7   : > { %11949 = vst [vmem:[#allocation19_spill] sm:$0xff] %v9590_v12  ;;  %v3364_v23 = vadd.f32 %v3363_v52, %v9602_v17 }
 0x7e8   : > { %v9597_v3 = vpack.c.bf16 %v3268_v11, %v3266_v36  ;;  %v3436_v31 = vpack.c.bf16 %v3317_v10, %v3315_v41  ;;  %v9608_v14 = vpack.c.bf16 %v3263_v4, %v3261_v50 }
 0x7ea   : > { %3955 = vrot.lane.b32.xlu0 %v9597_v3, %s7044_s29  ;;  %3979 = vrot.lane.b32.xlu1 %v3436_v31, %s7044_s29 }
 0x7ec   : > { %v3365_v32 = vpop.f32.mrf.mxu2  ;;  %v9616_v41 = vpop.f32.mrf.mxu3 }
 0x7ed   : > { %v3366_v9 = vadd.f32 %v3365_v32, %v9602_v17  ;;  %11951 = vst [vmem:[#allocation39_spill] sm:$0xff] %v9616_v41 }
 0x7ef   : > { %v9610_v36 = vpack.c.bf16 %v3366_v9, %v3364_v23  ;;  %v3258_v23 = vadd.f32 %v9547_v47, %v9516_v61  ;;  %v3489_v47 = vsel %vm421_vm0, %v3436_v31, 0 }
 0x7f1   : > { %11950 = vst [vmem:[#allocation30_spill] sm:$0xff] %v9610_v36 }
 0x7f2   : > { %4492 = vrot.lane.b32.xlu0 %v9610_v36, %s7044_s29  ;;  %3953 = vrot.lane.b32.xlu1 %v9608_v14, %s7044_s29 }
 0x7f5   : > { %v3319_v11 = vpop.f32.mrf.mxu1  ;;  %v3270_v15 = vpop.f32.mrf.mxu0 }
 0x7f6   : > { %v3320_v10 = vadd.f32 %v3319_v11, %v9495_v49 }
 0x7fa   : > { %4630 = vrot.lane.b32.xlu0 %v3436_v31, %s7045_s11  ;;  %5240 = vrot.lane.b32.xlu1 %v3436_v31, %s7046_s12  ;;  %v3486_v31 = vsel %vm421_vm0, %v9555_v62, 0 }
 0x7fc   : > { %v3368_v32 = vpop.f32.mrf.mxu2  ;;  %v3417_v43 = vpop.f32.mrf.mxu3 }
 0x7fd   : > { %v9621_v37 = vadd.f32 %v3417_v43, %v9430_v24  ;;  %v3321_v52 = vpop.f32.mrf.mxu1  ;;  %v3256_v43 = vadd.f32 %v9533_v39, %v9516_v61  ;;  %v3359_v39 = vadd.f32 %v9568_v29, %v9602_v17  ;;  %v3351_v29 = vadd.f32 %v9525_v7, %v9602_v17  ;;  %v3272_v22 = vpop.f32.mrf.mxu0 }
 0x7fe   : > { %v3322_v46 = vadd.f32 %v3321_v52, %v9495_v49  ;;  %v3369_v49 = vadd.f32 %v3368_v32, %v9602_v17  ;;  %v3361_v32 = vadd.f32 %v3360_v44, %v9602_v17  ;;  %v3346_v44 = vadd.f32 %v9493_v8, %v9602_v17 }
 0x7ff   : > { %11952 = vst [vmem:[#allocation40_spill] sm:$0xff] %v9621_v37  ;;  %v3341_v7 = vadd.f32 %v9481_v33, %v9602_v17 }
 0x800   : > { %v9625_v4 = vpack.c.bf16 %v3322_v46, %v3320_v10  ;;  %v9643_v10 = vpack.c.bf16 %v3258_v23, %v3256_v43  ;;  %v3356_v46 = vadd.f32 %v9557_v45, %v9602_v17 }
 0x802   : > { %4624 = vrot.lane.b32.xlu0 %v9504_v6, %s7045_s11  ;;  %5236 = vrot.lane.b32.xlu1 %v9531_v59, %s7046_s12  ;;  %v3492_v9 = vsel %vm421_vm0, %v9625_v4, 0 }
 0x803   : > { %3981 = vrot.lane.b32.xlu2 %v9625_v4, %s7044_s29  ;;  %3494 = vmatpush.bf16.xpose.msra.mxu0 %v3492_v9  ;;  %v9659_v9 = vpack.c.bf16 %v3361_v32, %v3359_v39 }
 0x804   : > { %v3370_v50 = vpop.f32.mrf.mxu2 }
 0x805   : > { %v3371_v11 = vadd.f32 %v3370_v50, %v9602_v17  ;;  %11953 = vst [vmem:[#allocation41_spill] sm:$0xff] %v9659_v9  ;;  %v3354_v50 = vadd.f32 %v9541_v19, %v9602_v17  ;;  %v3349_v19 = vadd.f32 %v9508_v21, %v9602_v17  ;;  %v3483_v21 = vsel %vm421_vm0, %v9531_v59, 0 }
 0x807   : > { %v9641_v52 = vpack.c.bf16 %v3371_v11, %v3369_v49  ;;  %v9672_v45 = vpack.c.bf16 %v3356_v46, %v3354_v50  ;;  %v9681_v23 = vpack.c.bf16 %v3351_v29, %v3349_v19  ;;  %v3344_v49 = vadd.f32 %v9486_v42, %v9602_v17 }
 0x808   : > { %v3339_v42 = vadd.f32 %v9475_v27, %v9602_v17  ;;  %v3336_v11 = vadd.f32 %v9470_v20, %v9602_v17  ;;  %v3480_v27 = vsel %vm421_vm0, %v9504_v6, 0  ;;  %v3474_v20 = vsel %vm421_vm0, %v9543_v30, 0 }
 0x809   : > { %4553 = vmatpush.bf16.msra.mxu3 %v9641_v52  ;;  %11954 = vst [vmem:[#allocation42_spill] sm:$0xff] %v9672_v45  ;;  %v9694_v8 = vpack.c.bf16 %v3346_v44, %v3344_v49 }
 0x80a   : > { %5212 = vrot.lane.b32.xlu0 %v9576_v53, %s7046_s12  ;;  %4622 = vrot.lane.b32.xlu1 %v9566_v51, %s7045_s11  ;;  %11955 = vst [vmem:[#allocation43_spill] sm:$0xff] %v9681_v23  ;;  %v9703_v43 = vpack.c.bf16 %v3341_v7, %v3339_v42 }
 0x80b   : > { %3951 = vrot.lane.b32.xlu2 %v9643_v10, %s7044_s29  ;;  %3495 = vmatpush.bf16.xpose.msra.mxu0 %v3489_v47  ;;  %11956 = vst [vmem:[#allocation44_spill] sm:$0xff] %v9694_v8  ;;  %v3334_v47 = vadd.f32 %v9458_v13, %v9602_v17  ;;  %v3477_v13 = vsel %vm421_vm0, %v9566_v51, 0  ;;  %v3471_v17 = vsel %vm421_vm0, %v9514_v54, 0 }
 0x80c   : > { %11957 = vst [vmem:[#allocation45_spill] sm:$0xff] %v9703_v43 }
 0x80d   : > { %4554 = vmatpush.bf16.msra.mxu3 %v9610_v36  ;;  %v9714_v33 = vpack.c.bf16 %v3336_v11, %v3334_v47 }
 0x80f   : > { %11958 = vst [vmem:[#allocation46_spill] sm:$0xff] %v9714_v33 }
 0x811   : > { %4555 = vmatpush.bf16.msra.mxu3 %v9659_v9 }
 0x812   : > { %5214 = vrot.lane.b32.xlu0 %v9553_v48, %s7046_s12  ;;  %4602 = vrot.lane.b32.xlu1 %v9576_v53, %s7045_s11 }
 0x813   : > { %4490 = vrot.lane.b32.xlu2 %v9659_v9, %s7044_s29  ;;  %3496 = vmatpush.bf16.xpose.msra.mxu0 %v3486_v31 }
 0x814   : > { %v3976_v46 = vpop.permute.xlu2 %3975 }
 0x815   : > { %4556 = vmatpush.bf16.msra.mxu3 %v9672_v45 }
 0x819   : > { %4557 = vmatpush.bf16.msra.mxu3 %v9681_v23 }
 0x81a   : > { %4606 = vrot.lane.b32.xlu0 %v9529_v63, %s7045_s11  ;;  %5216 = vrot.lane.b32.xlu1 %v9529_v63, %s7046_s12 }
 0x81b   : > { %4488 = vrot.lane.b32.xlu2 %v9672_v45, %s7044_s29  ;;  %3497 = vmatpush.bf16.xpose.msra.mxu0 %v3483_v21 }
 0x81c   : > { %v3974_v39 = vpop.permute.xlu1 %3973  ;;  %v3970_v31 = vpop.permute.xlu2 %3969 }
 0x81d   : > { %4558 = vmatpush.bf16.msra.mxu3 %v9694_v8  ;;  %v4011_v56 = vsel %vm421_vm0, %v3970_v31, 0 }
 0x821   : > { %4559 = vmatpush.bf16.msra.mxu3 %v9703_v43 }
 0x822   : > { %4610 = vrot.lane.b32.xlu0 %v9643_v10, %s7045_s11  ;;  %5222 = vrot.lane.b32.xlu1 %v9608_v14, %s7046_s12 }
 0x823   : > { %4486 = vrot.lane.b32.xlu2 %v9681_v23, %s7044_s29  ;;  %3498 = vmatpush.bf16.xpose.msra.mxu0 %v3480_v27 }
 0x824   : > { %v3968_v50 = vpop.permute.xlu1 %3967  ;;  %v9753_v44 = vpop.permute.xlu2 %3945 }
 0x825   : > { %4560 = vmatpush.bf16.msra.mxu3 %v9714_v33 }
 0x82a   : > { %4494 = vrot.lane.b32.xlu1 %v9641_v52, %s7044_s29  ;;  %5242 = vrot.lane.b32.xlu0 %v9625_v4, %s7046_s12 }
 0x82b   : > { %4484 = vrot.lane.b32.xlu2 %v9694_v8, %s7044_s29  ;;  %3499 = vmatpush.bf16.xpose.msra.mxu0 %v3477_v13 }
 0x82c   : > { %v9749_v19 = vpop.permute.xlu1 %3947 }
 0x832   : > { %4632 = vrot.lane.b32.xlu0 %v9625_v4, %s7045_s11 }
 0x833   : > { %4482 = vrot.lane.b32.xlu2 %v9703_v43, %s7044_s29  ;;  %3500 = vmatpush.bf16.xpose.msra.mxu0 %v3474_v20 }
 0x83b   : > { %4480 = vrot.lane.b32.xlu2 %v9714_v33, %s7044_s29  ;;  %3501 = vmatpush.bf16.xpose.msra.mxu0 %v3471_v17 }
 0x83c   : > { %v3978_v32 = vpop.permute.xlu0 %3977 }
 0x842   : > { %6254 = vmatmul.msk.bf16.vlgmr.msra.gmra.mxu0 %vm421_vm0, %v9576_v53 }
 0x843   : > { %5238 = vrot.lane.b32.xlu2 %v9555_v62, %s7046_s12 }
 0x844   : > { %v3972_v4 = vpop.permute.xlu0 %3971 }
 0x84b   : > { %4628 = vrot.lane.b32.xlu2 %v9555_v62, %s7045_s11 }
 0x84c   : > { %v9743_v29 = vpop.permute.xlu0 %3943 }
 0x852   : > { %6255 = vmatmul.msk.bf16.gmra.mxu0 %vm421_vm0, %v9553_v48 }
 0x853   : > { %5234 = vrot.lane.b32.xlu2 %v9504_v6, %s7046_s12 }
 0x854   : > { %v9751_v53 = vpop.permute.xlu0 %3949 }
 0x85b   : > { %4626 = vrot.lane.b32.xlu2 %v9531_v59, %s7045_s11 }
 0x85c   : > { %v9757_v49 = vpop.permute.xlu0 %3955  ;;  %v3980_v62 = vpop.permute.xlu1 %3979 }
 0x85d   : > { %v3982_v21 = vpop.permute.xlu2 %3981  ;;  %v4026_v59 = vsel %vm421_vm0, %v3980_v62, 0  ;;  %v4020_v62 = vsel %vm421_vm0, %v3976_v46, 0 }
 0x85e   : > { %v4029_v7 = vsel %vm421_vm0, %v3982_v21, 0 }
 0x85f   : > { %4031 = vmatpush.bf16.xpose.msra.mxu1 %v4029_v7 }
 0x862   : > { %6256 = vmatmul.msk.bf16.gmra.mxu0 %vm421_vm0, %v9529_v63  ;;  %v4023_v63 = vsel %vm421_vm0, %v3978_v32, 0 }
 0x863   : > { %5232 = vrot.lane.b32.xlu2 %v9566_v51, %s7046_s12 }
 0x864   : > { %v4493_v6 = vpop.permute.xlu0 %4492  ;;  %v9764_v42 = vpop.permute.xlu1 %3953 }
 0x865   : > { %v9766_v11 = vpop.permute.xlu2 %3951 }
 0x867   : > { %4032 = vmatpush.bf16.xpose.msra.mxu1 %v4026_v59  ;;  %v4017_v59 = vsel %vm421_vm0, %v3974_v39, 0 }
 0x86b   : > { %5230 = vrot.lane.b32.xlu2 %v9543_v30, %s7046_s12 }
 0x86c   : > { %v4631_v47 = vpop.permute.xlu0 %4630  ;;  %v9771_v27 = vpop.permute.xlu1 %5240 }
 0x86d   : > { %v4491_v13 = vpop.permute.xlu2 %4490 }
 0x86f   : > { %4033 = vmatpush.bf16.xpose.msra.mxu1 %v4023_v63 }
 0x872   : > { %6257 = vmatmul.msk.bf16.gmra.mxu0 %vm421_vm0, %v9585_v18 }
 0x873   : > { %5228 = vrot.lane.b32.xlu2 %v9514_v54, %s7046_s12 }
 0x874   : > { %v9778_v51 = vpop.permute.xlu0 %4624  ;;  %v9780_v20 = vpop.permute.xlu1 %5236 }
 0x875   : > { %v4489_v17 = vpop.permute.xlu2 %4488 }
 0x877   : > { %4034 = vmatpush.bf16.xpose.msra.mxu1 %v4020_v62 }
 0x87b   : > { %4620 = vrot.lane.b32.xlu2 %v9543_v30, %s7045_s11  ;;  %v4014_v30 = vsel %vm421_vm0, %v3972_v4, 0 }
 0x87c   : > { %v9785_v21 = vpop.permute.xlu0 %5212  ;;  %v9787_v32 = vpop.permute.xlu1 %4622 }
 0x87d   : > { %11959 = vst [vmem:[#allocation47_spill] sm:$0xff] %v9785_v21  ;;  %v4487_v7 = vpop.permute.xlu2 %4486 }
 0x87f   : > { %4035 = vmatpush.bf16.xpose.msra.mxu1 %v4017_v59 }
 0x882   : > { %6258 = vmatmul.msk.bf16.gmra.mxu0 %vm421_vm0, %v9643_v10 }
 0x883   : > { %4618 = vrot.lane.b32.xlu2 %v9514_v54, %s7045_s11 }
 0x884   : > { %v9794_v63 = vpop.permute.xlu0 %5214  ;;  %v9796_v46 = vpop.permute.xlu1 %4602 }
 0x885   : > { %11960 = vst [vmem:[#allocation48_spill] sm:$0xff] %v9794_v63  ;;  %v4485_v62 = vpop.permute.xlu2 %4484 }
 0x887   : > { %4036 = vmatpush.bf16.xpose.msra.mxu1 %v4014_v30 }
 0x88b   : > { %4604 = vrot.lane.b32.xlu2 %v9553_v48, %s7045_s11  ;;  %v4008_v48 = vsel %vm421_vm0, %v3968_v50, 0 }
 0x88c   : > { %v9801_v57 = vpop.permute.xlu0 %4606  ;;  %v9803_v39 = vpop.permute.xlu1 %5216 }
 0x88d   : > { %11961 = vst [vmem:[#allocation49_spill] sm:$0xff] %v9803_v39  ;;  %v4483_v59 = vpop.permute.xlu2 %4482 }
 0x88f   : > { %4037 = vmatpush.bf16.xpose.msra.mxu1 %v4011_v56 }
 0x892   : > { %6259 = vmatmul.msk.bf16.gmra.mxu0 %vm421_vm0, %v9608_v14 }
 0x893   : > { %5218 = vrot.lane.b32.xlu2 %v9585_v18, %s7046_s12 }
 0x894   : > { %v9810_v54 = vpop.permute.xlu0 %4610  ;;  %v9812_v4 = vpop.permute.xlu1 %5222 }
 0x895   : > { %11962 = vst [vmem:[#allocation50_spill] sm:$0xff] %v9812_v4  ;;  %v4481_v30 = vpop.permute.xlu2 %4480 }
 0x897   : > { %4038 = vmatpush.bf16.xpose.msra.mxu1 %v4008_v48  ;;  %v3273_v48 = vadd.f32 %v3272_v22, %v9516_v61 }
 0x89b   : > { %4608 = vrot.lane.b32.xlu2 %v9585_v18, %s7045_s11 }
 0x89c   : > { %v4495_v31 = vpop.permute.xlu1 %4494  ;;  %v5243_v56 = vpop.permute.xlu0 %5242 }
 0x89d   : > { %v5239_v60 = vpop.permute.xlu2 %5238  ;;  %4504 = vmatpush.bf16.msra.mxu2 %v4495_v31  ;;  %v3271_v31 = vadd.f32 %v3270_v15, %v9516_v61  ;;  %v5290_v61 = vsel %vm421_vm0, %v5243_v56, 0 }
 0x89e   : > { %6262 = vmatmul.msk.bf16.vlgmr.msra.gmra.mxu1 %vm421_vm0, %v9743_v29  ;;  %v5284_v56 = vsel %vm421_vm0, %v5239_v60, 0  ;;  %v5281_v60 = vsel %vm421_vm0, %v9780_v20, 0 }
 0x89f   : > { %v9826_v58 = vpack.c.bf16 %v3273_v48, %v3271_v31 }
 0x8a1   : > { %4505 = vmatpush.bf16.msra.mxu2 %v4493_v6 }
 0x8a2   : > { %6260 = vmatmul.msk.bf16.gmra.mxu0 %vm421_vm0, %v9597_v3 }
 0x8a3   : > { %5220 = vrot.lane.b32.xlu2 %v9643_v10, %s7046_s12  ;;  %v4677_v10 = vsel %vm421_vm0, %v4631_v47, 0 }
 0x8a4   : > { %v4633_v50 = vpop.permute.xlu0 %4632 }
 0x8a5   : > { %v4680_v18 = vsel %vm421_vm0, %v4633_v50, 0  ;;  %v4629_v28 = vpop.permute.xlu2 %4628  ;;  %4506 = vmatpush.bf16.msra.mxu2 %v4491_v13  ;;  %v9853_v50 = vld [vmem:[%s7594_s17 + $0x8] sm:$0xff] }
 0x8a6   : > { %4682 = vmatpush.bf16.xpose.msrb.mxu0 %v4680_v18  ;;  %v4674_v22 = vsel %vm421_vm0, %v4629_v28, 0  ;;  %v4665_v18 = vsel %vm421_vm0, %v9787_v32, 0 }
 0x8a9   : > { %4507 = vmatpush.bf16.msra.mxu2 %v4489_v17  ;;  %v5287_v17 = vsel %vm421_vm0, %v9771_v27, 0 }
 0x8ab   : > { %3957 = vrot.lane.b32.xlu2 %v9826_v58, %s7044_s29  ;;  %s6088_s29 = sshll.u32 %s288_s13, 3 }
 0x8ac   : > { %s290_s19 = scalar_lea.vmem [#allocation5], %s6088_s29 }
 0x8ad   : > { %v5235_v29 = vpop.permute.xlu2 %5234  ;;  %4508 = vmatpush.bf16.msra.mxu2 %v4487_v7  ;;  %v9843_v7 = vld [vmem:[%s7594_s17] sm:$0xff]  ;;  %s5984_s26 = sshll.u32 %s290_s19, 4  ;;  %s5985_s26 = int_to_ptr.vmem [resolvable:$true] %s5984_s26 }
 0x8ae   : > { %6263 = vmatmul.msk.bf16.gmra.mxu1 %vm421_vm0, %v9753_v44  ;;  %4683 = vmatpush.bf16.xpose.msrb.mxu0 %v4677_v10  ;;  %v9866_v10 = vld [vmem:[%s7594_s17 + $0x10] sm:$0xff] }
 0x8b1   : > { %4509 = vmatpush.bf16.msra.mxu2 %v4485_v62 }
 0x8b2   : > { %6261 = vmatmul.msk.bf16.gmra.mxu0 %vm421_vm0, %v9826_v58 }
 0x8b5   : > { %v4627_v15 = vpop.permute.xlu2 %4626  ;;  %4510 = vmatpush.bf16.msra.mxu2 %v4483_v59  ;;  %v4668_v59 = vsel %vm421_vm0, %v9778_v51, 0 }
 0x8b6   : > { %4684 = vmatpush.bf16.xpose.msrb.mxu0 %v4674_v22  ;;  %v4671_v47 = vsel %vm421_vm0, %v4627_v15, 0 }
 0x8b9   : > { %4511 = vmatpush.bf16.msra.mxu2 %v4481_v30 }
 0x8bd   : > { %5292 = vmatpush.bf16.xpose.msrb.mxu2 %v5290_v61  ;;  %v5233_v6 = vpop.permute.xlu2 %5232 }
 0x8be   : > { %6264 = vmatmul.msk.bf16.gmra.mxu1 %vm421_vm0, %v9749_v19  ;;  %4685 = vmatpush.bf16.xpose.msrb.mxu0 %v4671_v47  ;;  %v5278_v47 = vsel %vm421_vm0, %v5235_v29, 0  ;;  %v5275_v29 = vsel %vm421_vm0, %v5233_v6, 0 }
 0x8bf   : > { %v3503_v44 = vpop.f32.mrf.mxu0 }
 0x8c0   : > { %v3543_v13 = vmul.f32 0.17677669, %v3503_v44  ;;  %v9875_v44 = vld [vmem:[%s7594_s17 + $0x18] sm:$0xff] }
 0x8c2   : > { %v9846_v28 = vadd.f32 %v9843_v7, %v3543_v13 }
 0x8c4   : > { %3575 = vmax.xlane.f32.xlu1 %v9846_v28 }
 0x8c5   : > { %5293 = vmatpush.bf16.xpose.msrb.mxu2 %v5287_v17  ;;  %v5231_v62 = vpop.permute.xlu2 %5230 }
 0x8c6   : > { %4686 = vmatpush.bf16.xpose.msrb.mxu0 %v4668_v59 }
 0x8c7   : > { %v3505_v19 = vpop.f32.mrf.mxu0 }
 0x8c8   : > { %v3544_v30 = vmul.f32 0.17677669, %v3505_v19 }
 0x8ca   : > { %v9856_v27 = vadd.f32 %v9853_v50, %v3544_v30  ;;  %v9886_v30 = vld [vmem:[%s7594_s17 + $0x20] sm:$0xff] }
 0x8cc   : > { %3577 = vmax.xlane.f32.xlu0 %v9856_v27 }
 0x8cd   : > { %5294 = vmatpush.bf16.xpose.msrb.mxu2 %v5284_v56  ;;  %v5229_v48 = vpop.permute.xlu2 %5228 }
 0x8ce   : > { %6265 = vmatmul.msk.bf16.gmra.mxu1 %vm421_vm0, %v9751_v53  ;;  %4687 = vmatpush.bf16.xpose.msrb.mxu0 %v4665_v18 }
 0x8cf   : > { %v3508_v51 = vpop.f32.mrf.mxu0 }
 0x8d0   : > { %v3545_v31 = vmul.f32 0.17677669, %v3508_v51 }
 0x8d2   : > { %v9869_v15 = vadd.f32 %v9866_v10, %v3545_v31  ;;  %v5272_v31 = vsel %vm421_vm0, %v5231_v62, 0 }
 0x8d4   : > { %3579 = vmax.xlane.f32.xlu2 %v9869_v15 }
 0x8d5   : > { %5295 = vmatpush.bf16.xpose.msrb.mxu2 %v5281_v60  ;;  %v4621_v22 = vpop.permute.xlu2 %4620  ;;  %v9896_v60 = vld [vmem:[%s7594_s17 + $0x28] sm:$0xff] }
 0x8d6   : > { %v4662_v32 = vsel %vm421_vm0, %v4621_v22, 0 }
 0x8d7   : > { %4688 = vmatpush.bf16.xpose.msrb.mxu0 %v4662_v32  ;;  %v3510_v53 = vpop.f32.mrf.mxu0  ;;  %v5269_v32 = vsel %vm421_vm0, %v5229_v48, 0 }
 0x8d8   : > { %v3546_v61 = vmul.f32 0.17677669, %v3510_v53 }
 0x8da   : > { %v9878_v20 = vadd.f32 %v9875_v44, %v3546_v61 }
 0x8dc   : > { %3581 = vmax.xlane.f32.xlu1 %v9878_v20 }
 0x8dd   : > { %5296 = vmatpush.bf16.xpose.msrb.mxu2 %v5278_v47  ;;  %v4619_v13 = vpop.permute.xlu2 %4618 }
 0x8de   : > { %6266 = vmatmul.msk.bf16.gmra.mxu1 %vm421_vm0, %v9766_v11  ;;  %v4659_v17 = vsel %vm421_vm0, %v4619_v13, 0 }
 0x8df   : > { %4689 = vmatpush.bf16.xpose.msrb.mxu0 %v4659_v17  ;;  %v3513_v59 = vpop.f32.mrf.mxu0 }
 0x8e0   : > { %v3547_v19 = vmul.f32 0.17677669, %v3513_v59 }
 0x8e2   : > { %v9889_v56 = vadd.f32 %v9886_v30, %v3547_v19 }
 0x8e4   : > { %3583 = vmax.xlane.f32.xlu2 %v9889_v56 }
 0x8e5   : > { %5297 = vmatpush.bf16.xpose.msrb.mxu2 %v5275_v29  ;;  %v4605_v18 = vpop.permute.xlu2 %4604 }
 0x8e6   : > { %6270 = vmatmul.msk.bf16.vlgmr.msrb.gmra.mxu0 %vm421_vm0, %v9796_v46 }
 0x8e7   : > { %v3515_v11 = vpop.f32.mrf.mxu0 }
 0x8e8   : > { %v3548_v51 = vmul.f32 0.17677669, %v3515_v11 }
 0x8ea   : > { %v9899_v6 = vadd.f32 %v9896_v60, %v3548_v51 }
 0x8ec   : > { %3585 = vmax.xlane.f32.xlu0 %v9899_v6 }
 0x8ed   : > { %5298 = vmatpush.bf16.xpose.msrb.mxu2 %v5272_v31  ;;  %v9904_v22 = vpop.permute.xlu2 %5218 }
 0x8ee   : > { %6267 = vmatmul.msk.bf16.gmra.mxu1 %vm421_vm0, %v9764_v42  ;;  %11963 = vst [vmem:[#allocation51_spill] sm:$0xff] %v9904_v22 }
 0x8f5   : > { %5299 = vmatpush.bf16.xpose.msrb.mxu2 %v5269_v32  ;;  %v4609_v46 = vpop.permute.xlu2 %4608 }
 0x8f6   : > { %6271 = vmatmul.msk.bf16.gmra.mxu0 %vm421_vm0, %v4605_v18 }
 0x8fd   : > { %v9910_v62 = vpop.permute.xlu2 %5220 }
 0x8fe   : > { %6268 = vmatmul.msk.bf16.gmra.mxu1 %vm421_vm0, %v9757_v49  ;;  %11964 = vst [vmem:[#allocation52_spill] sm:$0xff] %v9910_v62 }
 0x905   : > { %v3958_v53 = vpop.permute.xlu2 %3957 }
 0x906   : > { %6272 = vmatmul.msk.bf16.gmra.mxu0 %vm421_vm0, %v9801_v57 }
 0x90e   : > { %6269 = vmatmul.msk.bf16.gmra.mxu1 %vm421_vm0, %v3958_v53 }
 0x916   : > { %6273 = vmatmul.msk.bf16.gmra.mxu0 %vm421_vm0, %v4609_v46 }
 0x91b   : > { %v4040_v42 = vpop.f32.mrf.mxu1 }
 0x91c   : > { %v4080_v61 = vmul.f32 0.17677669, %v4040_v42 }
 0x91e   : > { %v9917_v48 = vadd.f32 %v9843_v7, %v4080_v61 }
 0x920   : > { %4112 = vmax.xlane.f32.xlu1 %v9917_v48 }
 0x923   : > { %v4042_v47 = vpop.f32.mrf.mxu1 }
 0x924   : > { %v4081_v13 = vmul.f32 0.17677669, %v4042_v47 }
 0x926   : > { %v9921_v49 = vadd.f32 %v9853_v50, %v4081_v13  ;;  %6274 = vmatmul.msk.bf16.gmra.mxu0 %vm421_vm0, %v9810_v54  ;;  %v3518_v13 = vpop.f32.mrf.mxu0 }
 0x928   : > { %4114 = vmax.xlane.f32.xlu0 %v9921_v49 }
 0x92b   : > { %v4045_v57 = vpop.f32.mrf.mxu1 }
 0x92c   : > { %v4082_v17 = vmul.f32 0.17677669, %v4045_v57 }
 0x92e   : > { %v9927_v59 = vadd.f32 %v9866_v10, %v4082_v17  ;;  %v3549_v17 = vmul.f32 0.17677669, %v3518_v13 }
 0x930   : > { %4116 = vmax.xlane.f32.xlu2 %v9927_v59 }
 0x933   : > { %v4047_v19 = vpop.f32.mrf.mxu1 }
 0x937   : > { %v3576_v29 = vpop.xlane.xlu1 %3575 }
 0x938   : > { %v3607_v18 = vsub.f32 %v9846_v28, %v3576_v29  ;;  %v9947_v29 = vld [vmem:[%s7594_s17 + $0x40] sm:$0xff] }
 0x939   : > { %5224 = vrot.lane.b32.xlu1 %v9597_v3, %s7046_s12 }
 0x93a   : > { %v3623_v51 = vmul.f32 1.442695, %v3607_v18 }
 0x93b   : > { %v4050_v50 = vpop.f32.mrf.mxu1 }
 0x93c   : > { %v4084_v11 = vmul.f32 0.17677669, %v4050_v50  ;;  %6620 = vpow2.f32 %v3623_v51  ;;  %v4083_v51 = vmul.f32 0.17677669, %v4047_v19 }
 0x93e   : > { %v9934_v54 = vadd.f32 %v9886_v30, %v4084_v11 }
 0x93f   : > { %v3578_v31 = vpop.xlane.xlu0 %3577 }
 0x940   : > { %4120 = vmax.xlane.f32.xlu0 %v9934_v54  ;;  %v3608_v32 = vsub.f32 %v9856_v27, %v3578_v31  ;;  %v9958_v31 = vadd.f32 %v9875_v44, %v4083_v51  ;;  %v9972_v44 = vld [vmem:[%s7594_s17 + $0x48] sm:$0xff] }
 0x942   : > { %v3625_v53 = vmul.f32 1.442695, %v3608_v32  ;;  %v9938_v28 = vpop.eup %6620 }
 0x943   : > { %v4052_v46 = vpop.f32.mrf.mxu1 }
 0x944   : > { %6622 = vpow2.f32 %v3625_v53  ;;  %v4085_v32 = vmul.f32 0.17677669, %v4052_v46 }
 0x948   : > { %3655 = vadd.xlane.f32.xlu0 %v9938_v28  ;;  %4612 = vrot.lane.b32.xlu2 %v9608_v14, %s7045_s11  ;;  %v6917_v14 = vld [vmem:[%s7594_s17 + $0x30] sm:$0xff] }
 0x949   : > { %v9954_v50 = vadd.f32 %v6917_v14, %v3549_v17  ;;  %v9968_v17 = vadd.f32 %v9896_v60, %v4085_v32  ;;  %v9982_v60 = vld [vmem:[%s7594_s17 + $0x58] sm:$0xff] }
 0x94a   : > { %v9943_v61 = vpop.eup %6622 }
 0x94b   : > { %v4055_v42 = vpop.f32.mrf.mxu1 }
 0x94c   : > { %v4086_v46 = vmul.f32 0.17677669, %v4055_v42  ;;  %v9990_v42 = vld [vmem:[%s7594_s17 + $0x38] sm:$0xff] }
 0x94d   : > { %11965 = vst [vmem:[#allocation53_spill] sm:$0xff] %v9990_v42 }
 0x950   : > { %3657 = vadd.xlane.f32.xlu0 %v9943_v61 }
 0x953   : > { %v4057_v47 = vpop.f32.mrf.mxu1 }
 0x95b   : > { %v4060_v57 = vpop.f32.mrf.mxu1 }
 0x95c   : > { %v4088_v27 = vmul.f32 0.17677669, %v4060_v57 }
 0x95e   : > { %v9950_v18 = vadd.f32 %v9947_v29, %v4088_v27  ;;  %v9962_v27 = vld [vmem:[%s7594_s17 + $0x50] sm:$0xff] }
 0x95f   : > { %v10023_v38 = vpop.xlane.xlu0 %3585 }
 0x960   : > { %4128 = vmax.xlane.f32.xlu0 %v9950_v18 }
 0x963   : > { %v4062_v11 = vpop.f32.mrf.mxu1  ;;  %3587 = vmax.xlane.f32.xlu1 %v9954_v50 }
 0x964   : > { %v4089_v57 = vmul.f32 0.17677669, %v4062_v11 }
 0x966   : > { %v9975_v19 = vadd.f32 %v9972_v44, %v4089_v57 }
 0x96b   : > { %v4065_v53 = vpop.f32.mrf.mxu1  ;;  %4118 = vmax.xlane.f32.xlu1 %v9958_v31 }
 0x96c   : > { %v4090_v13 = vmul.f32 0.17677669, %v4065_v53  ;;  %v9979_v53 = vadd.f32 %v6917_v14, %v4086_v46  ;;  %v3520_v14 = vpop.f32.mrf.mxu0  ;;  %v9996_v46 = vld [vmem:[%s7594_s17 + $0x60] sm:$0xff] }
 0x96e   : > { %v9965_v37 = vadd.f32 %v9962_v27, %v4090_v13  ;;  %v4087_v13 = vmul.f32 0.17677669, %v4057_v47 }
 0x970   : > { %4132 = vmax.xlane.f32.xlu0 %v9965_v37  ;;  %v9993_v12 = vadd.f32 %v9990_v42, %v4087_v13 }
 0x971   : > { %4122 = vmax.xlane.f32.xlu2 %v9968_v17 }
 0x973   : > { %v4067_v11 = vpop.f32.mrf.mxu1  ;;  %4130 = vmax.xlane.f32.xlu1 %v9975_v19 }
 0x974   : > { %v4091_v51 = vmul.f32 0.17677669, %v4067_v11 }
 0x976   : > { %v9985_v32 = vadd.f32 %v9982_v60, %v4091_v51  ;;  %v3550_v51 = vmul.f32 0.17677669, %v3520_v14 }
 0x978   : > { %v10010_v13 = vadd.f32 %v9990_v42, %v3550_v51 }
 0x979   : > { %4124 = vmax.xlane.f32.xlu2 %v9979_v53 }
 0x97b   : > { %v4070_v57 = vpop.f32.mrf.mxu1  ;;  %4134 = vmax.xlane.f32.xlu1 %v9985_v32 }
 0x97c   : > { %v4092_v41 = vmul.f32 0.17677669, %v4070_v57  ;;  %v10004_v57 = vld [vmem:[%s7594_s17 + $0x68] sm:$0xff] }
 0x97e   : > { %v9999_v11 = vadd.f32 %v9996_v46, %v4092_v41  ;;  %v10014_v41 = vpop.xlane.xlu1 %3581 }
 0x981   : > { %4126 = vmax.xlane.f32.xlu2 %v9993_v12 }
 0x983   : > { %v4072_v47 = vpop.f32.mrf.mxu1  ;;  %4136 = vmax.xlane.f32.xlu1 %v9999_v11 }
 0x984   : > { %v4093_v55 = vmul.f32 0.17677669, %v4072_v47 }
 0x986   : > { %v10007_v25 = vadd.f32 %v10004_v57, %v4093_v55  ;;  %v3580_v55 = vpop.xlane.xlu2 %3579 }
 0x988   : > { %4138 = vmax.xlane.f32.xlu0 %v10007_v25 }
 0x989   : > { %3589 = vmax.xlane.f32.xlu2 %v10010_v13 }
 0x98b   : > { %v4075_v14 = vpop.f32.mrf.mxu1 }
 0x98c   : > { %v4094_v0 = vmul.f32 0.17677669, %v4075_v14 }
 0x98e   : > { %v10020_v47 = vadd.f32 %v10017_v35, %v4094_v0  ;;  %v10033_v0 = vpop.xlane.xlu2 %3583 }
 0x990   : > { %4140 = vmax.xlane.f32.xlu1 %v10020_v47 }
 0x993   : > { %v4113_v51 = vpop.xlane.xlu1 %4112  ;;  %v4077_v16 = vpop.f32.mrf.mxu1 }
 0x994   : > { %v4144_v26 = vsub.f32 %v9917_v48, %v4113_v51  ;;  %v4095_v5 = vmul.f32 0.17677669, %v4077_v16 }
 0x996   : > { %v4160_v40 = vmul.f32 1.442695, %v4144_v26  ;;  %v10030_v14 = vadd.f32 %v10027_v1, %v4095_v5 }
 0x998   : > { %11966 = vst [vmem:[#allocation54_spill] sm:$0xff] %v10030_v14  ;;  %6624 = vpow2.f32 %v4160_v40  ;;  %4142 = vmax.xlane.f32.xlu0 %v10030_v14 }
 0x99b   : > { %v4115_v2 = vpop.xlane.xlu0 %4114 }
 0x99c   : > { %v4145_v24 = vsub.f32 %v9921_v49, %v4115_v2 }
 0x99e   : > { %v10036_v34 = vpop.eup %6624  ;;  %v4162_v33 = vmul.f32 1.442695, %v4145_v24 }
 0x9a0   : > { %6626 = vpow2.f32 %v4162_v33  ;;  %4192 = vadd.xlane.f32.xlu0 %v10036_v34 }
 0x9a3   : > { %v4117_v26 = vpop.xlane.xlu2 %4116 }
 0x9a4   : > { %v4146_v16 = vsub.f32 %v9927_v59, %v4117_v26  ;;  %v3523_v26 = vpop.f32.mrf.mxu0 }
 0x9a6   : > { %v10040_v48 = vpop.eup %6626  ;;  %v4164_v5 = vmul.f32 1.442695, %v4146_v16  ;;  %v3609_v16 = vsub.f32 %v9869_v15, %v3580_v55 }
 0x9a7   : > { %4194 = vadd.xlane.f32.xlu1 %v10040_v48 }
 0x9a8   : > { %6628 = vpow2.f32 %v4164_v5  ;;  %v3551_v5 = vmul.f32 0.17677669, %v3523_v26  ;;  %v3627_v22 = vmul.f32 1.442695, %v3609_v16 }
 0x9aa   : > { %v10053_v39 = vadd.f32 %v9947_v29, %v3551_v5 }
 0x9ab   : > { %v4613_v40 = vpop.permute.xlu2 %4612  ;;  %v10058_v16 = vpop.permute.xlu1 %5224 }
 0x9ac   : > { %6275 = vmatmul.msk.bf16.gmra.mxu0 %vm421_vm0, %v4613_v40  ;;  %11968 = vst [vmem:[#allocation56_spill] sm:$0xff] %v10058_v16 }
 0x9ae   : > { %v10044_v51 = vpop.eup %6628 }
 0x9af   : > { %4196 = vadd.xlane.f32.xlu0 %v10044_v51 }
 0x9b3   : > { %v4121_v24 = vpop.xlane.xlu0 %4120 }
 0x9b4   : > { %v4148_v2 = vsub.f32 %v9934_v54, %v4121_v24 }
 0x9b6   : > { %v4168_v33 = vmul.f32 1.442695, %v4148_v2 }
 0x9b8   : > { %6630 = vpow2.f32 %v4168_v33 }
 0x9bb   : > { %v3656_v49 = vpop.xlane.xlu0 %3655 }
 0x9bc   : > { %6632 = vrcp.f32 %v3656_v49  ;;  %v3698_v21 = vand.u32 2147483648, %v3656_v49  ;;  %vm3692_vm3 = vweird.f32 %v3656_v49  ;;  %v3696_v15 = vand.u32 2147483647, %v3656_v49 }
 0x9be   : > { %v10048_v59 = vpop.eup %6630  ;;  %vm3697_vm6 = vcmp.eq.f32.partialorder %v3696_v15, 8.507059e+37 }
 0x9bf   : > { %4200 = vadd.xlane.f32.xlu2 %v10048_v59 }
 0x9c2   : > { %v6633_v40 = vpop.eup %6632 }
 0x9c3   : > { %v3688_v4 = vmul.f32 %v6633_v40, %v3656_v49  ;;  %v3658_v62 = vpop.xlane.xlu0 %3657  ;;  %vm3693_vm2 = vweird.f32 %v6633_v40 }
 0x9c4   : > { %6634 = vrcp.f32 %v3658_v62  ;;  %vm3694_vm4 = vmor %vm3692_vm3, %vm3693_vm2  ;;  %v3713_v29 = vand.u32 2147483648, %v3658_v62  ;;  %vm3707_vm7 = vweird.f32 %v3658_v62 }
 0x9c5   : > { %v3689_v54 = vsub.f32 1.0, %v3688_v4  ;;  %6636 = vpow2.f32 %v3627_v22  ;;  %v3699_v22 = vor.u32 1.1754944e-38, %v3698_v21 }
 0x9c6   : > { %v3714_v49 = vor.u32 1.1754944e-38, %v3713_v29 }
 0x9c7   : > { %v3690_v24 = vmul.f32 %v6633_v40, %v3689_v54  ;;  %3591 = vmax.xlane.f32.xlu2 %v10053_v39  ;;  %v3711_v54 = vand.u32 2147483647, %v3658_v62 }
 0x9c9   : > { %v3691_v33 = vadd.f32 %v6633_v40, %v3690_v24  ;;  %vm3712_vm9 = vcmp.eq.f32.partialorder %v3711_v54, 8.507059e+37 }
 0x9ca   : > { %v6635_v2 = vpop.eup %6634 }
 0x9cb   : > { %v3703_v63 = vmul.f32 %v6635_v2, %v3658_v62  ;;  %v10056_v26 = vpop.eup %6636  ;;  %v3695_v5 = vsel %vm3694_vm4, %v6633_v40, %v3691_v33  ;;  %vm3708_vm5 = vweird.f32 %v6635_v2 }
 0x9cc   : > { %11967 = vst [vmem:[#allocation55_spill] sm:$0xff] %v10056_v26  ;;  %v3700_v43 = vsel %vm3697_vm6, %v3699_v22, %v3695_v5  ;;  %vm3709_vm8 = vmor %vm3707_vm7, %vm3708_vm5 }
 0x9cd   : > { %v3704_v55 = vsub.f32 1.0, %v3703_v63  ;;  %v3701_v16 = vmul.f32 %v9938_v28, %v3700_v43 }
 0x9cf   : > { %v3705_v4 = vmul.f32 %v6635_v2, %v3704_v55  ;;  %3659 = vadd.xlane.f32.xlu2 %v10056_v26 }
 0x9d1   : > { %v3706_v24 = vadd.f32 %v6635_v2, %v3705_v4 }
 0x9d3   : > { %v3710_v63 = vsel %vm3709_vm8, %v6635_v2, %v3706_v24 }
 0x9d4   : > { %v3715_v8 = vsel %vm3712_vm9, %v3714_v49, %v3710_v63  ;;  %v10082_v49 = vpop.f32.mrf.mxu0 }
 0x9d5   : > { %v3716_v9 = vmul.f32 %v9943_v61, %v3715_v8  ;;  %v10072_v8 = vpop.xlane.xlu0 %4128 }
 0x9d6   : > { %v10063_v40 = vpop.xlane.xlu1 %3587 }
 0x9d7   : > { %v3927_v33 = vpack.c.bf16 %v3716_v9, %v3701_v16 }
 0x9d9   : > { %4561 = vmatmul.bf16.vlgmr.msra.gmra.mxu3 %v3927_v33 }
 0x9de   : > { %v4119_v55 = vpop.xlane.xlu1 %4118 }
 0x9df   : > { %v4147_v21 = vsub.f32 %v9958_v31, %v4119_v55 }
 0x9e1   : > { %v4166_v15 = vmul.f32 1.442695, %v4147_v21 }
 0x9e3   : > { %6638 = vpow2.f32 %v4166_v15  ;;  %v10079_v54 = vpop.xlane.xlu0 %4132 }
 0x9e4   : > { %v4123_v62 = vpop.xlane.xlu2 %4122 }
 0x9e5   : > { %v4149_v5 = vsub.f32 %v9968_v17, %v4123_v62 }
 0x9e6   : > { %v10067_v29 = vpop.xlane.xlu1 %4130 }
 0x9e7   : > { %v4170_v2 = vmul.f32 1.442695, %v4149_v5 }
 0x9e9   : > { %v10069_v4 = vpop.eup %6638  ;;  %6640 = vpow2.f32 %v4170_v2  ;;  %v10094_v2 = vpop.f32.mrf.mxu0 }
 0x9ea   : > { %4198 = vadd.xlane.f32.xlu1 %v10069_v4 }
 0x9ec   : > { %v4125_v9 = vpop.xlane.xlu2 %4124 }
 0x9ed   : > { %v4150_v43 = vsub.f32 %v9979_v53, %v4125_v9 }
 0x9ee   : > { %v4135_v28 = vpop.xlane.xlu1 %4134 }
 0x9ef   : > { %v10075_v61 = vpop.eup %6640  ;;  %v4172_v31 = vmul.f32 1.442695, %v4150_v43  ;;  %v4155_v16 = vsub.f32 %v9985_v32, %v4135_v28 }
 0x9f0   : > { %4202 = vadd.xlane.f32.xlu0 %v10075_v61 }
 0x9f1   : > { %6642 = vpow2.f32 %v4172_v31  ;;  %v4182_v17 = vmul.f32 1.442695, %v4155_v16  ;;  %v10102_v43 = vpop.f32.mrf.mxu0 }
 0x9f3   : > { %6644 = vpow2.f32 %v4182_v17 }
 0x9f4   : > { %v4127_v22 = vpop.xlane.xlu2 %4126 }
 0x9f5   : > { %v4151_v24 = vsub.f32 %v9993_v12, %v4127_v22 }
 0x9f6   : > { %v4137_v63 = vpop.xlane.xlu1 %4136 }
 0x9f7   : > { %v10084_v53 = vpop.eup %6642  ;;  %v4174_v33 = vmul.f32 1.442695, %v4151_v24  ;;  %v4156_v55 = vsub.f32 %v9999_v11, %v4137_v63 }
 0x9f8   : > { %4204 = vadd.xlane.f32.xlu1 %v10084_v53 }
 0x9f9   : > { %v10088_v32 = vpop.eup %6644  ;;  %6646 = vpow2.f32 %v4174_v33  ;;  %v4184_v21 = vmul.f32 1.442695, %v4156_v55  ;;  %v10111_v16 = vpop.f32.mrf.mxu0 }
 0x9fa   : > { %11969 = vst [vmem:[#allocation57_spill] sm:$0xff] %v10088_v32  ;;  %4214 = vadd.xlane.f32.xlu2 %v10088_v32 }
 0x9fb   : > { %6648 = vpow2.f32 %v4184_v21  ;;  %v4139_v15 = vpop.xlane.xlu0 %4138 }
 0x9fc   : > { %v4157_v12 = vsub.f32 %v10007_v25, %v4139_v15 }
 0x9fe   : > { %v4186_v5 = vmul.f32 1.442695, %v4157_v12 }
 0x9ff   : > { %v10092_v62 = vpop.eup %6646 }
 0xa00   : > { %4206 = vadd.xlane.f32.xlu0 %v10092_v62  ;;  %6650 = vpow2.f32 %v4186_v5 }
 0xa01   : > { %v10097_v11 = vpop.eup %6648  ;;  %v10115_v33 = vpop.f32.mrf.mxu0 }
 0xa02   : > { %4216 = vadd.xlane.f32.xlu2 %v10097_v11 }
 0xa03   : > { %v10109_v25 = vpop.xlane.xlu1 %4140 }
 0xa06   : > { %v10100_v9 = vpop.eup %6650 }
 0xa09   : > { %v10119_v26 = vpop.f32.mrf.mxu0 }
 0xa0a   : > { %4218 = vadd.xlane.f32.xlu2 %v10100_v9 }
 0xa0b   : > { %v10105_v28 = vpop.xlane.xlu0 %4142 }
 0xa0c   : > { %11970 = vst [vmem:[#allocation58_spill] sm:$0xff] %v10105_v28 }
 0xa11   : > { %5226 = vrot.lane.b32.xlu1 %v9826_v58, %s7046_s12 }
 0xa13   : > { %v4193_v31 = vpop.xlane.xlu0 %4192 }
 0xa14   : > { %6652 = vrcp.f32 %v4193_v31  ;;  %4614 = vrot.lane.b32.xlu0 %v9597_v3, %s7045_s11  ;;  %v4235_v5 = vand.u32 2147483648, %v4193_v31  ;;  %vm4229_vm11 = vweird.f32 %v4193_v31  ;;  %v4233_v36 = vand.u32 2147483647, %v4193_v31 }
 0xa16   : > { %v4236_v23 = vor.u32 1.1754944e-38, %v4235_v5  ;;  %vm4234_vm14 = vcmp.eq.f32.partialorder %v4233_v36, 8.507059e+37  ;;  %v3590_v36 = vpop.xlane.xlu2 %3589 }
 0xa1a   : > { %v6653_v17 = vpop.eup %6652  ;;  %v4195_v22 = vpop.xlane.xlu1 %4194 }
 0xa1b   : > { %v4225_v24 = vmul.f32 %v6653_v17, %v4193_v31  ;;  %6654 = vrcp.f32 %v4195_v22  ;;  %vm4230_vm10 = vweird.f32 %v6653_v17  ;;  %v4250_v3 = vand.u32 2147483648, %v4195_v22 }
 0xa1c   : > { %vm4231_vm12 = vmor %vm4229_vm11, %vm4230_vm10  ;;  %vm4244_vm15 = vweird.f32 %v4195_v22  ;;  %v4152_v31 = vsub.f32 %v9950_v18, %v10072_v8 }
 0xa1d   : > { %v4226_v63 = vsub.f32 1.0, %v4225_v24  ;;  %v4248_v24 = vand.u32 2147483647, %v4195_v22  ;;  %v4251_v45 = vor.u32 1.1754944e-38, %v4250_v3 }
 0xa1f   : > { %v4227_v55 = vmul.f32 %v6653_v17, %v4226_v63  ;;  %vm4249_vm2 = vcmp.eq.f32.partialorder %v4248_v24, 8.507059e+37 }
 0xa21   : > { %v6655_v21 = vpop.eup %6654  ;;  %v4228_v15 = vadd.f32 %v6653_v17, %v4227_v55 }
 0xa22   : > { %v4240_v12 = vmul.f32 %v6655_v21, %v4195_v22  ;;  %4616 = vrot.lane.b32.xlu2 %v9826_v58, %s7045_s11  ;;  %vm4245_vm13 = vweird.f32 %v6655_v21 }
 0xa23   : > { %v4232_v28 = vsel %vm4231_vm12, %v6653_v17, %v4228_v15  ;;  %vm4246_vm1 = vmor %vm4244_vm15, %vm4245_vm13 }
 0xa24   : > { %v4241_v14 = vsub.f32 1.0, %v4240_v12  ;;  %v4237_v55 = vsel %vm4234_vm14, %v4236_v23, %v4232_v28  ;;  %v4153_v12 = vsub.f32 %v9975_v19, %v10067_v29  ;;  %v10127_v23 = vpop.f32.mrf.mxu0  ;;  %v4154_v19 = vsub.f32 %v9965_v37, %v10079_v54 }
 0xa25   : > { %v4238_v17 = vmul.f32 %v10036_v34, %v4237_v55  ;;  %v3553_v54 = vmul.f32 0.17677669, %v10094_v2 }
 0xa26   : > { %v4242_v32 = vmul.f32 %v6655_v21, %v4241_v14  ;;  %v4178_v28 = vmul.f32 1.442695, %v4153_v12 }
 0xa28   : > { %v4243_v63 = vadd.f32 %v6655_v21, %v4242_v32  ;;  %v4176_v32 = vmul.f32 1.442695, %v4152_v31 }
 0xa2a   : > { %v4247_v58 = vsel %vm4246_vm1, %v6655_v21, %v4243_v63  ;;  %6656 = vpow2.f32 %v4176_v32  ;;  %v3612_v21 = vsub.f32 %v9899_v6, %v10023_v38  ;;  %v3554_v38 = vmul.f32 0.17677669, %v10102_v43 }
 0xa2b   : > { %v4252_v42 = vsel %vm4249_vm2, %v4251_v45, %v4247_v58  ;;  %v3610_v45 = vsub.f32 %v9878_v20, %v10014_v41  ;;  %6658 = vpow2.f32 %v4178_v28  ;;  %v3552_v20 = vmul.f32 0.17677669, %v10082_v49 }
 0xa2c   : > { %v4253_v14 = vmul.f32 %v10040_v48, %v4252_v42  ;;  %v4691_v42 = vpop.f32.mrf.mxu0  ;;  %v4180_v41 = vmul.f32 1.442695, %v4154_v19  ;;  %v3611_v49 = vsub.f32 %v9889_v56, %v10033_v0  ;;  %v3633_v24 = vmul.f32 1.442695, %v3612_v21  ;;  %v10168_v0 = vpop.xlane.xlu0 %4196 }
 0xa2d   : > { %v3629_v34 = vmul.f32 1.442695, %v3610_v45  ;;  %v10148_v5 = vadd.f32 %v9972_v44, %v3552_v20  ;;  %v10159_v63 = vadd.f32 %v9962_v27, %v3553_v54  ;;  %v3556_v58 = vmul.f32 0.17677669, %v10115_v33 }
 0xa2e   : > { %v4464_v15 = vpack.c.bf16 %v4253_v14, %v4238_v17  ;;  %v3631_v55 = vmul.f32 1.442695, %v3611_v49  ;;  %v4731_v31 = vmul.f32 0.17677669, %v4691_v42  ;;  %v3613_v14 = vsub.f32 %v9954_v50, %v10063_v40 }
 0xa2f   : > { %6660 = vpow2.f32 %v3629_v34  ;;  %v10191_v28 = vadd.f32 %v10004_v57, %v3556_v58  ;;  %v4265_v49 = vand.u32 2147483648, %v10168_v0  ;;  %vm4259_vm4 = vweird.f32 %v10168_v0 }
 0xa30   : > { %4512 = vmatmul.bf16.vlgmr.msra.gmra.mxu2 %v4464_v15  ;;  %v10133_v8 = vpop.eup %6656  ;;  %6662 = vpow2.f32 %v4180_v41  ;;  %v3555_v15 = vmul.f32 0.17677669, %v10111_v16 }
 0xa31   : > { %v10138_v48 = vpop.eup %6658  ;;  %6664 = vpow2.f32 %v3633_v24 }
 0xa32   : > { %v10131_v18 = vpop.xlane.xlu2 %4200  ;;  %v10201_v50 = vadd.f32 %v9996_v46, %v3555_v15 }
 0xa33   : > { %vm4289_vm15 = vweird.f32 %v10131_v18 }
 0xa34   : > { %v10150_v3 = vpop.f32.mrf.mxu0 }
 0xa35   : > { %v10142_v22 = vpop.eup %6660 }
 0xa36   : > { %v10161_v44 = vpop.eup %6662 }
 0xa37   : > { %v10171_v27 = vpop.eup %6664 }
 0xa3a   : > { %v3592_v29 = vpop.xlane.xlu2 %3591 }
 0xa3b   : > { %4208 = vadd.xlane.f32.xlu1 %v10133_v8  ;;  %v3615_v37 = vsub.f32 %v10053_v39, %v3592_v29  ;;  %v10166_v39 = vadd.f32 %v9982_v60, %v3554_v38  ;;  %v3614_v60 = vsub.f32 %v10010_v13, %v3590_v36  ;;  %v10194_v13 = vadd.f32 %v9843_v7, %v4731_v31 }
 0xa3c   : > { %v4696_v56 = vpop.f32.mrf.mxu0  ;;  %v3635_v36 = vmul.f32 1.442695, %v3613_v14  ;;  %v4158_v7 = vsub.f32 %v10020_v47, %v10109_v25  ;;  %v3558_v47 = vmul.f32 0.17677669, %v10127_v23  ;;  %v4263_v38 = vand.u32 2147483647, %v10168_v0 }
 0xa3d   : > { %v3639_v6 = vmul.f32 1.442695, %v3615_v37  ;;  %v3637_v32 = vmul.f32 1.442695, %v3614_v60  ;;  %v4733_v40 = vmul.f32 0.17677669, %v4696_v56 }
 0xa3e   : > { %4210 = vadd.xlane.f32.xlu0 %v10138_v48  ;;  %v4188_v19 = vmul.f32 1.442695, %v4158_v7  ;;  %v10230_v24 = vadd.f32 %v10027_v1, %v3558_v47  ;;  %vm4264_vm8 = vcmp.eq.f32.partialorder %v4263_v38, 8.507059e+37 }
 0xa3f   : > { %6666 = vpow2.f32 %v3639_v6  ;;  %v10207_v57 = vadd.f32 %v9866_v10, %v4733_v40 }
 0xa40   : > { %6668 = vpow2.f32 %v3631_v55  ;;  %v4295_v55 = vand.u32 2147483648, %v10131_v18 }
 0xa41   : > { %6670 = vrcp.f32 %v10168_v0 }
 0xa42   : > { %6672 = vpow2.f32 %v3637_v32  ;;  %v10221_v29 = vpop.xlane.xlu2 %3659 }
 0xa43   : > { %3661 = vadd.xlane.f32.xlu1 %v10142_v22 }
 0xa44   : > { %v10188_v12 = vpop.f32.mrf.mxu0 }
 0xa45   : > { %v10174_v2 = vpop.eup %6666 }
 0xa46   : > { %3593 = vmax.xlane.f32.xlu0 %v10148_v5  ;;  %v10179_v43 = vpop.eup %6668 }
 0xa47   : > { %v10183_v17 = vpop.eup %6670 }
 0xa48   : > { %v4255_v33 = vmul.f32 %v10183_v17, %v10168_v0  ;;  %v10210_v34 = vpop.eup %6672  ;;  %vm4260_vm3 = vweird.f32 %v10183_v17  ;;  %v4266_v0 = vor.u32 1.1754944e-38, %v4265_v49 }
 0xa49   : > { %vm10237_vm5 = vmor %vm4259_vm4, %vm4260_vm3 }
 0xa4a   : > { %v4256_v45 = vsub.f32 1.0, %v4255_v33 }
 0xa4b   : > { %3595 = vmax.xlane.f32.xlu2 %v10159_v63  ;;  %4212 = vadd.xlane.f32.xlu1 %v10161_v44 }
 0xa4c   : > { %v4701_v46 = vpop.f32.mrf.mxu0  ;;  %v4257_v42 = vmul.f32 %v10183_v17, %v4256_v45 }
 0xa4d   : > { %v4735_v25 = vmul.f32 0.17677669, %v4701_v46 }
 0xa4e   : > { %3597 = vmax.xlane.f32.xlu0 %v10166_v39  ;;  %v4258_v37 = vadd.f32 %v10183_v17, %v4257_v42  ;;  %v3557_v42 = vmul.f32 0.17677669, %v10119_v26 }
 0xa4f   : > { %v10235_v6 = vadd.f32 %v9886_v30, %v4735_v25 }
 0xa50   : > { %v4262_v14 = vsel %vm10237_vm5, %v10183_v17, %v4258_v37  ;;  %v10264_v49 = vadd.f32 %v10017_v35, %v3557_v42 }
 0xa51   : > { %v4267_v45 = vsel %vm4264_vm8, %v4266_v0, %v4262_v14  ;;  %v4296_v0 = vor.u32 1.1754944e-38, %v4295_v55 }
 0xa52   : > { %v4268_v47 = vmul.f32 %v10044_v51, %v4267_v45 }
 0xa53   : > { %3665 = vadd.xlane.f32.xlu1 %v10171_v27  ;;  %3671 = vadd.xlane.f32.xlu2 %v10174_v2 }
 0xa56   : > { %3663 = vadd.xlane.f32.xlu0 %v10179_v43 }
 0xa5b   : > { %3601 = vmax.xlane.f32.xlu1 %v10191_v28  ;;  %4763 = vmax.xlane.f32.xlu2 %v10194_v13 }
 0xa5d   : > { %v4199_v16 = vpop.xlane.xlu1 %4198 }
 0xa5e   : > { %6674 = vrcp.f32 %v4199_v16  ;;  %3599 = vmax.xlane.f32.xlu0 %v10201_v50  ;;  %v4280_v60 = vand.u32 2147483648, %v4199_v16  ;;  %v4278_v1 = vand.u32 2147483647, %v4199_v16  ;;  %vm4274_vm7 = vweird.f32 %v4199_v16 }
 0xa5f   : > { %6676 = vpow2.f32 %v3635_v36 }
 0xa60   : > { %6678 = vrcp.f32 %v10131_v18  ;;  %v4281_v33 = vor.u32 1.1754944e-38, %v4280_v60  ;;  %vm4279_vm10 = vcmp.eq.f32.partialorder %v4278_v1, 8.507059e+37 }
 0xa63   : > { %v10213_v20 = vpop.xlane.xlu0 %4202  ;;  %3669 = vadd.xlane.f32.xlu1 %v10210_v34  ;;  %4767 = vmax.xlane.f32.xlu2 %v10207_v57 }
 0xa64   : > { %v6675_v41 = vpop.eup %6674  ;;  %6680 = vrcp.f32 %v10213_v20  ;;  %v4310_v51 = vand.u32 2147483648, %v10213_v20  ;;  %vm4304_vm13 = vweird.f32 %v10213_v20  ;;  %v4308_v38 = vand.u32 2147483647, %v10213_v20 }
 0xa65   : > { %v10219_v10 = vpop.eup %6676  ;;  %v4270_v21 = vmul.f32 %v6675_v41, %v4199_v16  ;;  %6682 = vpow2.f32 %v4188_v19  ;;  %vm4275_vm6 = vweird.f32 %v6675_v41 }
 0xa66   : > { %3667 = vadd.xlane.f32.xlu0 %v10219_v10  ;;  %v10226_v54 = vpop.eup %6678  ;;  %vm4276_vm9 = vmor %vm4274_vm7, %vm4275_vm6  ;;  %vm4309_vm2 = vcmp.eq.f32.partialorder %v4308_v38, 8.507059e+37 }
 0xa67   : > { %v4271_v23 = vsub.f32 1.0, %v4270_v21  ;;  %v4285_v31 = vmul.f32 %v10226_v54, %v10131_v18  ;;  %vm4290_vm12 = vweird.f32 %v10226_v54 }
 0xa68   : > { %vm4291_vm1 = vmor %vm4289_vm15, %vm4290_vm12 }
 0xa69   : > { %v4272_v56 = vmul.f32 %v6675_v41, %v4271_v23  ;;  %v4286_v17 = vsub.f32 1.0, %v4285_v31  ;;  %v4311_v31 = vor.u32 1.1754944e-38, %v4310_v51 }
 0xa6a   : > { %v6681_v58 = vpop.eup %6680 }
 0xa6b   : > { %v4273_v15 = vadd.f32 %v6675_v41, %v4272_v56  ;;  %v4300_v30 = vmul.f32 %v6681_v58, %v10213_v20  ;;  %4771 = vmax.xlane.f32.xlu2 %v10235_v6  ;;  %3605 = vmax.xlane.f32.xlu1 %v10230_v24  ;;  %v10249_v32 = vpop.eup %6682  ;;  %v10253_v46 = vpop.xlane.xlu1 %4204  ;;  %v4287_v21 = vmul.f32 %v10226_v54, %v4286_v17  ;;  %vm4305_vm11 = vweird.f32 %v6681_v58 }
 0xa6c   : > { %6684 = vrcp.f32 %v10253_v46  ;;  %vm4306_vm14 = vmor %vm4304_vm13, %vm4305_vm11  ;;  %v4293_v56 = vand.u32 2147483647, %v10131_v18  ;;  %vm4319_vm8 = vweird.f32 %v10253_v46 }
 0xa6d   : > { %v4301_v36 = vsub.f32 1.0, %v4300_v30  ;;  %v10251_v40 = vpop.xlane.xlu2 %4214  ;;  %v4277_v7 = vsel %vm4276_vm9, %v6675_v41, %v4273_v15 }
 0xa6e   : > { %4220 = vadd.xlane.f32.xlu0 %v10249_v32  ;;  %v4282_v16 = vsel %vm4279_vm10, %v4281_v33, %v4277_v7  ;;  %vm4294_vm3 = vcmp.eq.f32.partialorder %v4293_v56, 8.507059e+37 }
 0xa6f   : > { %v4302_v19 = vmul.f32 %v6681_v58, %v4301_v36  ;;  %v4283_v25 = vmul.f32 %v10069_v4, %v4282_v16  ;;  %v4288_v4 = vadd.f32 %v10226_v54, %v4287_v21 }
 0xa71   : > { %v4465_v37 = vpack.c.bf16 %v4283_v25, %v4268_v47  ;;  %v4303_v23 = vadd.f32 %v6681_v58, %v4302_v19  ;;  %v4292_v14 = vsel %vm4291_vm1, %v10226_v54, %v4288_v4 }
 0xa72   : > { %v10276_v35 = vpop.eup %6684  ;;  %v4297_v45 = vsel %vm4294_vm3, %v4296_v0, %v4292_v14  ;;  %v4323_v14 = vand.u32 2147483647, %v10253_v46 }
 0xa73   : > { %v10261_v41 = vpop.xlane.xlu0 %4206  ;;  %4517 = vmatmul.bf16.gmra.mxu2 %v4465_v37  ;;  %v4307_v60 = vsel %vm4306_vm14, %v6681_v58, %v4303_v23  ;;  %v4315_v20 = vmul.f32 %v10276_v35, %v10253_v46  ;;  %v4298_v54 = vmul.f32 %v10048_v59, %v4297_v45  ;;  %v4325_v37 = vand.u32 2147483648, %v10253_v46 }
 0xa74   : > { %6686 = vrcp.f32 %v10261_v41  ;;  %v4312_v30 = vsel %vm4309_vm2, %v4311_v31, %v4307_v60  ;;  %vm4320_vm5 = vweird.f32 %v10276_v35  ;;  %vm4334_vm7 = vweird.f32 %v10261_v41 }
 0xa75   : > { %v10269_v26 = vpop.xlane.xlu2 %4216  ;;  %v4316_v7 = vsub.f32 1.0, %v4315_v20  ;;  %v4313_v17 = vmul.f32 %v10075_v61, %v4312_v30  ;;  %v4340_v61 = vand.u32 2147483648, %v10261_v41  ;;  %v4338_v38 = vand.u32 2147483647, %v10261_v41  ;;  %vm10323_vm12 = vmor %vm4319_vm8, %vm4320_vm5 }
 0xa76   : > { %6688 = vrcp.f32 %v10269_v26  ;;  %3603 = vmax.xlane.f32.xlu0 %v10264_v49  ;;  %v4415_v55 = vand.u32 2147483648, %v10269_v26  ;;  %vm4409_vm10 = vweird.f32 %v10269_v26  ;;  %v4413_v31 = vand.u32 2147483647, %v10269_v26 }
 0xa77   : > { %v4317_v47 = vmul.f32 %v10276_v35, %v4316_v7  ;;  %v4466_v25 = vpack.c.bf16 %v4313_v17, %v4298_v54  ;;  %v4341_v0 = vor.u32 1.1754944e-38, %v4340_v61  ;;  %v4326_v45 = vor.u32 1.1754944e-38, %v4325_v37  ;;  %v10333_v37 = vpop.f32.mrf.mxu0 }
 0xa78   : > { %vm4339_vm14 = vcmp.eq.f32.partialorder %v4338_v38, 8.507059e+37  ;;  %v4416_v7 = vor.u32 1.1754944e-38, %v4415_v55  ;;  %vm4414_vm15 = vcmp.eq.f32.partialorder %v4413_v31, 8.507059e+37  ;;  %vm4324_vm2 = vcmp.eq.f32.partialorder %v4323_v14, 8.507059e+37 }
 0xa79   : > { %v4318_v4 = vadd.f32 %v10276_v35, %v4317_v47 }
 0xa7a   : > { %v10281_v1 = vpop.eup %6686 }
 0xa7b   : > { %v4330_v15 = vmul.f32 %v10281_v1, %v10261_v41  ;;  %vm4335_vm4 = vweird.f32 %v10281_v1  ;;  %v4322_v17 = vsel %vm10323_vm12, %v10276_v35, %v4318_v4 }
 0xa7c   : > { %v6689_v33 = vpop.eup %6688  ;;  %vm10305_vm9 = vmor %vm4334_vm7, %vm4335_vm4 }
 0xa7d   : > { %v4331_v36 = vsub.f32 1.0, %v4330_v15  ;;  %v4405_v18 = vmul.f32 %v6689_v33, %v10269_v26  ;;  %v4219_v58 = vpop.xlane.xlu2 %4218  ;;  %vm4410_vm6 = vweird.f32 %v6689_v33 }
 0xa7e   : > { %6690 = vrcp.f32 %v4219_v58  ;;  %vm10314_vm11 = vmor %vm4409_vm10, %vm4410_vm6  ;;  %v4430_v15 = vand.u32 2147483648, %v4219_v58  ;;  %v4428_v46 = vand.u32 2147483647, %v4219_v58  ;;  %vm4424_vm1 = vweird.f32 %v4219_v58 }
 0xa7f   : > { %v4406_v16 = vsub.f32 1.0, %v4405_v18  ;;  %v4332_v42 = vmul.f32 %v10281_v1, %v4331_v36  ;;  %6692 = vrcp.f32 %v10221_v29 }
 0xa80   : > { %vm4429_vm4 = vcmp.eq.f32.partialorder %v4428_v46, 8.507059e+37 }
 0xa81   : > { %v4407_v19 = vmul.f32 %v6689_v33, %v4406_v16  ;;  %v4333_v23 = vadd.f32 %v10281_v1, %v4332_v42  ;;  %v4431_v42 = vor.u32 1.1754944e-38, %v4430_v15 }
 0xa83   : > { %5137 = vrot.lane.b32.xlu2 %v9641_v52, %s7045_s11  ;;  %4522 = vmatmul.bf16.gmra.mxu2 %v4466_v25  ;;  %v4408_v59 = vadd.f32 %v6689_v33, %v4407_v19  ;;  %v4337_v30 = vsel %vm10305_vm9, %v10281_v1, %v4333_v23  ;;  %v4327_v19 = vsel %vm4324_vm2, %v4326_v45, %v4322_v17 }
 0xa84   : > { %v6691_v21 = vpop.eup %6690  ;;  %v4342_v16 = vsel %vm4339_vm14, %v4341_v0, %v4337_v30 }
 0xa85   : > { %v4420_v51 = vmul.f32 %v6691_v21, %v4219_v58  ;;  %vm4425_vm13 = vweird.f32 %v6691_v21  ;;  %v4412_v18 = vsel %vm10314_vm11, %v6689_v33, %v4408_v59  ;;  %v4343_v33 = vmul.f32 %v10092_v62, %v4342_v16  ;;  %v10345_v62 = vpop.f32.mrf.mxu0 }
 0xa86   : > { %v4615_v56 = vpop.permute.xlu0 %4614  ;;  %vm4426_vm3 = vmor %vm4424_vm1, %vm4425_vm13  ;;  %v4417_v54 = vsel %vm4414_vm15, %v4416_v7, %v4412_v18  ;;  %v4328_v58 = vmul.f32 %v10084_v53, %v4327_v19  ;;  %v10353_v53 = vpop.eup %6692  ;;  %vm3722_vm11 = vweird.f32 %v10221_v29 }
 0xa87   : > { %v4421_v20 = vsub.f32 1.0, %v4420_v51  ;;  %6276 = vmatmul.msk.bf16.gmra.mxu0 %vm421_vm0, %v4615_v56  ;;  %v10336_v23 = vmul.f32 %v10097_v11, %v4417_v54  ;;  %v4617_v51 = vpop.permute.xlu2 %4616  ;;  %v10348_v11 = vpop.permute.xlu1 %5226  ;;  %v3718_v56 = vmul.f32 %v10353_v53, %v10221_v29  ;;  %vm3723_vm6 = vweird.f32 %v10353_v53 }
 0xa88   : > { %v4467_v59 = vpack.c.bf16 %v4343_v33, %v4328_v58  ;;  %vm10396_vm14 = vmor %vm3722_vm11, %vm3723_vm6 }
 0xa89   : > { %v4422_v36 = vmul.f32 %v6691_v21, %v4421_v20  ;;  %v3719_v31 = vsub.f32 1.0, %v3718_v56 }
 0xa8b   : > { %v4423_v1 = vadd.f32 %v6691_v21, %v4422_v36  ;;  %v3720_v15 = vmul.f32 %v10353_v53, %v3719_v31 }
 0xa8d   : > { %v4427_v47 = vsel %vm4426_vm3, %v6691_v21, %v4423_v1  ;;  %v4708_v21 = vpop.f32.mrf.mxu0  ;;  %v10369_v17 = vadd.f32 %v10353_v53, %v3720_v15 }
 0xa8e   : > { %v4432_v25 = vsel %vm4429_vm4, %v4431_v42, %v4427_v47  ;;  %v4738_v4 = vmul.f32 0.17677669, %v4708_v21 }
 0xa8f   : > { %v10339_v35 = vmul.f32 %v10100_v9, %v4432_v25  ;;  %v11979_v9 = vld [vmem:[#allocation53_spill] sm:$0xff] }
 0xa90   : > { %v10351_v38 = vadd.f32 %v11979_v9, %v4738_v4 }
 0xa91   : > { %v4470_v61 = vpack.c.bf16 %v10339_v35, %v10336_v23 }
 0xa93   : > { %4527 = vmatmul.bf16.gmra.mxu2 %v4467_v59 }
 0xa97   : > { %6277 = vmatmul.msk.bf16.gmra.mxu0 %vm421_vm0, %v4617_v51 }
 0xaac   : > { %4777 = vmax.xlane.f32.xlu2 %v10351_v38 }
 0xaae   : > { %v4209_v55 = vpop.xlane.xlu1 %4208 }
 0xaaf   : > { %6694 = vrcp.f32 %v4209_v55  ;;  %v4355_v1 = vand.u32 2147483648, %v4209_v55  ;;  %vm4349_vm7 = vweird.f32 %v4209_v55  ;;  %v4353_v54 = vand.u32 2147483647, %v4209_v55 }
 0xab0   : > { %6696 = vrcp.f32 %v10251_v40 }
 0xab1   : > { %v4211_v60 = vpop.xlane.xlu0 %4210  ;;  %vm4354_vm12 = vcmp.eq.f32.partialorder %v4353_v54, 8.507059e+37 }
 0xab2   : > { %6698 = vrcp.f32 %v4211_v60  ;;  %v4368_v59 = vand.u32 2147483647, %v4211_v60  ;;  %vm4364_vm10 = vweird.f32 %v4211_v60 }
 0xab4   : > { %vm4369_vm15 = vcmp.eq.f32.partialorder %v4368_v59, 8.507059e+37 }
 0xab5   : > { %v6695_v20 = vpop.eup %6694 }
 0xab6   : > { %v10359_v14 = vpop.eup %6696  ;;  %v4345_v0 = vmul.f32 %v6695_v20, %v4209_v55  ;;  %v10361_v41 = vpop.xlane.xlu1 %3661  ;;  %vm4350_vm5 = vweird.f32 %v6695_v20  ;;  %v4356_v55 = vor.u32 1.1754944e-38, %v4355_v1  ;;  %v3726_v1 = vand.u32 2147483647, %v10221_v29 }
 0xab7   : > { %6700 = vrcp.f32 %v10361_v41  ;;  %v4390_v36 = vmul.f32 %v10359_v14, %v10251_v40  ;;  %vm10374_vm8 = vmor %vm4349_vm7, %vm4350_vm5  ;;  %vm3737_vm3 = vweird.f32 %v10361_v41  ;;  %vm4395_vm4 = vweird.f32 %v10359_v14 }
 0xab8   : > { %v6699_v30 = vpop.eup %6698  ;;  %v4346_v26 = vsub.f32 1.0, %v4345_v0  ;;  %vm3727_vm2 = vcmp.eq.f32.partialorder %v3726_v1, 8.507059e+37 }
 0xab9   : > { %v4360_v46 = vmul.f32 %v6699_v30, %v4211_v60  ;;  %v3594_v18 = vpop.xlane.xlu0 %3593  ;;  %v4391_v33 = vsub.f32 1.0, %v4390_v36  ;;  %vm4365_vm9 = vweird.f32 %v6699_v30 }
 0xaba   : > { %v4347_v45 = vmul.f32 %v6695_v20, %v4346_v26  ;;  %v3616_v7 = vsub.f32 %v10148_v5, %v3594_v18  ;;  %v4370_v5 = vand.u32 2147483648, %v4211_v60  ;;  %vm10386_vm13 = vmor %vm4364_vm10, %vm4365_vm9  ;;  %v3728_v26 = vand.u32 2147483648, %v10221_v29 }
 0xabb   : > { %v4361_v16 = vsub.f32 1.0, %v4360_v46 }
 0xabc   : > { %v4348_v42 = vadd.f32 %v6695_v20, %v4347_v45  ;;  %v3641_v19 = vmul.f32 1.442695, %v3616_v7  ;;  %v4371_v36 = vor.u32 1.1754944e-38, %v4370_v5 }
 0xabd   : > { %v10372_v47 = vpop.eup %6700  ;;  %v4362_v58 = vmul.f32 %v6699_v30, %v4361_v16  ;;  %v4392_v16 = vmul.f32 %v10359_v14, %v4391_v33 }
 0xabe   : > { %v3733_v51 = vmul.f32 %v10372_v47, %v10361_v41  ;;  %6702 = vpow2.f32 %v3641_v19  ;;  %v10380_v21 = vpop.xlane.xlu1 %4212  ;;  %v3596_v4 = vpop.xlane.xlu2 %3595  ;;  %v4352_v9 = vsel %vm10374_vm8, %v6695_v20, %v4348_v42  ;;  %v3741_v19 = vand.u32 2147483647, %v10361_v41 }
 0xabf   : > { %v4363_v56 = vadd.f32 %v6699_v30, %v4362_v58  ;;  %6704 = vrcp.f32 %v10380_v21  ;;  %v3617_v15 = vsub.f32 %v10159_v63, %v3596_v4  ;;  %v4357_v20 = vsel %vm4354_vm12, %v4356_v55, %v4352_v9  ;;  %v11986_v58 = vld [vmem:[#allocation42_spill] sm:$0xff]  ;;  %v10486_v9 = vld [vmem:[%s7594_s17 + $0x8] sm:$0xff] }
 0xac0   : > { %v3734_v0 = vsub.f32 1.0, %v3733_v51  ;;  %vm3738_vm1 = vweird.f32 %v10372_v47  ;;  %v4400_v4 = vand.u32 2147483648, %v10251_v40  ;;  %v4393_v31 = vadd.f32 %v10359_v14, %v4392_v16 }
 0xac1   : > { %v3598_v46 = vpop.xlane.xlu0 %3597  ;;  %v4367_v60 = vsel %vm10386_vm13, %v6699_v30, %v4363_v56  ;;  %v3643_v7 = vmul.f32 1.442695, %v3617_v15  ;;  %v3725_v30 = vsel %vm10396_vm14, %v10353_v53, %v10369_v17  ;;  %v3743_v53 = vand.u32 2147483648, %v10361_v41  ;;  %vm10433_vm5 = vmor %vm3737_vm3, %vm3738_vm1 }
 0xac2   : > { %v3735_v45 = vmul.f32 %v10372_v47, %v3734_v0  ;;  %v3618_v63 = vsub.f32 %v10166_v39, %v3598_v46  ;;  %v4372_v42 = vsel %vm4369_vm15, %v4371_v36, %v4367_v60  ;;  %v4358_v39 = vmul.f32 %v10133_v8, %v4357_v20 }
 0xac3   : > { %v4373_v29 = vmul.f32 %v10138_v48, %v4372_v42  ;;  %6706 = vpow2.f32 %v3643_v7  ;;  %v3729_v17 = vor.u32 1.1754944e-38, %v3728_v26  ;;  %vm3742_vm6 = vcmp.eq.f32.partialorder %v3741_v19, 8.507059e+37 }
 0xac4   : > { %v10408_v54 = vpop.eup %6702  ;;  %v3645_v25 = vmul.f32 1.442695, %v3618_v63  ;;  %5741 = vrot.lane.b32.xlu2 %v11986_v58, %s7046_s12  ;;  %v3736_v33 = vadd.f32 %v10372_v47, %v3735_v45  ;;  %v3744_v0 = vor.u32 1.1754944e-38, %v3743_v53  ;;  %v4385_v36 = vand.u32 2147483648, %v10380_v21  ;;  %v11991_v63 = vld [vmem:[#allocation55_spill] sm:$0xff] }
 0xac5   : > { %v10415_v5 = vpop.eup %6704  ;;  %3673 = vadd.xlane.f32.xlu0 %v10408_v54  ;;  %v4468_v48 = vpack.c.bf16 %v4373_v29, %v4358_v39  ;;  %v3730_v56 = vsel %vm3727_vm2, %v3729_v17, %v3725_v30  ;;  %vm4394_vm8 = vweird.f32 %v10251_v40  ;;  %v4398_v20 = vand.u32 2147483647, %v10251_v40  ;;  %v11992_v40 = vld [vmem:[#allocation43_spill] sm:$0xff] }
 0xac6   : > { %v4375_v59 = vmul.f32 %v10415_v5, %v10380_v21  ;;  %6708 = vpow2.f32 %v3645_v25  ;;  %v10423_v51 = vpop.xlane.xlu1 %3665  ;;  %v10425_v8 = vpop.xlane.xlu2 %3671  ;;  %v3740_v15 = vsel %vm10433_vm5, %v10372_v47, %v3736_v33  ;;  %vm4380_vm7 = vweird.f32 %v10415_v5  ;;  %vm10456_vm9 = vmor %vm4394_vm8, %vm4395_vm4 }
 0xac7   : > { %6710 = vrcp.f32 %v10423_v51  ;;  %4532 = vmatmul.bf16.gmra.mxu2 %v4468_v48  ;;  %v4383_v60 = vand.u32 2147483647, %v10380_v21  ;;  %v3745_v18 = vsel %vm3742_vm6, %v3744_v0, %v3740_v15  ;;  %vm4379_vm10 = vweird.f32 %v10380_v21 }
 0xac8   : > { %v4376_v55 = vsub.f32 1.0, %v4375_v59  ;;  %v3731_v1 = vmul.f32 %v11991_v63, %v3730_v56  ;;  %v3746_v16 = vmul.f32 %v10142_v22, %v3745_v18  ;;  %v4732_v30 = vmul.f32 0.17677669, %v10150_v3  ;;  %vm10469_vm11 = vmor %vm4379_vm10, %vm4380_vm7 }
 0xac9   : > { %v10438_v41 = vpop.xlane.xlu0 %3663  ;;  %v10447_v46 = vpop.eup %6706  ;;  %v4401_v19 = vor.u32 1.1754944e-38, %v4400_v4  ;;  %v4397_v22 = vsel %vm10456_vm9, %v10359_v14, %v4393_v31  ;;  %v4386_v21 = vor.u32 1.1754944e-38, %v4385_v36  ;;  %vm4399_vm12 = vcmp.eq.f32.partialorder %v4398_v20, 8.507059e+37  ;;  %v11995_v20 = vld [vmem:[#allocation57_spill] sm:$0xff] }
 0xaca   : > { %v4377_v26 = vmul.f32 %v10415_v5, %v4376_v55  ;;  %6712 = vrcp.f32 %v10438_v41  ;;  %v3928_v3 = vpack.c.bf16 %v3746_v16, %v3731_v1  ;;  %vm4384_vm13 = vcmp.eq.f32.partialorder %v4383_v60, 8.507059e+37 }
 0xacb   : > { %v4402_v14 = vsel %vm4399_vm12, %v4401_v19, %v4397_v22  ;;  %v10489_v55 = vadd.f32 %v10486_v9, %v4732_v30  ;;  %vm3767_vm15 = vweird.f32 %v10423_v51  ;;  %v3771_v47 = vand.u32 2147483647, %v10423_v51 }
 0xacc   : > { %v10452_v45 = vpop.eup %6708  ;;  %v4378_v7 = vadd.f32 %v10415_v5, %v4377_v26  ;;  %5129 = vrot.lane.b32.xlu2 %v11992_v40, %s7045_s11  ;;  %4566 = vmatmul.bf16.gmra.mxu3 %v3928_v3  ;;  %v3773_v26 = vand.u32 2147483648, %v10423_v51  ;;  %v4403_v60 = vmul.f32 %v11995_v20, %v4402_v14  ;;  %vm3752_vm3 = vweird.f32 %v10438_v41 }
 0xacd   : > { %v6711_v42 = vpop.eup %6710  ;;  %3675 = vadd.xlane.f32.xlu0 %v10447_v46  ;;  %3677 = vadd.xlane.f32.xlu1 %v10452_v45  ;;  %vm3772_vm4 = vcmp.eq.f32.partialorder %v3771_v47, 8.507059e+37 }
 0xace   : > { %v3763_v39 = vmul.f32 %v6711_v42, %v10423_v51  ;;  %v3602_v29 = vpop.xlane.xlu1 %3601  ;;  %v10479_v33 = vpop.xlane.xlu2 %4763  ;;  %v4382_v53 = vsel %vm10469_vm11, %v10415_v5, %v4378_v7  ;;  %vm3768_vm14 = vweird.f32 %v6711_v42  ;;  %v3774_v25 = vor.u32 1.1754944e-38, %v3773_v26 }
 0xacf   : > { %v3620_v17 = vsub.f32 %v10191_v28, %v3602_v29  ;;  %v4387_v4 = vsel %vm4384_vm13, %v4386_v21, %v4382_v53  ;;  %vm10498_vm1 = vmor %vm3767_vm15, %vm3768_vm14 }
 0xad0   : > { %v6713_v59 = vpop.eup %6712  ;;  %v3764_v48 = vsub.f32 1.0, %v3763_v39  ;;  %v4388_v28 = vmul.f32 %v10161_v44, %v4387_v4  ;;  %v3758_v44 = vand.u32 2147483648, %v10438_v41 }
 0xad1   : > { %v3748_v56 = vmul.f32 %v6713_v59, %v10438_v41  ;;  %v3649_v31 = vmul.f32 1.442695, %v3620_v17  ;;  %v3600_v0 = vpop.xlane.xlu0 %3599  ;;  %vm3753_vm2 = vweird.f32 %v6713_v59 }
 0xad2   : > { %v3765_v15 = vmul.f32 %v6711_v42, %v3764_v48  ;;  %v3619_v5 = vsub.f32 %v10201_v50, %v3600_v0  ;;  %v3756_v50 = vand.u32 2147483647, %v10438_v41  ;;  %v4469_v19 = vpack.c.bf16 %v4403_v60, %v4388_v28  ;;  %vm3754_vm5 = vmor %vm3752_vm3, %vm3753_vm2 }
 0xad3   : > { %v3749_v36 = vsub.f32 1.0, %v3748_v56  ;;  %6714 = vpow2.f32 %v3649_v31  ;;  %v3759_v39 = vor.u32 1.1754944e-38, %v3758_v44  ;;  %v4734_v0 = vmul.f32 0.17677669, %v10188_v12  ;;  %v11998_v12 = vld [vmem:[#allocation58_spill] sm:$0xff] }
 0xad4   : > { %v3766_v18 = vadd.f32 %v6711_v42, %v3765_v15  ;;  %v3647_v7 = vmul.f32 1.442695, %v3619_v5  ;;  %vm3757_vm6 = vcmp.eq.f32.partialorder %v3756_v50, 8.507059e+37 }
 0xad5   : > { %v3750_v1 = vmul.f32 %v6713_v59, %v3749_v36  ;;  %4765 = vmax.xlane.f32.xlu0 %v10489_v55 }
 0xad6   : > { %6716 = vpow2.f32 %v3647_v7  ;;  %v3670_v16 = vpop.xlane.xlu1 %3669  ;;  %v10505_v30 = vpop.xlane.xlu2 %4767  ;;  %v3770_v51 = vsel %vm10498_vm1, %v6711_v42, %v3766_v18  ;;  %v10527_v18 = vld [vmem:[%s7594_s17 + $0x18] sm:$0xff]  ;;  %v11999_v7 = vld [vmem:[#allocation54_spill] sm:$0xff]  ;;  %vm3812_vm1 = vweird.f32 %v10425_v8 }
 0xad7   : > { %v3751_v22 = vadd.f32 %v6713_v59, %v3750_v1  ;;  %6718 = vrcp.f32 %v3670_v16  ;;  %4537 = vmatmul.bf16.gmra.mxu2 %v4469_v19  ;;  %v3775_v53 = vsel %vm3772_vm4, %v3774_v25, %v3770_v51  ;;  %v3803_v60 = vand.u32 2147483648, %v3670_v16 }
 0xad8   : > { %v3776_v41 = vmul.f32 %v10171_v27, %v3775_v53  ;;  %v10524_v27 = vpop.f32.mrf.mxu0  ;;  %v10530_v47 = vadd.f32 %v10527_v18, %v4734_v0  ;;  %v3801_v63 = vand.u32 2147483647, %v3670_v16  ;;  %vm3797_vm8 = vweird.f32 %v3670_v16 }
 0xad9   : > { %v10510_v21 = vpop.eup %6714  ;;  %v3668_v3 = vpop.xlane.xlu0 %3667  ;;  %v3755_v29 = vsel %vm3754_vm5, %v6713_v59, %v3751_v22  ;;  %v3804_v22 = vor.u32 1.1754944e-38, %v3803_v60  ;;  %v12003_v60 = vld [vmem:[#allocation41_spill] sm:$0xff] }
 0xada   : > { %6720 = vrcp.f32 %v3668_v3  ;;  %3681 = vadd.xlane.f32.xlu1 %v10510_v21  ;;  %v3760_v17 = vsel %vm3757_vm6, %v3759_v39, %v3755_v29  ;;  %v3788_v50 = vand.u32 2147483648, %v3668_v3  ;;  %v3786_v25 = vand.u32 2147483647, %v3668_v3 }
 0xadb   : > { %v3761_v48 = vmul.f32 %v10179_v43, %v3760_v17  ;;  %vm3802_vm11 = vcmp.eq.f32.partialorder %v3801_v63, 8.507059e+37  ;;  %vm3782_vm12 = vweird.f32 %v3668_v3 }
 0xadc   : > { %v10513_v42 = vpop.eup %6716  ;;  %v3789_v17 = vor.u32 1.1754944e-38, %v3788_v50  ;;  %vm3787_vm14 = vcmp.eq.f32.partialorder %v3786_v25, 8.507059e+37 }
 0xadd   : > { %v6719_v4 = vpop.eup %6718  ;;  %3679 = vadd.xlane.f32.xlu0 %v10513_v42  ;;  %v3929_v31 = vpack.c.bf16 %v3776_v41, %v3761_v48 }
 0xade   : > { %v3793_v14 = vmul.f32 %v6719_v4, %v3670_v16  ;;  %v10518_v56 = vpop.xlane.xlu2 %4771  ;;  %v3606_v59 = vpop.xlane.xlu1 %3605  ;;  %vm3798_vm7 = vweird.f32 %v6719_v4 }
 0xadf   : > { %v3622_v15 = vsub.f32 %v10230_v24, %v3606_v59  ;;  %4571 = vmatmul.bf16.gmra.mxu3 %v3929_v31  ;;  %v4159_v24 = vsub.f32 %v11999_v7, %v11998_v12  ;;  %vm10534_vm9 = vmor %vm3797_vm8, %vm3798_vm7  ;;  %v10582_v7 = vld [vmem:[%s7594_s17 + $0x30] sm:$0xff] }
 0xae0   : > { %v6721_v5 = vpop.eup %6720  ;;  %v3794_v28 = vsub.f32 1.0, %v3793_v14 }
 0xae1   : > { %v3778_v26 = vmul.f32 %v6721_v5, %v3668_v3  ;;  %v3653_v43 = vmul.f32 1.442695, %v3622_v15  ;;  %v10522_v36 = vpop.xlane.xlu0 %4220  ;;  %vm3783_vm10 = vweird.f32 %v6721_v5  ;;  %v4190_v16 = vmul.f32 1.442695, %v4159_v24  ;;  %v4713_v15 = vpop.f32.mrf.mxu0 }
 0xae2   : > { %v3795_v20 = vmul.f32 %v6719_v4, %v3794_v28  ;;  %vm3784_vm13 = vmor %vm3782_vm12, %vm3783_vm10  ;;  %v10553_v28 = vld [vmem:[%s7594_s17 + $0x48] sm:$0xff] }
 0xae3   : > { %v3779_v1 = vsub.f32 1.0, %v3778_v26  ;;  %6722 = vpow2.f32 %v3653_v43  ;;  %v10565_v26 = vld [vmem:[%s7594_s17 + $0x28] sm:$0xff] }
 0xae4   : > { %v3796_v44 = vadd.f32 %v6719_v4, %v3795_v20  ;;  %6724 = vpow2.f32 %v4190_v16  ;;  %v12002_v20 = vld [vmem:[#allocation30_spill] sm:$0xff] }
 0xae5   : > { %v3780_v51 = vmul.f32 %v6721_v5, %v3779_v1  ;;  %4769 = vmax.xlane.f32.xlu0 %v10530_v47 }
 0xae6   : > { %v5138_v39 = vpop.permute.xlu2 %5137  ;;  %v3800_v29 = vsel %vm10534_vm9, %v6719_v4, %v3796_v44  ;;  %v4795_v44 = vsub.f32 %v10194_v13, %v10479_v33 }
 0xae7   : > { %v3781_v53 = vadd.f32 %v6721_v5, %v3780_v51  ;;  %5147 = vmatpush.bf16.msrb.mxu1 %v5138_v39  ;;  %4542 = vmatmul.bf16.gmra.mxu2 %v4470_v61  ;;  %v3805_v48 = vsel %vm3802_vm11, %v3804_v22, %v3800_v29  ;;  %v4740_v61 = vmul.f32 0.17677669, %v4713_v15  ;;  %v3818_v29 = vand.u32 2147483648, %v10425_v8 }
 0xae8   : > { %v3806_v0 = vmul.f32 %v10210_v34, %v3805_v48  ;;  %v4736_v34 = vmul.f32 0.17677669, %v10333_v37  ;;  %v4737_v37 = vmul.f32 0.17677669, %v10345_v62  ;;  %v4811_v51 = vmul.f32 1.442695, %v4795_v44 }
 0xae9   : > { %v3604_v41 = vpop.xlane.xlu0 %3603  ;;  %v3785_v14 = vsel %vm3784_vm13, %v6721_v5, %v3781_v53  ;;  %v10544_v59 = vpop.eup %6722  ;;  %v3816_v53 = vand.u32 2147483647, %v10425_v8 }
 0xaea   : > { %v3621_v4 = vsub.f32 %v10264_v49, %v3604_v41  ;;  %v3790_v31 = vsel %vm3787_vm14, %v3789_v17, %v3785_v14  ;;  %3685 = vadd.xlane.f32.xlu1 %v10544_v59  ;;  %v10550_v5 = vpop.eup %6724  ;;  %v10556_v49 = vadd.f32 %v10553_v28, %v4740_v61  ;;  %v10568_v43 = vadd.f32 %v10565_v26, %v4736_v34 }
 0xaeb   : > { %v3791_v3 = vmul.f32 %v10219_v10, %v3790_v31  ;;  %v10585_v24 = vadd.f32 %v10582_v7, %v4737_v37  ;;  %v3819_v41 = vor.u32 1.1754944e-38, %v3818_v29  ;;  %vm3817_vm4 = vcmp.eq.f32.partialorder %v3816_v53, 8.507059e+37 }
 0xaec   : > { %v3651_v23 = vmul.f32 1.442695, %v3621_v4 }
 0xaed   : > { %v3930_v35 = vpack.c.bf16 %v3806_v0, %v3791_v3 }
 0xaee   : > { %6726 = vpow2.f32 %v3651_v23 }
 0xaef   : > { %4576 = vmatmul.bf16.gmra.mxu3 %v3930_v35  ;;  %6728 = vrcp.f32 %v10425_v8 }
 0xaf2   : > { %4222 = vadd.xlane.f32.xlu1 %v10550_v5 }
 0xaf4   : > { %v10559_v10 = vpop.eup %6726 }
 0xaf5   : > { %3683 = vadd.xlane.f32.xlu0 %v10559_v10  ;;  %4781 = vmax.xlane.f32.xlu2 %v10556_v49  ;;  %v6729_v12 = vpop.eup %6728 }
 0xaf6   : > { %vm3813_vm15 = vweird.f32 %v6729_v12 }
 0xaf7   : > { %vm3814_vm2 = vmor %vm3812_vm1, %vm3813_vm15 }
 0xafd   : > { %4773 = vmax.xlane.f32.xlu0 %v10568_v43 }
 0xb0b   : > { %5747 = vrot.lane.b32.xlu1 %v9641_v52, %s7046_s12  ;;  %v3808_v52 = vmul.f32 %v6729_v12, %v10425_v8 }
 0xb0d   : > { %v3809_v63 = vsub.f32 1.0, %v3808_v52 }
 0xb0f   : > { %v3810_v50 = vmul.f32 %v6729_v12, %v3809_v63 }
 0xb11   : > { %5745 = vrot.lane.b32.xlu0 %v12002_v20, %s7046_s12  ;;  %v3811_v62 = vadd.f32 %v6729_v12, %v3810_v50 }
 0xb13   : > { %v3815_v48 = vsel %vm3814_vm2, %v6729_v12, %v3811_v62 }
 0xb14   : > { %v3820_v3 = vsel %vm3817_vm4, %v3819_v41, %v3815_v48 }
 0xb15   : > { %v3821_v12 = vmul.f32 %v10174_v2, %v3820_v3 }
 0xb19   : > { %5135 = vrot.lane.b32.xlu0 %v12002_v20, %s7045_s11 }
 0xb21   : > { %5743 = vrot.lane.b32.xlu0 %v12003_v60, %s7046_s12 }
 0xb35   : > { %4775 = vmax.xlane.f32.xlu1 %v10585_v24 }
 0xb38   : > { %v3674_v1 = vpop.xlane.xlu0 %3673 }
 0xb39   : > { %6730 = vrcp.f32 %v3674_v1  ;;  %v3833_v13 = vand.u32 2147483648, %v3674_v1  ;;  %v3831_v17 = vand.u32 2147483647, %v3674_v1  ;;  %vm3827_vm5 = vweird.f32 %v3674_v1 }
 0xb3b   : > { %v3834_v31 = vor.u32 1.1754944e-38, %v3833_v13  ;;  %vm3832_vm7 = vcmp.eq.f32.partialorder %v3831_v17, 8.507059e+37 }
 0xb3f   : > { %v6731_v19 = vpop.eup %6730 }
 0xb40   : > { %v3823_v25 = vmul.f32 %v6731_v19, %v3674_v1  ;;  %v10591_v22 = vpop.xlane.xlu0 %3675  ;;  %v10593_v39 = vpop.xlane.xlu1 %3677  ;;  %vm3828_vm3 = vweird.f32 %v6731_v19 }
 0xb41   : > { %6732 = vrcp.f32 %v10591_v22  ;;  %vm3829_vm6 = vmor %vm3827_vm5, %vm3828_vm3  ;;  %vm3842_vm10 = vweird.f32 %v10591_v22  ;;  %v3848_v2 = vand.u32 2147483648, %v10591_v22  ;;  %v3846_v29 = vand.u32 2147483647, %v10591_v22 }
 0xb42   : > { %v3824_v16 = vsub.f32 1.0, %v3823_v25  ;;  %6734 = vrcp.f32 %v10593_v39  ;;  %vm3857_vm12 = vweird.f32 %v10593_v39  ;;  %v3861_v53 = vand.u32 2147483647, %v10593_v39 }
 0xb43   : > { %6736 = vpow2.f32 %v4811_v51  ;;  %vm3847_vm14 = vcmp.eq.f32.partialorder %v3846_v29, 8.507059e+37 }
 0xb44   : > { %v3825_v33 = vmul.f32 %v6731_v19, %v3824_v16  ;;  %vm3862_vm15 = vcmp.eq.f32.partialorder %v3861_v53, 8.507059e+37 }
 0xb46   : > { %v3826_v14 = vadd.f32 %v6731_v19, %v3825_v33 }
 0xb47   : > { %v6733_v4 = vpop.eup %6732 }
 0xb48   : > { %v6735_v0 = vpop.eup %6734  ;;  %v3838_v8 = vmul.f32 %v6733_v4, %v10591_v22  ;;  %v4766_v15 = vpop.xlane.xlu0 %4765  ;;  %v3830_v23 = vsel %vm3829_vm6, %v6731_v19, %v3826_v14  ;;  %vm3843_vm8 = vweird.f32 %v6733_v4 }
 0xb49   : > { %v10601_v35 = vpop.eup %6736  ;;  %v3853_v61 = vmul.f32 %v6735_v0, %v10593_v39  ;;  %v4796_v34 = vsub.f32 %v10489_v55, %v4766_v15  ;;  %v3835_v20 = vsel %vm3832_vm7, %v3834_v31, %v3830_v23  ;;  %vm3858_vm9 = vweird.f32 %v6735_v0  ;;  %vm10616_vm11 = vmor %vm3842_vm10, %vm3843_vm8 }
 0xb4a   : > { %v3839_v37 = vsub.f32 1.0, %v3838_v8  ;;  %v3836_v52 = vmul.f32 %v10408_v54, %v3835_v20  ;;  %v3863_v55 = vand.u32 2147483648, %v10593_v39  ;;  %vm3859_vm13 = vmor %vm3857_vm12, %vm3858_vm9  ;;  %vm4439_vm10 = vweird.f32 %v10522_v36 }
 0xb4b   : > { %v3854_v63 = vsub.f32 1.0, %v3853_v61  ;;  %v4813_v1 = vmul.f32 1.442695, %v4796_v34  ;;  %4843 = vadd.xlane.f32.xlu0 %v10601_v35 }
 0xb4c   : > { %v3840_v44 = vmul.f32 %v6733_v4, %v3839_v37  ;;  %v3931_v50 = vpack.c.bf16 %v3836_v52, %v3821_v12  ;;  %v3864_v48 = vor.u32 1.1754944e-38, %v3863_v55 }
 0xb4d   : > { %v3855_v19 = vmul.f32 %v6735_v0, %v3854_v63  ;;  %6738 = vpow2.f32 %v4813_v1  ;;  %v10608_v51 = vpop.xlane.xlu1 %3681 }
 0xb4e   : > { %v3841_v62 = vadd.f32 %v6733_v4, %v3840_v44  ;;  %6740 = vrcp.f32 %v10608_v51  ;;  %4581 = vmatmul.bf16.gmra.mxu3 %v3931_v50  ;;  %5133 = vrot.lane.b32.xlu1 %v12003_v60, %s7045_s11  ;;  %v3849_v60 = vor.u32 1.1754944e-38, %v3848_v2  ;;  %v3893_v44 = vand.u32 2147483648, %v10608_v51 }
 0xb4f   : > { %v3856_v54 = vadd.f32 %v6735_v0, %v3855_v19  ;;  %vm3887_vm5 = vweird.f32 %v10608_v51  ;;  %v3891_v50 = vand.u32 2147483647, %v10608_v51 }
 0xb50   : > { %v3680_v16 = vpop.xlane.xlu0 %3679  ;;  %v3845_v13 = vsel %vm10616_vm11, %v6733_v4, %v3841_v62  ;;  %v3894_v25 = vor.u32 1.1754944e-38, %v3893_v44 }
 0xb51   : > { %6742 = vrcp.f32 %v3680_v16  ;;  %v3860_v33 = vsel %vm3859_vm13, %v6735_v0, %v3856_v54  ;;  %v3850_v14 = vsel %vm3847_vm14, %v3849_v60, %v3845_v13  ;;  %v3878_v52 = vand.u32 2147483648, %v3680_v16 }
 0xb52   : > { %v3865_v39 = vsel %vm3862_vm15, %v3864_v48, %v3860_v33  ;;  %6744 = vrcp.f32 %v10522_v36  ;;  %v3851_v0 = vmul.f32 %v10447_v46, %v3850_v14  ;;  %v12006_v46 = vld [vmem:[#allocation44_spill] sm:$0xff]  ;;  %vm3872_vm3 = vweird.f32 %v3680_v16 }
 0xb53   : > { %v10625_v17 = vpop.eup %6738  ;;  %v3866_v8 = vmul.f32 %v10452_v45, %v3865_v39  ;;  %v3876_v63 = vand.u32 2147483647, %v3680_v16  ;;  %v3879_v2 = vor.u32 1.1754944e-38, %v3878_v52  ;;  %vm3892_vm8 = vcmp.eq.f32.partialorder %v3891_v50, 8.507059e+37 }
 0xb54   : > { %v6741_v41 = vpop.eup %6740  ;;  %4845 = vadd.xlane.f32.xlu0 %v10625_v17  ;;  %v4443_v14 = vand.u32 2147483647, %v10522_v36 }
 0xb55   : > { %v3883_v22 = vmul.f32 %v6741_v41, %v10608_v51  ;;  %v3932_v20 = vpack.c.bf16 %v3866_v8, %v3851_v0  ;;  %vm3888_vm2 = vweird.f32 %v6741_v41  ;;  %vm3877_vm7 = vcmp.eq.f32.partialorder %v3876_v63, 8.507059e+37 }
 0xb56   : > { %5131 = vrot.lane.b32.xlu1 %v11986_v58, %s7045_s11  ;;  %vm3889_vm6 = vmor %vm3887_vm5, %vm3888_vm2  ;;  %vm10666_vm12 = vcmp.eq.f32.partialorder %v4443_v14, 8.507059e+37  ;;  %v4445_v0 = vand.u32 2147483648, %v10522_v36 }
 0xb57   : > { %v6743_v31 = vpop.eup %6742  ;;  %v3884_v4 = vsub.f32 1.0, %v3883_v22 }
 0xb58   : > { %v3868_v3 = vmul.f32 %v6743_v31, %v3680_v16  ;;  %v10634_v23 = vpop.eup %6744  ;;  %vm3873_vm1 = vweird.f32 %v6743_v31  ;;  %v10643_v1 = vpop.xlane.xlu0 %4769 }
 0xb59   : > { %v3885_v61 = vmul.f32 %v6741_v41, %v3884_v4  ;;  %v4435_v58 = vmul.f32 %v10634_v23, %v10522_v36  ;;  %vm3874_vm4 = vmor %vm3872_vm3, %vm3873_vm1  ;;  %vm4440_vm9 = vweird.f32 %v10634_v23 }
 0xb5a   : > { %v3869_v15 = vsub.f32 1.0, %v3868_v3  ;;  %vm10662_vm11 = vmor %vm4439_vm10, %vm4440_vm9 }
 0xb5b   : > { %v3886_v45 = vadd.f32 %v6741_v41, %v3885_v61  ;;  %v4436_v62 = vsub.f32 1.0, %v4435_v58 }
 0xb5c   : > { %v3870_v34 = vmul.f32 %v6743_v31, %v3869_v15 }
 0xb5d   : > { %v10636_v12 = vpop.xlane.xlu1 %3685  ;;  %v3890_v54 = vsel %vm3889_vm6, %v6741_v41, %v3886_v45  ;;  %v4437_v13 = vmul.f32 %v10634_v23, %v4436_v62  ;;  %v4446_v45 = vor.u32 1.1754944e-38, %v4445_v0 }
 0xb5e   : > { %v3871_v37 = vadd.f32 %v6743_v31, %v3870_v34  ;;  %4586 = vmatmul.bf16.gmra.mxu3 %v3932_v20  ;;  %6746 = vrcp.f32 %v10636_v12  ;;  %5737 = vrot.lane.b32.xlu1 %v12006_v46, %s7046_s12  ;;  %v3895_v33 = vsel %vm3892_vm8, %v3894_v25, %v3890_v54  ;;  %vm3917_vm14 = vweird.f32 %v10636_v12 }
 0xb5f   : > { %v3896_v41 = vmul.f32 %v10510_v21, %v3895_v33  ;;  %v4438_v22 = vadd.f32 %v10634_v23, %v4437_v13  ;;  %v3921_v20 = vand.u32 2147483647, %v10636_v12  ;;  %v12013_v33 = vld [vmem:[#allocation45_spill] sm:$0xff]  ;;  %v10706_v21 = vld [vmem:[%s7594_s17 + $0x40] sm:$0xff] }
 0xb60   : > { %v3875_v19 = vsel %vm3874_vm4, %v6743_v31, %v3871_v37  ;;  %v3923_v37 = vand.u32 2147483648, %v10636_v12 }
 0xb61   : > { %v3880_v29 = vsel %vm3877_vm7, %v3879_v2, %v3875_v19  ;;  %v4442_v8 = vsel %vm10662_vm11, %v10634_v23, %v4438_v22  ;;  %vm3922_vm4 = vcmp.eq.f32.partialorder %v3921_v20, 8.507059e+37 }
 0xb62   : > { %v3881_v48 = vmul.f32 %v10513_v42, %v3880_v29  ;;  %v3924_v62 = vor.u32 1.1754944e-38, %v3923_v37  ;;  %v4447_v54 = vsel %vm10666_vm12, %v4446_v45, %v4442_v8 }
 0xb64   : > { %v10648_v55 = vpop.eup %6746  ;;  %v3933_v31 = vpack.c.bf16 %v3896_v41, %v3881_v48  ;;  %v10694_v41 = vpop.f32.mrf.mxu2 }
 0xb65   : > { %v3913_v53 = vmul.f32 %v10648_v55, %v10636_v12  ;;  %v4223_v16 = vpop.xlane.xlu1 %4222  ;;  %vm3918_vm13 = vweird.f32 %v10648_v55 }
 0xb66   : > { %6748 = vrcp.f32 %v4223_v16  ;;  %v4460_v36 = vand.u32 2147483648, %v4223_v16  ;;  %v4458_v52 = vand.u32 2147483647, %v4223_v16  ;;  %vm10681_vm1 = vmor %vm3917_vm14, %vm3918_vm13  ;;  %vm4454_vm2 = vweird.f32 %v4223_v16 }
 0xb67   : > { %v3914_v51 = vsub.f32 1.0, %v3913_v53 }
 0xb68   : > { %v3684_v60 = vpop.xlane.xlu0 %3683  ;;  %5739 = vrot.lane.b32.xlu0 %v11992_v40, %s7046_s12  ;;  %v4461_v2 = vor.u32 1.1754944e-38, %v4460_v36  ;;  %vm4459_vm6 = vcmp.eq.f32.partialorder %v4458_v52, 8.507059e+37 }
 0xb69   : > { %6750 = vrcp.f32 %v3684_v60  ;;  %v3915_v39 = vmul.f32 %v10648_v55, %v3914_v51  ;;  %v3906_v44 = vand.u32 2147483647, %v3684_v60  ;;  %v3908_v50 = vand.u32 2147483648, %v3684_v60 }
 0xb6a   : > { %vm3902_vm7 = vweird.f32 %v3684_v60 }
 0xb6b   : > { %v3916_v15 = vadd.f32 %v10648_v55, %v3915_v39  ;;  %v3909_v53 = vor.u32 1.1754944e-38, %v3908_v50  ;;  %vm3907_vm9 = vcmp.eq.f32.partialorder %v3906_v44, 8.507059e+37  ;;  %v12020_v44 = vld [vmem:[#allocation49_spill] sm:$0xff] }
 0xb6c   : > { %v6749_v4 = vpop.eup %6748 }
 0xb6d   : > { %v4450_v40 = vmul.f32 %v6749_v4, %v4223_v16  ;;  %vm4455_vm15 = vweird.f32 %v6749_v4  ;;  %v3920_v12 = vsel %vm10681_vm1, %v10648_v55, %v3916_v15  ;;  %v4448_v55 = vmul.f32 %v10249_v32, %v4447_v54  ;;  %v12015_v15 = vld [vmem:[#allocation47_spill] sm:$0xff] }
 0xb6e   : > { %4591 = vmatmul.bf16.gmra.mxu3 %v3933_v31  ;;  %vm4456_vm5 = vmor %vm4454_vm2, %vm4455_vm15  ;;  %v3925_v13 = vsel %vm3922_vm4, %v3924_v62, %v3920_v12  ;;  %v4739_v32 = vmul.f32 0.17677669, %v10524_v27  ;;  %v10718_v27 = vpop.xlane.xlu2 %4777  ;;  %v12023_v12 = vld [vmem:[#allocation51_spill] sm:$0xff] }
 0xb6f   : > { %v6751_v42 = vpop.eup %6750  ;;  %v4451_v61 = vsub.f32 1.0, %v4450_v40  ;;  %v3926_v39 = vmul.f32 %v10544_v59, %v3925_v13  ;;  %v10700_v40 = vpop.f32.mrf.mxu3 }
 0xb70   : > { %v3898_v34 = vmul.f32 %v6751_v42, %v3684_v60  ;;  %5127 = vrot.lane.b32.xlu0 %v12006_v46, %s7045_s11  ;;  %vm3903_vm3 = vweird.f32 %v6751_v42  ;;  %v10698_v31 = vpop.xlane.xlu0 %4773  ;;  %12014 = vst [vmem:[#allocation53_spill] sm:$0xff] %v10700_v40 }
 0xb71   : > { %v4452_v58 = vmul.f32 %v6749_v4, %v4451_v61  ;;  %vm3904_vm8 = vmor %vm3902_vm7, %vm3903_vm3 }
 0xb72   : > { %v3899_v23 = vsub.f32 1.0, %v3898_v34 }
 0xb73   : > { %v4453_v46 = vadd.f32 %v6749_v4, %v4452_v58  ;;  %v12017_v58 = vld [vmem:[#allocation48_spill] sm:$0xff] }
 0xb74   : > { %v3900_v19 = vmul.f32 %v6751_v42, %v3899_v23 }
 0xb75   : > { %v4457_v29 = vsel %vm4456_vm5, %v6749_v4, %v4453_v46 }
 0xb76   : > { %v3901_v25 = vadd.f32 %v6751_v42, %v3900_v19  ;;  %v4462_v16 = vsel %vm4459_vm6, %v4461_v2, %v4457_v29  ;;  %v5742_v37 = vpop.permute.xlu2 %5741 }
 0xb77   : > { %v4463_v51 = vmul.f32 %v10550_v5, %v4462_v16  ;;  %v10703_v5 = vpop.f32.mrf.mxu2  ;;  %v10711_v59 = vpop.f32.mrf.mxu3 }
 0xb78   : > { %5735 = vrot.lane.b32.xlu0 %v12013_v33, %s7046_s12  ;;  %v3905_v48 = vsel %vm3904_vm8, %v6751_v42, %v3901_v25 }
 0xb79   : > { %v3910_v22 = vsel %vm3907_vm9, %v3909_v53, %v3905_v48  ;;  %v4471_v14 = vpack.c.bf16 %v4463_v51, %v4448_v55 }
 0xb7a   : > { %v3911_v60 = vmul.f32 %v10559_v10, %v3910_v22  ;;  %v10709_v10 = vadd.f32 %v10706_v21, %v4739_v32  ;;  %v12028_v22 = vld [vmem:[#allocation52_spill] sm:$0xff] }
 0xb7b   : > { %4547 = vmatmul.bf16.gmra.mxu2 %v4471_v14 }
 0xb7c   : > { %v3934_v4 = vpack.c.bf16 %v3926_v39, %v3911_v60 }
 0xb7d   : > { %v5748_v3 = vpop.permute.xlu1 %5747 }
 0xb7e   : > { %4596 = vmatmul.bf16.gmra.mxu3 %v3934_v4  ;;  %v5130_v14 = vpop.permute.xlu2 %5129 }
 0xb7f   : > { %5757 = vmatpush.bf16.msrb.mxu3 %v5748_v3  ;;  %v10714_v0 = vpop.f32.mrf.mxu2  ;;  %v10720_v61 = vpop.f32.mrf.mxu3 }
 0xb83   : > { %v5746_v42 = vpop.permute.xlu0 %5745 }
 0xb84   : > { %5758 = vmatpush.bf16.msrb.mxu3 %v5746_v42 }
 0xb87   : > { %v10722_v20 = vpop.f32.mrf.mxu2  ;;  %v10724_v36 = vpop.f32.mrf.mxu3 }
 0xb88   : > { %4779 = vmax.xlane.f32.xlu1 %v10709_v10  ;;  %12016 = vst [vmem:[#allocation42_spill] sm:$0xff] %v10722_v20 }
 0xb8b   : > { %v5136_v8 = vpop.permute.xlu0 %5135  ;;  %6278 = vmatmul.msk.bf16.vlgmr.msrb.gmra.mxu2 %vm421_vm0, %v12015_v15 }
 0xb8c   : > { %5148 = vmatpush.bf16.msrb.mxu1 %v5136_v8 }
 0xb8f   : > { %v10728_v52 = vpop.f32.mrf.mxu2  ;;  %v10732_v23 = vpop.f32.mrf.mxu3 }
 0xb90   : > { %12018 = vst [vmem:[#allocation55_spill] sm:$0xff] %v10732_v23 }
 0xb93   : > { %v5744_v34 = vpop.permute.xlu0 %5743 }
 0xb94   : > { %5759 = vmatpush.bf16.msrb.mxu3 %v5744_v34 }
 0xb97   : > { %v10734_v45 = vpop.f32.mrf.mxu2  ;;  %v10736_v63 = vpop.f32.mrf.mxu3 }
 0xb98   : > { %5760 = vmatpush.bf16.msrb.mxu3 %v5742_v37  ;;  %12019 = vst [vmem:[#allocation43_spill] sm:$0xff] %v10734_v45 }
 0xb9b   : > { %6279 = vmatmul.msk.bf16.gmra.mxu2 %vm421_vm0, %v12017_v58 }
 0xb9f   : > { %v10740_v50 = vpop.f32.mrf.mxu2  ;;  %v10742_v46 = vpop.f32.mrf.mxu3 }
 0xba0   : > { %12021 = vst [vmem:[#allocation57_spill] sm:$0xff] %v10740_v50 }
 0xba1   : > { %5125 = vrot.lane.b32.xlu1 %v12013_v33, %s7045_s11  ;;  %12022 = vst [vmem:[#allocation58_spill] sm:$0xff] %v10742_v46 }
 0xba7   : > { %v10748_v62 = vpop.f32.mrf.mxu2  ;;  %v10750_v54 = vpop.f32.mrf.mxu3 }
 0xba8   : > { %v10744_v19 = vpop.xlane.xlu1 %4775  ;;  %12024 = vst [vmem:[#allocation54_spill] sm:$0xff] %v10748_v62 }
 0xba9   : > { %12025 = vst [vmem:[#allocation30_spill] sm:$0xff] %v10750_v54 }
 0xbab   : > { %6280 = vmatmul.msk.bf16.gmra.mxu2 %vm421_vm0, %v12020_v44 }
 0xbaf   : > { %v10752_v53 = vpop.f32.mrf.mxu2  ;;  %v10754_v55 = vpop.f32.mrf.mxu3 }
 0xbb0   : > { %12026 = vst [vmem:[#allocation41_spill] sm:$0xff] %v10752_v53  ;;  %v6939_v53 = vld [vmem:[%s7594_s17 + $0x60] sm:$0xff] }
 0xbb1   : > { %12027 = vst [vmem:[#allocation44_spill] sm:$0xff] %v10754_v55 }
 0xbb7   : > { %v10758_v39 = vpop.f32.mrf.mxu2 }
 0xbb8   : > { %12029 = vst [vmem:[#allocation45_spill] sm:$0xff] %v10758_v39 }
 0xbbb   : > { %6281 = vmatmul.msk.bf16.gmra.mxu2 %vm421_vm0, %v12023_v12 }
 0xbbe   : > { %v4844_v2 = vpop.xlane.xlu0 %4843 }
 0xbbf   : > { %6752 = vrcp.f32 %v4844_v2  ;;  %v4886_v32 = vand.u32 2147483648, %v4844_v2  ;;  %vm4880_vm11 = vweird.f32 %v4844_v2  ;;  %v4884_v42 = vand.u32 2147483647, %v4844_v2 }
 0xbc0   : > { %v5134_v25 = vpop.permute.xlu1 %5133 }
 0xbc1   : > { %5149 = vmatpush.bf16.msrb.mxu1 %v5134_v25  ;;  %v4887_v12 = vor.u32 1.1754944e-38, %v4886_v32  ;;  %vm4885_vm14 = vcmp.eq.f32.partialorder %v4884_v42, 8.507059e+37 }
 0xbc5   : > { %v6753_v29 = vpop.eup %6752 }
 0xbc6   : > { %v4876_v16 = vmul.f32 %v6753_v29, %v4844_v2  ;;  %vm4881_vm10 = vweird.f32 %v6753_v29  ;;  %v10762_v2 = vpop.f32.mrf.mxu2 }
 0xbc7   : > { %v4846_v13 = vpop.xlane.xlu0 %4845  ;;  %vm4882_vm12 = vmor %vm4880_vm11, %vm4881_vm10  ;;  %12031 = vst [vmem:[#allocation48_spill] sm:$0xff] %v10762_v2 }
 0xbc8   : > { %v4877_v33 = vsub.f32 1.0, %v4876_v16  ;;  %6754 = vrcp.f32 %v4846_v13  ;;  %v5132_v51 = vpop.permute.xlu1 %5131  ;;  %v4901_v34 = vand.u32 2147483648, %v4846_v13  ;;  %v4899_v44 = vand.u32 2147483647, %v4846_v13 }
 0xbc9   : > { %5150 = vmatpush.bf16.msrb.mxu1 %v5132_v51  ;;  %vm4895_vm15 = vweird.f32 %v4846_v13 }
 0xbca   : > { %v4878_v48 = vmul.f32 %v6753_v29, %v4877_v33  ;;  %v4902_v33 = vor.u32 1.1754944e-38, %v4901_v34  ;;  %vm4900_vm2 = vcmp.eq.f32.partialorder %v4899_v44, 8.507059e+37  ;;  %v12037_v34 = vld [vmem:[#allocation56_spill] sm:$0xff] }
 0xbcb   : > { %6282 = vmatmul.msk.bf16.gmra.mxu2 %vm421_vm0, %v12028_v22 }
 0xbcc   : > { %v4879_v4 = vadd.f32 %v6753_v29, %v4878_v48 }
 0xbcd   : > { %5151 = vmatpush.bf16.msrb.mxu1 %v5130_v14 }
 0xbce   : > { %v6755_v60 = vpop.eup %6754  ;;  %v4883_v37 = vsel %vm4882_vm12, %v6753_v29, %v4879_v4 }
 0xbcf   : > { %v4891_v3 = vmul.f32 %v6755_v60, %v4846_v13  ;;  %vm4896_vm13 = vweird.f32 %v6755_v60  ;;  %v4888_v16 = vsel %vm4885_vm14, %v4887_v12, %v4883_v37  ;;  %v6933_v13 = vld [vmem:[%s7594_s17 + $0x10] sm:$0xff] }
 0xbd0   : > { %vm4897_vm1 = vmor %vm4895_vm15, %vm4896_vm13  ;;  %v10765_v22 = vmul.f32 %v10601_v35, %v4888_v16  ;;  %v10778_v35 = vpop.f32.mrf.mxu2 }
 0xbd1   : > { %v4892_v8 = vsub.f32 1.0, %v4891_v3  ;;  %v10760_v15 = vpop.f32.mrf.mxu3  ;;  %v12033_v3 = vld [vmem:[#allocation50_spill] sm:$0xff]  ;;  %12035 = vst [vmem:[#allocation52_spill] sm:$0xff] %v10778_v35 }
 0xbd2   : > { %12030 = vst [vmem:[#allocation47_spill] sm:$0xff] %v10760_v15 }
 0xbd3   : > { %v4893_v58 = vmul.f32 %v6755_v60, %v4892_v8 }
 0xbd5   : > { %v4894_v25 = vadd.f32 %v6755_v60, %v4893_v58 }
 0xbd7   : > { %v4898_v51 = vsel %vm4897_vm1, %v6755_v60, %v4894_v25  ;;  %v5738_v60 = vpop.permute.xlu1 %5737 }
 0xbd8   : > { %v4903_v48 = vsel %vm4900_vm2, %v4902_v33, %v4898_v51  ;;  %v10784_v37 = vpop.f32.mrf.mxu2 }
 0xbd9   : > { %v10768_v29 = vmul.f32 %v10625_v17, %v4903_v48  ;;  %v10770_v14 = vpop.f32.mrf.mxu3  ;;  %12038 = vst [vmem:[#allocation56_spill] sm:$0xff] %v10784_v37 }
 0xbda   : > { %12032 = vst [vmem:[#allocation49_spill] sm:$0xff] %v10770_v14  ;;  %v5740_v4 = vpop.permute.xlu0 %5739 }
 0xbdb   : > { %5761 = vmatpush.bf16.msrb.mxu3 %v5740_v4  ;;  %6283 = vmatmul.msk.bf16.gmra.mxu2 %vm421_vm0, %v12033_v3 }
 0xbdf   : > { %5762 = vmatpush.bf16.msrb.mxu3 %v5738_v60 }
 0xbe0   : > { %v4545_v44 = vpop.f32.mrf.mxu2 }
 0xbe1   : > { %v10776_v32 = vpop.f32.mrf.mxu3 }
 0xbe2   : > { %12034 = vst [vmem:[#allocation51_spill] sm:$0xff] %v10776_v32  ;;  %v5128_v42 = vpop.permute.xlu0 %5127 }
 0xbe3   : > { %5152 = vmatpush.bf16.msrb.mxu1 %v5128_v42  ;;  %v6932_v42 = vld [vmem:[%s7594_s17] sm:$0xff] }
 0xbe9   : > { %v10780_v17 = vpop.f32.mrf.mxu3 }
 0xbea   : > { %12036 = vst [vmem:[#allocation50_spill] sm:$0xff] %v10780_v17  ;;  %v5736_v8 = vpop.permute.xlu0 %5735 }
 0xbeb   : > { %5763 = vmatpush.bf16.msrb.mxu3 %v5736_v8  ;;  %6284 = vmatmul.msk.bf16.gmra.mxu2 %vm421_vm0, %v12037_v34 }
 0xbf1   : > { %v10786_v58 = vpop.f32.mrf.mxu3 }
 0xbf2   : > { %12039 = vst [vmem:[#allocation59_spill] sm:$0xff] %v10786_v58 }
 0xbf9   : > { %v4594_v12 = vpop.f32.mrf.mxu3 }
 0xbfa   : > { %v10788_v25 = vadd.f32 %v4594_v12, %v4545_v44 }
 0xbfb   : > { %6285 = vmatmul.msk.bf16.gmra.mxu2 %vm421_vm0, %v10348_v11  ;;  %v10796_v4 = vpop.xlane.xlu1 %4779 }
 0xbfc   : > { %12040 = vst [vmem:[#allocation60_spill] sm:$0xff] %v10788_v25 }
 0xbfe   : > { %v4548_v16 = vpop.f32.mrf.mxu2 }
 0xc01   : > { %v4597_v33 = vpop.f32.mrf.mxu3 }
 0xc02   : > { %v10792_v51 = vadd.f32 %v4597_v33, %v4548_v16 }
 0xc04   : > { %12041 = vst [vmem:[#allocation61_spill] sm:$0xff] %v10792_v51 }
 0xc06   : > { %v10794_v48 = vpop.f32.mrf.mxu2 }
 0xc07   : > { %12042 = vst [vmem:[#allocation62_spill] sm:$0xff] %v10794_v48 }
 0xc0e   : > { %v5301_v3 = vpop.f32.mrf.mxu2 }
 0xc0f   : > { %v5341_v60 = vmul.f32 0.17677669, %v5301_v3 }
 0xc11   : > { %v5357_v8 = vadd.f32 %v6932_v42, %v5341_v60 }
 0xc13   : > { %5373 = vmax.xlane.f32.xlu1 %v5357_v8  ;;  %v5126_v34 = vpop.permute.xlu1 %5125 }
 0xc14   : > { %5153 = vmatpush.bf16.msrb.mxu1 %v5126_v34  ;;  %v6934_v34 = vld [vmem:[%s7594_s17 + $0x20] sm:$0xff] }
 0xc16   : > { %v5303_v44 = vpop.f32.mrf.mxu2 }
 0xc17   : > { %v5342_v12 = vmul.f32 0.17677669, %v5303_v44 }
 0xc19   : > { %v5358_v11 = vadd.f32 %v10486_v9, %v5342_v12 }
 0xc1b   : > { %5375 = vmax.xlane.f32.xlu2 %v5358_v11 }
 0xc1e   : > { %v5306_v16 = vpop.f32.mrf.mxu2 }
 0xc1f   : > { %v5343_v33 = vmul.f32 0.17677669, %v5306_v16 }
 0xc21   : > { %v5359_v40 = vadd.f32 %v6933_v13, %v5343_v33 }
 0xc23   : > { %5377 = vmax.xlane.f32.xlu1 %v5359_v40 }
 0xc26   : > { %v5308_v48 = vpop.f32.mrf.mxu2 }
 0xc27   : > { %v5344_v51 = vmul.f32 0.17677669, %v5308_v48 }
 0xc29   : > { %v10802_v3 = vadd.f32 %v10527_v18, %v5344_v51 }
 0xc2b   : > { %5379 = vmax.xlane.f32.xlu2 %v10802_v3 }
 0xc2e   : > { %v5311_v60 = vpop.f32.mrf.mxu2 }
 0xc2f   : > { %v5345_v42 = vmul.f32 0.17677669, %v5311_v60  ;;  %v6935_v60 = vld [vmem:[%s7594_s17 + $0x38] sm:$0xff] }
 0xc31   : > { %v5361_v44 = vadd.f32 %v6934_v34, %v5345_v42 }
 0xc33   : > { %5381 = vmax.xlane.f32.xlu1 %v5361_v44 }
 0xc36   : > { %v5313_v9 = vpop.f32.mrf.mxu2 }
 0xc37   : > { %v5346_v12 = vmul.f32 0.17677669, %v5313_v9 }
 0xc39   : > { %v10807_v16 = vadd.f32 %v10565_v26, %v5346_v12 }
 0xc3b   : > { %5383 = vmax.xlane.f32.xlu2 %v10807_v16 }
 0xc3e   : > { %v5316_v13 = vpop.f32.mrf.mxu2 }
 0xc3f   : > { %v5347_v48 = vmul.f32 0.17677669, %v5316_v13  ;;  %v12043_v13 = vld [vmem:[#allocation46_spill] sm:$0xff] }
 0xc41   : > { %v10811_v18 = vadd.f32 %v10582_v7, %v5347_v48  ;;  %v10828_v48 = vpop.xlane.xlu2 %4781 }
 0xc43   : > { %5385 = vmax.xlane.f32.xlu1 %v10811_v18 }
 0xc46   : > { %v5318_v51 = vpop.f32.mrf.mxu2 }
 0xc47   : > { %v5348_v33 = vmul.f32 0.17677669, %v5318_v51 }
 0xc49   : > { %v10815_v25 = vadd.f32 %v6935_v60, %v5348_v33 }
 0xc4b   : > { %5387 = vmax.xlane.f32.xlu2 %v10815_v25 }
 0xc4e   : > { %v5321_v42 = vpop.f32.mrf.mxu2 }
 0xc4f   : > { %v5349_v34 = vmul.f32 0.17677669, %v5321_v42 }
 0xc51   : > { %v10819_v26 = vadd.f32 %v10706_v21, %v5349_v34  ;;  %v4797_v21 = vsub.f32 %v10207_v57, %v10505_v30 }
 0xc53   : > { %5389 = vmax.xlane.f32.xlu2 %v10819_v26  ;;  %v4815_v42 = vmul.f32 1.442695, %v4797_v21 }
 0xc56   : > { %v5323_v9 = vpop.f32.mrf.mxu2 }
 0xc57   : > { %v5350_v12 = vmul.f32 0.17677669, %v5323_v9 }
 0xc59   : > { %v10823_v7 = vadd.f32 %v10553_v28, %v5350_v12  ;;  %v4798_v12 = vsub.f32 %v10530_v47, %v10643_v1  ;;  %v4716_v47 = vpop.f32.mrf.mxu0 }
 0xc5b   : > { %5391 = vmax.xlane.f32.xlu1 %v10823_v7 }
 0xc5e   : > { %v10837_v37 = vpop.f32.mrf.mxu2 }
 0xc74   : > { %5123 = vrot.lane.b32.xlu1 %v12043_v13, %s7045_s11  ;;  %s6288_s11 = sshll.u32 %s7103_s25, 3 }
 0xc75   : > { %s5982_s16 = scalar_lea.hbm %s11713_s6, %s6288_s11  ;;  %s6993_s11 = scalar_lea.hbm %s11713_s6, 16 }
 0xc76   : > { %s5986_s28 = sshll.u32 %s5982_s16, 4  ;;  %s5987_s28 = int_to_ptr.hbm [resolvable:$true] %s5986_s28 }
 0xc77   : > { %s6987_s10 = sshra.s32 %s5987_s28, 4  ;;  %s6988_s10 = int_to_ptr.hbm [resolvable:$true] %s6987_s10 }
 0xc78   : > { %s6989_s25 = scalar_lea.hbm %s6988_s10, 8  ;;  %p6994_p4 = scmp.lt.s32.totalorder %s6988_s10, %s11713_s6 }
 0xc79   : > { %p6990_p1 = scmp.ne.s32.totalorder %s6988_s10, %s6989_s25  ;;  %p6995_p7 = scmp.lt.s32.totalorder %s6993_s11, %s6989_s25 }
 0xc7b   : > { %p6991_p2 = pnand %p6990_p1, %p7120_p5  ;;  %p6996_p8 = por %p6995_p7, %p6994_p4 }
 0xc7d   : > { %p6992_p3 = pneg %p6991_p2 }
 0xc7f   : > { %p6997_p9 = pnand %p6996_p8, %p6992_p3 }
 0xc86   : > { %v5374_v51 = vpop.xlane.xlu1 %5373 }
 0xc87   : > { %v5405_v33 = vsub.f32 %v5357_v8, %v5374_v51  ;;  %v4817_v8 = vmul.f32 1.442695, %v4798_v12 }
 0xc89   : > { %v5421_v60 = vmul.f32 1.442695, %v5405_v33  ;;  %v5328_v33 = vpop.f32.mrf.mxu2 }
 0xc8a   : > { %v5352_v12 = vmul.f32 0.17677669, %v5328_v33  ;;  %v6937_v33 = vld [vmem:[%s7594_s17 + $0x50] sm:$0xff] }
 0xc8b   : > { %6756 = vpow2.f32 %v5421_v60 }
 0xc8c   : > { %6758 = vpow2.f32 %v4815_v42 }
 0xc8e   : > { %v5376_v34 = vpop.xlane.xlu2 %5375 }
 0xc8f   : > { %v5406_v9 = vsub.f32 %v5358_v11, %v5376_v34 }
 0xc91   : > { %v10832_v58 = vpop.eup %6756  ;;  %v5423_v28 = vmul.f32 1.442695, %v5406_v9  ;;  %v10848_v34 = vpop.f32.mrf.mxu2 }
 0xc92   : > { %5453 = vadd.xlane.f32.xlu0 %v10832_v58  ;;  %v10839_v51 = vpop.eup %6758 }
 0xc93   : > { %6760 = vpow2.f32 %v5423_v28 }
 0xc94   : > { %6762 = vpow2.f32 %v4817_v8 }
 0xc96   : > { %v5378_v57 = vpop.xlane.xlu1 %5377 }
 0xc97   : > { %v5407_v11 = vsub.f32 %v5359_v40, %v5378_v57  ;;  %v4718_v40 = vpop.f32.mrf.mxu0  ;;  %v6936_v57 = vld [vmem:[%s7594_s17 + $0x58] sm:$0xff] }
 0xc98   : > { %v4742_v2 = vmul.f32 0.17677669, %v4718_v40 }
 0xc99   : > { %v10841_v30 = vpop.eup %6760  ;;  %v5425_v60 = vmul.f32 1.442695, %v5407_v11  ;;  %v10854_v11 = vadd.f32 %v6936_v57, %v5352_v12  ;;  %v6938_v12 = vld [vmem:[%s7594_s17 + $0x68] sm:$0xff] }
 0xc9a   : > { %5455 = vadd.xlane.f32.xlu2 %v10841_v30  ;;  %4847 = vadd.xlane.f32.xlu0 %v10839_v51  ;;  %v10845_v21 = vpop.eup %6762  ;;  %v10876_v15 = vadd.f32 %v6936_v57, %v4742_v2 }
 0xc9b   : > { %6764 = vpow2.f32 %v5425_v60  ;;  %v5333_v60 = vpop.f32.mrf.mxu2 }
 0xc9e   : > { %v5380_v8 = vpop.xlane.xlu2 %5379 }
 0xca1   : > { %v10850_v9 = vpop.eup %6764 }
 0xca2   : > { %4849 = vadd.xlane.f32.xlu0 %v10845_v21 }
 0xca6   : > { %v5382_v1 = vpop.xlane.xlu1 %5381 }
 0xca7   : > { %v5409_v42 = vsub.f32 %v5361_v44, %v5382_v1  ;;  %v4741_v44 = vmul.f32 0.17677669, %v4716_v47  ;;  %v4721_v1 = vpop.f32.mrf.mxu0  ;;  %v4802_v47 = vsub.f32 %v10351_v38, %v10718_v27 }
 0xca9   : > { %v5429_v28 = vmul.f32 1.442695, %v5409_v42  ;;  %v5354_v42 = vmul.f32 0.17677669, %v5333_v60  ;;  %v10863_v35 = vadd.f32 %v6937_v33, %v4741_v44  ;;  %v4743_v60 = vmul.f32 0.17677669, %v4721_v1 }
 0xcaa   : > { %5457 = vadd.xlane.f32.xlu0 %v10850_v9 }
 0xcab   : > { %6766 = vpow2.f32 %v5429_v28  ;;  %v10866_v32 = vadd.f32 %v6938_v12, %v5354_v42  ;;  %v4825_v42 = vmul.f32 1.442695, %v4802_v47  ;;  %v10879_v55 = vadd.f32 %v6939_v53, %v4743_v60 }
 0xcae   : > { %v5384_v28 = vpop.xlane.xlu2 %5383 }
 0xcaf   : > { %v4723_v14 = vpop.f32.mrf.mxu0 }
 0xcb1   : > { %v10856_v17 = vpop.eup %6766 }
 0xcb2   : > { %5733 = vrot.lane.b32.xlu2 %v12043_v13, %s7046_s12  ;;  %5395 = vmax.xlane.f32.xlu0 %v10854_v11  ;;  %v4799_v13 = vsub.f32 %v10235_v6, %v10518_v56  ;;  %v4800_v6 = vsub.f32 %v10568_v43, %v10698_v31  ;;  %v5410_v43 = vsub.f32 %v10807_v16, %v5384_v28 }
 0xcb3   : > { %5461 = vadd.xlane.f32.xlu1 %v10856_v17  ;;  %v5408_v31 = vsub.f32 %v10802_v3, %v5380_v8 }
 0xcb4   : > { %v4819_v44 = vmul.f32 1.442695, %v4799_v13  ;;  %v4821_v38 = vmul.f32 1.442695, %v4800_v6  ;;  %v5431_v13 = vmul.f32 1.442695, %v5410_v43 }
 0xcb5   : > { %v5427_v47 = vmul.f32 1.442695, %v5408_v31  ;;  %v6940_v6 = vld [vmem:[%s7594_s17 + $0x78] sm:$0xff] }
 0xcb6   : > { %6768 = vpow2.f32 %v4819_v44  ;;  %v5386_v28 = vpop.xlane.xlu1 %5385 }
 0xcb7   : > { %6770 = vpow2.f32 %v4825_v42  ;;  %v10886_v40 = vpop.f32.mrf.mxu0  ;;  %v5411_v8 = vsub.f32 %v10811_v18, %v5386_v28  ;;  %v4801_v18 = vsub.f32 %v10585_v24, %v10744_v19 }
 0xcb8   : > { %6772 = vpow2.f32 %v4821_v38 }
 0xcb9   : > { %v5433_v43 = vmul.f32 1.442695, %v5411_v8  ;;  %v6941_v8 = vld [vmem:[%s7594_s17 + $0x70] sm:$0xff] }
 0xcba   : > { %4783 = vmax.xlane.f32.xlu0 %v10863_v35 }
 0xcbb   : > { %5399 = vmax.xlane.f32.xlu1 %v10866_v32 }
 0xcbc   : > { %v10888_v2 = vpop.eup %6768 }
 0xcbd   : > { %v10890_v1 = vpop.eup %6770 }
 0xcbe   : > { %v10874_v39 = vpop.xlane.xlu2 %5387 }
 0xcbf   : > { %v4728_v44 = vpop.f32.mrf.mxu0  ;;  %v5412_v19 = vsub.f32 %v10815_v25, %v10874_v39 }
 0xcc0   : > { %v4746_v16 = vmul.f32 0.17677669, %v4728_v44 }
 0xcc2   : > { %4785 = vmax.xlane.f32.xlu0 %v10876_v15  ;;  %v10905_v38 = vadd.f32 %v6940_v6, %v4746_v16  ;;  %v12044_v16 = vpack.c.bf16 %v10768_v29, %v10765_v22  ;;  %v4803_v22 = vsub.f32 %v10709_v10, %v10796_v4  ;;  %v4804_v10 = vsub.f32 %v10556_v49, %v10828_v48 }
 0xcc3   : > { %4787 = vmax.xlane.f32.xlu1 %v10879_v55  ;;  %v4745_v4 = vmul.f32 0.17677669, %v10886_v40 }
 0xcc4   : > { %v4827_v29 = vmul.f32 1.442695, %v4803_v22 }
 0xcc6   : > { %v5390_v56 = vpop.xlane.xlu2 %5389 }
 0xcc7   : > { %v5413_v27 = vsub.f32 %v10819_v26, %v5390_v56  ;;  %v10896_v26 = vpop.eup %6772  ;;  %v4744_v56 = vmul.f32 0.17677669, %v4723_v14 }
 0xcc9   : > { %v5437_v57 = vmul.f32 1.442695, %v5413_v27  ;;  %v5351_v27 = vmul.f32 0.17677669, %v10837_v37  ;;  %v10914_v31 = vadd.f32 %v6938_v12, %v4744_v56  ;;  %v4823_v37 = vmul.f32 1.442695, %v4801_v18 }
 0xcca   : > { %4851 = vadd.xlane.f32.xlu0 %v10888_v2  ;;  %v5435_v56 = vmul.f32 1.442695, %v5412_v19 }
 0xccb   : > { %6774 = vpow2.f32 %v5437_v57  ;;  %4857 = vadd.xlane.f32.xlu1 %v10890_v1 }
 0xccc   : > { %6776 = vpow2.f32 %v5431_v13  ;;  %v10916_v13 = vadd.f32 %v6937_v33, %v5351_v27  ;;  %v5336_v33 = vpop.f32.mrf.mxu2 }
 0xccd   : > { %6778 = vpow2.f32 %v5427_v47  ;;  %v5353_v47 = vmul.f32 0.17677669, %v10848_v34  ;;  %v5355_v24 = vmul.f32 0.17677669, %v5336_v33 }
 0xcce   : > { %v5392_v57 = vpop.xlane.xlu1 %5391  ;;  %6780 = vpow2.f32 %v5433_v43 }
 0xccf   : > { %v10925_v12 = vadd.f32 %v6939_v53, %v5353_v47  ;;  %v5414_v28 = vsub.f32 %v10823_v7, %v5392_v57  ;;  %6782 = vpow2.f32 %v4823_v37  ;;  %v10936_v53 = vadd.f32 %v6941_v8, %v5355_v24 }
 0xcd0   : > { %v10959_v37 = vadd.f32 %v6941_v8, %v4745_v4 }
 0xcd1   : > { %v10898_v60 = vpop.eup %6774  ;;  %v5439_v34 = vmul.f32 1.442695, %v5414_v28 }
 0xcd2   : > { %4853 = vadd.xlane.f32.xlu0 %v10896_v26  ;;  %v10902_v42 = vpop.eup %6776 }
 0xcd3   : > { %5469 = vadd.xlane.f32.xlu1 %v10898_v60  ;;  %v10907_v3 = vpop.eup %6778  ;;  %6784 = vpow2.f32 %v5439_v34 }
 0xcd4   : > { %v10923_v44 = vpop.eup %6780  ;;  %6786 = vpow2.f32 %v5435_v56  ;;  %v5338_v25 = vpop.f32.mrf.mxu2 }
 0xcd5   : > { %v10938_v27 = vpop.eup %6782  ;;  %6788 = vpow2.f32 %v4827_v29  ;;  %v5356_v57 = vmul.f32 0.17677669, %v5338_v25 }
 0xcd7   : > { %v10952_v18 = vadd.f32 %v6940_v6, %v5356_v57 }
 0xcd9   : > { %v10944_v7 = vpop.eup %6784 }
 0xcda   : > { %5463 = vadd.xlane.f32.xlu0 %v10902_v42  ;;  %v10946_v39 = vpop.eup %6786 }
 0xcdb   : > { %4793 = vmax.xlane.f32.xlu1 %v10905_v38  ;;  %5459 = vadd.xlane.f32.xlu2 %v10907_v3  ;;  %v10950_v43 = vpop.eup %6788 }
 0xce2   : > { %4789 = vmax.xlane.f32.xlu0 %v10914_v31 }
 0xce3   : > { %5393 = vmax.xlane.f32.xlu2 %v10916_v13 }
 0xce6   : > { %v5124_v14 = vpop.permute.xlu1 %5123 }
 0xce7   : > { %5154 = vmatpush.bf16.msrb.mxu1 %v5124_v14  ;;  %v4829_v14 = vmul.f32 1.442695, %v4804_v10 }
 0xcea   : > { %5465 = vadd.xlane.f32.xlu0 %v10923_v44  ;;  %5155 = vmatmul.bf16.vlgmr.msrb.gmra.mxu1 %v12044_v16 }
 0xceb   : > { %5397 = vmax.xlane.f32.xlu2 %v10925_v12 }
 0xcf2   : > { %5401 = vmax.xlane.f32.xlu0 %v10936_v53 }
 0xcf3   : > { %4855 = vadd.xlane.f32.xlu2 %v10938_v27 }
 0xcfa   : > { %5471 = vadd.xlane.f32.xlu0 %v10944_v7 }
 0xcfb   : > { %5467 = vadd.xlane.f32.xlu2 %v10946_v39 }
 0xd02   : > { %4859 = vadd.xlane.f32.xlu0 %v10950_v43 }
 0xd03   : > { %5403 = vmax.xlane.f32.xlu2 %v10952_v18 }
 0xd05   : > { %v5454_v47 = vpop.xlane.xlu0 %5453 }
 0xd06   : > { %6790 = vrcp.f32 %v5454_v47  ;;  %v5496_v29 = vand.u32 2147483648, %v5454_v47  ;;  %vm5490_vm4 = vweird.f32 %v5454_v47  ;;  %v5494_v57 = vand.u32 2147483647, %v5454_v47 }
 0xd07   : > { %6792 = vpow2.f32 %v4829_v14 }
 0xd08   : > { %v5497_v54 = vor.u32 1.1754944e-38, %v5496_v29  ;;  %vm5495_vm7 = vcmp.eq.f32.partialorder %v5494_v57, 8.507059e+37 }
 0xd0b   : > { %4791 = vmax.xlane.f32.xlu2 %v10959_v37 }
 0xd0c   : > { %v6791_v33 = vpop.eup %6790 }
 0xd0d   : > { %v5486_v6 = vmul.f32 %v6791_v33, %v5454_v47  ;;  %v5456_v16 = vpop.xlane.xlu2 %5455  ;;  %v4848_v28 = vpop.xlane.xlu0 %4847  ;;  %vm5491_vm3 = vweird.f32 %v6791_v33 }
 0xd0e   : > { %6794 = vrcp.f32 %v5456_v16  ;;  %v10962_v34 = vpop.eup %6792  ;;  %vm5492_vm5 = vmor %vm5490_vm4, %vm5491_vm3  ;;  %v5511_v4 = vand.u32 2147483648, %v5456_v16  ;;  %v5509_v62 = vand.u32 2147483647, %v5456_v16  ;;  %vm5505_vm8 = vweird.f32 %v5456_v16 }
 0xd0f   : > { %v5487_v24 = vsub.f32 1.0, %v5486_v6  ;;  %6796 = vrcp.f32 %v4848_v28  ;;  %v4916_v29 = vand.u32 2147483648, %v4848_v28  ;;  %vm4910_vm12 = vweird.f32 %v4848_v28 }
 0xd10   : > { %v5512_v23 = vor.u32 1.1754944e-38, %v5511_v4  ;;  %vm5510_vm10 = vcmp.eq.f32.partialorder %v5509_v62, 8.507059e+37 }
 0xd11   : > { %v5488_v19 = vmul.f32 %v6791_v33, %v5487_v24  ;;  %v4917_v4 = vor.u32 1.1754944e-38, %v4916_v29 }
 0xd13   : > { %4861 = vadd.xlane.f32.xlu2 %v10962_v34  ;;  %v5489_v40 = vadd.f32 %v6791_v33, %v5488_v19 }
 0xd14   : > { %v6795_v49 = vpop.eup %6794 }
 0xd15   : > { %v6797_v48 = vpop.eup %6796  ;;  %v5501_v8 = vmul.f32 %v6795_v49, %v5456_v16  ;;  %v5734_v56 = vpop.permute.xlu2 %5733  ;;  %v5493_v6 = vsel %vm5492_vm5, %v6791_v33, %v5489_v40  ;;  %vm5506_vm6 = vweird.f32 %v6795_v49  ;;  %v4914_v16 = vand.u32 2147483647, %v4848_v28 }
 0xd16   : > { %v4850_v22 = vpop.xlane.xlu0 %4849  ;;  %v4906_v25 = vmul.f32 %v6797_v48, %v4848_v28  ;;  %5764 = vmatpush.bf16.msrb.mxu3 %v5734_v56  ;;  %v5498_v45 = vsel %vm5495_vm7, %v5497_v54, %v5493_v6  ;;  %vm5507_vm9 = vmor %vm5505_vm8, %vm5506_vm6  ;;  %vm4911_vm11 = vweird.f32 %v6797_v48 }
 0xd17   : > { %6798 = vrcp.f32 %v4850_v22  ;;  %v5502_v10 = vsub.f32 1.0, %v5501_v8  ;;  %v5499_v33 = vmul.f32 %v10832_v58, %v5498_v45  ;;  %vm10969_vm13 = vmor %vm4910_vm12, %vm4911_vm11  ;;  %v4929_v62 = vand.u32 2147483647, %v4850_v22 }
 0xd18   : > { %v4907_v14 = vsub.f32 1.0, %v4906_v25  ;;  %vm4925_vm15 = vweird.f32 %v4850_v22  ;;  %vm4915_vm1 = vcmp.eq.f32.partialorder %v4914_v16, 8.507059e+37 }
 0xd19   : > { %v5503_v24 = vmul.f32 %v6795_v49, %v5502_v10  ;;  %v4931_v10 = vand.u32 2147483648, %v4850_v22  ;;  %vm4930_vm3 = vcmp.eq.f32.partialorder %v4929_v62, 8.507059e+37 }
 0xd1a   : > { %v4908_v19 = vmul.f32 %v6797_v48, %v4907_v14 }
 0xd1b   : > { %v5504_v50 = vadd.f32 %v6795_v49, %v5503_v24 }
 0xd1c   : > { %v4909_v25 = vadd.f32 %v6797_v48, %v4908_v19 }
 0xd1d   : > { %v6799_v46 = vpop.eup %6798  ;;  %v5508_v56 = vsel %vm5507_vm9, %v6795_v49, %v5504_v50 }
 0xd1e   : > { %v4921_v47 = vmul.f32 %v6799_v46, %v4850_v22  ;;  %v10965_v8 = vpop.xlane.xlu0 %5457  ;;  %v5513_v20 = vsel %vm5510_vm10, %v5512_v23, %v5508_v56  ;;  %vm4926_vm14 = vweird.f32 %v6799_v46  ;;  %v4913_v23 = vsel %vm10969_vm13, %v6797_v48, %v4909_v25 }
 0xd1f   : > { %v5514_v40 = vmul.f32 %v10841_v30, %v5513_v20  ;;  %vm4927_vm2 = vmor %vm4925_vm15, %vm4926_vm14  ;;  %v4932_v20 = vor.u32 1.1754944e-38, %v4931_v10  ;;  %v4918_v30 = vsel %vm4915_vm1, %v4917_v4, %v4913_v23  ;;  %vm5520_vm13 = vweird.f32 %v10965_v8 }
 0xd20   : > { %v4922_v57 = vsub.f32 1.0, %v4921_v47  ;;  %v4919_v56 = vmul.f32 %v10839_v51, %v4918_v30 }
 0xd21   : > { %v5725_v49 = vpack.c.bf16 %v5514_v40, %v5499_v33 }
 0xd22   : > { %v4923_v50 = vmul.f32 %v6799_v46, %v4922_v57 }
 0xd23   : > { %5765 = vmatmul.bf16.vlgmr.msrb.gmra.mxu3 %v5725_v49 }
 0xd24   : > { %v4924_v45 = vadd.f32 %v6799_v46, %v4923_v50 }
 0xd26   : > { %v5396_v58 = vpop.xlane.xlu0 %5395  ;;  %v4928_v28 = vsel %vm4927_vm2, %v6799_v46, %v4924_v45  ;;  %v10976_v6 = vpop.xlane.xlu1 %5461 }
 0xd27   : > { %v5416_v14 = vsub.f32 %v10854_v11, %v5396_v58  ;;  %v4933_v24 = vsel %vm4930_vm3, %v4932_v20, %v4928_v28 }
 0xd28   : > { %v4934_v48 = vmul.f32 %v10845_v21, %v4933_v24 }
 0xd29   : > { %v5443_v19 = vmul.f32 1.442695, %v5416_v14 }
 0xd2a   : > { %v5116_v22 = vpack.c.bf16 %v4934_v48, %v4919_v56 }
 0xd2b   : > { %6800 = vpow2.f32 %v5443_v19 }
 0xd2c   : > { %5160 = vmatmul.bf16.gmra.mxu1 %v5116_v22 }
 0xd2e   : > { %v4784_v47 = vpop.xlane.xlu0 %4783  ;;  %v5400_v33 = vpop.xlane.xlu1 %5399 }
 0xd2f   : > { %v4805_v25 = vsub.f32 %v10863_v35, %v4784_v47  ;;  %v5418_v11 = vsub.f32 %v10866_v32, %v5400_v33 }
 0xd31   : > { %v10981_v40 = vpop.eup %6800  ;;  %v4831_v46 = vmul.f32 1.442695, %v4805_v25  ;;  %v5447_v51 = vmul.f32 1.442695, %v5418_v11 }
 0xd32   : > { %5475 = vadd.xlane.f32.xlu0 %v10981_v40 }
 0xd33   : > { %6802 = vpow2.f32 %v4831_v46  ;;  %v5526_v46 = vand.u32 2147483648, %v10965_v8 }
 0xd34   : > { %6804 = vpow2.f32 %v5447_v51 }
 0xd35   : > { %6806 = vrcp.f32 %v10965_v8  ;;  %v5527_v22 = vor.u32 1.1754944e-38, %v5526_v46 }
 0xd36   : > { %v10985_v29 = vpop.xlane.xlu0 %4785  ;;  %v10998_v49 = vpop.xlane.xlu1 %4787 }
 0xd39   : > { %v10987_v57 = vpop.eup %6802 }
 0xd3a   : > { %4863 = vadd.xlane.f32.xlu2 %v10987_v57  ;;  %v10991_v21 = vpop.eup %6804 }
 0xd3b   : > { %v10994_v16 = vpop.eup %6806 }
 0xd3c   : > { %v5516_v50 = vmul.f32 %v10994_v16, %v10965_v8  ;;  %vm5521_vm9 = vweird.f32 %v10994_v16 }
 0xd3d   : > { %vm11026_vm14 = vmor %vm5520_vm13, %vm5521_vm9  ;;  %vm5550_vm9 = vweird.f32 %v10976_v6 }
 0xd3e   : > { %v4852_v35 = vpop.xlane.xlu0 %4851  ;;  %v5517_v4 = vsub.f32 1.0, %v5516_v50  ;;  %v11015_v51 = vpop.xlane.xlu1 %4857 }
 0xd3f   : > { %6808 = vrcp.f32 %v4852_v35  ;;  %v4946_v24 = vand.u32 2147483648, %v4852_v35  ;;  %vm4940_vm5 = vweird.f32 %v4852_v35  ;;  %v4944_v56 = vand.u32 2147483647, %v4852_v35 }
 0xd40   : > { %v5518_v14 = vmul.f32 %v10994_v16, %v5517_v4 }
 0xd41   : > { %v4947_v11 = vor.u32 1.1754944e-38, %v4946_v24  ;;  %vm4945_vm10 = vcmp.eq.f32.partialorder %v4944_v56, 8.507059e+37 }
 0xd42   : > { %5479 = vadd.xlane.f32.xlu2 %v10991_v21 }
 0xd45   : > { %v6809_v10 = vpop.eup %6808 }
 0xd46   : > { %v4936_v32 = vmul.f32 %v6809_v10, %v4852_v35  ;;  %v4854_v54 = vpop.xlane.xlu0 %4853  ;;  %vm4941_vm4 = vweird.f32 %v6809_v10 }
 0xd47   : > { %6810 = vrcp.f32 %v4854_v54  ;;  %v4961_v48 = vand.u32 2147483648, %v4854_v54  ;;  %vm11008_vm6 = vmor %vm4940_vm5, %vm4941_vm4  ;;  %v4959_v25 = vand.u32 2147483647, %v4854_v54  ;;  %vm4955_vm8 = vweird.f32 %v4854_v54 }
 0xd48   : > { %v4937_v62 = vsub.f32 1.0, %v4936_v32  ;;  %v5519_v32 = vadd.f32 %v10994_v16, %v5518_v14 }
 0xd49   : > { %v4962_v50 = vor.u32 1.1754944e-38, %v4961_v48  ;;  %vm4960_vm12 = vcmp.eq.f32.partialorder %v4959_v25, 8.507059e+37 }
 0xd4a   : > { %v4938_v23 = vmul.f32 %v6809_v10, %v4937_v62  ;;  %v5523_v25 = vsel %vm11026_vm14, %v10994_v16, %v5519_v32  ;;  %v11047_v32 = vpop.xlane.xlu1 %5469  ;;  %vm4985_vm14 = vweird.f32 %v11015_v51 }
 0xd4c   : > { %v4939_v30 = vadd.f32 %v6809_v10, %v4938_v23 }
 0xd4d   : > { %v6811_v45 = vpop.eup %6810 }
 0xd4e   : > { %v4951_v20 = vmul.f32 %v6811_v45, %v4854_v54  ;;  %v11000_v58 = vpop.xlane.xlu0 %5463  ;;  %v11002_v28 = vpop.xlane.xlu2 %5459  ;;  %vm4956_vm7 = vweird.f32 %v6811_v45  ;;  %v4943_v33 = vsel %vm11008_vm6, %v6809_v10, %v4939_v30 }
 0xd4f   : > { %6812 = vrcp.f32 %v11000_v58  ;;  %vm4957_vm11 = vmor %vm4955_vm8, %vm4956_vm7  ;;  %v4948_v10 = vsel %vm4945_vm10, %v4947_v11, %v4943_v33  ;;  %v5539_v16 = vand.u32 2147483647, %v11002_v28  ;;  %vm5535_vm2 = vweird.f32 %v11002_v28 }
 0xd50   : > { %v4952_v19 = vsub.f32 1.0, %v4951_v20  ;;  %6814 = vrcp.f32 %v11002_v28  ;;  %vm5565_vm7 = vweird.f32 %v11000_v58 }
 0xd51   : > { %6816 = vrcp.f32 %v10976_v6  ;;  %vm5540_vm4 = vcmp.eq.f32.partialorder %v5539_v16, 8.507059e+37 }
 0xd52   : > { %v4953_v47 = vmul.f32 %v6811_v45, %v4952_v19  ;;  %v5524_v19 = vand.u32 2147483647, %v10965_v8  ;;  %6818 = vrcp.f32 %v11015_v51 }
 0xd54   : > { %v4954_v35 = vadd.f32 %v6811_v45, %v4953_v47  ;;  %vm5525_vm1 = vcmp.eq.f32.partialorder %v5524_v19, 8.507059e+37 }
 0xd55   : > { %v11019_v62 = vpop.eup %6812 }
 0xd56   : > { %v11021_v23 = vpop.xlane.xlu0 %4789  ;;  %v4958_v4 = vsel %vm4957_vm11, %v6811_v45, %v4954_v35  ;;  %v6815_v20 = vpop.eup %6814  ;;  %v4949_v45 = vmul.f32 %v10888_v2, %v4948_v10  ;;  %v5561_v33 = vmul.f32 %v11019_v62, %v11000_v58  ;;  %v5541_v2 = vand.u32 2147483648, %v11002_v28 }
 0xd57   : > { %v5394_v30 = vpop.xlane.xlu2 %5393  ;;  %v4963_v24 = vsel %vm4960_vm12, %v4962_v50, %v4958_v4  ;;  %v11024_v54 = vpop.eup %6816  ;;  %v5531_v56 = vmul.f32 %v6815_v20, %v11002_v28  ;;  %vm5536_vm15 = vweird.f32 %v6815_v20  ;;  %vm5566_vm6 = vweird.f32 %v11019_v62 }
 0xd58   : > { %v5415_v48 = vsub.f32 %v10916_v13, %v5394_v30  ;;  %v4964_v47 = vmul.f32 %v10896_v26, %v4963_v24  ;;  %v5546_v35 = vmul.f32 %v11024_v54, %v10976_v6  ;;  %v4806_v13 = vsub.f32 %v10876_v15, %v10985_v29  ;;  %vm5537_vm3 = vmor %vm5535_vm2, %vm5536_vm15 }
 0xd59   : > { %v5532_v11 = vsub.f32 1.0, %v5531_v56  ;;  %v5562_v50 = vsub.f32 1.0, %v5561_v33  ;;  %v5528_v30 = vsel %vm5525_vm1, %v5527_v22, %v5523_v25  ;;  %v5542_v24 = vor.u32 1.1754944e-38, %v5541_v2  ;;  %v11052_v56 = vpop.eup %6818  ;;  %vm11089_vm8 = vmor %vm5565_vm7, %vm5566_vm6 }
 0xd5a   : > { %v5441_v8 = vmul.f32 1.442695, %v5415_v48  ;;  %v5117_v26 = vpack.c.bf16 %v4964_v47, %v4949_v45  ;;  %v5547_v15 = vsub.f32 1.0, %v5546_v35  ;;  %v4833_v29 = vmul.f32 1.442695, %v4806_v13 }
 0xd5b   : > { %v5533_v46 = vmul.f32 %v6815_v20, %v5532_v11  ;;  %v5529_v45 = vmul.f32 %v10850_v9, %v5528_v30  ;;  %v4807_v22 = vsub.f32 %v10879_v55, %v10998_v49  ;;  %v5563_v25 = vmul.f32 %v11019_v62, %v5562_v50 }
 0xd5c   : > { %6820 = vpow2.f32 %v5441_v8  ;;  %5165 = vmatmul.bf16.gmra.mxu1 %v5117_v26  ;;  %v5548_v8 = vmul.f32 %v11024_v54, %v5547_v15  ;;  %v4808_v9 = vsub.f32 %v10914_v31, %v11021_v23  ;;  %v4563_v55 = vadd.f32 %v10711_v59, %v10694_v41  ;;  %v4794_v59 = vpop.xlane.xlu1 %4793 }
 0xd5d   : > { %v5534_v10 = vadd.f32 %v6815_v20, %v5533_v46  ;;  %vm5551_vm5 = vweird.f32 %v11024_v54  ;;  %v5564_v35 = vadd.f32 %v11019_v62, %v5563_v25  ;;  %v5571_v31 = vand.u32 2147483648, %v11000_v58 }
 0xd5e   : > { %v11050_v4 = vpop.xlane.xlu0 %5465  ;;  %v5549_v2 = vadd.f32 %v11024_v54, %v5548_v8  ;;  %v5569_v41 = vand.u32 2147483647, %v11000_v58  ;;  %v4837_v16 = vmul.f32 1.442695, %v4808_v9  ;;  %v5556_v30 = vand.u32 2147483648, %v10976_v6  ;;  %vm11106_vm10 = vmor %vm5550_vm9, %vm5551_vm5 }
 0xd5f   : > { %v5398_v14 = vpop.xlane.xlu2 %5397  ;;  %6822 = vrcp.f32 %v11050_v4  ;;  %v5538_v48 = vsel %vm5537_vm3, %v6815_v20, %v5534_v10  ;;  %v4991_v8 = vand.u32 2147483648, %v11015_v51  ;;  %vm4986_vm13 = vweird.f32 %v11052_v56 }
 0xd60   : > { %v5417_v19 = vsub.f32 %v10925_v12, %v5398_v14  ;;  %v5543_v47 = vsel %vm5540_vm4, %v5542_v24, %v5538_v48  ;;  %6824 = vpow2.f32 %v4833_v29  ;;  %v4981_v12 = vmul.f32 %v11052_v56, %v11015_v51  ;;  %vm11143_vm15 = vmor %vm4985_vm14, %vm4986_vm13 }
 0xd61   : > { %v5544_v11 = vmul.f32 %v10907_v3, %v5543_v47  ;;  %v4835_v3 = vmul.f32 1.442695, %v4807_v22  ;;  %v5554_v14 = vand.u32 2147483647, %v10976_v6  ;;  %v4810_v47 = vsub.f32 %v10905_v38, %v4794_v59 }
 0xd62   : > { %v11057_v28 = vpop.eup %6820  ;;  %v5445_v33 = vmul.f32 1.442695, %v5417_v19  ;;  %v4982_v26 = vsub.f32 1.0, %v4981_v12  ;;  %v5568_v19 = vsel %vm11089_vm8, %v11019_v62, %v5564_v35  ;;  %vm5570_vm11 = vcmp.eq.f32.partialorder %v5569_v41, 8.507059e+37 }
 0xd63   : > { %5473 = vadd.xlane.f32.xlu1 %v11057_v28  ;;  %v5726_v20 = vpack.c.bf16 %v5544_v11, %v5529_v45  ;;  %v5572_v45 = vor.u32 1.1754944e-38, %v5571_v31  ;;  %v5553_v62 = vsel %vm11106_vm10, %v11024_v54, %v5549_v2  ;;  %v5557_v22 = vor.u32 1.1754944e-38, %v5556_v30 }
 0xd64   : > { %6826 = vpow2.f32 %v5445_v33  ;;  %v4983_v6 = vmul.f32 %v11052_v56, %v4982_v26  ;;  %vm5555_vm12 = vcmp.eq.f32.partialorder %v5554_v14, 8.507059e+37  ;;  %v4841_v12 = vmul.f32 1.442695, %v4810_v47 }
 0xd65   : > { %v11071_v49 = vpop.eup %6822  ;;  %5770 = vmatmul.bf16.gmra.mxu3 %v5726_v20  ;;  %v5573_v33 = vsel %vm5570_vm11, %v5572_v45, %v5568_v19  ;;  %vm5580_vm4 = vweird.f32 %v11050_v4 }
 0xd66   : > { %v5402_v13 = vpop.xlane.xlu0 %5401  ;;  %v11084_v10 = vpop.eup %6824  ;;  %v5574_v35 = vmul.f32 %v10902_v42, %v5573_v33  ;;  %v4992_v42 = vor.u32 1.1754944e-38, %v4991_v8  ;;  %vm5581_vm1 = vweird.f32 %v11071_v49 }
 0xd67   : > { %v5419_v23 = vsub.f32 %v10936_v53, %v5402_v13  ;;  %v11079_v46 = vpop.xlane.xlu2 %4855  ;;  %v5156_v50 = vpop.f32.mrf.mxu1  ;;  %v5576_v53 = vmul.f32 %v11071_v49, %v11050_v4  ;;  %vm11166_vm5 = vmor %vm5580_vm4, %vm5581_vm1 }
 0xd68   : > { %6828 = vrcp.f32 %v11079_v46  ;;  %v11095_v58 = vadd.f32 %v5156_v50, %v4563_v55  ;;  %v5558_v55 = vsel %vm5555_vm12, %v5557_v22, %v5553_v62  ;;  %vm4970_vm6 = vweird.f32 %v11079_v46 }
 0xd69   : > { %v5449_v29 = vmul.f32 1.442695, %v5419_v23  ;;  %6830 = vpow2.f32 %v4835_v3  ;;  %v5577_v25 = vsub.f32 1.0, %v5576_v53  ;;  %v4984_v3 = vadd.f32 %v11052_v56, %v4983_v6 }
 0xd6a   : > { %v11097_v24 = vpop.eup %6826  ;;  %v4989_v23 = vand.u32 2147483647, %v11015_v51  ;;  %v5559_v41 = vmul.f32 %v10856_v17, %v5558_v55  ;;  %v4974_v51 = vand.u32 2147483647, %v11079_v46  ;;  %v5584_v22 = vand.u32 2147483647, %v11050_v4 }
 0xd6b   : > { %6832 = vpow2.f32 %v5449_v29  ;;  %4865 = vadd.xlane.f32.xlu1 %v11084_v10  ;;  %5477 = vadd.xlane.f32.xlu0 %v11097_v24  ;;  %v5578_v2 = vmul.f32 %v11071_v49, %v5577_v25  ;;  %v4988_v17 = vsel %vm11143_vm15, %v11052_v56, %v4984_v3  ;;  %v4976_v29 = vand.u32 2147483648, %v11079_v46 }
 0xd6c   : > { %6834 = vpow2.f32 %v4837_v16  ;;  %v5727_v30 = vpack.c.bf16 %v5574_v35, %v5559_v41  ;;  %vm4990_vm3 = vcmp.eq.f32.partialorder %v4989_v23, 8.507059e+37  ;;  %v5586_v25 = vand.u32 2147483648, %v11050_v4 }
 0xd6d   : > { %6836 = vrcp.f32 %v11047_v32  ;;  %v5579_v15 = vadd.f32 %v11071_v49, %v5578_v2  ;;  %v4993_v62 = vsel %vm4990_vm3, %v4992_v42, %v4988_v17  ;;  %vm4975_vm8 = vcmp.eq.f32.partialorder %v4974_v51, 8.507059e+37 }
 0xd6e   : > { %v11117_v11 = vpop.eup %6828  ;;  %v11120_v38 = vpop.xlane.xlu0 %5471  ;;  %vm5585_vm10 = vcmp.eq.f32.partialorder %v5584_v22, 8.507059e+37  ;;  %vm5610_vm3 = vweird.f32 %v11047_v32 }
 0xd6f   : > { %v4966_v9 = vmul.f32 %v11117_v11, %v11079_v46  ;;  %v11125_v20 = vpop.xlane.xlu2 %5467  ;;  %v11127_v54 = vpop.eup %6830  ;;  %vm4971_vm2 = vweird.f32 %v11117_v11  ;;  %v5583_v4 = vsel %vm11166_vm5, %v11071_v49, %v5579_v15  ;;  %v4994_v49 = vmul.f32 %v10890_v1, %v4993_v62 }
 0xd70   : > { %6838 = vrcp.f32 %v11125_v20  ;;  %vm11178_vm7 = vmor %vm4970_vm6, %vm4971_vm2  ;;  %v5601_v35 = vand.u32 2147483648, %v11125_v20  ;;  %vm5595_vm11 = vweird.f32 %v11125_v20  ;;  %vm5625_vm1 = vweird.f32 %v11120_v38 }
 0xd71   : > { %v11133_v13 = vpop.eup %6832  ;;  %v4967_v26 = vsub.f32 1.0, %v4966_v9  ;;  %6840 = vrcp.f32 %v11120_v38 }
 0xd72   : > { %v11137_v31 = vpop.eup %6834  ;;  %5481 = vadd.xlane.f32.xlu2 %v11133_v13  ;;  %6842 = vpow2.f32 %v4841_v12  ;;  %v4977_v12 = vor.u32 1.1754944e-38, %v4976_v29 }
 0xd73   : > { %v4968_v16 = vmul.f32 %v11117_v11, %v4967_v26  ;;  %4869 = vadd.xlane.f32.xlu0 %v11137_v31  ;;  %4867 = vadd.xlane.f32.xlu1 %v11127_v54  ;;  %v11150_v50 = vpop.eup %6836  ;;  %v5599_v26 = vand.u32 2147483647, %v11125_v20 }
 0xd74   : > { %v5606_v48 = vmul.f32 %v11150_v50, %v11047_v32  ;;  %vm5611_vm15 = vweird.f32 %v11150_v50 }
 0xd75   : > { %v4969_v53 = vadd.f32 %v11117_v11, %v4968_v16  ;;  %5775 = vmatmul.bf16.gmra.mxu3 %v5727_v30  ;;  %v5602_v16 = vor.u32 1.1754944e-38, %v5601_v35  ;;  %vm5600_vm13 = vcmp.eq.f32.partialorder %v5599_v26, 8.507059e+37  ;;  %vm5612_vm4 = vmor %vm5610_vm3, %vm5611_vm15 }
 0xd76   : > { %v6839_v14 = vpop.eup %6838  ;;  %v11172_v47 = vpop.xlane.xlu0 %4859  ;;  %v5607_v29 = vsub.f32 1.0, %v5606_v48 }
 0xd77   : > { %v11162_v19 = vpop.eup %6840  ;;  %v5591_v45 = vmul.f32 %v6839_v14, %v11125_v20  ;;  %v5404_v6 = vpop.xlane.xlu2 %5403  ;;  %v4973_v55 = vsel %vm11178_vm7, %v11117_v11, %v4969_v53  ;;  %6844 = vrcp.f32 %v11172_v47  ;;  %vm5596_vm9 = vweird.f32 %v6839_v14 }
 0xd78   : > { %v5420_v8 = vsub.f32 %v10952_v18, %v5404_v6  ;;  %v11183_v46 = vpop.eup %6842  ;;  %v5621_v3 = vmul.f32 %v11162_v19, %v11120_v38  ;;  %v4978_v23 = vsel %vm4975_vm8, %v4977_v12, %v4973_v55  ;;  %v5587_v11 = vor.u32 1.1754944e-38, %v5586_v25  ;;  %vm5597_vm12 = vmor %vm5595_vm11, %vm5596_vm9 }
 0xd79   : > { %v5592_v9 = vsub.f32 1.0, %v5591_v45  ;;  %v4979_v41 = vmul.f32 %v10938_v27, %v4978_v23  ;;  %v5608_v48 = vmul.f32 %v11150_v50, %v5607_v29  ;;  %vm5626_vm14 = vweird.f32 %v11162_v19 }
 0xd7a   : > { %v5451_v18 = vmul.f32 1.442695, %v5420_v8  ;;  %4873 = vadd.xlane.f32.xlu2 %v11183_v46  ;;  %v5622_v42 = vsub.f32 1.0, %v5621_v3  ;;  %v5588_v30 = vsel %vm5585_vm10, %v5587_v11, %v5583_v4  ;;  %v5629_v8 = vand.u32 2147483647, %v11120_v38  ;;  %vm5627_vm2 = vmor %vm5625_vm1, %vm5626_vm14 }
 0xd7b   : > { %v5593_v2 = vmul.f32 %v6839_v14, %v5592_v9  ;;  %v5118_v51 = vpack.c.bf16 %v4994_v49, %v4979_v41  ;;  %v5589_v1 = vmul.f32 %v10923_v44, %v5588_v30  ;;  %v5631_v44 = vand.u32 2147483648, %v11120_v38 }
 0xd7c   : > { %6846 = vpow2.f32 %v5451_v18  ;;  %v5623_v6 = vmul.f32 %v11162_v19, %v5622_v42  ;;  %v5609_v33 = vadd.f32 %v11150_v50, %v5608_v48  ;;  %v5616_v12 = vand.u32 2147483648, %v11047_v32 }
 0xd7d   : > { %v5594_v59 = vadd.f32 %v6839_v14, %v5593_v2  ;;  %v11200_v53 = vpop.eup %6844  ;;  %5170 = vmatmul.bf16.gmra.mxu1 %v5118_v51  ;;  %v5614_v55 = vand.u32 2147483647, %v11047_v32  ;;  %v5632_v3 = vor.u32 1.1754944e-38, %v5631_v44  ;;  %vm5630_vm5 = vcmp.eq.f32.partialorder %v5629_v8, 8.507059e+37 }
 0xd7e   : > { %v4996_v22 = vmul.f32 %v11200_v53, %v11172_v47  ;;  %v5613_v38 = vsel %vm5612_vm4, %v11150_v50, %v5609_v33  ;;  %v5617_v18 = vor.u32 1.1754944e-38, %v5616_v12  ;;  %vm5001_vm7 = vweird.f32 %v11200_v53 }
 0xd7f   : > { %v4792_v17 = vpop.xlane.xlu2 %4791  ;;  %v5598_v15 = vsel %vm5597_vm12, %v6839_v14, %v5594_v59  ;;  %vm5615_vm6 = vcmp.eq.f32.partialorder %v5614_v55, 8.507059e+37  ;;  %vm5000_vm8 = vweird.f32 %v11172_v47  ;;  %v5004_v49 = vand.u32 2147483647, %v11172_v47  ;;  %v12064_v55 = vld [vmem:[#allocation21_spill] sm:$0xff] }
 0xd80   : > { %v4809_v27 = vsub.f32 %v10959_v37, %v4792_v17  ;;  %v5603_v56 = vsel %vm5600_vm13, %v5602_v16, %v5598_v15  ;;  %v5624_v37 = vadd.f32 %v11162_v19, %v5623_v6  ;;  %v5618_v11 = vsel %vm5615_vm6, %v5617_v18, %v5613_v38  ;;  %vm11234_vm9 = vmor %vm5000_vm8, %vm5001_vm7 }
 0xd81   : > { %v5604_v45 = vmul.f32 %v10946_v39, %v5603_v56  ;;  %v4997_v39 = vsub.f32 1.0, %v4996_v22  ;;  %v5619_v16 = vmul.f32 %v10898_v60, %v5618_v11  ;;  %vm5005_vm11 = vcmp.eq.f32.partialorder %v5004_v49, 8.507059e+37 }
 0xd82   : > { %v11205_v20 = vpop.eup %6846  ;;  %v4839_v62 = vmul.f32 1.442695, %v4809_v27  ;;  %v5628_v4 = vsel %vm5627_vm2, %v11162_v19, %v5624_v37  ;;  %v5006_v19 = vand.u32 2147483648, %v11172_v47  ;;  %v4568_v48 = vadd.f32 %v10724_v36, %v10714_v0 }
 0xd83   : > { %5483 = vadd.xlane.f32.xlu1 %v11205_v20  ;;  %v5728_v14 = vpack.c.bf16 %v5604_v45, %v5589_v1  ;;  %v4998_v35 = vmul.f32 %v11200_v53, %v4997_v39  ;;  %v5633_v2 = vsel %vm5630_vm5, %v5632_v3, %v5628_v4  ;;  %v12065_v4 = vld [vmem:[#allocation14_spill] sm:$0xff] }
 0xd84   : > { %6848 = vpow2.f32 %v4839_v62  ;;  %v5634_v41 = vmul.f32 %v10944_v7, %v5633_v2  ;;  %v5007_v7 = vor.u32 1.1754944e-38, %v5006_v19  ;;  %v11244_v62 = vpop.f32.mrf.mxu3  ;;  %v3385_v3 = vadd.f32 %v12065_v4, %v12064_v55 }
 0xd85   : > { %5780 = vmatmul.bf16.gmra.mxu3 %v5728_v14  ;;  %v4999_v23 = vadd.f32 %v11200_v53, %v4998_v35 }
 0xd86   : > { %v5729_v15 = vpack.c.bf16 %v5634_v41, %v5619_v16 }
 0xd87   : > { %v4862_v25 = vpop.xlane.xlu2 %4861  ;;  %v5003_v17 = vsel %vm11234_vm9, %v11200_v53, %v4999_v23  ;;  %v5158_v53 = vpop.f32.mrf.mxu1  ;;  %v4573_v23 = vadd.f32 %v10736_v63, %v10728_v52 }
 0xd88   : > { %6850 = vrcp.f32 %v4862_v25  ;;  %v5021_v42 = vand.u32 2147483648, %v4862_v25  ;;  %v5019_v30 = vand.u32 2147483647, %v4862_v25  ;;  %vm5015_vm12 = vweird.f32 %v4862_v25 }
 0xd89   : > { %v5008_v27 = vsel %vm5005_vm11, %v5007_v7, %v5003_v17 }
 0xd8a   : > { %v11220_v9 = vpop.eup %6848  ;;  %v5022_v47 = vor.u32 1.1754944e-38, %v5021_v42  ;;  %vm5020_vm14 = vcmp.eq.f32.partialorder %v5019_v30, 8.507059e+37  ;;  %v5009_v60 = vmul.f32 %v10950_v43, %v5008_v27  ;;  %v4565_v43 = vadd.f32 %v10720_v61, %v10703_v5 }
 0xd8b   : > { %4871 = vadd.xlane.f32.xlu0 %v11220_v9 }
 0xd8c   : > { %v5197_v33 = vadd.f32 %v5158_v53, %v4565_v43  ;;  %v12068_v53 = vld [vmem:[#allocation42_spill] sm:$0xff] }
 0xd8e   : > { %v6851_v26 = vpop.eup %6850 }
 0xd8f   : > { %v5011_v32 = vmul.f32 %v6851_v26, %v4862_v25  ;;  %vm5016_vm10 = vweird.f32 %v6851_v26  ;;  %v12063_v25 = vld [vmem:[#allocation22_spill] sm:$0xff] }
 0xd90   : > { %vm5017_vm13 = vmor %vm5015_vm12, %vm5016_vm10 }
 0xd91   : > { %v5012_v59 = vsub.f32 1.0, %v5011_v32 }
 0xd93   : > { %v5013_v51 = vmul.f32 %v6851_v26, %v5012_v59 }
 0xd95   : > { %v5014_v29 = vadd.f32 %v6851_v26, %v5013_v51  ;;  %5785 = vmatmul.bf16.gmra.mxu3 %v5729_v15 }
 0xd97   : > { %v5018_v56 = vsel %vm5017_vm13, %v6851_v26, %v5014_v29  ;;  %v12066_v29 = vld [vmem:[#allocation12_spill] sm:$0xff] }
 0xd98   : > { %v5023_v1 = vsel %vm5020_vm14, %v5022_v47, %v5018_v56  ;;  %v11298_v47 = vadd.f32 %v12066_v29, %v12064_v55  ;;  %v12067_v56 = vld [vmem:[#allocation24_spill] sm:$0xff] }
 0xd99   : > { %v5024_v45 = vmul.f32 %v10962_v34, %v5023_v1  ;;  %v11304_v1 = vadd.f32 %v12067_v56, %v12064_v55 }
 0xd9b   : > { %v5119_v6 = vpack.c.bf16 %v5024_v45, %v5009_v60 }
 0xd9d   : > { %5175 = vmatmul.bf16.gmra.mxu1 %v5119_v6 }
 0xda5   : > { %v5476_v0 = vpop.xlane.xlu0 %5475 }
 0xda6   : > { %v5766_v22 = vpop.f32.mrf.mxu3  ;;  %6852 = vrcp.f32 %v5476_v0  ;;  %v5659_v30 = vand.u32 2147483647, %v5476_v0  ;;  %v5661_v17 = vand.u32 2147483648, %v5476_v0  ;;  %vm5655_vm1 = vweird.f32 %v5476_v0 }
 0xda7   : > { %v5806_v14 = vadd.f32 %v5766_v22, %v11095_v58  ;;  %v12069_v22 = vld [vmem:[#allocation55_spill] sm:$0xff] }
 0xda8   : > { %vm11316_vm3 = vcmp.eq.f32.partialorder %v5659_v30, 8.507059e+37 }
 0xda9   : > { %v5822_v37 = vmul.f32 0.25, %v5806_v14  ;;  %v5161_v44 = vpop.f32.mrf.mxu1  ;;  %v4570_v14 = vadd.f32 %v12069_v22, %v12068_v53 }
 0xdaa   : > { %v11249_v39 = vadd.f32 %v5161_v44, %v4568_v48  ;;  %v5662_v44 = vor.u32 1.1754944e-38, %v5661_v17 }
 0xdab   : > { %v11254_v34 = vadd.f32 %v5822_v37, %v12063_v25 }
 0xdac   : > { %v11263_v5 = vpop.eup %6852 }
 0xdad   : > { %v11260_v36 = vpop.xlane.xlu2 %4863  ;;  %v5651_v61 = vmul.f32 %v11263_v5, %v5476_v0  ;;  %vm5656_vm15 = vweird.f32 %v11263_v5 }
 0xdae   : > { %v5768_v8 = vpop.f32.mrf.mxu3  ;;  %6854 = vrcp.f32 %v11260_v36  ;;  %v5034_v60 = vand.u32 2147483647, %v11260_v36  ;;  %vm11312_vm2 = vmor %vm5655_vm1, %vm5656_vm15  ;;  %v5036_v43 = vand.u32 2147483648, %v11260_v36  ;;  %vm5030_vm4 = vweird.f32 %v11260_v36 }
 0xdaf   : > { %v5807_v12 = vadd.f32 %v5768_v8, %v5197_v33  ;;  %v5652_v32 = vsub.f32 1.0, %v5651_v61 }
 0xdb0   : > { %vm11338_vm6 = vcmp.eq.f32.partialorder %v5034_v60, 8.507059e+37 }
 0xdb1   : > { %v5823_v58 = vmul.f32 0.25, %v5807_v12  ;;  %v5163_v38 = vpop.f32.mrf.mxu1  ;;  %v5653_v59 = vmul.f32 %v11263_v5, %v5652_v32 }
 0xdb3   : > { %v11258_v35 = vadd.f32 %v5823_v58, %v3385_v3  ;;  %v5654_v7 = vadd.f32 %v11263_v5, %v5653_v59 }
 0xdb4   : > { %v11268_v2 = vpop.eup %6854 }
 0xdb5   : > { %v11270_v26 = vpop.xlane.xlu2 %5479  ;;  %v5026_v11 = vmul.f32 %v11268_v2, %v11260_v36  ;;  %vm5031_vm5 = vweird.f32 %v11268_v2  ;;  %v5658_v12 = vsel %vm11312_vm2, %v11263_v5, %v5654_v7  ;;  %v5037_v5 = vor.u32 1.1754944e-38, %v5036_v43 }
 0xdb6   : > { %vm11352_vm8 = vmor %vm5030_vm4, %vm5031_vm5  ;;  %vm5685_vm9 = vweird.f32 %v11270_v26  ;;  %v5689_v56 = vand.u32 2147483647, %v11270_v26  ;;  %v5691_v60 = vand.u32 2147483648, %v11270_v26 }
 0xdb7   : > { %v5027_v50 = vsub.f32 1.0, %v5026_v11  ;;  %v5199_v11 = vadd.f32 %v5163_v38, %v4570_v14  ;;  %v5663_v38 = vsel %vm11316_vm3, %v5662_v44, %v5658_v12 }
 0xdb8   : > { %vm11396_vm15 = vcmp.eq.f32.partialorder %v5689_v56, 8.507059e+37 }
 0xdb9   : > { %v5028_v15 = vmul.f32 %v11268_v2, %v5027_v50 }
 0xdbb   : > { %v5029_v33 = vadd.f32 %v11268_v2, %v5028_v15 }
 0xdbd   : > { %v5033_v15 = vsel %vm11352_vm8, %v11268_v2, %v5029_v33  ;;  %v12080_v33 = vld [vmem:[#allocation25_spill] sm:$0xff] }
 0xdd6   : > { %v11266_v18 = vpop.xlane.xlu1 %5473 }
 0xdd7   : > { %6856 = vrcp.f32 %v11266_v18  ;;  %v5646_v3 = vand.u32 2147483648, %v11266_v18  ;;  %vm5640_vm10 = vweird.f32 %v11266_v18 }
 0xdd8   : > { %6858 = vrcp.f32 %v11270_v26 }
 0xdd9   : > { %v5166_v19 = vpop.f32.mrf.mxu1  ;;  %v5647_v36 = vor.u32 1.1754944e-38, %v5646_v3  ;;  %v5692_v3 = vor.u32 1.1754944e-38, %v5691_v60 }
 0xdda   : > { %v11278_v41 = vadd.f32 %v5166_v19, %v4573_v23  ;;  %v5644_v19 = vand.u32 2147483647, %v11266_v18 }
 0xddc   : > { %vm5645_vm12 = vcmp.eq.f32.partialorder %v5644_v19, 8.507059e+37 }
 0xddd   : > { %v11280_v49 = vpop.eup %6856 }
 0xdde   : > { %v5636_v42 = vmul.f32 %v11280_v49, %v11266_v18  ;;  %v11285_v16 = vpop.xlane.xlu0 %5477  ;;  %v11287_v52 = vpop.xlane.xlu1 %4865  ;;  %vm5641_vm7 = vweird.f32 %v11280_v49 }
 0xddf   : > { %6860 = vrcp.f32 %v11285_v16  ;;  %v11290_v63 = vpop.eup %6858  ;;  %vm11362_vm11 = vmor %vm5640_vm10, %vm5641_vm7  ;;  %v5051_v43 = vand.u32 2147483648, %v11287_v52  ;;  %vm5045_vm3 = vweird.f32 %v11287_v52  ;;  %v5676_v17 = vand.u32 2147483648, %v11285_v16 }
 0xde0   : > { %v5637_v51 = vsub.f32 1.0, %v5636_v42  ;;  %6862 = vrcp.f32 %v11287_v52  ;;  %v5681_v27 = vmul.f32 %v11290_v63, %v11270_v26  ;;  %vm5686_vm13 = vweird.f32 %v11290_v63 }
 0xde1   : > { %vm11409_vm1 = vmor %vm5685_vm9, %vm5686_vm13  ;;  %vm5670_vm5 = vweird.f32 %v11285_v16 }
 0xde2   : > { %v5638_v45 = vmul.f32 %v11280_v49, %v5637_v51  ;;  %v5682_v4 = vsub.f32 1.0, %v5681_v27 }
 0xde4   : > { %v5639_v32 = vadd.f32 %v11280_v49, %v5638_v45  ;;  %v5683_v30 = vmul.f32 %v11290_v63, %v5682_v4  ;;  %v5664_v45 = vmul.f32 %v10981_v40, %v5663_v38 }
 0xde5   : > { %v11308_v6 = vpop.eup %6860  ;;  %v11346_v50 = vpop.xlane.xlu2 %5481 }
 0xde6   : > { %v11321_v25 = vpop.eup %6862  ;;  %v11326_v8 = vpop.xlane.xlu0 %4869  ;;  %v5666_v58 = vmul.f32 %v11308_v6, %v11285_v16  ;;  %v5643_v27 = vsel %vm11362_vm11, %v11280_v49, %v5639_v32  ;;  %v5684_v14 = vadd.f32 %v11290_v63, %v5683_v30  ;;  %vm5671_vm2 = vweird.f32 %v11308_v6 }
 0xde7   : > { %v5041_v0 = vmul.f32 %v11321_v25, %v11287_v52  ;;  %v11336_v61 = vpop.xlane.xlu1 %4867  ;;  %6864 = vrcp.f32 %v11326_v8  ;;  %v5648_v22 = vsel %vm5645_vm12, %v5647_v36, %v5643_v27  ;;  %vm5046_vm14 = vweird.f32 %v11321_v25  ;;  %vm11438_vm7 = vmor %vm5670_vm5, %vm5671_vm2 }
 0xde8   : > { %v5771_v42 = vpop.f32.mrf.mxu3  ;;  %6866 = vrcp.f32 %v11336_v61  ;;  %v5667_v7 = vsub.f32 1.0, %v5666_v58  ;;  %v5649_v37 = vmul.f32 %v11057_v28, %v5648_v22  ;;  %v5049_v58 = vand.u32 2147483647, %v11287_v52  ;;  %vm11419_vm4 = vmor %vm5045_vm3, %vm5046_vm14 }
 0xde9   : > { %v5042_v59 = vsub.f32 1.0, %v5041_v0  ;;  %6868 = vrcp.f32 %v11346_v50  ;;  %v5808_v18 = vadd.f32 %v5771_v42, %v11249_v39  ;;  %v5038_v39 = vsel %vm11338_vm6, %v5037_v5, %v5033_v15  ;;  %v5168_v15 = vpop.f32.mrf.mxu1 }
 0xdea   : > { %v5668_v49 = vmul.f32 %v11308_v6, %v5667_v7  ;;  %v5730_v5 = vpack.c.bf16 %v5664_v45, %v5649_v37  ;;  %v5039_v19 = vmul.f32 %v10987_v57, %v5038_v39  ;;  %v5052_v36 = vor.u32 1.1754944e-38, %v5051_v43  ;;  %v12089_v45 = vld [vmem:[#allocation43_spill] sm:$0xff]  ;;  %v12092_v37 = vld [vmem:[#allocation30_spill] sm:$0xff] }
 0xdeb   : > { %v5043_v29 = vmul.f32 %v11321_v25, %v5042_v59  ;;  %v5824_v2 = vmul.f32 0.25, %v5808_v18  ;;  %v5688_v52 = vsel %vm11409_vm1, %v11290_v63, %v5684_v14  ;;  %v5674_v7 = vand.u32 2147483647, %v11285_v16 }
 0xdec   : > { %v5669_v59 = vadd.f32 %v11308_v6, %v5668_v49  ;;  %5790 = vmatmul.bf16.gmra.mxu3 %v5730_v5  ;;  %vm5050_vm6 = vcmp.eq.f32.partialorder %v5049_v58, 8.507059e+37  ;;  %v5677_v39 = vor.u32 1.1754944e-38, %v5676_v17  ;;  %v5693_v49 = vsel %vm11396_vm15, %v5692_v3, %v5688_v52  ;;  %v12097_v17 = vld [vmem:[#allocation9_spill] sm:$0xff] }
 0xded   : > { %v11378_v53 = vpop.eup %6864  ;;  %v5044_v40 = vadd.f32 %v11321_v25, %v5043_v29  ;;  %v11394_v12 = vadd.f32 %v5824_v2, %v12080_v33  ;;  %v11423_v38 = vpop.xlane.xlu2 %4873  ;;  %v12090_v2 = vld [vmem:[#allocation58_spill] sm:$0xff]  ;;  %vm5675_vm8 = vcmp.eq.f32.partialorder %v5674_v7, 8.507059e+37  ;;  %v5694_v4 = vmul.f32 %v10991_v21, %v5693_v49 }
 0xdee   : > { %v5071_v48 = vmul.f32 %v11378_v53, %v11326_v8  ;;  %v11388_v44 = vpop.eup %6866  ;;  %6870 = vrcp.f32 %v11423_v38  ;;  %v5673_v60 = vsel %vm11438_vm7, %v11308_v6, %v5669_v59  ;;  %v4575_v22 = vadd.f32 %v12090_v2, %v12089_v45 }
 0xdef   : > { %v5056_v28 = vmul.f32 %v11388_v44, %v11336_v61  ;;  %v11403_v23 = vpop.eup %6868  ;;  %v5048_v57 = vsel %vm11419_vm4, %v11321_v25, %v5044_v40  ;;  %vm5061_vm9 = vweird.f32 %v11388_v44  ;;  %vm5076_vm10 = vweird.f32 %v11378_v53 }
 0xdf0   : > { %v5773_v0 = vpop.f32.mrf.mxu3  ;;  %v5072_v26 = vsub.f32 1.0, %v5071_v48  ;;  %v5053_v18 = vsel %vm5050_vm6, %v5052_v36, %v5048_v57  ;;  %v12091_v48 = vld [vmem:[#allocation57_spill] sm:$0xff]  ;;  %v5081_v32 = vand.u32 2147483648, %v11326_v8  ;;  %vm5060_vm11 = vweird.f32 %v11336_v61 }
 0xdf1   : > { %v5057_v51 = vsub.f32 1.0, %v5056_v28  ;;  %v5809_v30 = vadd.f32 %v5773_v0, %v5199_v11  ;;  %v5696_v11 = vmul.f32 %v11403_v23, %v11346_v50  ;;  %v5054_v56 = vmul.f32 %v11084_v10, %v5053_v18  ;;  %vm11477_vm13 = vmor %vm5060_vm11, %vm5061_vm9 }
 0xdf2   : > { %v5073_v16 = vmul.f32 %v11378_v53, %v5072_v26  ;;  %v4578_v40 = vadd.f32 %v12092_v37, %v12091_v48  ;;  %v5066_v10 = vand.u32 2147483648, %v11336_v61  ;;  %v5678_v28 = vsel %vm5675_vm8, %v5677_v39, %v5673_v60 }
 0xdf3   : > { %v5058_v25 = vmul.f32 %v11388_v44, %v5057_v51  ;;  %v5825_v63 = vmul.f32 0.25, %v5809_v30  ;;  %v5120_v43 = vpack.c.bf16 %v5054_v56, %v5039_v19  ;;  %v5064_v5 = vand.u32 2147483647, %v11336_v61 }
 0xdf4   : > { %v5074_v0 = vadd.f32 %v11378_v53, %v5073_v16  ;;  %v11468_v3 = vpop.eup %6870  ;;  %vm5075_vm12 = vweird.f32 %v11326_v8  ;;  %v5067_v21 = vor.u32 1.1754944e-38, %v5066_v10  ;;  %v5679_v51 = vmul.f32 %v11097_v24, %v5678_v28 }
 0xdf5   : > { %v11455_v14 = vadd.f32 %v5825_v63, %v11298_v47  ;;  %v5059_v6 = vadd.f32 %v11388_v44, %v5058_v25  ;;  %v5697_v47 = vsub.f32 1.0, %v5696_v11  ;;  %5180 = vmatmul.bf16.gmra.mxu1 %v5120_v43  ;;  %vm11484_vm14 = vmor %vm5075_vm12, %vm5076_vm10  ;;  %v5101_v7 = vmul.f32 %v11468_v3, %v11423_v38 }
 0xdf6   : > { %v11444_v27 = vpop.xlane.xlu1 %5483  ;;  %v5078_v11 = vsel %vm11484_vm14, %v11378_v53, %v5074_v0  ;;  %v5201_v29 = vadd.f32 %v5168_v15, %v4575_v22  ;;  %v5082_v25 = vor.u32 1.1754944e-38, %v5081_v32  ;;  %vm5065_vm15 = vcmp.eq.f32.partialorder %v5064_v5, 8.507059e+37 }
 0xdf7   : > { %6872 = vrcp.f32 %v11444_v27  ;;  %v5063_v52 = vsel %vm11477_vm13, %v11388_v44, %v5059_v6  ;;  %v5698_v24 = vmul.f32 %v11403_v23, %v5697_v47  ;;  %v5704_v18 = vand.u32 2147483647, %v11346_v50 }
 0xdf8   : > { %v5776_v33 = vpop.f32.mrf.mxu3  ;;  %v5731_v16 = vpack.c.bf16 %v5694_v4, %v5679_v51  ;;  %v5068_v56 = vsel %vm5065_vm15, %v5067_v21, %v5063_v52  ;;  %vm5701_vm3 = vweird.f32 %v11403_v23  ;;  %v5102_v49 = vsub.f32 1.0, %v5101_v7  ;;  %v12105_v52 = vld [vmem:[#allocation44_spill] sm:$0xff] }
 0xdf9   : > { %v5810_v58 = vadd.f32 %v5776_v33, %v11278_v41  ;;  %v5079_v41 = vand.u32 2147483647, %v11326_v8  ;;  %v5699_v39 = vadd.f32 %v11403_v23, %v5698_v24  ;;  %v5721_v53 = vand.u32 2147483648, %v11444_v27 }
 0xdfa   : > { %v5171_v26 = vpop.f32.mrf.mxu1  ;;  %vm5715_vm4 = vweird.f32 %v11444_v27  ;;  %v5719_v22 = vand.u32 2147483647, %v11444_v27  ;;  %v5069_v43 = vmul.f32 %v11127_v54, %v5068_v56  ;;  %vm5700_vm6 = vweird.f32 %v11346_v50 }
 0xdfb   : > { %v5826_v19 = vmul.f32 0.25, %v5810_v58  ;;  %v5202_v36 = vadd.f32 %v5171_v26, %v4578_v40  ;;  %vm5080_vm1 = vcmp.eq.f32.partialorder %v5079_v41, 8.507059e+37  ;;  %v5706_v40 = vand.u32 2147483648, %v11346_v50  ;;  %vm11526_vm7 = vmor %vm5700_vm6, %vm5701_vm3 }
 0xdfc   : > { %v5083_v2 = vsel %vm5080_vm1, %v5082_v25, %v5078_v11  ;;  %5795 = vmatmul.bf16.gmra.mxu3 %v5731_v16  ;;  %v5103_v54 = vmul.f32 %v11468_v3, %v5102_v49  ;;  %v5722_v47 = vor.u32 1.1754944e-38, %v5721_v53  ;;  %vm11531_vm8 = vcmp.eq.f32.partialorder %v5704_v18, 8.507059e+37  ;;  %v12106_v25 = vld [vmem:[#allocation11_spill] sm:$0xff] }
 0xdfd   : > { %v6873_v59 = vpop.eup %6872  ;;  %v11490_v8 = vadd.f32 %v5826_v19, %v12097_v17  ;;  %v5084_v33 = vmul.f32 %v11137_v31, %v5083_v2  ;;  %vm5720_vm9 = vcmp.eq.f32.partialorder %v5719_v22, 8.507059e+37  ;;  %v5707_v0 = vor.u32 1.1754944e-38, %v5706_v40  ;;  %v12104_v17 = vld [vmem:[#allocation54_spill] sm:$0xff]  ;;  %v12108_v22 = vld [vmem:[#allocation41_spill] sm:$0xff] }
 0xdfe   : > { %v5711_v30 = vmul.f32 %v6873_v59, %v11444_v27  ;;  %v11492_v57 = vpop.xlane.xlu0 %4871  ;;  %vm5716_vm2 = vweird.f32 %v6873_v59  ;;  %v5111_v4 = vand.u32 2147483648, %v11423_v38  ;;  %v5104_v21 = vadd.f32 %v11468_v3, %v5103_v54  ;;  %v12112_v54 = vld [vmem:[#allocation16_spill] sm:$0xff] }
 0xdff   : > { %6874 = vrcp.f32 %v11492_v57  ;;  %vm11511_vm5 = vmor %vm5715_vm4, %vm5716_vm2  ;;  %v5121_v32 = vpack.c.bf16 %v5084_v33, %v5069_v43  ;;  %v5096_v41 = vand.u32 2147483648, %v11492_v57  ;;  %vm5106_vm11 = vweird.f32 %v11468_v3 }
 0xe00   : > { %v5712_v63 = vsub.f32 1.0, %v5711_v30  ;;  %v5778_v44 = vpop.f32.mrf.mxu3  ;;  %v5094_v26 = vand.u32 2147483647, %v11492_v57  ;;  %vm5090_vm12 = vweird.f32 %v11492_v57  ;;  %v4580_v24 = vadd.f32 %v12105_v52, %v12104_v17  ;;  %v12118_v52 = vld [vmem:[#allocation18_spill] sm:$0xff] }
 0xe01   : > { %v5811_v45 = vadd.f32 %v5778_v44, %v5201_v29  ;;  %vm5105_vm13 = vweird.f32 %v11423_v38  ;;  %v5097_v29 = vor.u32 1.1754944e-38, %v5096_v41  ;;  %v5112_v18 = vor.u32 1.1754944e-38, %v5111_v4 }
 0xe02   : > { %v5713_v60 = vmul.f32 %v6873_v59, %v5712_v63  ;;  %v5173_v7 = vpop.f32.mrf.mxu1  ;;  %vm5107_vm15 = vmor %vm5105_vm13, %vm5106_vm11  ;;  %vm5095_vm1 = vcmp.eq.f32.partialorder %v5094_v26, 8.507059e+37 }
 0xe03   : > { %v5827_v48 = vmul.f32 0.25, %v5811_v45  ;;  %v5203_v16 = vadd.f32 %v5173_v7, %v4580_v24 }
 0xe04   : > { %v5714_v15 = vadd.f32 %v6873_v59, %v5713_v60 }
 0xe05   : > { %v6875_v37 = vpop.eup %6874  ;;  %v11522_v58 = vadd.f32 %v5827_v48, %v11304_v1  ;;  %v5703_v1 = vsel %vm11526_vm7, %v11403_v23, %v5699_v39  ;;  %5185 = vmatmul.bf16.gmra.mxu1 %v5121_v32  ;;  %v12107_v39 = vld [vmem:[#allocation15_spill] sm:$0xff] }
 0xe06   : > { %v5718_v6 = vsel %vm11511_vm5, %v6873_v59, %v5714_v15  ;;  %v5086_v27 = vmul.f32 %v6875_v37, %v11492_v57  ;;  %vm5091_vm10 = vweird.f32 %v6875_v37  ;;  %v5708_v23 = vsel %vm11531_vm8, %v5707_v0, %v5703_v1  ;;  %v12109_v48 = vld [vmem:[#allocation47_spill] sm:$0xff]  ;;  %v12113_v0 = vld [vmem:[#allocation10_spill] sm:$0xff] }
 0xe07   : > { %v5723_v19 = vsel %vm5720_vm9, %v5722_v47, %v5718_v6  ;;  %vm5092_vm14 = vmor %vm5090_vm12, %vm5091_vm10  ;;  %v5709_v57 = vmul.f32 %v11133_v13, %v5708_v23  ;;  %v3400_v49 = vadd.f32 %v12107_v39, %v12064_v55  ;;  %v3405_v4 = vadd.f32 %v12113_v0, %v12064_v55 }
 0xe08   : > { %v5087_v50 = vsub.f32 1.0, %v5086_v27  ;;  %v5781_v5 = vpop.f32.mrf.mxu3  ;;  %v5724_v30 = vmul.f32 %v11205_v20, %v5723_v19  ;;  %v5108_v20 = vsel %vm5107_vm15, %v11468_v3, %v5104_v21  ;;  %v12111_v27 = vld [vmem:[#allocation49_spill] sm:$0xff]  ;;  %v12114_v19 = vld [vmem:[#allocation48_spill] sm:$0xff] }
 0xe09   : > { %v5812_v42 = vadd.f32 %v5781_v5, %v5202_v36  ;;  %v5109_v36 = vand.u32 2147483647, %v11423_v38 }
 0xe0a   : > { %v5088_v59 = vmul.f32 %v6875_v37, %v5087_v50  ;;  %v5732_v44 = vpack.c.bf16 %v5724_v30, %v5709_v57  ;;  %v12117_v30 = vld [vmem:[#allocation50_spill] sm:$0xff] }
 0xe0b   : > { %v5828_v61 = vmul.f32 0.25, %v5812_v42  ;;  %vm5110_vm2 = vcmp.eq.f32.partialorder %v5109_v36, 8.507059e+37 }
 0xe0c   : > { %v5089_v51 = vadd.f32 %v6875_v37, %v5088_v59  ;;  %v5113_v45 = vsel %vm5110_vm2, %v5112_v18, %v5108_v20  ;;  %5800 = vmatmul.bf16.gmra.mxu3 %v5732_v44  ;;  %v12115_v59 = vld [vmem:[#allocation51_spill] sm:$0xff]  ;;  %v12120_v18 = vld [vmem:[#allocation56_spill] sm:$0xff] }
 0xe0d   : > { %v11553_v63 = vadd.f32 %v5828_v61, %v12106_v25  ;;  %v5114_v13 = vmul.f32 %v11183_v46, %v5113_v45  ;;  %v4588_v41 = vadd.f32 %v12115_v59, %v12114_v19  ;;  %v12116_v61 = vld [vmem:[#allocation52_spill] sm:$0xff]  ;;  %v12119_v25 = vld [vmem:[#allocation29_spill] sm:$0xff] }
 0xe0e   : > { %v5093_v11 = vsel %vm5092_vm14, %v6875_v37, %v5089_v51  ;;  %v4583_v37 = vadd.f32 %v12109_v48, %v12108_v22  ;;  %v4590_v17 = vadd.f32 %v12117_v30, %v12116_v61  ;;  %v3410_v57 = vadd.f32 %v12119_v25, %v12064_v55  ;;  %v12123_v22 = vld [vmem:[#allocation60_spill] sm:$0xff] }
 0xe0f   : > { %v5098_v56 = vsel %vm5095_vm1, %v5097_v29, %v5093_v11  ;;  %v6942_v59 = vld [vmem:[%s11711_s4 + $0x10] sm:$0x77] }
 0xe10   : > { %v5783_v38 = vpop.f32.mrf.mxu3  ;;  %v5099_v2 = vmul.f32 %v11220_v9, %v5098_v56  ;;  %v12110_v9 = vld [vmem:[#allocation45_spill] sm:$0xff]  ;;  %v11598_v30 = vperm.slane %v6942_v59, 2 }
 0xe11   : > { %v5813_v60 = vadd.f32 %v5783_v38, %v5203_v16  ;;  %v4585_v28 = vadd.f32 %v12111_v27, %v12110_v9  ;;  %v12121_v16 = vld [vmem:[#allocation59_spill] sm:$0xff]  ;;  %v12125_v27 = vld [vmem:[#allocation61_spill] sm:$0xff] }
 0xe12   : > { %v5122_v3 = vpack.c.bf16 %v5114_v13, %v5099_v2  ;;  %v4593_v44 = vadd.f32 %v12121_v16, %v12120_v18  ;;  %v12129_v16 = vld [vmem:[#allocation17_spill] sm:$0xff] }
 0xe13   : > { %v5829_v53 = vmul.f32 0.25, %v5813_v60 }
 0xe15   : > { %v11561_v15 = vadd.f32 %v5829_v53, %v3400_v49  ;;  %5190 = vmatmul.bf16.gmra.mxu1 %v5122_v3  ;;  %v12122_v49 = vld [vmem:[#allocation19_spill] sm:$0xff] }
 0xe18   : > { %v5786_v40 = vpop.f32.mrf.mxu3 }
 0xe1a   : > { %v5176_v10 = vpop.f32.mrf.mxu1 }
 0xe1b   : > { %v5204_v43 = vadd.f32 %v5176_v10, %v4583_v37 }
 0xe1d   : > { %v5814_v33 = vadd.f32 %v5786_v40, %v5204_v43  ;;  %v12124_v40 = vld [vmem:[#allocation39_spill] sm:$0xff] }
 0xe1e   : > { %v3415_v10 = vadd.f32 %v12124_v40, %v12064_v55 }
 0xe1f   : > { %v5830_v6 = vmul.f32 0.25, %v5814_v33 }
 0xe20   : > { %v5788_v50 = vpop.f32.mrf.mxu3 }
 0xe21   : > { %v11568_v47 = vadd.f32 %v5830_v6, %v12112_v54 }
 0xe22   : > { %v5178_v31 = vpop.f32.mrf.mxu1 }
 0xe23   : > { %v5205_v46 = vadd.f32 %v5178_v31, %v4585_v28 }
 0xe25   : > { %v5815_v1 = vadd.f32 %v5788_v50, %v5205_v46  ;;  %v12126_v46 = vld [vmem:[#allocation62_spill] sm:$0xff] }
 0xe26   : > { %v4600_v50 = vadd.f32 %v11244_v62, %v12126_v46 }
 0xe27   : > { %v5831_v32 = vmul.f32 0.25, %v5815_v1  ;;  %v12127_v1 = vld [vmem:[#allocation40_spill] sm:$0xff] }
 0xe29   : > { %v5847_v5 = vadd.f32 %v5831_v32, %v3405_v4 }
 0xe6f   : > { %v5791_v42 = vpop.f32.mrf.mxu3 }
 0xe72   : > { %v5181_v21 = vpop.f32.mrf.mxu1 }
 0xe73   : > { %v5206_v26 = vadd.f32 %v5181_v21, %v4588_v41  ;;  %v11592_v41 = vperm.slane %v6942_v59, 1  ;;  %v12128_v21 = vld [vmem:[#allocation53_spill] sm:$0xff] }
 0xe75   : > { %v5816_v23 = vadd.f32 %v5791_v42, %v5206_v26  ;;  %v3420_v26 = vadd.f32 %v12128_v21, %v12064_v55  ;;  %v5864_v18 = vmul.f32 %v11592_v41, %v5847_v5  ;;  %v5861_v40 = vmul.f32 %v11592_v41, %v11553_v63  ;;  %v12134_v63 = vld [vmem:[#allocation33_spill] sm:$0xff] }
 0xe76   : > { %v5857_v59 = vmul.f32 %v11592_v41, %v11394_v12  ;;  %v12138_v12 = vld [vmem:[#allocation31_spill] sm:$0xff] }
 0xe77   : > { %v5832_v51 = vmul.f32 0.25, %v5816_v23  ;;  %v5793_v36 = vpop.f32.mrf.mxu3 }
 0xe79   : > { %v5848_v24 = vadd.f32 %v5832_v51, %v12118_v52 }
 0xe7a   : > { %v5183_v7 = vpop.f32.mrf.mxu1 }
 0xe7b   : > { %v5207_v11 = vadd.f32 %v5183_v7, %v4590_v17 }
 0xe7d   : > { %v5817_v29 = vadd.f32 %v5793_v36, %v5207_v11 }
 0xe7f   : > { %v5833_v20 = vmul.f32 0.25, %v5817_v29  ;;  %v5796_v38 = vpop.f32.mrf.mxu3  ;;  %v5865_v29 = vmul.f32 %v11592_v41, %v5848_v24  ;;  %v5943_v24 = vld [vmem:[%s11712_s5 + $0x10] sm:$0xff] }
 0xe81   : > { %v5849_v56 = vadd.f32 %v5833_v20, %v3410_v57 }
 0xe82   : > { %v5186_v60 = vpop.f32.mrf.mxu1 }
 0xe83   : > { %v5208_v45 = vadd.f32 %v5186_v60, %v4593_v44  ;;  %v5866_v7 = vmul.f32 %v11592_v41, %v5849_v56  ;;  %v5944_v56 = vld [vmem:[%s11712_s5 + $0x18] sm:$0xff] }
 0xe84   : > { %5962 = vmatpush.msra.mxu1 %v5944_v56  ;;  %v12143_v56 = vld [vmem:[#allocation36_spill] sm:$0xff] }
 0xe85   : > { %v5818_v2 = vadd.f32 %v5796_v38, %v5208_v45  ;;  %v5883_v60 = vadd.f32 %v11598_v30, %v5866_v7  ;;  %v5863_v45 = vmul.f32 %v11592_v41, %v11568_v47  ;;  %v5881_v47 = vadd.f32 %v11598_v30, %v5864_v18 }
 0xe86   : > { %5963 = vmatpush.msra.mxu1 %v5943_v24  ;;  %v5874_v7 = vadd.f32 %v11598_v30, %v5857_v59 }
 0xe87   : > { %v5834_v39 = vmul.f32 0.25, %v5818_v2  ;;  %v5798_v13 = vpop.f32.mrf.mxu3  ;;  %v12130_v2 = vld [vmem:[#allocation8_spill] sm:$0xff] }
 0xe89   : > { %v5850_v53 = vadd.f32 %v5834_v39, %v12122_v49  ;;  %v5882_v49 = vadd.f32 %v11598_v30, %v5865_v29 }
 0xe8a   : > { %v5188_v3 = vpop.f32.mrf.mxu1 }
 0xe8b   : > { %v5209_v48 = vadd.f32 %v5188_v3, %v12123_v22  ;;  %v5867_v17 = vmul.f32 %v11592_v41, %v5850_v53  ;;  %v5942_v53 = vld [vmem:[%s11712_s5 + $0x8] sm:$0xff]  ;;  %v12131_v3 = vld [vmem:[#allocation34_spill] sm:$0xff] }
 0xe8c   : > { %5964 = vmatpush.msra.mxu1 %v5942_v53 }
 0xe8d   : > { %v5819_v37 = vadd.f32 %v5798_v13, %v5209_v48  ;;  %v5884_v20 = vadd.f32 %v11598_v30, %v5867_v17  ;;  %v5862_v13 = vmul.f32 %v11592_v41, %v11561_v15  ;;  %v5899_v48 = vmax.f32 %v5883_v60, 0.0 }
 0xe8e   : > { %v5880_v15 = vadd.f32 %v11598_v30, %v5863_v45  ;;  %v5855_v17 = vmul.f32 %v11592_v41, %v11254_v34  ;;  %v12141_v34 = vld [vmem:[#allocation38_spill] sm:$0xff] }
 0xe8f   : > { %v5835_v43 = vmul.f32 0.25, %v5819_v37  ;;  %v5801_v6 = vpop.f32.mrf.mxu3  ;;  %v5900_v39 = vmax.f32 %v5884_v20, 0.0  ;;  %v5941_v37 = vld [vmem:[%s11712_s5] sm:$0xff]  ;;  %v5890_v20 = vmax.f32 %v5874_v7, 0.0 }
 0xe90   : > { %5965 = vmatpush.msra.mxu1 %v5941_v37  ;;  %v5872_v18 = vadd.f32 %v11598_v30, %v5855_v17 }
 0xe91   : > { %v5851_v33 = vadd.f32 %v5835_v43, %v3415_v10  ;;  %v12132_v10 = vld [vmem:[#allocation28_spill] sm:$0xff] }
 0xe92   : > { %v5191_v9 = vpop.f32.mrf.mxu1  ;;  %v5916_v43 = vadd.f32 %v5900_v39, %v12132_v10  ;;  %v5888_v60 = vmax.f32 %v5872_v18, 0.0  ;;  %v6363_v39 = vld [vmem:[%s11712_s5 + $0x20] ss:$0 sm:$0xff] }
 0xe93   : > { %v5210_v28 = vadd.f32 %v5191_v9, %v12125_v27  ;;  %v5868_v62 = vmul.f32 %v11592_v41, %v5851_v33  ;;  %v5898_v33 = vmax.f32 %v5882_v49, 0.0  ;;  %v12133_v9 = vld [vmem:[#allocation20_spill] sm:$0xff] }
 0xe94   : > { %v5915_v27 = vadd.f32 %v5899_v48, %v12133_v9 }
 0xe95   : > { %v5820_v54 = vadd.f32 %v5801_v6, %v5210_v28  ;;  %v5885_v55 = vadd.f32 %v11598_v30, %v5868_v62  ;;  %v5860_v6 = vmul.f32 %v11592_v41, %v11522_v58  ;;  %v5897_v28 = vmax.f32 %v5881_v47, 0.0  ;;  %v12135_v58 = vld [vmem:[#allocation23_spill] sm:$0xff] }
 0xe96   : > { %v5914_v46 = vadd.f32 %v5898_v33, %v12134_v63 }
 0xe97   : > { %v5836_v31 = vmul.f32 0.25, %v5820_v54  ;;  %v5803_v19 = vpop.f32.mrf.mxu3  ;;  %v5901_v38 = vmax.f32 %v5885_v55, 0.0  ;;  %v5879_v54 = vadd.f32 %v11598_v30, %v5862_v13 }
 0xe99   : > { %v5852_v0 = vadd.f32 %v5836_v31, %v12127_v1  ;;  %v5917_v22 = vadd.f32 %v5901_v38, %v12131_v3  ;;  %v5859_v31 = vmul.f32 %v11592_v41, %v11490_v8  ;;  %v5878_v1 = vadd.f32 %v11598_v30, %v5861_v40  ;;  %v12136_v8 = vld [vmem:[#allocation13_spill] sm:$0xff] }
 0xe9a   : > { %v5193_v4 = vpop.f32.mrf.mxu1 }
 0xe9b   : > { %v5211_v32 = vadd.f32 %v5193_v4, %v4600_v50  ;;  %v5869_v23 = vmul.f32 %v11592_v41, %v5852_v0  ;;  %v5896_v50 = vmax.f32 %v5880_v15, 0.0  ;;  %v5858_v0 = vmul.f32 %v11592_v41, %v11455_v14  ;;  %v12137_v14 = vld [vmem:[#allocation32_spill] sm:$0xff] }
 0xe9c   : > { %v5913_v4 = vadd.f32 %v5897_v28, %v12135_v58  ;;  %v5894_v21 = vmax.f32 %v5878_v1, 0.0 }
 0xe9d   : > { %v5821_v42 = vadd.f32 %v5803_v19, %v5211_v32  ;;  %v5886_v36 = vadd.f32 %v11598_v30, %v5869_v23  ;;  %v5895_v32 = vmax.f32 %v5879_v54, 0.0  ;;  %v5877_v19 = vadd.f32 %v11598_v30, %v5860_v6 }
 0xe9e   : > { %v5856_v23 = vmul.f32 %v11592_v41, %v11258_v35 }
 0xe9f   : > { %v5837_v51 = vmul.f32 0.25, %v5821_v42  ;;  %v5902_v57 = vmax.f32 %v5886_v36, 0.0  ;;  %v5912_v42 = vadd.f32 %v5896_v50, %v12136_v8  ;;  %v5893_v62 = vmax.f32 %v5877_v19, 0.0 }
 0xea0   : > { %v5873_v29 = vadd.f32 %v11598_v30, %v5856_v23 }
 0xea1   : > { %v5853_v61 = vadd.f32 %v5837_v51, %v3420_v26  ;;  %v5918_v5 = vadd.f32 %v5902_v57, %v12130_v2  ;;  %v5876_v26 = vadd.f32 %v11598_v30, %v5859_v31  ;;  %v5911_v51 = vadd.f32 %v5895_v32, %v12137_v14  ;;  %v5920_v2 = vld [vmem:[%s305_s14] sm:$0xff] }
 0xea3   : > { %v5870_v52 = vmul.f32 %v11592_v41, %v5853_v61  ;;  %v5875_v61 = vadd.f32 %v11598_v30, %v5858_v0  ;;  %v5892_v36 = vmax.f32 %v5876_v26, 0.0 }
 0xea5   : > { %v5887_v11 = vadd.f32 %v11598_v30, %v5870_v52  ;;  %v5910_v52 = vadd.f32 %v5894_v21, %v12138_v12  ;;  %v5891_v35 = vmax.f32 %v5875_v61, 0.0  ;;  %v12144_v30 = vld [vmem:[#allocation35_spill] sm:$0xff] }
 0xea6   : > { %v5904_v45 = vadd.f32 %v5888_v60, %v12144_v30 }
 0xea7   : > { %v5903_v25 = vmax.f32 %v5887_v11, 0.0  ;;  %v12139_v11 = vld [vmem:[#allocation26_spill] sm:$0xff]  ;;  %v5907_v41 = vadd.f32 %v5891_v35, %v12141_v34 }
 0xea8   : > { %v5909_v55 = vadd.f32 %v5893_v62, %v12139_v11 }
 0xea9   : > { %v5919_v44 = vadd.f32 %v5903_v25, %v12129_v16  ;;  %v12140_v25 = vld [vmem:[#allocation27_spill] sm:$0xff]  ;;  %v5889_v16 = vmax.f32 %v5873_v29, 0.0 }
 0xeaa   : > { %v5908_v57 = vadd.f32 %v5892_v36, %v12140_v25 }
 0xeab   : > { %5921 = vmatpush.msra.mxu0 %v5919_v44  ;;  %v12142_v44 = vld [vmem:[#allocation37_spill] sm:$0xff]  ;;  %v5905_v24 = vadd.f32 %v5889_v16, %v12143_v56 }
 0xeac   : > { %v5906_v38 = vadd.f32 %v5890_v20, %v12142_v44 }
 0xead   : > { %5922 = vmatpush.msra.mxu0 %v5918_v5 }
 0xeaf   : > { %5923 = vmatpush.msra.mxu0 %v5917_v22 }
 0xeb1   : > { %5924 = vmatpush.msra.mxu0 %v5916_v43 }
 0xeb3   : > { %5925 = vmatpush.msra.mxu0 %v5915_v27 }
 0xeb5   : > { %5926 = vmatpush.msra.mxu0 %v5914_v46 }
 0xeb7   : > { %5927 = vmatpush.msra.mxu0 %v5913_v4 }
 0xeb9   : > { %5928 = vmatpush.msra.mxu0 %v5912_v42 }
 0xebb   : > { %5929 = vmatpush.msra.mxu0 %v5911_v51 }
 0xebd   : > { %5930 = vmatpush.msra.mxu0 %v5910_v52 }
 0xebf   : > { %5931 = vmatpush.msra.mxu0 %v5909_v55 }
 0xec1   : > { %5932 = vmatpush.msra.mxu0 %v5908_v57 }
 0xec3   : > { %5933 = vmatpush.msra.mxu0 %v5907_v41 }
 0xec5   : > { %5934 = vmatpush.msra.mxu0 %v5906_v38 }
 0xec7   : > { %5935 = vmatpush.msra.mxu0 %v5905_v24 }
 0xec9   : > { %5936 = vmatpush.msra.mxu0 %v5904_v45 }
 0xeca   : > { %5937 = vmatmul.f32.vlgmr.msra.gmra.mxu0 %v5920_v2 }
 0xf47   : > { %v5938_v5 = vpop.f32.mrf.mxu0 }
 0xf48   : > { %6286 = vmatmul.msk.f32.vlgmr.msra.gmra.mxu1 %vm421_vm0, %v5938_v5 }
 0xfc5   : > { %v5967_v49 = vpop.f32.mrf.mxu1 }
 0xfc6   : > { %v5968_v53 = vadd.f32 %v6363_v39, %v5967_v49 }
 0xfc8   : > { %5970 = vst [vmem:[%s290_s19] sm:$0xff] %v5968_v53 }
 0xfc9   : > { %7000 = shalt.err (!%p6997_p9)
}
 0xfca   : > { %6312 = dma.vmem_to_hbm [thread:$0]  (%p7120_p5), %s5985_s26, 128, %s5987_s28, %s5972_s9  }
 0xfcb PF: > { %p6324_p10 = scmp.ge.s32.totalorder %s7039_s24, 2  ;;  %s5998_s13 = sand.u32 1, %s7027_s21  }
 0xfcc   : > { %s5999_s15 = scalar_lea.sflag [#allocation4], %s5998_s13 }
 0xfcd   : > { %p6319_p11 = pnand %p6324_p10, %p7124_p6 }
 0xfcf   : > { %p6320_p12 = pneg %p6319_p11 }
 0xfd1   : > { %7022 = dma.done.wait (%p6320_p12), %s5999_s15, 128  }
 0xfd2   : > { %7024 = vsyncadd (%p6320_p12), %s5999_s15, 4294967168  ;;  %p17_p13 = scmp.ge.s32.totalorder %s7107_s27, 4   ;;  %s12145_s21 = smov %s7031_s22 }
 0xfd3   : > { %s12146_s22 = smov %s7035_s23  ;;  %s12147_s23 = smov %s7118_s30 }
 0xfd4   : > { %s12148_s24 = smov %s7107_s27  ;;  %19 = sbr.rel (!%p17_p13) target bundleno = 4 (0x4), region = 90 }
 0xfd9   :  { %6005 = vsyncpa [#allocation3], 1 }
 0xfda   :  { %6007 = vsyncpa [#allocation3 + $0x1], 1 }
 0xfdb   :  { %6008 = vsyncpa [#allocation4], 1 }
 0xfdc   :  { %6010 = vsyncpa [#allocation4 + $0x1], 1 }

</bundles_post_ra>
